<compile_context>
chip_gen: v6e
topology: v6e:2x2x1
jax: 0.10.0
libtpu: 0.0.40
codegen_flags: <defaults>
</compile_context>

<pallas_src>
import functools

import jax
import jax.numpy as jnp
import numpy as np
from jax import lax
from jax.experimental import pallas as pl
from jax.experimental.pallas import tpu as pltpu

EPS = 1e-5
_ACC_ROWS = 256                    # output rows accumulated per register-resident block
_VMEM_LIMIT = 32 * 1024 * 1024     # explicit scoped-VMEM cap (fits every generation)


# ----------------------------------------------------------------------------
# Fused [BN-affine + ReLU] -> zero-pad -> 3x3 conv (9 MXU taps) [+ residual]
# ----------------------------------------------------------------------------
def _make_bnrelu_conv3x3_kernel(h, w, fuse_residual):
    wp = w + 2          # padded row width
    q = h * wp          # rows of the conv output (includes 2 wrap-around cols per row)

    def kernel(*refs):
        if fuse_residual:
            x_ref, s_ref, b_ref, w_ref, r_ref, o_ref, xp_ref = refs
        else:
            x_ref, s_ref, b_ref, w_ref, o_ref, xp_ref = refs
            r_ref = None

        # Build the BN-ReLU-activated, zero-padded input in VMEM once per image.
        # The Cout-tile grid axis is 'arbitrary' (sequential per core), so the scratch
        # stays valid for the remaining Cout tiles of the same image.
        @pl.when(pl.program_id(1) == 0)
        def _():
            xp_ref[...] = jnp.zeros_like(xp_ref)
            x2d = x_ref.at[0]                                  # (h*w, cin) view
            for y in range(h):                                 # static unroll
                row = x2d[pl.ds(y * w, w), :]
                xp_ref[pl.ds((y + 1) * wp + 1, w), :] = jnp.maximum(
                    row * s_ref[...] + b_ref[...], 0.0)

        out2d = o_ref.at[0]                                    # (q, tc) view
        tc = o_ref.shape[2]

        # conv: out[r] = sum_k xp[r + ky*wp + kx] @ w[k]; accumulate in row blocks so
        # the f32 accumulator stays in vregs (no whole-image spill).
        for q0 in range(0, q, _ACC_ROWS):
            rows = min(_ACC_ROWS, q - q0)
            acc = jnp.zeros((rows, tc), jnp.float32)
            for k in range(9):
                ky, kx = divmod(k, 3)
                patch = xp_ref[pl.ds(q0 + ky * wp + kx, rows), :].astype(jnp.bfloat16)
                acc = acc + jnp.dot(patch, w_ref[k],
                                    preferred_element_type=jnp.float32)
            out2d[pl.ds(q0, rows), :] = acc

        if fuse_residual:
            # residual add fused into the conv output (valid columns only)
            r2d = r_ref.at[0]                                  # (h*w, tc) view
            for y in range(h):                                 # static unroll
                out2d[pl.ds(y * wp, w), :] += r2d[pl.ds(y * w, w), :]

    return kernel


def bnrelu_conv3x3(x, scale, shift, w_hwio, stride=1, residual=None):
    """relu(x*scale + shift) -> 3x3 conv (pad=1, no bias) [-> + residual].

    x: (N,H,W,Cin) f32, w_hwio: (3,3,Cin,Cout), residual (stride==1 only): (N,H,W,Cout).
    Returns (N, H/stride, W/stride, Cout) f32.
    """
    n, h, w, cin = x.shape
    cout = w_hwio.shape[-1]
    assert residual is None or stride == 1
    wp, q, qp = w + 2, h * (w + 2), (h + 3) * (w + 2)

    x_flat = x.reshape(n, h * w, cin).astype(jnp.float32)
    s_row = scale.reshape(1, cin).astype(jnp.float32)
    b_row = shift.reshape(1, cin).astype(jnp.float32)
    w_flat = w_hwio.reshape(9, cin, cout).astype(jnp.bfloat16)

    tc = 128 if cout % 128 == 0 else cout     # lane-dense Cout tiles when possible
    nct = cout // tc

    in_specs = [
        pl.BlockSpec((1, h * w, cin), lambda i, j: (i, 0, 0)),
        pl.BlockSpec((1, cin), lambda i, j: (0, 0)),
        pl.BlockSpec((1, cin), lambda i, j: (0, 0)),
        pl.BlockSpec((9, cin, tc), lambda i, j: (0, 0, j)),
    ]
    args = [x_flat, s_row, b_row, w_flat]
    if residual is not None:
        in_specs.append(pl.BlockSpec((1, h * w, tc), lambda i, j: (i, 0, j)))
        args.append(residual.reshape(n, h * w, cout).astype(jnp.float32))

    out = pl.pallas_call(
        _make_bnrelu_conv3x3_kernel(h, w, residual is not None),
        out_shape=jax.ShapeDtypeStruct((n, q, cout), jnp.float32),
        grid=(n, nct),
        in_specs=in_specs,
        out_specs=pl.BlockSpec((1, q, tc), lambda i, j: (i, 0, j)),
        scratch_shapes=[pltpu.VMEM((qp, cin), jnp.float32)],
        compiler_params=pltpu.CompilerParams(
            dimension_semantics=("parallel", "arbitrary"),
            vmem_limit_bytes=_VMEM_LIMIT),
    )(*args)

    out = out.reshape(n, h, wp, cout)[:, :, :w, :]    # drop the 2 wrap-around columns
    if stride != 1:
        # TODO(synk): stride>1 still computes the stride-1 output then subsamples
        # (4x extra MXU work for stride-2); a direct strided-patch kernel would remove it.
        out = out[:, ::stride, ::stride, :]
    return out


# ----------------------------------------------------------------------------
# Fused [BN-affine + ReLU] -> 1x1 conv (projection shortcut)
# ----------------------------------------------------------------------------
def _bnrelu_conv1x1_kernel(x_ref, s_ref, b_ref, w_ref, o_ref):
    act = jnp.maximum(x_ref[0] * s_ref[...] + b_ref[...], 0.0).astype(jnp.bfloat16)
    o_ref[0] = jnp.dot(act, w_ref[...], preferred_element_type=jnp.float32)


def bnrelu_conv1x1(x, scale, shift, w_hwio):
    """relu(x*scale + shift) -> 1x1 conv (no bias).  x: (N,Ho,Wo,Cin)."""
    n, ho, wo, cin = x.shape
    cout = w_hwio.shape[-1]
    p = ho * wo
    out = pl.pallas_call(
        _bnrelu_conv1x1_kernel,
        out_shape=jax.ShapeDtypeStruct((n, p, cout), jnp.float32),
        grid=(n,),
        in_specs=[
            pl.BlockSpec((1, p, cin), lambda i: (i, 0, 0)),
            pl.BlockSpec((1, cin), lambda i: (0, 0)),
            pl.BlockSpec((1, cin), lambda i: (0, 0)),
            pl.BlockSpec((cin, cout), lambda i: (0, 0)),
        ],
        out_specs=pl.BlockSpec((1, p, cout), lambda i: (i, 0, 0)),
        compiler_params=pltpu.CompilerParams(
            dimension_semantics=("parallel",),
            vmem_limit_bytes=_VMEM_LIMIT),
    )(x.reshape(n, p, cin).astype(jnp.float32),
      scale.reshape(1, cin).astype(jnp.float32),
      shift.reshape(1, cin).astype(jnp.float32),
      w_hwio.reshape(cin, cout).astype(jnp.bfloat16))
    return out.reshape(n, ho, wo, cout)


# ----------------------------------------------------------------------------
# BatchNorm (training-mode batch statistics) folded to a per-channel affine
# ----------------------------------------------------------------------------
def _bn_fold(y_nhwc, gamma, beta, eps=EPS):
    # TODO(synk): this per-channel batch-stat reduction is plain JAX (one extra HBM read
    # of the activation); it could be fused into the producing conv kernel's epilogue.
    mean = jnp.mean(y_nhwc, axis=(0, 1, 2))
    var = jnp.var(y_nhwc, axis=(0, 1, 2))     # biased, matches torch BN training normalization
    scale = gamma * lax.rsqrt(var + eps)
    shift = beta - mean * scale
    return scale, shift


# ----------------------------------------------------------------------------
# WideBasicBlock forward (Pallas) and pure-JAX reference
# ----------------------------------------------------------------------------
def wide_basic_block_forward(x_nchw, params, stride):
    equal_in_out = "w_sc" not in params
    x = jnp.transpose(x_nchw, (0, 2, 3, 1)).astype(jnp.float32)      # NCHW -> NHWC

    s1, b1 = _bn_fold(x, params["gamma1"], params["beta1"])

    # bn1 -> relu1 -> conv1, fused in one kernel
    c1 = bnrelu_conv3x3(x, s1, b1, params["w1"], stride=stride)

    s2, b2 = _bn_fold(c1, params["gamma2"], params["beta2"])

    if equal_in_out:
        shortcut = x                          # raw (pre-activation) input
    else:
        # convShortcut consumes the *activated* input; elementwise BN/ReLU commutes with
        # spatial subsampling, so feed the strided raw input to the fused 1x1 kernel.
        shortcut = bnrelu_conv1x1(x[:, ::stride, ::stride, :], s1, b1, params["w_sc"])

    # bn2 -> relu2 -> conv2 -> (+ shortcut), fused in one kernel
    out = bnrelu_conv3x3(c1, s2, b2, params["w2"], stride=1, residual=shortcut)
    # TODO(synk): dropout (droprate > 0) is not implemented; module default dropRate=0.0.
    return jnp.transpose(out, (0, 3, 1, 2))                           # NHWC -> NCHW


def wide_basic_block_reference(x_nchw, params, stride):
    """Pure-JAX reference (lax.conv) for correctness checking."""
    def conv(x, w, s, pad):
        return lax.conv_general_dilated(
            x, w, window_strides=(s, s), padding=pad,
            dimension_numbers=("NHWC", "HWIO", "NHWC"),
            precision=lax.Precision.HIGHEST)

    def bn(y, g, b):
        m = jnp.mean(y, axis=(0, 1, 2))
        v = jnp.var(y, axis=(0, 1, 2))
        return (y - m) * lax.rsqrt(v + EPS) * g + b

    x = jnp.transpose(x_nchw, (0, 2, 3, 1)).astype(jnp.float32)
    a1 = jax.nn.relu(bn(x, params["gamma1"], params["beta1"]))
    out = jax.nn.relu(bn(conv(a1, params["w1"], stride, ((1, 1), (1, 1))),
                         params["gamma2"], params["beta2"]))
    out = conv(out, params["w2"], 1, ((1, 1), (1, 1)))
    if "w_sc" in params:
        shortcut = conv(a1, params["w_sc"], stride, ((0, 0), (0, 0)))
    else:
        shortcut = x
    return jnp.transpose(shortcut + out, (0, 3, 1, 2))


def init_params(key, in_planes, out_planes):
    ks = jax.random.split(key, 7)
    p = {
        "gamma1": 1.0 + 0.1 * jax.random.normal(ks[0], (in_planes,), jnp.float32),
        "beta1": 0.1 * jax.random.normal(ks[1], (in_planes,), jnp.float32),
        "w1": 0.1 * jax.random.normal(ks[2], (3, 3, in_planes, out_planes), jnp.float32),
        "gamma2": 1.0 + 0.1 * jax.random.normal(ks[3], (out_planes,), jnp.float32),
        "beta2": 0.1 * jax.random.normal(ks[4], (out_planes,), jnp.float32),
        "w2": 0.1 * jax.random.normal(ks[5], (3, 3, out_planes, out_planes), jnp.float32),
    }
    if in_planes != out_planes:   # matches torch: convShortcut exists iff not equalInOut
        p["w_sc"] = 0.1 * jax.random.normal(ks[6], (1, 1, in_planes, out_planes), jnp.float32)
    return p


if __name__ == "__main__":
    key = jax.random.PRNGKey(0)
    kx1, kp1, kx2, kp2 = jax.random.split(key, 4)

    # Case 1: equalInOut (identity shortcut), stride=1.  batch=2, channels=4, spatial=16.
    x1 = jax.random.normal(kx1, (2, 4, 16, 16), jnp.float32)
    p1 = init_params(kp1, 4, 4)
    fwd1 = jax.jit(functools.partial(wide_basic_block_forward, stride=1))
    y1 = jax.block_until_ready(fwd1(x1, p1))
    r1 = wide_basic_block_reference(x1, p1, 1)
    np.testing.assert_allclose(np.asarray(y1), np.asarray(r1), rtol=2e-2, atol=2e-2)

    # Case 2: projection shortcut (in_planes != out_planes), stride=2.
    x2 = jax.random.normal(kx2, (2, 4, 16, 16), jnp.float32)
    p2 = init_params(kp2, 4, 8)
    fwd2 = jax.jit(functools.partial(wide_basic_block_forward, stride=2))
    y2 = jax.block_until_ready(fwd2(x2, p2))
    r2 = wide_basic_block_reference(x2, p2, 2)
    np.testing.assert_allclose(np.asarray(y2), np.asarray(r2), rtol=2e-2, atol=2e-2)

    print("KERNEL_OK")
</pallas_src>

<mosaic_0001>
module attributes {stable_mosaic.version = 11 : i64} {
  func.func @kernel(%arg0: i32, %arg1: i32, %arg2: memref<1x256x4xf32, #tpu.memory_space<vmem>>, %arg3: memref<1x4xf32, #tpu.memory_space<vmem>>, %arg4: memref<1x4xf32, #tpu.memory_space<vmem>>, %arg5: memref<9x4x4xbf16, #tpu.memory_space<vmem>>, %arg6: memref<1x288x4xf32, #tpu.memory_space<vmem>>, %arg7: memref<342x4xf32, #tpu.memory_space<vmem>>) attributes {dimension_semantics = [#tpu.dimension_semantics<parallel>, #tpu.dimension_semantics<arbitrary>], iteration_bounds = array<i64: 2, 1>, scalar_prefetch = 0 : i64, scratch_operands = 1 : i64, tpu.core_type = #tpu.core_type<tc>, window_params = [{transform_indices = @transform_0, window_bounds = array<i64: 1, 256, 4>}, {pipeline_mode = #tpu.pipeline_mode<synchronous>, transform_indices = @transform_1, window_bounds = array<i64: 1, 4>}, {pipeline_mode = #tpu.pipeline_mode<synchronous>, transform_indices = @transform_2, window_bounds = array<i64: 1, 4>}, {transform_indices = @transform_3, window_bounds = array<i64: 9, 4, 4>}, {transform_indices = @transform_4, window_bounds = array<i64: 1, 288, 4>}]} {
    %c0_i32 = arith.constant 0 : i32
    %0 = arith.cmpi eq, %arg1, %c0_i32 : i32
    %1 = arith.extui %0 : i1 to i32
    %c0_i32_0 = arith.constant 0 : i32
    %2 = arith.cmpi ne, %1, %c0_i32_0 : i32
    scf.if %2 {
      %cst_96 = arith.constant 0.000000e+00 : f32
      %119 = vector.broadcast %cst_96 : f32 to vector<342x4xf32>
      %c0_97 = arith.constant 0 : index
      %c0_98 = arith.constant 0 : index
      %120 = vector.load %arg7[%c0_97, %c0_98] : memref<342x4xf32, #tpu.memory_space<vmem>>, vector<342x4xf32>
      tpu.vector_store %arg7[%c0_97, %c0_98], %119 {strides = array<i32>} : memref<342x4xf32, #tpu.memory_space<vmem>>, vector<342x4xf32>,
      %c0_i32_99 = arith.constant 0 : i32
      %c0_i32_100 = arith.constant 0 : i32
      %c0_i32_101 = arith.constant 0 : i32
      %121 = tpu.memref_slice %arg2[%c0_i32_99, %c0_i32_100, %c0_i32_101] : memref<1x256x4xf32, #tpu.memory_space<vmem>> -> memref<1x256x4xf32, #tpu.memory_space<vmem>>
      %122 = tpu.memref_squeeze %121 : memref<1x256x4xf32, #tpu.memory_space<vmem>> -> memref<256x4xf32, #tpu.memory_space<vmem>>
      %c0_102 = arith.constant 0 : index
      %c0_103 = arith.constant 0 : index
      %123 = vector.load %122[%c0_102, %c0_103] : memref<256x4xf32, #tpu.memory_space<vmem>>, vector<16x4xf32>
      %c0_104 = arith.constant 0 : index
      %c0_105 = arith.constant 0 : index
      %124 = vector.load %arg3[%c0_104, %c0_105] : memref<1x4xf32, #tpu.memory_space<vmem>>, vector<1x4xf32>
      %125 = vector.broadcast %124 : vector<1x4xf32> to vector<16x4xf32>
      %126 = arith.mulf %123, %125 : vector<16x4xf32>
      %c0_106 = arith.constant 0 : index
      %c0_107 = arith.constant 0 : index
      %127 = vector.load %arg4[%c0_106, %c0_107] : memref<1x4xf32, #tpu.memory_space<vmem>>, vector<1x4xf32>
      %128 = vector.broadcast %127 : vector<1x4xf32> to vector<16x4xf32>
      %129 = arith.addf %126, %128 : vector<16x4xf32>
      %cst_108 = arith.constant 0.000000e+00 : f32
      %130 = vector.broadcast %cst_108 : f32 to vector<16x4xf32>
      %131 = arith.maximumf %129, %130 : vector<16x4xf32>
      %c19_109 = arith.constant 19 : index
      %c0_110 = arith.constant 0 : index
      %132 = vector.load %arg7[%c19_109, %c0_110] : memref<342x4xf32, #tpu.memory_space<vmem>>, vector<16x4xf32>
      tpu.vector_store %arg7[%c19_109, %c0_110], %131 {strides = array<i32>} : memref<342x4xf32, #tpu.memory_space<vmem>>, vector<16x4xf32>,
      %c0_i32_111 = arith.constant 0 : i32
      %c0_i32_112 = arith.constant 0 : i32
      %c0_i32_113 = arith.constant 0 : i32
      %133 = tpu.memref_slice %arg2[%c0_i32_111, %c0_i32_112, %c0_i32_113] : memref<1x256x4xf32, #tpu.memory_space<vmem>> -> memref<1x256x4xf32, #tpu.memory_space<vmem>>
      %134 = tpu.memref_squeeze %133 : memref<1x256x4xf32, #tpu.memory_space<vmem>> -> memref<256x4xf32, #tpu.memory_space<vmem>>
      %c16 = arith.constant 16 : index
      %c0_114 = arith.constant 0 : index
      %135 = vector.load %134[%c16, %c0_114] : memref<256x4xf32, #tpu.memory_space<vmem>>, vector<16x4xf32>
      %c0_115 = arith.constant 0 : index
      %c0_116 = arith.constant 0 : index
      %136 = vector.load %arg3[%c0_115, %c0_116] : memref<1x4xf32, #tpu.memory_space<vmem>>, vector<1x4xf32>
      %137 = vector.broadcast %136 : vector<1x4xf32> to vector<16x4xf32>
      %138 = arith.mulf %135, %137 : vector<16x4xf32>
      %c0_117 = arith.constant 0 : index
      %c0_118 = arith.constant 0 : index
      %139 = vector.load %arg4[%c0_117, %c0_118] : memref<1x4xf32, #tpu.memory_space<vmem>>, vector<1x4xf32>
      %140 = vector.broadcast %139 : vector<1x4xf32> to vector<16x4xf32>
      %141 = arith.addf %138, %140 : vector<16x4xf32>
      %cst_119 = arith.constant 0.000000e+00 : f32
      %142 = vector.broadcast %cst_119 : f32 to vector<16x4xf32>
      %143 = arith.maximumf %141, %142 : vector<16x4xf32>
      %c37_120 = arith.constant 37 : index
      %c0_121 = arith.constant 0 : index
      %144 = vector.load %arg7[%c37_120, %c0_121] : memref<342x4xf32, #tpu.memory_space<vmem>>, vector<16x4xf32>
      tpu.vector_store %arg7[%c37_120, %c0_121], %143 {strides = array<i32>} : memref<342x4xf32, #tpu.memory_space<vmem>>, vector<16x4xf32>,
      %c0_i32_122 = arith.constant 0 : i32
      %c0_i32_123 = arith.constant 0 : i32
      %c0_i32_124 = arith.constant 0 : i32
      %145 = tpu.memref_slice %arg2[%c0_i32_122, %c0_i32_123, %c0_i32_124] : memref<1x256x4xf32, #tpu.memory_space<vmem>> -> memref<1x256x4xf32, #tpu.memory_space<vmem>>
      %146 = tpu.memref_squeeze %145 : memref<1x256x4xf32, #tpu.memory_space<vmem>> -> memref<256x4xf32, #tpu.memory_space<vmem>>
      %c32 = arith.constant 32 : index
      %c0_125 = arith.constant 0 : index
      %147 = vector.load %146[%c32, %c0_125] : memref<256x4xf32, #tpu.memory_space<vmem>>, vector<16x4xf32>
      %c0_126 = arith.constant 0 : index
      %c0_127 = arith.constant 0 : index
      %148 = vector.load %arg3[%c0_126, %c0_127] : memref<1x4xf32, #tpu.memory_space<vmem>>, vector<1x4xf32>
      %149 = vector.broadcast %148 : vector<1x4xf32> to vector<16x4xf32>
      %150 = arith.mulf %147, %149 : vector<16x4xf32>
      %c0_128 = arith.constant 0 : index
      %c0_129 = arith.constant 0 : index
      %151 = vector.load %arg4[%c0_128, %c0_129] : memref<1x4xf32, #tpu.memory_space<vmem>>, vector<1x4xf32>
      %152 = vector.broadcast %151 : vector<1x4xf32> to vector<16x4xf32>
      %153 = arith.addf %150, %152 : vector<16x4xf32>
      %cst_130 = arith.constant 0.000000e+00 : f32
      %154 = vector.broadcast %cst_130 : f32 to vector<16x4xf32>
      %155 = arith.maximumf %153, %154 : vector<16x4xf32>
      %c55 = arith.constant 55 : index
      %c0_131 = arith.constant 0 : index
      %156 = vector.load %arg7[%c55, %c0_131] : memref<342x4xf32, #tpu.memory_space<vmem>>, vector<16x4xf32>
      tpu.vector_store %arg7[%c55, %c0_131], %155 {strides = array<i32>} : memref<342x4xf32, #tpu.memory_space<vmem>>, vector<16x4xf32>,
      %c0_i32_132 = arith.constant 0 : i32
      %c0_i32_133 = arith.constant 0 : i32
      %c0_i32_134 = arith.constant 0 : i32
      %157 = tpu.memref_slice %arg2[%c0_i32_132, %c0_i32_133, %c0_i32_134] : memref<1x256x4xf32, #tpu.memory_space<vmem>> -> memref<1x256x4xf32, #tpu.memory_space<vmem>>
      %158 = tpu.memref_squeeze %157 : memref<1x256x4xf32, #tpu.memory_space<vmem>> -> memref<256x4xf32, #tpu.memory_space<vmem>>
      %c48 = arith.constant 48 : index
      %c0_135 = arith.constant 0 : index
      %159 = vector.load %158[%c48, %c0_135] : memref<256x4xf32, #tpu.memory_space<vmem>>, vector<16x4xf32>
      %c0_136 = arith.constant 0 : index
      %c0_137 = arith.constant 0 : index
      %160 = vector.load %arg3[%c0_136, %c0_137] : memref<1x4xf32, #tpu.memory_space<vmem>>, vector<1x4xf32>
      %161 = vector.broadcast %160 : vector<1x4xf32> to vector<16x4xf32>
      %162 = arith.mulf %159, %161 : vector<16x4xf32>
      %c0_138 = arith.constant 0 : index
      %c0_139 = arith.constant 0 : index
      %163 = vector.load %arg4[%c0_138, %c0_139] : memref<1x4xf32, #tpu.memory_space<vmem>>, vector<1x4xf32>
      %164 = vector.broadcast %163 : vector<1x4xf32> to vector<16x4xf32>
      %165 = arith.addf %162, %164 : vector<16x4xf32>
      %cst_140 = arith.constant 0.000000e+00 : f32
      %166 = vector.broadcast %cst_140 : f32 to vector<16x4xf32>
      %167 = arith.maximumf %165, %166 : vector<16x4xf32>
      %c73 = arith.constant 73 : index
      %c0_141 = arith.constant 0 : index
      %168 = vector.load %arg7[%c73, %c0_141] : memref<342x4xf32, #tpu.memory_space<vmem>>, vector<16x4xf32>
      tpu.vector_store %arg7[%c73, %c0_141], %167 {strides = array<i32>} : memref<342x4xf32, #tpu.memory_space<vmem>>, vector<16x4xf32>,
      %c0_i32_142 = arith.constant 0 : i32
      %c0_i32_143 = arith.constant 0 : i32
      %c0_i32_144 = arith.constant 0 : i32
      %169 = tpu.memref_slice %arg2[%c0_i32_142, %c0_i32_143, %c0_i32_144] : memref<1x256x4xf32, #tpu.memory_space<vmem>> -> memref<1x256x4xf32, #tpu.memory_space<vmem>>
      %170 = tpu.memref_squeeze %169 : memref<1x256x4xf32, #tpu.memory_space<vmem>> -> memref<256x4xf32, #tpu.memory_space<vmem>>
      %c64 = arith.constant 64 : index
      %c0_145 = arith.constant 0 : index
      %171 = vector.load %170[%c64, %c0_145] : memref<256x4xf32, #tpu.memory_space<vmem>>, vector<16x4xf32>
      %c0_146 = arith.constant 0 : index
      %c0_147 = arith.constant 0 : index
      %172 = vector.load %arg3[%c0_146, %c0_147] : memref<1x4xf32, #tpu.memory_space<vmem>>, vector<1x4xf32>
      %173 = vector.broadcast %172 : vector<1x4xf32> to vector<16x4xf32>
      %174 = arith.mulf %171, %173 : vector<16x4xf32>
      %c0_148 = arith.constant 0 : index
      %c0_149 = arith.constant 0 : index
      %175 = vector.load %arg4[%c0_148, %c0_149] : memref<1x4xf32, #tpu.memory_space<vmem>>, vector<1x4xf32>
      %176 = vector.broadcast %175 : vector<1x4xf32> to vector<16x4xf32>
      %177 = arith.addf %174, %176 : vector<16x4xf32>
      %cst_150 = arith.constant 0.000000e+00 : f32
      %178 = vector.broadcast %cst_150 : f32 to vector<16x4xf32>
      %179 = arith.maximumf %177, %178 : vector<16x4xf32>
      %c91 = arith.constant 91 : index
      %c0_151 = arith.constant 0 : index
      %180 = vector.load %arg7[%c91, %c0_151] : memref<342x4xf32, #tpu.memory_space<vmem>>, vector<16x4xf32>
      tpu.vector_store %arg7[%c91, %c0_151], %179 {strides = array<i32>} : memref<342x4xf32, #tpu.memory_space<vmem>>, vector<16x4xf32>,
      %c0_i32_152 = arith.constant 0 : i32
      %c0_i32_153 = arith.constant 0 : i32
      %c0_i32_154 = arith.constant 0 : i32
      %181 = tpu.memref_slice %arg2[%c0_i32_152, %c0_i32_153, %c0_i32_154] : memref<1x256x4xf32, #tpu.memory_space<vmem>> -> memref<1x256x4xf32, #tpu.memory_space<vmem>>
      %182 = tpu.memref_squeeze %181 : memref<1x256x4xf32, #tpu.memory_space<vmem>> -> memref<256x4xf32, #tpu.memory_space<vmem>>
      %c80 = arith.constant 80 : index
      %c0_155 = arith.constant 0 : index
      %183 = vector.load %182[%c80, %c0_155] : memref<256x4xf32, #tpu.memory_space<vmem>>, vector<16x4xf32>
      %c0_156 = arith.constant 0 : index
      %c0_157 = arith.constant 0 : index
      %184 = vector.load %arg3[%c0_156, %c0_157] : memref<1x4xf32, #tpu.memory_space<vmem>>, vector<1x4xf32>
      %185 = vector.broadcast %184 : vector<1x4xf32> to vector<16x4xf32>
      %186 = arith.mulf %183, %185 : vector<16x4xf32>
      %c0_158 = arith.constant 0 : index
      %c0_159 = arith.constant 0 : index
      %187 = vector.load %arg4[%c0_158, %c0_159] : memref<1x4xf32, #tpu.memory_space<vmem>>, vector<1x4xf32>
      %188 = vector.broadcast %187 : vector<1x4xf32> to vector<16x4xf32>
      %189 = arith.addf %186, %188 : vector<16x4xf32>
      %cst_160 = arith.constant 0.000000e+00 : f32
      %190 = vector.broadcast %cst_160 : f32 to vector<16x4xf32>
      %191 = arith.maximumf %189, %190 : vector<16x4xf32>
      %c109 = arith.constant 109 : index
      %c0_161 = arith.constant 0 : index
      %192 = vector.load %arg7[%c109, %c0_161] : memref<342x4xf32, #tpu.memory_space<vmem>>, vector<16x4xf32>
      tpu.vector_store %arg7[%c109, %c0_161], %191 {strides = array<i32>} : memref<342x4xf32, #tpu.memory_space<vmem>>, vector<16x4xf32>,
      %c0_i32_162 = arith.constant 0 : i32
      %c0_i32_163 = arith.constant 0 : i32
      %c0_i32_164 = arith.constant 0 : i32
      %193 = tpu.memref_slice %arg2[%c0_i32_162, %c0_i32_163, %c0_i32_164] : memref<1x256x4xf32, #tpu.memory_space<vmem>> -> memref<1x256x4xf32, #tpu.memory_space<vmem>>
      %194 = tpu.memref_squeeze %193 : memref<1x256x4xf32, #tpu.memory_space<vmem>> -> memref<256x4xf32, #tpu.memory_space<vmem>>
      %c96 = arith.constant 96 : index
      %c0_165 = arith.constant 0 : index
      %195 = vector.load %194[%c96, %c0_165] : memref<256x4xf32, #tpu.memory_space<vmem>>, vector<16x4xf32>
      %c0_166 = arith.constant 0 : index
      %c0_167 = arith.constant 0 : index
      %196 = vector.load %arg3[%c0_166, %c0_167] : memref<1x4xf32, #tpu.memory_space<vmem>>, vector<1x4xf32>
      %197 = vector.broadcast %196 : vector<1x4xf32> to vector<16x4xf32>
      %198 = arith.mulf %195, %197 : vector<16x4xf32>
      %c0_168 = arith.constant 0 : index
      %c0_169 = arith.constant 0 : index
      %199 = vector.load %arg4[%c0_168, %c0_169] : memref<1x4xf32, #tpu.memory_space<vmem>>, vector<1x4xf32>
      %200 = vector.broadcast %199 : vector<1x4xf32> to vector<16x4xf32>
      %201 = arith.addf %198, %200 : vector<16x4xf32>
      %cst_170 = arith.constant 0.000000e+00 : f32
      %202 = vector.broadcast %cst_170 : f32 to vector<16x4xf32>
      %203 = arith.maximumf %201, %202 : vector<16x4xf32>
      %c127 = arith.constant 127 : index
      %c0_171 = arith.constant 0 : index
      %204 = vector.load %arg7[%c127, %c0_171] : memref<342x4xf32, #tpu.memory_space<vmem>>, vector<16x4xf32>
      tpu.vector_store %arg7[%c127, %c0_171], %203 {strides = array<i32>} : memref<342x4xf32, #tpu.memory_space<vmem>>, vector<16x4xf32>,
      %c0_i32_172 = arith.constant 0 : i32
      %c0_i32_173 = arith.constant 0 : i32
      %c0_i32_174 = arith.constant 0 : i32
      %205 = tpu.memref_slice %arg2[%c0_i32_172, %c0_i32_173, %c0_i32_174] : memref<1x256x4xf32, #tpu.memory_space<vmem>> -> memref<1x256x4xf32, #tpu.memory_space<vmem>>
      %206 = tpu.memref_squeeze %205 : memref<1x256x4xf32, #tpu.memory_space<vmem>> -> memref<256x4xf32, #tpu.memory_space<vmem>>
      %c112 = arith.constant 112 : index
      %c0_175 = arith.constant 0 : index
      %207 = vector.load %206[%c112, %c0_175] : memref<256x4xf32, #tpu.memory_space<vmem>>, vector<16x4xf32>
      %c0_176 = arith.constant 0 : index
      %c0_177 = arith.constant 0 : index
      %208 = vector.load %arg3[%c0_176, %c0_177] : memref<1x4xf32, #tpu.memory_space<vmem>>, vector<1x4xf32>
      %209 = vector.broadcast %208 : vector<1x4xf32> to vector<16x4xf32>
      %210 = arith.mulf %207, %209 : vector<16x4xf32>
      %c0_178 = arith.constant 0 : index
      %c0_179 = arith.constant 0 : index
      %211 = vector.load %arg4[%c0_178, %c0_179] : memref<1x4xf32, #tpu.memory_space<vmem>>, vector<1x4xf32>
      %212 = vector.broadcast %211 : vector<1x4xf32> to vector<16x4xf32>
      %213 = arith.addf %210, %212 : vector<16x4xf32>
      %cst_180 = arith.constant 0.000000e+00 : f32
      %214 = vector.broadcast %cst_180 : f32 to vector<16x4xf32>
      %215 = arith.maximumf %213, %214 : vector<16x4xf32>
      %c145 = arith.constant 145 : index
      %c0_181 = arith.constant 0 : index
      %216 = vector.load %arg7[%c145, %c0_181] : memref<342x4xf32, #tpu.memory_space<vmem>>, vector<16x4xf32>
      tpu.vector_store %arg7[%c145, %c0_181], %215 {strides = array<i32>} : memref<342x4xf32, #tpu.memory_space<vmem>>, vector<16x4xf32>,
      %c0_i32_182 = arith.constant 0 : i32
      %c0_i32_183 = arith.constant 0 : i32
      %c0_i32_184 = arith.constant 0 : i32
      %217 = tpu.memref_slice %arg2[%c0_i32_182, %c0_i32_183, %c0_i32_184] : memref<1x256x4xf32, #tpu.memory_space<vmem>> -> memref<1x256x4xf32, #tpu.memory_space<vmem>>
      %218 = tpu.memref_squeeze %217 : memref<1x256x4xf32, #tpu.memory_space<vmem>> -> memref<256x4xf32, #tpu.memory_space<vmem>>
      %c128 = arith.constant 128 : index
      %c0_185 = arith.constant 0 : index
      %219 = vector.load %218[%c128, %c0_185] : memref<256x4xf32, #tpu.memory_space<vmem>>, vector<16x4xf32>
      %c0_186 = arith.constant 0 : index
      %c0_187 = arith.constant 0 : index
      %220 = vector.load %arg3[%c0_186, %c0_187] : memref<1x4xf32, #tpu.memory_space<vmem>>, vector<1x4xf32>
      %221 = vector.broadcast %220 : vector<1x4xf32> to vector<16x4xf32>
      %222 = arith.mulf %219, %221 : vector<16x4xf32>
      %c0_188 = arith.constant 0 : index
      %c0_189 = arith.constant 0 : index
      %223 = vector.load %arg4[%c0_188, %c0_189] : memref<1x4xf32, #tpu.memory_space<vmem>>, vector<1x4xf32>
      %224 = vector.broadcast %223 : vector<1x4xf32> to vector<16x4xf32>
      %225 = arith.addf %222, %224 : vector<16x4xf32>
      %cst_190 = arith.constant 0.000000e+00 : f32
      %226 = vector.broadcast %cst_190 : f32 to vector<16x4xf32>
      %227 = arith.maximumf %225, %226 : vector<16x4xf32>
      %c163 = arith.constant 163 : index
      %c0_191 = arith.constant 0 : index
      %228 = vector.load %arg7[%c163, %c0_191] : memref<342x4xf32, #tpu.memory_space<vmem>>, vector<16x4xf32>
      tpu.vector_store %arg7[%c163, %c0_191], %227 {strides = array<i32>} : memref<342x4xf32, #tpu.memory_space<vmem>>, vector<16x4xf32>,
      %c0_i32_192 = arith.constant 0 : i32
      %c0_i32_193 = arith.constant 0 : i32
      %c0_i32_194 = arith.constant 0 : i32
      %229 = tpu.memref_slice %arg2[%c0_i32_192, %c0_i32_193, %c0_i32_194] : memref<1x256x4xf32, #tpu.memory_space<vmem>> -> memref<1x256x4xf32, #tpu.memory_space<vmem>>
      %230 = tpu.memref_squeeze %229 : memref<1x256x4xf32, #tpu.memory_space<vmem>> -> memref<256x4xf32, #tpu.memory_space<vmem>>
      %c144 = arith.constant 144 : index
      %c0_195 = arith.constant 0 : index
      %231 = vector.load %230[%c144, %c0_195] : memref<256x4xf32, #tpu.memory_space<vmem>>, vector<16x4xf32>
      %c0_196 = arith.constant 0 : index
      %c0_197 = arith.constant 0 : index
      %232 = vector.load %arg3[%c0_196, %c0_197] : memref<1x4xf32, #tpu.memory_space<vmem>>, vector<1x4xf32>
      %233 = vector.broadcast %232 : vector<1x4xf32> to vector<16x4xf32>
      %234 = arith.mulf %231, %233 : vector<16x4xf32>
      %c0_198 = arith.constant 0 : index
      %c0_199 = arith.constant 0 : index
      %235 = vector.load %arg4[%c0_198, %c0_199] : memref<1x4xf32, #tpu.memory_space<vmem>>, vector<1x4xf32>
      %236 = vector.broadcast %235 : vector<1x4xf32> to vector<16x4xf32>
      %237 = arith.addf %234, %236 : vector<16x4xf32>
      %cst_200 = arith.constant 0.000000e+00 : f32
      %238 = vector.broadcast %cst_200 : f32 to vector<16x4xf32>
      %239 = arith.maximumf %237, %238 : vector<16x4xf32>
      %c181 = arith.constant 181 : index
      %c0_201 = arith.constant 0 : index
      %240 = vector.load %arg7[%c181, %c0_201] : memref<342x4xf32, #tpu.memory_space<vmem>>, vector<16x4xf32>
      tpu.vector_store %arg7[%c181, %c0_201], %239 {strides = array<i32>} : memref<342x4xf32, #tpu.memory_space<vmem>>, vector<16x4xf32>,
      %c0_i32_202 = arith.constant 0 : i32
      %c0_i32_203 = arith.constant 0 : i32
      %c0_i32_204 = arith.constant 0 : i32
      %241 = tpu.memref_slice %arg2[%c0_i32_202, %c0_i32_203, %c0_i32_204] : memref<1x256x4xf32, #tpu.memory_space<vmem>> -> memref<1x256x4xf32, #tpu.memory_space<vmem>>
      %242 = tpu.memref_squeeze %241 : memref<1x256x4xf32, #tpu.memory_space<vmem>> -> memref<256x4xf32, #tpu.memory_space<vmem>>
      %c160 = arith.constant 160 : index
      %c0_205 = arith.constant 0 : index
      %243 = vector.load %242[%c160, %c0_205] : memref<256x4xf32, #tpu.memory_space<vmem>>, vector<16x4xf32>
      %c0_206 = arith.constant 0 : index
      %c0_207 = arith.constant 0 : index
      %244 = vector.load %arg3[%c0_206, %c0_207] : memref<1x4xf32, #tpu.memory_space<vmem>>, vector<1x4xf32>
      %245 = vector.broadcast %244 : vector<1x4xf32> to vector<16x4xf32>
      %246 = arith.mulf %243, %245 : vector<16x4xf32>
      %c0_208 = arith.constant 0 : index
      %c0_209 = arith.constant 0 : index
      %247 = vector.load %arg4[%c0_208, %c0_209] : memref<1x4xf32, #tpu.memory_space<vmem>>, vector<1x4xf32>
      %248 = vector.broadcast %247 : vector<1x4xf32> to vector<16x4xf32>
      %249 = arith.addf %246, %248 : vector<16x4xf32>
      %cst_210 = arith.constant 0.000000e+00 : f32
      %250 = vector.broadcast %cst_210 : f32 to vector<16x4xf32>
      %251 = arith.maximumf %249, %250 : vector<16x4xf32>
      %c199 = arith.constant 199 : index
      %c0_211 = arith.constant 0 : index
      %252 = vector.load %arg7[%c199, %c0_211] : memref<342x4xf32, #tpu.memory_space<vmem>>, vector<16x4xf32>
      tpu.vector_store %arg7[%c199, %c0_211], %251 {strides = array<i32>} : memref<342x4xf32, #tpu.memory_space<vmem>>, vector<16x4xf32>,
      %c0_i32_212 = arith.constant 0 : i32
      %c0_i32_213 = arith.constant 0 : i32
      %c0_i32_214 = arith.constant 0 : i32
      %253 = tpu.memref_slice %arg2[%c0_i32_212, %c0_i32_213, %c0_i32_214] : memref<1x256x4xf32, #tpu.memory_space<vmem>> -> memref<1x256x4xf32, #tpu.memory_space<vmem>>
      %254 = tpu.memref_squeeze %253 : memref<1x256x4xf32, #tpu.memory_space<vmem>> -> memref<256x4xf32, #tpu.memory_space<vmem>>
      %c176 = arith.constant 176 : index
      %c0_215 = arith.constant 0 : index
      %255 = vector.load %254[%c176, %c0_215] : memref<256x4xf32, #tpu.memory_space<vmem>>, vector<16x4xf32>
      %c0_216 = arith.constant 0 : index
      %c0_217 = arith.constant 0 : index
      %256 = vector.load %arg3[%c0_216, %c0_217] : memref<1x4xf32, #tpu.memory_space<vmem>>, vector<1x4xf32>
      %257 = vector.broadcast %256 : vector<1x4xf32> to vector<16x4xf32>
      %258 = arith.mulf %255, %257 : vector<16x4xf32>
      %c0_218 = arith.constant 0 : index
      %c0_219 = arith.constant 0 : index
      %259 = vector.load %arg4[%c0_218, %c0_219] : memref<1x4xf32, #tpu.memory_space<vmem>>, vector<1x4xf32>
      %260 = vector.broadcast %259 : vector<1x4xf32> to vector<16x4xf32>
      %261 = arith.addf %258, %260 : vector<16x4xf32>
      %cst_220 = arith.constant 0.000000e+00 : f32
      %262 = vector.broadcast %cst_220 : f32 to vector<16x4xf32>
      %263 = arith.maximumf %261, %262 : vector<16x4xf32>
      %c217 = arith.constant 217 : index
      %c0_221 = arith.constant 0 : index
      %264 = vector.load %arg7[%c217, %c0_221] : memref<342x4xf32, #tpu.memory_space<vmem>>, vector<16x4xf32>
      tpu.vector_store %arg7[%c217, %c0_221], %263 {strides = array<i32>} : memref<342x4xf32, #tpu.memory_space<vmem>>, vector<16x4xf32>,
      %c0_i32_222 = arith.constant 0 : i32
      %c0_i32_223 = arith.constant 0 : i32
      %c0_i32_224 = arith.constant 0 : i32
      %265 = tpu.memref_slice %arg2[%c0_i32_222, %c0_i32_223, %c0_i32_224] : memref<1x256x4xf32, #tpu.memory_space<vmem>> -> memref<1x256x4xf32, #tpu.memory_space<vmem>>
      %266 = tpu.memref_squeeze %265 : memref<1x256x4xf32, #tpu.memory_space<vmem>> -> memref<256x4xf32, #tpu.memory_space<vmem>>
      %c192 = arith.constant 192 : index
      %c0_225 = arith.constant 0 : index
      %267 = vector.load %266[%c192, %c0_225] : memref<256x4xf32, #tpu.memory_space<vmem>>, vector<16x4xf32>
      %c0_226 = arith.constant 0 : index
      %c0_227 = arith.constant 0 : index
      %268 = vector.load %arg3[%c0_226, %c0_227] : memref<1x4xf32, #tpu.memory_space<vmem>>, vector<1x4xf32>
      %269 = vector.broadcast %268 : vector<1x4xf32> to vector<16x4xf32>
      %270 = arith.mulf %267, %269 : vector<16x4xf32>
      %c0_228 = arith.constant 0 : index
      %c0_229 = arith.constant 0 : index
      %271 = vector.load %arg4[%c0_228, %c0_229] : memref<1x4xf32, #tpu.memory_space<vmem>>, vector<1x4xf32>
      %272 = vector.broadcast %271 : vector<1x4xf32> to vector<16x4xf32>
      %273 = arith.addf %270, %272 : vector<16x4xf32>
      %cst_230 = arith.constant 0.000000e+00 : f32
      %274 = vector.broadcast %cst_230 : f32 to vector<16x4xf32>
      %275 = arith.maximumf %273, %274 : vector<16x4xf32>
      %c235 = arith.constant 235 : index
      %c0_231 = arith.constant 0 : index
      %276 = vector.load %arg7[%c235, %c0_231] : memref<342x4xf32, #tpu.memory_space<vmem>>, vector<16x4xf32>
      tpu.vector_store %arg7[%c235, %c0_231], %275 {strides = array<i32>} : memref<342x4xf32, #tpu.memory_space<vmem>>, vector<16x4xf32>,
      %c0_i32_232 = arith.constant 0 : i32
      %c0_i32_233 = arith.constant 0 : i32
      %c0_i32_234 = arith.constant 0 : i32
      %277 = tpu.memref_slice %arg2[%c0_i32_232, %c0_i32_233, %c0_i32_234] : memref<1x256x4xf32, #tpu.memory_space<vmem>> -> memref<1x256x4xf32, #tpu.memory_space<vmem>>
      %278 = tpu.memref_squeeze %277 : memref<1x256x4xf32, #tpu.memory_space<vmem>> -> memref<256x4xf32, #tpu.memory_space<vmem>>
      %c208 = arith.constant 208 : index
      %c0_235 = arith.constant 0 : index
      %279 = vector.load %278[%c208, %c0_235] : memref<256x4xf32, #tpu.memory_space<vmem>>, vector<16x4xf32>
      %c0_236 = arith.constant 0 : index
      %c0_237 = arith.constant 0 : index
      %280 = vector.load %arg3[%c0_236, %c0_237] : memref<1x4xf32, #tpu.memory_space<vmem>>, vector<1x4xf32>
      %281 = vector.broadcast %280 : vector<1x4xf32> to vector<16x4xf32>
      %282 = arith.mulf %279, %281 : vector<16x4xf32>
      %c0_238 = arith.constant 0 : index
      %c0_239 = arith.constant 0 : index
      %283 = vector.load %arg4[%c0_238, %c0_239] : memref<1x4xf32, #tpu.memory_space<vmem>>, vector<1x4xf32>
      %284 = vector.broadcast %283 : vector<1x4xf32> to vector<16x4xf32>
      %285 = arith.addf %282, %284 : vector<16x4xf32>
      %cst_240 = arith.constant 0.000000e+00 : f32
      %286 = vector.broadcast %cst_240 : f32 to vector<16x4xf32>
      %287 = arith.maximumf %285, %286 : vector<16x4xf32>
      %c253 = arith.constant 253 : index
      %c0_241 = arith.constant 0 : index
      %288 = vector.load %arg7[%c253, %c0_241] : memref<342x4xf32, #tpu.memory_space<vmem>>, vector<16x4xf32>
      tpu.vector_store %arg7[%c253, %c0_241], %287 {strides = array<i32>} : memref<342x4xf32, #tpu.memory_space<vmem>>, vector<16x4xf32>,
      %c0_i32_242 = arith.constant 0 : i32
      %c0_i32_243 = arith.constant 0 : i32
      %c0_i32_244 = arith.constant 0 : i32
      %289 = tpu.memref_slice %arg2[%c0_i32_242, %c0_i32_243, %c0_i32_244] : memref<1x256x4xf32, #tpu.memory_space<vmem>> -> memref<1x256x4xf32, #tpu.memory_space<vmem>>
      %290 = tpu.memref_squeeze %289 : memref<1x256x4xf32, #tpu.memory_space<vmem>> -> memref<256x4xf32, #tpu.memory_space<vmem>>
      %c224 = arith.constant 224 : index
      %c0_245 = arith.constant 0 : index
      %291 = vector.load %290[%c224, %c0_245] : memref<256x4xf32, #tpu.memory_space<vmem>>, vector<16x4xf32>
      %c0_246 = arith.constant 0 : index
      %c0_247 = arith.constant 0 : index
      %292 = vector.load %arg3[%c0_246, %c0_247] : memref<1x4xf32, #tpu.memory_space<vmem>>, vector<1x4xf32>
      %293 = vector.broadcast %292 : vector<1x4xf32> to vector<16x4xf32>
      %294 = arith.mulf %291, %293 : vector<16x4xf32>
      %c0_248 = arith.constant 0 : index
      %c0_249 = arith.constant 0 : index
      %295 = vector.load %arg4[%c0_248, %c0_249] : memref<1x4xf32, #tpu.memory_space<vmem>>, vector<1x4xf32>
      %296 = vector.broadcast %295 : vector<1x4xf32> to vector<16x4xf32>
      %297 = arith.addf %294, %296 : vector<16x4xf32>
      %cst_250 = arith.constant 0.000000e+00 : f32
      %298 = vector.broadcast %cst_250 : f32 to vector<16x4xf32>
      %299 = arith.maximumf %297, %298 : vector<16x4xf32>
      %c271 = arith.constant 271 : index
      %c0_251 = arith.constant 0 : index
      %300 = vector.load %arg7[%c271, %c0_251] : memref<342x4xf32, #tpu.memory_space<vmem>>, vector<16x4xf32>
      tpu.vector_store %arg7[%c271, %c0_251], %299 {strides = array<i32>} : memref<342x4xf32, #tpu.memory_space<vmem>>, vector<16x4xf32>,
      %c0_i32_252 = arith.constant 0 : i32
      %c0_i32_253 = arith.constant 0 : i32
      %c0_i32_254 = arith.constant 0 : i32
      %301 = tpu.memref_slice %arg2[%c0_i32_252, %c0_i32_253, %c0_i32_254] : memref<1x256x4xf32, #tpu.memory_space<vmem>> -> memref<1x256x4xf32, #tpu.memory_space<vmem>>
      %302 = tpu.memref_squeeze %301 : memref<1x256x4xf32, #tpu.memory_space<vmem>> -> memref<256x4xf32, #tpu.memory_space<vmem>>
      %c240 = arith.constant 240 : index
      %c0_255 = arith.constant 0 : index
      %303 = vector.load %302[%c240, %c0_255] : memref<256x4xf32, #tpu.memory_space<vmem>>, vector<16x4xf32>
      %c0_256 = arith.constant 0 : index
      %c0_257 = arith.constant 0 : index
      %304 = vector.load %arg3[%c0_256, %c0_257] : memref<1x4xf32, #tpu.memory_space<vmem>>, vector<1x4xf32>
      %305 = vector.broadcast %304 : vector<1x4xf32> to vector<16x4xf32>
      %306 = arith.mulf %303, %305 : vector<16x4xf32>
      %c0_258 = arith.constant 0 : index
      %c0_259 = arith.constant 0 : index
      %307 = vector.load %arg4[%c0_258, %c0_259] : memref<1x4xf32, #tpu.memory_space<vmem>>, vector<1x4xf32>
      %308 = vector.broadcast %307 : vector<1x4xf32> to vector<16x4xf32>
      %309 = arith.addf %306, %308 : vector<16x4xf32>
      %cst_260 = arith.constant 0.000000e+00 : f32
      %310 = vector.broadcast %cst_260 : f32 to vector<16x4xf32>
      %311 = arith.maximumf %309, %310 : vector<16x4xf32>
      %c289 = arith.constant 289 : index
      %c0_261 = arith.constant 0 : index
      %312 = vector.load %arg7[%c289, %c0_261] : memref<342x4xf32, #tpu.memory_space<vmem>>, vector<16x4xf32>
      tpu.vector_store %arg7[%c289, %c0_261], %311 {strides = array<i32>} : memref<342x4xf32, #tpu.memory_space<vmem>>, vector<16x4xf32>,
    } else {
    }
    %cst = arith.constant 0.000000e+00 : f32
    %3 = vector.broadcast %cst : f32 to vector<256x4xf32>
    %c0 = arith.constant 0 : index
    %c0_1 = arith.constant 0 : index
    %4 = vector.load %arg7[%c0, %c0_1] : memref<342x4xf32, #tpu.memory_space<vmem>>, vector<256x4xf32>
    %5 = arith.truncf %4 : vector<256x4xf32> to vector<256x4xbf16>
    %c0_2 = arith.constant 0 : index
    %c0_3 = arith.constant 0 : index
    %c0_4 = arith.constant 0 : index
    %6 = vector.load %arg5[%c0_2, %c0_3, %c0_4] : memref<9x4x4xbf16, #tpu.memory_space<vmem>>, vector<1x4x4xbf16>
    %7 = vector.shape_cast %6 : vector<1x4x4xbf16> to vector<4x4xbf16>
    %cst_5 = arith.constant dense<0.000000e+00> : vector<256x4xf32>
    %8 = tpu.matmul %5, %7, %cst_5 {dimension_numbers = #tpu.dot_dimension_numbers<[1], [0], [0], [1], [0, 0, 1, 1], [], []>} : vector<256x4xbf16>, vector<4x4xbf16>, vector<256x4xf32> -> vector<256x4xf32>
    %9 = arith.addf %3, %8 : vector<256x4xf32>
    %c1 = arith.constant 1 : index
    %c0_6 = arith.constant 0 : index
    %10 = vector.load %arg7[%c1, %c0_6] : memref<342x4xf32, #tpu.memory_space<vmem>>, vector<256x4xf32>
    %11 = arith.truncf %10 : vector<256x4xf32> to vector<256x4xbf16>
    %c1_7 = arith.constant 1 : index
    %c0_8 = arith.constant 0 : index
    %c0_9 = arith.constant 0 : index
    %12 = vector.load %arg5[%c1_7, %c0_8, %c0_9] : memref<9x4x4xbf16, #tpu.memory_space<vmem>>, vector<1x4x4xbf16>
    %13 = vector.shape_cast %12 : vector<1x4x4xbf16> to vector<4x4xbf16>
    %cst_10 = arith.constant dense<0.000000e+00> : vector<256x4xf32>
    %14 = tpu.matmul %11, %13, %cst_10 {dimension_numbers = #tpu.dot_dimension_numbers<[1], [0], [0], [1], [0, 0, 1, 1], [], []>} : vector<256x4xbf16>, vector<4x4xbf16>, vector<256x4xf32> -> vector<256x4xf32>
    %15 = arith.addf %9, %14 : vector<256x4xf32>
    %c2 = arith.constant 2 : index
    %c0_11 = arith.constant 0 : index
    %16 = vector.load %arg7[%c2, %c0_11] : memref<342x4xf32, #tpu.memory_space<vmem>>, vector<256x4xf32>
    %17 = arith.truncf %16 : vector<256x4xf32> to vector<256x4xbf16>
    %c2_12 = arith.constant 2 : index
    %c0_13 = arith.constant 0 : index
    %c0_14 = arith.constant 0 : index
    %18 = vector.load %arg5[%c2_12, %c0_13, %c0_14] : memref<9x4x4xbf16, #tpu.memory_space<vmem>>, vector<1x4x4xbf16>
    %19 = vector.shape_cast %18 : vector<1x4x4xbf16> to vector<4x4xbf16>
    %cst_15 = arith.constant dense<0.000000e+00> : vector<256x4xf32>
    %20 = tpu.matmul %17, %19, %cst_15 {dimension_numbers = #tpu.dot_dimension_numbers<[1], [0], [0], [1], [0, 0, 1, 1], [], []>} : vector<256x4xbf16>, vector<4x4xbf16>, vector<256x4xf32> -> vector<256x4xf32>
    %21 = arith.addf %15, %20 : vector<256x4xf32>
    %c18 = arith.constant 18 : index
    %c0_16 = arith.constant 0 : index
    %22 = vector.load %arg7[%c18, %c0_16] : memref<342x4xf32, #tpu.memory_space<vmem>>, vector<256x4xf32>
    %23 = arith.truncf %22 : vector<256x4xf32> to vector<256x4xbf16>
    %c3 = arith.constant 3 : index
    %c0_17 = arith.constant 0 : index
    %c0_18 = arith.constant 0 : index
    %24 = vector.load %arg5[%c3, %c0_17, %c0_18] : memref<9x4x4xbf16, #tpu.memory_space<vmem>>, vector<1x4x4xbf16>
    %25 = vector.shape_cast %24 : vector<1x4x4xbf16> to vector<4x4xbf16>
    %cst_19 = arith.constant dense<0.000000e+00> : vector<256x4xf32>
    %26 = tpu.matmul %23, %25, %cst_19 {dimension_numbers = #tpu.dot_dimension_numbers<[1], [0], [0], [1], [0, 0, 1, 1], [], []>} : vector<256x4xbf16>, vector<4x4xbf16>, vector<256x4xf32> -> vector<256x4xf32>
    %27 = arith.addf %21, %26 : vector<256x4xf32>
    %c19 = arith.constant 19 : index
    %c0_20 = arith.constant 0 : index
    %28 = vector.load %arg7[%c19, %c0_20] : memref<342x4xf32, #tpu.memory_space<vmem>>, vector<256x4xf32>
    %29 = arith.truncf %28 : vector<256x4xf32> to vector<256x4xbf16>
    %c4 = arith.constant 4 : index
    %c0_21 = arith.constant 0 : index
    %c0_22 = arith.constant 0 : index
    %30 = vector.load %arg5[%c4, %c0_21, %c0_22] : memref<9x4x4xbf16, #tpu.memory_space<vmem>>, vector<1x4x4xbf16>
    %31 = vector.shape_cast %30 : vector<1x4x4xbf16> to vector<4x4xbf16>
    %cst_23 = arith.constant dense<0.000000e+00> : vector<256x4xf32>
    %32 = tpu.matmul %29, %31, %cst_23 {dimension_numbers = #tpu.dot_dimension_numbers<[1], [0], [0], [1], [0, 0, 1, 1], [], []>} : vector<256x4xbf16>, vector<4x4xbf16>, vector<256x4xf32> -> vector<256x4xf32>
    %33 = arith.addf %27, %32 : vector<256x4xf32>
    %c20 = arith.constant 20 : index
    %c0_24 = arith.constant 0 : index
    %34 = vector.load %arg7[%c20, %c0_24] : memref<342x4xf32, #tpu.memory_space<vmem>>, vector<256x4xf32>
    %35 = arith.truncf %34 : vector<256x4xf32> to vector<256x4xbf16>
    %c5 = arith.constant 5 : index
    %c0_25 = arith.constant 0 : index
    %c0_26 = arith.constant 0 : index
    %36 = vector.load %arg5[%c5, %c0_25, %c0_26] : memref<9x4x4xbf16, #tpu.memory_space<vmem>>, vector<1x4x4xbf16>
    %37 = vector.shape_cast %36 : vector<1x4x4xbf16> to vector<4x4xbf16>
    %cst_27 = arith.constant dense<0.000000e+00> : vector<256x4xf32>
    %38 = tpu.matmul %35, %37, %cst_27 {dimension_numbers = #tpu.dot_dimension_numbers<[1], [0], [0], [1], [0, 0, 1, 1], [], []>} : vector<256x4xbf16>, vector<4x4xbf16>, vector<256x4xf32> -> vector<256x4xf32>
    %39 = arith.addf %33, %38 : vector<256x4xf32>
    %c36 = arith.constant 36 : index
    %c0_28 = arith.constant 0 : index
    %40 = vector.load %arg7[%c36, %c0_28] : memref<342x4xf32, #tpu.memory_space<vmem>>, vector<256x4xf32>
    %41 = arith.truncf %40 : vector<256x4xf32> to vector<256x4xbf16>
    %c6 = arith.constant 6 : index
    %c0_29 = arith.constant 0 : index
    %c0_30 = arith.constant 0 : index
    %42 = vector.load %arg5[%c6, %c0_29, %c0_30] : memref<9x4x4xbf16, #tpu.memory_space<vmem>>, vector<1x4x4xbf16>
    %43 = vector.shape_cast %42 : vector<1x4x4xbf16> to vector<4x4xbf16>
    %cst_31 = arith.constant dense<0.000000e+00> : vector<256x4xf32>
    %44 = tpu.matmul %41, %43, %cst_31 {dimension_numbers = #tpu.dot_dimension_numbers<[1], [0], [0], [1], [0, 0, 1, 1], [], []>} : vector<256x4xbf16>, vector<4x4xbf16>, vector<256x4xf32> -> vector<256x4xf32>
    %45 = arith.addf %39, %44 : vector<256x4xf32>
    %c37 = arith.constant 37 : index
    %c0_32 = arith.constant 0 : index
    %46 = vector.load %arg7[%c37, %c0_32] : memref<342x4xf32, #tpu.memory_space<vmem>>, vector<256x4xf32>
    %47 = arith.truncf %46 : vector<256x4xf32> to vector<256x4xbf16>
    %c7 = arith.constant 7 : index
    %c0_33 = arith.constant 0 : index
    %c0_34 = arith.constant 0 : index
    %48 = vector.load %arg5[%c7, %c0_33, %c0_34] : memref<9x4x4xbf16, #tpu.memory_space<vmem>>, vector<1x4x4xbf16>
    %49 = vector.shape_cast %48 : vector<1x4x4xbf16> to vector<4x4xbf16>
    %cst_35 = arith.constant dense<0.000000e+00> : vector<256x4xf32>
    %50 = tpu.matmul %47, %49, %cst_35 {dimension_numbers = #tpu.dot_dimension_numbers<[1], [0], [0], [1], [0, 0, 1, 1], [], []>} : vector<256x4xbf16>, vector<4x4xbf16>, vector<256x4xf32> -> vector<256x4xf32>
    %51 = arith.addf %45, %50 : vector<256x4xf32>
    %c38 = arith.constant 38 : index
    %c0_36 = arith.constant 0 : index
    %52 = vector.load %arg7[%c38, %c0_36] : memref<342x4xf32, #tpu.memory_space<vmem>>, vector<256x4xf32>
    %53 = arith.truncf %52 : vector<256x4xf32> to vector<256x4xbf16>
    %c8 = arith.constant 8 : index
    %c0_37 = arith.constant 0 : index
    %c0_38 = arith.constant 0 : index
    %54 = vector.load %arg5[%c8, %c0_37, %c0_38] : memref<9x4x4xbf16, #tpu.memory_space<vmem>>, vector<1x4x4xbf16>
    %55 = vector.shape_cast %54 : vector<1x4x4xbf16> to vector<4x4xbf16>
    %cst_39 = arith.constant dense<0.000000e+00> : vector<256x4xf32>
    %56 = tpu.matmul %53, %55, %cst_39 {dimension_numbers = #tpu.dot_dimension_numbers<[1], [0], [0], [1], [0, 0, 1, 1], [], []>} : vector<256x4xbf16>, vector<4x4xbf16>, vector<256x4xf32> -> vector<256x4xf32>
    %57 = arith.addf %51, %56 : vector<256x4xf32>
    %c0_i32_40 = arith.constant 0 : i32
    %c0_i32_41 = arith.constant 0 : i32
    %c0_i32_42 = arith.constant 0 : i32
    %58 = tpu.memref_slice %arg6[%c0_i32_40, %c0_i32_41, %c0_i32_42] : memref<1x288x4xf32, #tpu.memory_space<vmem>> -> memref<1x288x4xf32, #tpu.memory_space<vmem>>
    %59 = tpu.memref_squeeze %58 : memref<1x288x4xf32, #tpu.memory_space<vmem>> -> memref<288x4xf32, #tpu.memory_space<vmem>>
    %c0_43 = arith.constant 0 : index
    %c0_44 = arith.constant 0 : index
    %60 = vector.load %59[%c0_43, %c0_44] : memref<288x4xf32, #tpu.memory_space<vmem>>, vector<256x4xf32>
    tpu.vector_store %59[%c0_43, %c0_44], %57 {strides = array<i32>} : memref<288x4xf32, #tpu.memory_space<vmem>>, vector<256x4xf32>,
    %cst_45 = arith.constant 0.000000e+00 : f32
    %61 = vector.broadcast %cst_45 : f32 to vector<32x4xf32>
    %c256 = arith.constant 256 : index
    %c0_46 = arith.constant 0 : index
    %62 = vector.load %arg7[%c256, %c0_46] : memref<342x4xf32, #tpu.memory_space<vmem>>, vector<32x4xf32>
    %63 = arith.truncf %62 : vector<32x4xf32> to vector<32x4xbf16>
    %c0_47 = arith.constant 0 : index
    %c0_48 = arith.constant 0 : index
    %c0_49 = arith.constant 0 : index
    %64 = vector.load %arg5[%c0_47, %c0_48, %c0_49] : memref<9x4x4xbf16, #tpu.memory_space<vmem>>, vector<1x4x4xbf16>
    %65 = vector.shape_cast %64 : vector<1x4x4xbf16> to vector<4x4xbf16>
    %cst_50 = arith.constant dense<0.000000e+00> : vector<32x4xf32>
    %66 = tpu.matmul %63, %65, %cst_50 {dimension_numbers = #tpu.dot_dimension_numbers<[1], [0], [0], [1], [0, 0, 1, 1], [], []>} : vector<32x4xbf16>, vector<4x4xbf16>, vector<32x4xf32> -> vector<32x4xf32>
    %67 = arith.addf %61, %66 : vector<32x4xf32>
    %c257 = arith.constant 257 : index
    %c0_51 = arith.constant 0 : index
    %68 = vector.load %arg7[%c257, %c0_51] : memref<342x4xf32, #tpu.memory_space<vmem>>, vector<32x4xf32>
    %69 = arith.truncf %68 : vector<32x4xf32> to vector<32x4xbf16>
    %c1_52 = arith.constant 1 : index
    %c0_53 = arith.constant 0 : index
    %c0_54 = arith.constant 0 : index
    %70 = vector.load %arg5[%c1_52, %c0_53, %c0_54] : memref<9x4x4xbf16, #tpu.memory_space<vmem>>, vector<1x4x4xbf16>
    %71 = vector.shape_cast %70 : vector<1x4x4xbf16> to vector<4x4xbf16>
    %cst_55 = arith.constant dense<0.000000e+00> : vector<32x4xf32>
    %72 = tpu.matmul %69, %71, %cst_55 {dimension_numbers = #tpu.dot_dimension_numbers<[1], [0], [0], [1], [0, 0, 1, 1], [], []>} : vector<32x4xbf16>, vector<4x4xbf16>, vector<32x4xf32> -> vector<32x4xf32>
    %73 = arith.addf %67, %72 : vector<32x4xf32>
    %c258 = arith.constant 258 : index
    %c0_56 = arith.constant 0 : index
    %74 = vector.load %arg7[%c258, %c0_56] : memref<342x4xf32, #tpu.memory_space<vmem>>, vector<32x4xf32>
    %75 = arith.truncf %74 : vector<32x4xf32> to vector<32x4xbf16>
    %c2_57 = arith.constant 2 : index
    %c0_58 = arith.constant 0 : index
    %c0_59 = arith.constant 0 : index
    %76 = vector.load %arg5[%c2_57, %c0_58, %c0_59] : memref<9x4x4xbf16, #tpu.memory_space<vmem>>, vector<1x4x4xbf16>
    %77 = vector.shape_cast %76 : vector<1x4x4xbf16> to vector<4x4xbf16>
    %cst_60 = arith.constant dense<0.000000e+00> : vector<32x4xf32>
    %78 = tpu.matmul %75, %77, %cst_60 {dimension_numbers = #tpu.dot_dimension_numbers<[1], [0], [0], [1], [0, 0, 1, 1], [], []>} : vector<32x4xbf16>, vector<4x4xbf16>, vector<32x4xf32> -> vector<32x4xf32>
    %79 = arith.addf %73, %78 : vector<32x4xf32>
    %c274 = arith.constant 274 : index
    %c0_61 = arith.constant 0 : index
    %80 = vector.load %arg7[%c274, %c0_61] : memref<342x4xf32, #tpu.memory_space<vmem>>, vector<32x4xf32>
    %81 = arith.truncf %80 : vector<32x4xf32> to vector<32x4xbf16>
    %c3_62 = arith.constant 3 : index
    %c0_63 = arith.constant 0 : index
    %c0_64 = arith.constant 0 : index
    %82 = vector.load %arg5[%c3_62, %c0_63, %c0_64] : memref<9x4x4xbf16, #tpu.memory_space<vmem>>, vector<1x4x4xbf16>
    %83 = vector.shape_cast %82 : vector<1x4x4xbf16> to vector<4x4xbf16>
    %cst_65 = arith.constant dense<0.000000e+00> : vector<32x4xf32>
    %84 = tpu.matmul %81, %83, %cst_65 {dimension_numbers = #tpu.dot_dimension_numbers<[1], [0], [0], [1], [0, 0, 1, 1], [], []>} : vector<32x4xbf16>, vector<4x4xbf16>, vector<32x4xf32> -> vector<32x4xf32>
    %85 = arith.addf %79, %84 : vector<32x4xf32>
    %c275 = arith.constant 275 : index
    %c0_66 = arith.constant 0 : index
    %86 = vector.load %arg7[%c275, %c0_66] : memref<342x4xf32, #tpu.memory_space<vmem>>, vector<32x4xf32>
    %87 = arith.truncf %86 : vector<32x4xf32> to vector<32x4xbf16>
    %c4_67 = arith.constant 4 : index
    %c0_68 = arith.constant 0 : index
    %c0_69 = arith.constant 0 : index
    %88 = vector.load %arg5[%c4_67, %c0_68, %c0_69] : memref<9x4x4xbf16, #tpu.memory_space<vmem>>, vector<1x4x4xbf16>
    %89 = vector.shape_cast %88 : vector<1x4x4xbf16> to vector<4x4xbf16>
    %cst_70 = arith.constant dense<0.000000e+00> : vector<32x4xf32>
    %90 = tpu.matmul %87, %89, %cst_70 {dimension_numbers = #tpu.dot_dimension_numbers<[1], [0], [0], [1], [0, 0, 1, 1], [], []>} : vector<32x4xbf16>, vector<4x4xbf16>, vector<32x4xf32> -> vector<32x4xf32>
    %91 = arith.addf %85, %90 : vector<32x4xf32>
    %c276 = arith.constant 276 : index
    %c0_71 = arith.constant 0 : index
    %92 = vector.load %arg7[%c276, %c0_71] : memref<342x4xf32, #tpu.memory_space<vmem>>, vector<32x4xf32>
    %93 = arith.truncf %92 : vector<32x4xf32> to vector<32x4xbf16>
    %c5_72 = arith.constant 5 : index
    %c0_73 = arith.constant 0 : index
    %c0_74 = arith.constant 0 : index
    %94 = vector.load %arg5[%c5_72, %c0_73, %c0_74] : memref<9x4x4xbf16, #tpu.memory_space<vmem>>, vector<1x4x4xbf16>
    %95 = vector.shape_cast %94 : vector<1x4x4xbf16> to vector<4x4xbf16>
    %cst_75 = arith.constant dense<0.000000e+00> : vector<32x4xf32>
    %96 = tpu.matmul %93, %95, %cst_75 {dimension_numbers = #tpu.dot_dimension_numbers<[1], [0], [0], [1], [0, 0, 1, 1], [], []>} : vector<32x4xbf16>, vector<4x4xbf16>, vector<32x4xf32> -> vector<32x4xf32>
    %97 = arith.addf %91, %96 : vector<32x4xf32>
    %c292 = arith.constant 292 : index
    %c0_76 = arith.constant 0 : index
    %98 = vector.load %arg7[%c292, %c0_76] : memref<342x4xf32, #tpu.memory_space<vmem>>, vector<32x4xf32>
    %99 = arith.truncf %98 : vector<32x4xf32> to vector<32x4xbf16>
    %c6_77 = arith.constant 6 : index
    %c0_78 = arith.constant 0 : index
    %c0_79 = arith.constant 0 : index
    %100 = vector.load %arg5[%c6_77, %c0_78, %c0_79] : memref<9x4x4xbf16, #tpu.memory_space<vmem>>, vector<1x4x4xbf16>
    %101 = vector.shape_cast %100 : vector<1x4x4xbf16> to vector<4x4xbf16>
    %cst_80 = arith.constant dense<0.000000e+00> : vector<32x4xf32>
    %102 = tpu.matmul %99, %101, %cst_80 {dimension_numbers = #tpu.dot_dimension_numbers<[1], [0], [0], [1], [0, 0, 1, 1], [], []>} : vector<32x4xbf16>, vector<4x4xbf16>, vector<32x4xf32> -> vector<32x4xf32>
    %103 = arith.addf %97, %102 : vector<32x4xf32>
    %c293 = arith.constant 293 : index
    %c0_81 = arith.constant 0 : index
    %104 = vector.load %arg7[%c293, %c0_81] : memref<342x4xf32, #tpu.memory_space<vmem>>, vector<32x4xf32>
    %105 = arith.truncf %104 : vector<32x4xf32> to vector<32x4xbf16>
    %c7_82 = arith.constant 7 : index
    %c0_83 = arith.constant 0 : index
    %c0_84 = arith.constant 0 : index
    %106 = vector.load %arg5[%c7_82, %c0_83, %c0_84] : memref<9x4x4xbf16, #tpu.memory_space<vmem>>, vector<1x4x4xbf16>
    %107 = vector.shape_cast %106 : vector<1x4x4xbf16> to vector<4x4xbf16>
    %cst_85 = arith.constant dense<0.000000e+00> : vector<32x4xf32>
    %108 = tpu.matmul %105, %107, %cst_85 {dimension_numbers = #tpu.dot_dimension_numbers<[1], [0], [0], [1], [0, 0, 1, 1], [], []>} : vector<32x4xbf16>, vector<4x4xbf16>, vector<32x4xf32> -> vector<32x4xf32>
    %109 = arith.addf %103, %108 : vector<32x4xf32>
    %c294 = arith.constant 294 : index
    %c0_86 = arith.constant 0 : index
    %110 = vector.load %arg7[%c294, %c0_86] : memref<342x4xf32, #tpu.memory_space<vmem>>, vector<32x4xf32>
    %111 = arith.truncf %110 : vector<32x4xf32> to vector<32x4xbf16>
    %c8_87 = arith.constant 8 : index
    %c0_88 = arith.constant 0 : index
    %c0_89 = arith.constant 0 : index
    %112 = vector.load %arg5[%c8_87, %c0_88, %c0_89] : memref<9x4x4xbf16, #tpu.memory_space<vmem>>, vector<1x4x4xbf16>
    %113 = vector.shape_cast %112 : vector<1x4x4xbf16> to vector<4x4xbf16>
    %cst_90 = arith.constant dense<0.000000e+00> : vector<32x4xf32>
    %114 = tpu.matmul %111, %113, %cst_90 {dimension_numbers = #tpu.dot_dimension_numbers<[1], [0], [0], [1], [0, 0, 1, 1], [], []>} : vector<32x4xbf16>, vector<4x4xbf16>, vector<32x4xf32> -> vector<32x4xf32>
    %115 = arith.addf %109, %114 : vector<32x4xf32>
    %c0_i32_91 = arith.constant 0 : i32
    %c0_i32_92 = arith.constant 0 : i32
    %c0_i32_93 = arith.constant 0 : i32
    %116 = tpu.memref_slice %arg6[%c0_i32_91, %c0_i32_92, %c0_i32_93] : memref<1x288x4xf32, #tpu.memory_space<vmem>> -> memref<1x288x4xf32, #tpu.memory_space<vmem>>
    %117 = tpu.memref_squeeze %116 : memref<1x288x4xf32, #tpu.memory_space<vmem>> -> memref<288x4xf32, #tpu.memory_space<vmem>>
    %c256_94 = arith.constant 256 : index
    %c0_95 = arith.constant 0 : index
    %118 = vector.load %117[%c256_94, %c0_95] : memref<288x4xf32, #tpu.memory_space<vmem>>, vector<32x4xf32>
    tpu.vector_store %117[%c256_94, %c0_95], %115 {strides = array<i32>} : memref<288x4xf32, #tpu.memory_space<vmem>>, vector<32x4xf32>,
    return
  }
  func.func @transform_0(%arg0: i32, %arg1: i32) -> (i32, i32, i32) {
    %c0_i32 = arith.constant 0 : i32
    %c0_i32_0 = arith.constant 0 : i32
    %c0_i32_1 = arith.constant 0 : i32
    return %arg0, %c0_i32, %c0_i32_0 : i32, i32, i32
  }
  func.func @transform_1(%arg0: i32, %arg1: i32) -> (i32, i32) {
    %c0_i32 = arith.constant 0 : i32
    %c0_i32_0 = arith.constant 0 : i32
    %c0_i32_1 = arith.constant 0 : i32
    return %c0_i32, %c0_i32_0 : i32, i32
  }
  func.func @transform_2(%arg0: i32, %arg1: i32) -> (i32, i32) {
    %c0_i32 = arith.constant 0 : i32
    %c0_i32_0 = arith.constant 0 : i32
    %c0_i32_1 = arith.constant 0 : i32
    return %c0_i32, %c0_i32_0 : i32, i32
  }
  func.func @transform_3(%arg0: i32, %arg1: i32) -> (i32, i32, i32) {
    %c0_i32 = arith.constant 0 : i32
    %c0_i32_0 = arith.constant 0 : i32
    %c0_i32_1 = arith.constant 0 : i32
    return %c0_i32, %c0_i32_0, %arg1 : i32, i32, i32
  }
  func.func @transform_4(%arg0: i32, %arg1: i32) -> (i32, i32, i32) {
    %c0_i32 = arith.constant 0 : i32
    %c0_i32_0 = arith.constant 0 : i32
    return %arg0, %c0_i32, %arg1 : i32, i32, i32
  }
}

module attributes {stable_mosaic.version = 11 : i64} {
  func.func @kernel(%arg0: i32, %arg1: i32, %arg2: memref<1x256x4xf32, #tpu.memory_space<vmem>>, %arg3: memref<1x4xf32, #tpu.memory_space<vmem>>, %arg4: memref<1x4xf32, #tpu.memory_space<vmem>>, %arg5: memref<9x4x4xbf16, #tpu.memory_space<vmem>>, %arg6: memref<1x256x4xf32, #tpu.memory_space<vmem>>, %arg7: memref<1x288x4xf32, #tpu.memory_space<vmem>>, %arg8: memref<342x4xf32, #tpu.memory_space<vmem>>) attributes {dimension_semantics = [#tpu.dimension_semantics<parallel>, #tpu.dimension_semantics<arbitrary>], iteration_bounds = array<i64: 2, 1>, scalar_prefetch = 0 : i64, scratch_operands = 1 : i64, tpu.core_type = #tpu.core_type<tc>, window_params = [{transform_indices = @transform_0, window_bounds = array<i64: 1, 256, 4>}, {pipeline_mode = #tpu.pipeline_mode<synchronous>, transform_indices = @transform_1, window_bounds = array<i64: 1, 4>}, {pipeline_mode = #tpu.pipeline_mode<synchronous>, transform_indices = @transform_2, window_bounds = array<i64: 1, 4>}, {transform_indices = @transform_3, window_bounds = array<i64: 9, 4, 4>}, {transform_indices = @transform_4, window_bounds = array<i64: 1, 256, 4>}, {transform_indices = @transform_5, window_bounds = array<i64: 1, 288, 4>}]} {
    %c0_i32 = arith.constant 0 : i32
    %0 = arith.cmpi eq, %arg1, %c0_i32 : i32
    %1 = arith.extui %0 : i1 to i32
    %c0_i32_0 = arith.constant 0 : i32
    %2 = arith.cmpi ne, %1, %c0_i32_0 : i32
    scf.if %2 {
      %cst_309 = arith.constant 0.000000e+00 : f32
      %279 = vector.broadcast %cst_309 : f32 to vector<342x4xf32>
      %c0_310 = arith.constant 0 : index
      %c0_311 = arith.constant 0 : index
      %280 = vector.load %arg8[%c0_310, %c0_311] : memref<342x4xf32, #tpu.memory_space<vmem>>, vector<342x4xf32>
      tpu.vector_store %arg8[%c0_310, %c0_311], %279 {strides = array<i32>} : memref<342x4xf32, #tpu.memory_space<vmem>>, vector<342x4xf32>,
      %c0_i32_312 = arith.constant 0 : i32
      %c0_i32_313 = arith.constant 0 : i32
      %c0_i32_314 = arith.constant 0 : i32
      %281 = tpu.memref_slice %arg2[%c0_i32_312, %c0_i32_313, %c0_i32_314] : memref<1x256x4xf32, #tpu.memory_space<vmem>> -> memref<1x256x4xf32, #tpu.memory_space<vmem>>
      %282 = tpu.memref_squeeze %281 : memref<1x256x4xf32, #tpu.memory_space<vmem>> -> memref<256x4xf32, #tpu.memory_space<vmem>>
      %c0_315 = arith.constant 0 : index
      %c0_316 = arith.constant 0 : index
      %283 = vector.load %282[%c0_315, %c0_316] : memref<256x4xf32, #tpu.memory_space<vmem>>, vector<16x4xf32>
      %c0_317 = arith.constant 0 : index
      %c0_318 = arith.constant 0 : index
      %284 = vector.load %arg3[%c0_317, %c0_318] : memref<1x4xf32, #tpu.memory_space<vmem>>, vector<1x4xf32>
      %285 = vector.broadcast %284 : vector<1x4xf32> to vector<16x4xf32>
      %286 = arith.mulf %283, %285 : vector<16x4xf32>
      %c0_319 = arith.constant 0 : index
      %c0_320 = arith.constant 0 : index
      %287 = vector.load %arg4[%c0_319, %c0_320] : memref<1x4xf32, #tpu.memory_space<vmem>>, vector<1x4xf32>
      %288 = vector.broadcast %287 : vector<1x4xf32> to vector<16x4xf32>
      %289 = arith.addf %286, %288 : vector<16x4xf32>
      %cst_321 = arith.constant 0.000000e+00 : f32
      %290 = vector.broadcast %cst_321 : f32 to vector<16x4xf32>
      %291 = arith.maximumf %289, %290 : vector<16x4xf32>
      %c19_322 = arith.constant 19 : index
      %c0_323 = arith.constant 0 : index
      %292 = vector.load %arg8[%c19_322, %c0_323] : memref<342x4xf32, #tpu.memory_space<vmem>>, vector<16x4xf32>
      tpu.vector_store %arg8[%c19_322, %c0_323], %291 {strides = array<i32>} : memref<342x4xf32, #tpu.memory_space<vmem>>, vector<16x4xf32>,
      %c0_i32_324 = arith.constant 0 : i32
      %c0_i32_325 = arith.constant 0 : i32
      %c0_i32_326 = arith.constant 0 : i32
      %293 = tpu.memref_slice %arg2[%c0_i32_324, %c0_i32_325, %c0_i32_326] : memref<1x256x4xf32, #tpu.memory_space<vmem>> -> memref<1x256x4xf32, #tpu.memory_space<vmem>>
      %294 = tpu.memref_squeeze %293 : memref<1x256x4xf32, #tpu.memory_space<vmem>> -> memref<256x4xf32, #tpu.memory_space<vmem>>
      %c16_327 = arith.constant 16 : index
      %c0_328 = arith.constant 0 : index
      %295 = vector.load %294[%c16_327, %c0_328] : memref<256x4xf32, #tpu.memory_space<vmem>>, vector<16x4xf32>
      %c0_329 = arith.constant 0 : index
      %c0_330 = arith.constant 0 : index
      %296 = vector.load %arg3[%c0_329, %c0_330] : memref<1x4xf32, #tpu.memory_space<vmem>>, vector<1x4xf32>
      %297 = vector.broadcast %296 : vector<1x4xf32> to vector<16x4xf32>
      %298 = arith.mulf %295, %297 : vector<16x4xf32>
      %c0_331 = arith.constant 0 : index
      %c0_332 = arith.constant 0 : index
      %299 = vector.load %arg4[%c0_331, %c0_332] : memref<1x4xf32, #tpu.memory_space<vmem>>, vector<1x4xf32>
      %300 = vector.broadcast %299 : vector<1x4xf32> to vector<16x4xf32>
      %301 = arith.addf %298, %300 : vector<16x4xf32>
      %cst_333 = arith.constant 0.000000e+00 : f32
      %302 = vector.broadcast %cst_333 : f32 to vector<16x4xf32>
      %303 = arith.maximumf %301, %302 : vector<16x4xf32>
      %c37_334 = arith.constant 37 : index
      %c0_335 = arith.constant 0 : index
      %304 = vector.load %arg8[%c37_334, %c0_335] : memref<342x4xf32, #tpu.memory_space<vmem>>, vector<16x4xf32>
      tpu.vector_store %arg8[%c37_334, %c0_335], %303 {strides = array<i32>} : memref<342x4xf32, #tpu.memory_space<vmem>>, vector<16x4xf32>,
      %c0_i32_336 = arith.constant 0 : i32
      %c0_i32_337 = arith.constant 0 : i32
      %c0_i32_338 = arith.constant 0 : i32
      %305 = tpu.memref_slice %arg2[%c0_i32_336, %c0_i32_337, %c0_i32_338] : memref<1x256x4xf32, #tpu.memory_space<vmem>> -> memref<1x256x4xf32, #tpu.memory_space<vmem>>
      %306 = tpu.memref_squeeze %305 : memref<1x256x4xf32, #tpu.memory_space<vmem>> -> memref<256x4xf32, #tpu.memory_space<vmem>>
      %c32_339 = arith.constant 32 : index
      %c0_340 = arith.constant 0 : index
      %307 = vector.load %306[%c32_339, %c0_340] : memref<256x4xf32, #tpu.memory_space<vmem>>, vector<16x4xf32>
      %c0_341 = arith.constant 0 : index
      %c0_342 = arith.constant 0 : index
      %308 = vector.load %arg3[%c0_341, %c0_342] : memref<1x4xf32, #tpu.memory_space<vmem>>, vector<1x4xf32>
      %309 = vector.broadcast %308 : vector<1x4xf32> to vector<16x4xf32>
      %310 = arith.mulf %307, %309 : vector<16x4xf32>
      %c0_343 = arith.constant 0 : index
      %c0_344 = arith.constant 0 : index
      %311 = vector.load %arg4[%c0_343, %c0_344] : memref<1x4xf32, #tpu.memory_space<vmem>>, vector<1x4xf32>
      %312 = vector.broadcast %311 : vector<1x4xf32> to vector<16x4xf32>
      %313 = arith.addf %310, %312 : vector<16x4xf32>
      %cst_345 = arith.constant 0.000000e+00 : f32
      %314 = vector.broadcast %cst_345 : f32 to vector<16x4xf32>
      %315 = arith.maximumf %313, %314 : vector<16x4xf32>
      %c55 = arith.constant 55 : index
      %c0_346 = arith.constant 0 : index
      %316 = vector.load %arg8[%c55, %c0_346] : memref<342x4xf32, #tpu.memory_space<vmem>>, vector<16x4xf32>
      tpu.vector_store %arg8[%c55, %c0_346], %315 {strides = array<i32>} : memref<342x4xf32, #tpu.memory_space<vmem>>, vector<16x4xf32>,
      %c0_i32_347 = arith.constant 0 : i32
      %c0_i32_348 = arith.constant 0 : i32
      %c0_i32_349 = arith.constant 0 : i32
      %317 = tpu.memref_slice %arg2[%c0_i32_347, %c0_i32_348, %c0_i32_349] : memref<1x256x4xf32, #tpu.memory_space<vmem>> -> memref<1x256x4xf32, #tpu.memory_space<vmem>>
      %318 = tpu.memref_squeeze %317 : memref<1x256x4xf32, #tpu.memory_space<vmem>> -> memref<256x4xf32, #tpu.memory_space<vmem>>
      %c48_350 = arith.constant 48 : index
      %c0_351 = arith.constant 0 : index
      %319 = vector.load %318[%c48_350, %c0_351] : memref<256x4xf32, #tpu.memory_space<vmem>>, vector<16x4xf32>
      %c0_352 = arith.constant 0 : index
      %c0_353 = arith.constant 0 : index
      %320 = vector.load %arg3[%c0_352, %c0_353] : memref<1x4xf32, #tpu.memory_space<vmem>>, vector<1x4xf32>
      %321 = vector.broadcast %320 : vector<1x4xf32> to vector<16x4xf32>
      %322 = arith.mulf %319, %321 : vector<16x4xf32>
      %c0_354 = arith.constant 0 : index
      %c0_355 = arith.constant 0 : index
      %323 = vector.load %arg4[%c0_354, %c0_355] : memref<1x4xf32, #tpu.memory_space<vmem>>, vector<1x4xf32>
      %324 = vector.broadcast %323 : vector<1x4xf32> to vector<16x4xf32>
      %325 = arith.addf %322, %324 : vector<16x4xf32>
      %cst_356 = arith.constant 0.000000e+00 : f32
      %326 = vector.broadcast %cst_356 : f32 to vector<16x4xf32>
      %327 = arith.maximumf %325, %326 : vector<16x4xf32>
      %c73 = arith.constant 73 : index
      %c0_357 = arith.constant 0 : index
      %328 = vector.load %arg8[%c73, %c0_357] : memref<342x4xf32, #tpu.memory_space<vmem>>, vector<16x4xf32>
      tpu.vector_store %arg8[%c73, %c0_357], %327 {strides = array<i32>} : memref<342x4xf32, #tpu.memory_space<vmem>>, vector<16x4xf32>,
      %c0_i32_358 = arith.constant 0 : i32
      %c0_i32_359 = arith.constant 0 : i32
      %c0_i32_360 = arith.constant 0 : i32
      %329 = tpu.memref_slice %arg2[%c0_i32_358, %c0_i32_359, %c0_i32_360] : memref<1x256x4xf32, #tpu.memory_space<vmem>> -> memref<1x256x4xf32, #tpu.memory_space<vmem>>
      %330 = tpu.memref_squeeze %329 : memref<1x256x4xf32, #tpu.memory_space<vmem>> -> memref<256x4xf32, #tpu.memory_space<vmem>>
      %c64_361 = arith.constant 64 : index
      %c0_362 = arith.constant 0 : index
      %331 = vector.load %330[%c64_361, %c0_362] : memref<256x4xf32, #tpu.memory_space<vmem>>, vector<16x4xf32>
      %c0_363 = arith.constant 0 : index
      %c0_364 = arith.constant 0 : index
      %332 = vector.load %arg3[%c0_363, %c0_364] : memref<1x4xf32, #tpu.memory_space<vmem>>, vector<1x4xf32>
      %333 = vector.broadcast %332 : vector<1x4xf32> to vector<16x4xf32>
      %334 = arith.mulf %331, %333 : vector<16x4xf32>
      %c0_365 = arith.constant 0 : index
      %c0_366 = arith.constant 0 : index
      %335 = vector.load %arg4[%c0_365, %c0_366] : memref<1x4xf32, #tpu.memory_space<vmem>>, vector<1x4xf32>
      %336 = vector.broadcast %335 : vector<1x4xf32> to vector<16x4xf32>
      %337 = arith.addf %334, %336 : vector<16x4xf32>
      %cst_367 = arith.constant 0.000000e+00 : f32
      %338 = vector.broadcast %cst_367 : f32 to vector<16x4xf32>
      %339 = arith.maximumf %337, %338 : vector<16x4xf32>
      %c91 = arith.constant 91 : index
      %c0_368 = arith.constant 0 : index
      %340 = vector.load %arg8[%c91, %c0_368] : memref<342x4xf32, #tpu.memory_space<vmem>>, vector<16x4xf32>
      tpu.vector_store %arg8[%c91, %c0_368], %339 {strides = array<i32>} : memref<342x4xf32, #tpu.memory_space<vmem>>, vector<16x4xf32>,
      %c0_i32_369 = arith.constant 0 : i32
      %c0_i32_370 = arith.constant 0 : i32
      %c0_i32_371 = arith.constant 0 : i32
      %341 = tpu.memref_slice %arg2[%c0_i32_369, %c0_i32_370, %c0_i32_371] : memref<1x256x4xf32, #tpu.memory_space<vmem>> -> memref<1x256x4xf32, #tpu.memory_space<vmem>>
      %342 = tpu.memref_squeeze %341 : memref<1x256x4xf32, #tpu.memory_space<vmem>> -> memref<256x4xf32, #tpu.memory_space<vmem>>
      %c80_372 = arith.constant 80 : index
      %c0_373 = arith.constant 0 : index
      %343 = vector.load %342[%c80_372, %c0_373] : memref<256x4xf32, #tpu.memory_space<vmem>>, vector<16x4xf32>
      %c0_374 = arith.constant 0 : index
      %c0_375 = arith.constant 0 : index
      %344 = vector.load %arg3[%c0_374, %c0_375] : memref<1x4xf32, #tpu.memory_space<vmem>>, vector<1x4xf32>
      %345 = vector.broadcast %344 : vector<1x4xf32> to vector<16x4xf32>
      %346 = arith.mulf %343, %345 : vector<16x4xf32>
      %c0_376 = arith.constant 0 : index
      %c0_377 = arith.constant 0 : index
      %347 = vector.load %arg4[%c0_376, %c0_377] : memref<1x4xf32, #tpu.memory_space<vmem>>, vector<1x4xf32>
      %348 = vector.broadcast %347 : vector<1x4xf32> to vector<16x4xf32>
      %349 = arith.addf %346, %348 : vector<16x4xf32>
      %cst_378 = arith.constant 0.000000e+00 : f32
      %350 = vector.broadcast %cst_378 : f32 to vector<16x4xf32>
      %351 = arith.maximumf %349, %350 : vector<16x4xf32>
      %c109 = arith.constant 109 : index
      %c0_379 = arith.constant 0 : index
      %352 = vector.load %arg8[%c109, %c0_379] : memref<342x4xf32, #tpu.memory_space<vmem>>, vector<16x4xf32>
      tpu.vector_store %arg8[%c109, %c0_379], %351 {strides = array<i32>} : memref<342x4xf32, #tpu.memory_space<vmem>>, vector<16x4xf32>,
      %c0_i32_380 = arith.constant 0 : i32
      %c0_i32_381 = arith.constant 0 : i32
      %c0_i32_382 = arith.constant 0 : i32
      %353 = tpu.memref_slice %arg2[%c0_i32_380, %c0_i32_381, %c0_i32_382] : memref<1x256x4xf32, #tpu.memory_space<vmem>> -> memref<1x256x4xf32, #tpu.memory_space<vmem>>
      %354 = tpu.memref_squeeze %353 : memref<1x256x4xf32, #tpu.memory_space<vmem>> -> memref<256x4xf32, #tpu.memory_space<vmem>>
      %c96_383 = arith.constant 96 : index
      %c0_384 = arith.constant 0 : index
      %355 = vector.load %354[%c96_383, %c0_384] : memref<256x4xf32, #tpu.memory_space<vmem>>, vector<16x4xf32>
      %c0_385 = arith.constant 0 : index
      %c0_386 = arith.constant 0 : index
      %356 = vector.load %arg3[%c0_385, %c0_386] : memref<1x4xf32, #tpu.memory_space<vmem>>, vector<1x4xf32>
      %357 = vector.broadcast %356 : vector<1x4xf32> to vector<16x4xf32>
      %358 = arith.mulf %355, %357 : vector<16x4xf32>
      %c0_387 = arith.constant 0 : index
      %c0_388 = arith.constant 0 : index
      %359 = vector.load %arg4[%c0_387, %c0_388] : memref<1x4xf32, #tpu.memory_space<vmem>>, vector<1x4xf32>
      %360 = vector.broadcast %359 : vector<1x4xf32> to vector<16x4xf32>
      %361 = arith.addf %358, %360 : vector<16x4xf32>
      %cst_389 = arith.constant 0.000000e+00 : f32
      %362 = vector.broadcast %cst_389 : f32 to vector<16x4xf32>
      %363 = arith.maximumf %361, %362 : vector<16x4xf32>
      %c127 = arith.constant 127 : index
      %c0_390 = arith.constant 0 : index
      %364 = vector.load %arg8[%c127, %c0_390] : memref<342x4xf32, #tpu.memory_space<vmem>>, vector<16x4xf32>
      tpu.vector_store %arg8[%c127, %c0_390], %363 {strides = array<i32>} : memref<342x4xf32, #tpu.memory_space<vmem>>, vector<16x4xf32>,
      %c0_i32_391 = arith.constant 0 : i32
      %c0_i32_392 = arith.constant 0 : i32
      %c0_i32_393 = arith.constant 0 : i32
      %365 = tpu.memref_slice %arg2[%c0_i32_391, %c0_i32_392, %c0_i32_393] : memref<1x256x4xf32, #tpu.memory_space<vmem>> -> memref<1x256x4xf32, #tpu.memory_space<vmem>>
      %366 = tpu.memref_squeeze %365 : memref<1x256x4xf32, #tpu.memory_space<vmem>> -> memref<256x4xf32, #tpu.memory_space<vmem>>
      %c112_394 = arith.constant 112 : index
      %c0_395 = arith.constant 0 : index
      %367 = vector.load %366[%c112_394, %c0_395] : memref<256x4xf32, #tpu.memory_space<vmem>>, vector<16x4xf32>
      %c0_396 = arith.constant 0 : index
      %c0_397 = arith.constant 0 : index
      %368 = vector.load %arg3[%c0_396, %c0_397] : memref<1x4xf32, #tpu.memory_space<vmem>>, vector<1x4xf32>
      %369 = vector.broadcast %368 : vector<1x4xf32> to vector<16x4xf32>
      %370 = arith.mulf %367, %369 : vector<16x4xf32>
      %c0_398 = arith.constant 0 : index
      %c0_399 = arith.constant 0 : index
      %371 = vector.load %arg4[%c0_398, %c0_399] : memref<1x4xf32, #tpu.memory_space<vmem>>, vector<1x4xf32>
      %372 = vector.broadcast %371 : vector<1x4xf32> to vector<16x4xf32>
      %373 = arith.addf %370, %372 : vector<16x4xf32>
      %cst_400 = arith.constant 0.000000e+00 : f32
      %374 = vector.broadcast %cst_400 : f32 to vector<16x4xf32>
      %375 = arith.maximumf %373, %374 : vector<16x4xf32>
      %c145 = arith.constant 145 : index
      %c0_401 = arith.constant 0 : index
      %376 = vector.load %arg8[%c145, %c0_401] : memref<342x4xf32, #tpu.memory_space<vmem>>, vector<16x4xf32>
      tpu.vector_store %arg8[%c145, %c0_401], %375 {strides = array<i32>} : memref<342x4xf32, #tpu.memory_space<vmem>>, vector<16x4xf32>,
      %c0_i32_402 = arith.constant 0 : i32
      %c0_i32_403 = arith.constant 0 : i32
      %c0_i32_404 = arith.constant 0 : i32
      %377 = tpu.memref_slice %arg2[%c0_i32_402, %c0_i32_403, %c0_i32_404] : memref<1x256x4xf32, #tpu.memory_space<vmem>> -> memref<1x256x4xf32, #tpu.memory_space<vmem>>
      %378 = tpu.memref_squeeze %377 : memref<1x256x4xf32, #tpu.memory_space<vmem>> -> memref<256x4xf32, #tpu.memory_space<vmem>>
      %c128_405 = arith.constant 128 : index
      %c0_406 = arith.constant 0 : index
      %379 = vector.load %378[%c128_405, %c0_406] : memref<256x4xf32, #tpu.memory_space<vmem>>, vector<16x4xf32>
      %c0_407 = arith.constant 0 : index
      %c0_408 = arith.constant 0 : index
      %380 = vector.load %arg3[%c0_407, %c0_408] : memref<1x4xf32, #tpu.memory_space<vmem>>, vector<1x4xf32>
      %381 = vector.broadcast %380 : vector<1x4xf32> to vector<16x4xf32>
      %382 = arith.mulf %379, %381 : vector<16x4xf32>
      %c0_409 = arith.constant 0 : index
      %c0_410 = arith.constant 0 : index
      %383 = vector.load %arg4[%c0_409, %c0_410] : memref<1x4xf32, #tpu.memory_space<vmem>>, vector<1x4xf32>
      %384 = vector.broadcast %383 : vector<1x4xf32> to vector<16x4xf32>
      %385 = arith.addf %382, %384 : vector<16x4xf32>
      %cst_411 = arith.constant 0.000000e+00 : f32
      %386 = vector.broadcast %cst_411 : f32 to vector<16x4xf32>
      %387 = arith.maximumf %385, %386 : vector<16x4xf32>
      %c163 = arith.constant 163 : index
      %c0_412 = arith.constant 0 : index
      %388 = vector.load %arg8[%c163, %c0_412] : memref<342x4xf32, #tpu.memory_space<vmem>>, vector<16x4xf32>
      tpu.vector_store %arg8[%c163, %c0_412], %387 {strides = array<i32>} : memref<342x4xf32, #tpu.memory_space<vmem>>, vector<16x4xf32>,
      %c0_i32_413 = arith.constant 0 : i32
      %c0_i32_414 = arith.constant 0 : i32
      %c0_i32_415 = arith.constant 0 : i32
      %389 = tpu.memref_slice %arg2[%c0_i32_413, %c0_i32_414, %c0_i32_415] : memref<1x256x4xf32, #tpu.memory_space<vmem>> -> memref<1x256x4xf32, #tpu.memory_space<vmem>>
      %390 = tpu.memref_squeeze %389 : memref<1x256x4xf32, #tpu.memory_space<vmem>> -> memref<256x4xf32, #tpu.memory_space<vmem>>
      %c144_416 = arith.constant 144 : index
      %c0_417 = arith.constant 0 : index
      %391 = vector.load %390[%c144_416, %c0_417] : memref<256x4xf32, #tpu.memory_space<vmem>>, vector<16x4xf32>
      %c0_418 = arith.constant 0 : index
      %c0_419 = arith.constant 0 : index
      %392 = vector.load %arg3[%c0_418, %c0_419] : memref<1x4xf32, #tpu.memory_space<vmem>>, vector<1x4xf32>
      %393 = vector.broadcast %392 : vector<1x4xf32> to vector<16x4xf32>
      %394 = arith.mulf %391, %393 : vector<16x4xf32>
      %c0_420 = arith.constant 0 : index
      %c0_421 = arith.constant 0 : index
      %395 = vector.load %arg4[%c0_420, %c0_421] : memref<1x4xf32, #tpu.memory_space<vmem>>, vector<1x4xf32>
      %396 = vector.broadcast %395 : vector<1x4xf32> to vector<16x4xf32>
      %397 = arith.addf %394, %396 : vector<16x4xf32>
      %cst_422 = arith.constant 0.000000e+00 : f32
      %398 = vector.broadcast %cst_422 : f32 to vector<16x4xf32>
      %399 = arith.maximumf %397, %398 : vector<16x4xf32>
      %c181 = arith.constant 181 : index
      %c0_423 = arith.constant 0 : index
      %400 = vector.load %arg8[%c181, %c0_423] : memref<342x4xf32, #tpu.memory_space<vmem>>, vector<16x4xf32>
      tpu.vector_store %arg8[%c181, %c0_423], %399 {strides = array<i32>} : memref<342x4xf32, #tpu.memory_space<vmem>>, vector<16x4xf32>,
      %c0_i32_424 = arith.constant 0 : i32
      %c0_i32_425 = arith.constant 0 : i32
      %c0_i32_426 = arith.constant 0 : i32
      %401 = tpu.memref_slice %arg2[%c0_i32_424, %c0_i32_425, %c0_i32_426] : memref<1x256x4xf32, #tpu.memory_space<vmem>> -> memref<1x256x4xf32, #tpu.memory_space<vmem>>
      %402 = tpu.memref_squeeze %401 : memref<1x256x4xf32, #tpu.memory_space<vmem>> -> memref<256x4xf32, #tpu.memory_space<vmem>>
      %c160_427 = arith.constant 160 : index
      %c0_428 = arith.constant 0 : index
      %403 = vector.load %402[%c160_427, %c0_428] : memref<256x4xf32, #tpu.memory_space<vmem>>, vector<16x4xf32>
      %c0_429 = arith.constant 0 : index
      %c0_430 = arith.constant 0 : index
      %404 = vector.load %arg3[%c0_429, %c0_430] : memref<1x4xf32, #tpu.memory_space<vmem>>, vector<1x4xf32>
      %405 = vector.broadcast %404 : vector<1x4xf32> to vector<16x4xf32>
      %406 = arith.mulf %403, %405 : vector<16x4xf32>
      %c0_431 = arith.constant 0 : index
      %c0_432 = arith.constant 0 : index
      %407 = vector.load %arg4[%c0_431, %c0_432] : memref<1x4xf32, #tpu.memory_space<vmem>>, vector<1x4xf32>
      %408 = vector.broadcast %407 : vector<1x4xf32> to vector<16x4xf32>
      %409 = arith.addf %406, %408 : vector<16x4xf32>
      %cst_433 = arith.constant 0.000000e+00 : f32
      %410 = vector.broadcast %cst_433 : f32 to vector<16x4xf32>
      %411 = arith.maximumf %409, %410 : vector<16x4xf32>
      %c199 = arith.constant 199 : index
      %c0_434 = arith.constant 0 : index
      %412 = vector.load %arg8[%c199, %c0_434] : memref<342x4xf32, #tpu.memory_space<vmem>>, vector<16x4xf32>
      tpu.vector_store %arg8[%c199, %c0_434], %411 {strides = array<i32>} : memref<342x4xf32, #tpu.memory_space<vmem>>, vector<16x4xf32>,
      %c0_i32_435 = arith.constant 0 : i32
      %c0_i32_436 = arith.constant 0 : i32
      %c0_i32_437 = arith.constant 0 : i32
      %413 = tpu.memref_slice %arg2[%c0_i32_435, %c0_i32_436, %c0_i32_437] : memref<1x256x4xf32, #tpu.memory_space<vmem>> -> memref<1x256x4xf32, #tpu.memory_space<vmem>>
      %414 = tpu.memref_squeeze %413 : memref<1x256x4xf32, #tpu.memory_space<vmem>> -> memref<256x4xf32, #tpu.memory_space<vmem>>
      %c176_438 = arith.constant 176 : index
      %c0_439 = arith.constant 0 : index
      %415 = vector.load %414[%c176_438, %c0_439] : memref<256x4xf32, #tpu.memory_space<vmem>>, vector<16x4xf32>
      %c0_440 = arith.constant 0 : index
      %c0_441 = arith.constant 0 : index
      %416 = vector.load %arg3[%c0_440, %c0_441] : memref<1x4xf32, #tpu.memory_space<vmem>>, vector<1x4xf32>
      %417 = vector.broadcast %416 : vector<1x4xf32> to vector<16x4xf32>
      %418 = arith.mulf %415, %417 : vector<16x4xf32>
      %c0_442 = arith.constant 0 : index
      %c0_443 = arith.constant 0 : index
      %419 = vector.load %arg4[%c0_442, %c0_443] : memref<1x4xf32, #tpu.memory_space<vmem>>, vector<1x4xf32>
      %420 = vector.broadcast %419 : vector<1x4xf32> to vector<16x4xf32>
      %421 = arith.addf %418, %420 : vector<16x4xf32>
      %cst_444 = arith.constant 0.000000e+00 : f32
      %422 = vector.broadcast %cst_444 : f32 to vector<16x4xf32>
      %423 = arith.maximumf %421, %422 : vector<16x4xf32>
      %c217 = arith.constant 217 : index
      %c0_445 = arith.constant 0 : index
      %424 = vector.load %arg8[%c217, %c0_445] : memref<342x4xf32, #tpu.memory_space<vmem>>, vector<16x4xf32>
      tpu.vector_store %arg8[%c217, %c0_445], %423 {strides = array<i32>} : memref<342x4xf32, #tpu.memory_space<vmem>>, vector<16x4xf32>,
      %c0_i32_446 = arith.constant 0 : i32
      %c0_i32_447 = arith.constant 0 : i32
      %c0_i32_448 = arith.constant 0 : i32
      %425 = tpu.memref_slice %arg2[%c0_i32_446, %c0_i32_447, %c0_i32_448] : memref<1x256x4xf32, #tpu.memory_space<vmem>> -> memref<1x256x4xf32, #tpu.memory_space<vmem>>
      %426 = tpu.memref_squeeze %425 : memref<1x256x4xf32, #tpu.memory_space<vmem>> -> memref<256x4xf32, #tpu.memory_space<vmem>>
      %c192_449 = arith.constant 192 : index
      %c0_450 = arith.constant 0 : index
      %427 = vector.load %426[%c192_449, %c0_450] : memref<256x4xf32, #tpu.memory_space<vmem>>, vector<16x4xf32>
      %c0_451 = arith.constant 0 : index
      %c0_452 = arith.constant 0 : index
      %428 = vector.load %arg3[%c0_451, %c0_452] : memref<1x4xf32, #tpu.memory_space<vmem>>, vector<1x4xf32>
      %429 = vector.broadcast %428 : vector<1x4xf32> to vector<16x4xf32>
      %430 = arith.mulf %427, %429 : vector<16x4xf32>
      %c0_453 = arith.constant 0 : index
      %c0_454 = arith.constant 0 : index
      %431 = vector.load %arg4[%c0_453, %c0_454] : memref<1x4xf32, #tpu.memory_space<vmem>>, vector<1x4xf32>
      %432 = vector.broadcast %431 : vector<1x4xf32> to vector<16x4xf32>
      %433 = arith.addf %430, %432 : vector<16x4xf32>
      %cst_455 = arith.constant 0.000000e+00 : f32
      %434 = vector.broadcast %cst_455 : f32 to vector<16x4xf32>
      %435 = arith.maximumf %433, %434 : vector<16x4xf32>
      %c235 = arith.constant 235 : index
      %c0_456 = arith.constant 0 : index
      %436 = vector.load %arg8[%c235, %c0_456] : memref<342x4xf32, #tpu.memory_space<vmem>>, vector<16x4xf32>
      tpu.vector_store %arg8[%c235, %c0_456], %435 {strides = array<i32>} : memref<342x4xf32, #tpu.memory_space<vmem>>, vector<16x4xf32>,
      %c0_i32_457 = arith.constant 0 : i32
      %c0_i32_458 = arith.constant 0 : i32
      %c0_i32_459 = arith.constant 0 : i32
      %437 = tpu.memref_slice %arg2[%c0_i32_457, %c0_i32_458, %c0_i32_459] : memref<1x256x4xf32, #tpu.memory_space<vmem>> -> memref<1x256x4xf32, #tpu.memory_space<vmem>>
      %438 = tpu.memref_squeeze %437 : memref<1x256x4xf32, #tpu.memory_space<vmem>> -> memref<256x4xf32, #tpu.memory_space<vmem>>
      %c208_460 = arith.constant 208 : index
      %c0_461 = arith.constant 0 : index
      %439 = vector.load %438[%c208_460, %c0_461] : memref<256x4xf32, #tpu.memory_space<vmem>>, vector<16x4xf32>
      %c0_462 = arith.constant 0 : index
      %c0_463 = arith.constant 0 : index
      %440 = vector.load %arg3[%c0_462, %c0_463] : memref<1x4xf32, #tpu.memory_space<vmem>>, vector<1x4xf32>
      %441 = vector.broadcast %440 : vector<1x4xf32> to vector<16x4xf32>
      %442 = arith.mulf %439, %441 : vector<16x4xf32>
      %c0_464 = arith.constant 0 : index
      %c0_465 = arith.constant 0 : index
      %443 = vector.load %arg4[%c0_464, %c0_465] : memref<1x4xf32, #tpu.memory_space<vmem>>, vector<1x4xf32>
      %444 = vector.broadcast %443 : vector<1x4xf32> to vector<16x4xf32>
      %445 = arith.addf %442, %444 : vector<16x4xf32>
      %cst_466 = arith.constant 0.000000e+00 : f32
      %446 = vector.broadcast %cst_466 : f32 to vector<16x4xf32>
      %447 = arith.maximumf %445, %446 : vector<16x4xf32>
      %c253 = arith.constant 253 : index
      %c0_467 = arith.constant 0 : index
      %448 = vector.load %arg8[%c253, %c0_467] : memref<342x4xf32, #tpu.memory_space<vmem>>, vector<16x4xf32>
      tpu.vector_store %arg8[%c253, %c0_467], %447 {strides = array<i32>} : memref<342x4xf32, #tpu.memory_space<vmem>>, vector<16x4xf32>,
      %c0_i32_468 = arith.constant 0 : i32
      %c0_i32_469 = arith.constant 0 : i32
      %c0_i32_470 = arith.constant 0 : i32
      %449 = tpu.memref_slice %arg2[%c0_i32_468, %c0_i32_469, %c0_i32_470] : memref<1x256x4xf32, #tpu.memory_space<vmem>> -> memref<1x256x4xf32, #tpu.memory_space<vmem>>
      %450 = tpu.memref_squeeze %449 : memref<1x256x4xf32, #tpu.memory_space<vmem>> -> memref<256x4xf32, #tpu.memory_space<vmem>>
      %c224_471 = arith.constant 224 : index
      %c0_472 = arith.constant 0 : index
      %451 = vector.load %450[%c224_471, %c0_472] : memref<256x4xf32, #tpu.memory_space<vmem>>, vector<16x4xf32>
      %c0_473 = arith.constant 0 : index
      %c0_474 = arith.constant 0 : index
      %452 = vector.load %arg3[%c0_473, %c0_474] : memref<1x4xf32, #tpu.memory_space<vmem>>, vector<1x4xf32>
      %453 = vector.broadcast %452 : vector<1x4xf32> to vector<16x4xf32>
      %454 = arith.mulf %451, %453 : vector<16x4xf32>
      %c0_475 = arith.constant 0 : index
      %c0_476 = arith.constant 0 : index
      %455 = vector.load %arg4[%c0_475, %c0_476] : memref<1x4xf32, #tpu.memory_space<vmem>>, vector<1x4xf32>
      %456 = vector.broadcast %455 : vector<1x4xf32> to vector<16x4xf32>
      %457 = arith.addf %454, %456 : vector<16x4xf32>
      %cst_477 = arith.constant 0.000000e+00 : f32
      %458 = vector.broadcast %cst_477 : f32 to vector<16x4xf32>
      %459 = arith.maximumf %457, %458 : vector<16x4xf32>
      %c271 = arith.constant 271 : index
      %c0_478 = arith.constant 0 : index
      %460 = vector.load %arg8[%c271, %c0_478] : memref<342x4xf32, #tpu.memory_space<vmem>>, vector<16x4xf32>
      tpu.vector_store %arg8[%c271, %c0_478], %459 {strides = array<i32>} : memref<342x4xf32, #tpu.memory_space<vmem>>, vector<16x4xf32>,
      %c0_i32_479 = arith.constant 0 : i32
      %c0_i32_480 = arith.constant 0 : i32
      %c0_i32_481 = arith.constant 0 : i32
      %461 = tpu.memref_slice %arg2[%c0_i32_479, %c0_i32_480, %c0_i32_481] : memref<1x256x4xf32, #tpu.memory_space<vmem>> -> memref<1x256x4xf32, #tpu.memory_space<vmem>>
      %462 = tpu.memref_squeeze %461 : memref<1x256x4xf32, #tpu.memory_space<vmem>> -> memref<256x4xf32, #tpu.memory_space<vmem>>
      %c240_482 = arith.constant 240 : index
      %c0_483 = arith.constant 0 : index
      %463 = vector.load %462[%c240_482, %c0_483] : memref<256x4xf32, #tpu.memory_space<vmem>>, vector<16x4xf32>
      %c0_484 = arith.constant 0 : index
      %c0_485 = arith.constant 0 : index
      %464 = vector.load %arg3[%c0_484, %c0_485] : memref<1x4xf32, #tpu.memory_space<vmem>>, vector<1x4xf32>
      %465 = vector.broadcast %464 : vector<1x4xf32> to vector<16x4xf32>
      %466 = arith.mulf %463, %465 : vector<16x4xf32>
      %c0_486 = arith.constant 0 : index
      %c0_487 = arith.constant 0 : index
      %467 = vector.load %arg4[%c0_486, %c0_487] : memref<1x4xf32, #tpu.memory_space<vmem>>, vector<1x4xf32>
      %468 = vector.broadcast %467 : vector<1x4xf32> to vector<16x4xf32>
      %469 = arith.addf %466, %468 : vector<16x4xf32>
      %cst_488 = arith.constant 0.000000e+00 : f32
      %470 = vector.broadcast %cst_488 : f32 to vector<16x4xf32>
      %471 = arith.maximumf %469, %470 : vector<16x4xf32>
      %c289 = arith.constant 289 : index
      %c0_489 = arith.constant 0 : index
      %472 = vector.load %arg8[%c289, %c0_489] : memref<342x4xf32, #tpu.memory_space<vmem>>, vector<16x4xf32>
      tpu.vector_store %arg8[%c289, %c0_489], %471 {strides = array<i32>} : memref<342x4xf32, #tpu.memory_space<vmem>>, vector<16x4xf32>,
    } else {
    }
    %cst = arith.constant 0.000000e+00 : f32
    %3 = vector.broadcast %cst : f32 to vector<256x4xf32>
    %c0 = arith.constant 0 : index
    %c0_1 = arith.constant 0 : index
    %4 = vector.load %arg8[%c0, %c0_1] : memref<342x4xf32, #tpu.memory_space<vmem>>, vector<256x4xf32>
    %5 = arith.truncf %4 : vector<256x4xf32> to vector<256x4xbf16>
    %c0_2 = arith.constant 0 : index
    %c0_3 = arith.constant 0 : index
    %c0_4 = arith.constant 0 : index
    %6 = vector.load %arg5[%c0_2, %c0_3, %c0_4] : memref<9x4x4xbf16, #tpu.memory_space<vmem>>, vector<1x4x4xbf16>
    %7 = vector.shape_cast %6 : vector<1x4x4xbf16> to vector<4x4xbf16>
    %cst_5 = arith.constant dense<0.000000e+00> : vector<256x4xf32>
    %8 = tpu.matmul %5, %7, %cst_5 {dimension_numbers = #tpu.dot_dimension_numbers<[1], [0], [0], [1], [0, 0, 1, 1], [], []>} : vector<256x4xbf16>, vector<4x4xbf16>, vector<256x4xf32> -> vector<256x4xf32>
    %9 = arith.addf %3, %8 : vector<256x4xf32>
    %c1 = arith.constant 1 : index
    %c0_6 = arith.constant 0 : index
    %10 = vector.load %arg8[%c1, %c0_6] : memref<342x4xf32, #tpu.memory_space<vmem>>, vector<256x4xf32>
    %11 = arith.truncf %10 : vector<256x4xf32> to vector<256x4xbf16>
    %c1_7 = arith.constant 1 : index
    %c0_8 = arith.constant 0 : index
    %c0_9 = arith.constant 0 : index
    %12 = vector.load %arg5[%c1_7, %c0_8, %c0_9] : memref<9x4x4xbf16, #tpu.memory_space<vmem>>, vector<1x4x4xbf16>
    %13 = vector.shape_cast %12 : vector<1x4x4xbf16> to vector<4x4xbf16>
    %cst_10 = arith.constant dense<0.000000e+00> : vector<256x4xf32>
    %14 = tpu.matmul %11, %13, %cst_10 {dimension_numbers = #tpu.dot_dimension_numbers<[1], [0], [0], [1], [0, 0, 1, 1], [], []>} : vector<256x4xbf16>, vector<4x4xbf16>, vector<256x4xf32> -> vector<256x4xf32>
    %15 = arith.addf %9, %14 : vector<256x4xf32>
    %c2 = arith.constant 2 : index
    %c0_11 = arith.constant 0 : index
    %16 = vector.load %arg8[%c2, %c0_11] : memref<342x4xf32, #tpu.memory_space<vmem>>, vector<256x4xf32>
    %17 = arith.truncf %16 : vector<256x4xf32> to vector<256x4xbf16>
    %c2_12 = arith.constant 2 : index
    %c0_13 = arith.constant 0 : index
    %c0_14 = arith.constant 0 : index
    %18 = vector.load %arg5[%c2_12, %c0_13, %c0_14] : memref<9x4x4xbf16, #tpu.memory_space<vmem>>, vector<1x4x4xbf16>
    %19 = vector.shape_cast %18 : vector<1x4x4xbf16> to vector<4x4xbf16>
    %cst_15 = arith.constant dense<0.000000e+00> : vector<256x4xf32>
    %20 = tpu.matmul %17, %19, %cst_15 {dimension_numbers = #tpu.dot_dimension_numbers<[1], [0], [0], [1], [0, 0, 1, 1], [], []>} : vector<256x4xbf16>, vector<4x4xbf16>, vector<256x4xf32> -> vector<256x4xf32>
    %21 = arith.addf %15, %20 : vector<256x4xf32>
    %c18 = arith.constant 18 : index
    %c0_16 = arith.constant 0 : index
    %22 = vector.load %arg8[%c18, %c0_16] : memref<342x4xf32, #tpu.memory_space<vmem>>, vector<256x4xf32>
    %23 = arith.truncf %22 : vector<256x4xf32> to vector<256x4xbf16>
    %c3 = arith.constant 3 : index
    %c0_17 = arith.constant 0 : index
    %c0_18 = arith.constant 0 : index
    %24 = vector.load %arg5[%c3, %c0_17, %c0_18] : memref<9x4x4xbf16, #tpu.memory_space<vmem>>, vector<1x4x4xbf16>
    %25 = vector.shape_cast %24 : vector<1x4x4xbf16> to vector<4x4xbf16>
    %cst_19 = arith.constant dense<0.000000e+00> : vector<256x4xf32>
    %26 = tpu.matmul %23, %25, %cst_19 {dimension_numbers = #tpu.dot_dimension_numbers<[1], [0], [0], [1], [0, 0, 1, 1], [], []>} : vector<256x4xbf16>, vector<4x4xbf16>, vector<256x4xf32> -> vector<256x4xf32>
    %27 = arith.addf %21, %26 : vector<256x4xf32>
    %c19 = arith.constant 19 : index
    %c0_20 = arith.constant 0 : index
    %28 = vector.load %arg8[%c19, %c0_20] : memref<342x4xf32, #tpu.memory_space<vmem>>, vector<256x4xf32>
    %29 = arith.truncf %28 : vector<256x4xf32> to vector<256x4xbf16>
    %c4 = arith.constant 4 : index
    %c0_21 = arith.constant 0 : index
    %c0_22 = arith.constant 0 : index
    %30 = vector.load %arg5[%c4, %c0_21, %c0_22] : memref<9x4x4xbf16, #tpu.memory_space<vmem>>, vector<1x4x4xbf16>
    %31 = vector.shape_cast %30 : vector<1x4x4xbf16> to vector<4x4xbf16>
    %cst_23 = arith.constant dense<0.000000e+00> : vector<256x4xf32>
    %32 = tpu.matmul %29, %31, %cst_23 {dimension_numbers = #tpu.dot_dimension_numbers<[1], [0], [0], [1], [0, 0, 1, 1], [], []>} : vector<256x4xbf16>, vector<4x4xbf16>, vector<256x4xf32> -> vector<256x4xf32>
    %33 = arith.addf %27, %32 : vector<256x4xf32>
    %c20 = arith.constant 20 : index
    %c0_24 = arith.constant 0 : index
    %34 = vector.load %arg8[%c20, %c0_24] : memref<342x4xf32, #tpu.memory_space<vmem>>, vector<256x4xf32>
    %35 = arith.truncf %34 : vector<256x4xf32> to vector<256x4xbf16>
    %c5 = arith.constant 5 : index
    %c0_25 = arith.constant 0 : index
    %c0_26 = arith.constant 0 : index
    %36 = vector.load %arg5[%c5, %c0_25, %c0_26] : memref<9x4x4xbf16, #tpu.memory_space<vmem>>, vector<1x4x4xbf16>
    %37 = vector.shape_cast %36 : vector<1x4x4xbf16> to vector<4x4xbf16>
    %cst_27 = arith.constant dense<0.000000e+00> : vector<256x4xf32>
    %38 = tpu.matmul %35, %37, %cst_27 {dimension_numbers = #tpu.dot_dimension_numbers<[1], [0], [0], [1], [0, 0, 1, 1], [], []>} : vector<256x4xbf16>, vector<4x4xbf16>, vector<256x4xf32> -> vector<256x4xf32>
    %39 = arith.addf %33, %38 : vector<256x4xf32>
    %c36 = arith.constant 36 : index
    %c0_28 = arith.constant 0 : index
    %40 = vector.load %arg8[%c36, %c0_28] : memref<342x4xf32, #tpu.memory_space<vmem>>, vector<256x4xf32>
    %41 = arith.truncf %40 : vector<256x4xf32> to vector<256x4xbf16>
    %c6 = arith.constant 6 : index
    %c0_29 = arith.constant 0 : index
    %c0_30 = arith.constant 0 : index
    %42 = vector.load %arg5[%c6, %c0_29, %c0_30] : memref<9x4x4xbf16, #tpu.memory_space<vmem>>, vector<1x4x4xbf16>
    %43 = vector.shape_cast %42 : vector<1x4x4xbf16> to vector<4x4xbf16>
    %cst_31 = arith.constant dense<0.000000e+00> : vector<256x4xf32>
    %44 = tpu.matmul %41, %43, %cst_31 {dimension_numbers = #tpu.dot_dimension_numbers<[1], [0], [0], [1], [0, 0, 1, 1], [], []>} : vector<256x4xbf16>, vector<4x4xbf16>, vector<256x4xf32> -> vector<256x4xf32>
    %45 = arith.addf %39, %44 : vector<256x4xf32>
    %c37 = arith.constant 37 : index
    %c0_32 = arith.constant 0 : index
    %46 = vector.load %arg8[%c37, %c0_32] : memref<342x4xf32, #tpu.memory_space<vmem>>, vector<256x4xf32>
    %47 = arith.truncf %46 : vector<256x4xf32> to vector<256x4xbf16>
    %c7 = arith.constant 7 : index
    %c0_33 = arith.constant 0 : index
    %c0_34 = arith.constant 0 : index
    %48 = vector.load %arg5[%c7, %c0_33, %c0_34] : memref<9x4x4xbf16, #tpu.memory_space<vmem>>, vector<1x4x4xbf16>
    %49 = vector.shape_cast %48 : vector<1x4x4xbf16> to vector<4x4xbf16>
    %cst_35 = arith.constant dense<0.000000e+00> : vector<256x4xf32>
    %50 = tpu.matmul %47, %49, %cst_35 {dimension_numbers = #tpu.dot_dimension_numbers<[1], [0], [0], [1], [0, 0, 1, 1], [], []>} : vector<256x4xbf16>, vector<4x4xbf16>, vector<256x4xf32> -> vector<256x4xf32>
    %51 = arith.addf %45, %50 : vector<256x4xf32>
    %c38 = arith.constant 38 : index
    %c0_36 = arith.constant 0 : index
    %52 = vector.load %arg8[%c38, %c0_36] : memref<342x4xf32, #tpu.memory_space<vmem>>, vector<256x4xf32>
    %53 = arith.truncf %52 : vector<256x4xf32> to vector<256x4xbf16>
    %c8 = arith.constant 8 : index
    %c0_37 = arith.constant 0 : index
    %c0_38 = arith.constant 0 : index
    %54 = vector.load %arg5[%c8, %c0_37, %c0_38] : memref<9x4x4xbf16, #tpu.memory_space<vmem>>, vector<1x4x4xbf16>
    %55 = vector.shape_cast %54 : vector<1x4x4xbf16> to vector<4x4xbf16>
    %cst_39 = arith.constant dense<0.000000e+00> : vector<256x4xf32>
    %56 = tpu.matmul %53, %55, %cst_39 {dimension_numbers = #tpu.dot_dimension_numbers<[1], [0], [0], [1], [0, 0, 1, 1], [], []>} : vector<256x4xbf16>, vector<4x4xbf16>, vector<256x4xf32> -> vector<256x4xf32>
    %57 = arith.addf %51, %56 : vector<256x4xf32>
    %c0_i32_40 = arith.constant 0 : i32
    %c0_i32_41 = arith.constant 0 : i32
    %c0_i32_42 = arith.constant 0 : i32
    %58 = tpu.memref_slice %arg7[%c0_i32_40, %c0_i32_41, %c0_i32_42] : memref<1x288x4xf32, #tpu.memory_space<vmem>> -> memref<1x288x4xf32, #tpu.memory_space<vmem>>
    %59 = tpu.memref_squeeze %58 : memref<1x288x4xf32, #tpu.memory_space<vmem>> -> memref<288x4xf32, #tpu.memory_space<vmem>>
    %c0_43 = arith.constant 0 : index
    %c0_44 = arith.constant 0 : index
    %60 = vector.load %59[%c0_43, %c0_44] : memref<288x4xf32, #tpu.memory_space<vmem>>, vector<256x4xf32>
    tpu.vector_store %59[%c0_43, %c0_44], %57 {strides = array<i32>} : memref<288x4xf32, #tpu.memory_space<vmem>>, vector<256x4xf32>,
    %cst_45 = arith.constant 0.000000e+00 : f32
    %61 = vector.broadcast %cst_45 : f32 to vector<32x4xf32>
    %c256 = arith.constant 256 : index
    %c0_46 = arith.constant 0 : index
    %62 = vector.load %arg8[%c256, %c0_46] : memref<342x4xf32, #tpu.memory_space<vmem>>, vector<32x4xf32>
    %63 = arith.truncf %62 : vector<32x4xf32> to vector<32x4xbf16>
    %c0_47 = arith.constant 0 : index
    %c0_48 = arith.constant 0 : index
    %c0_49 = arith.constant 0 : index
    %64 = vector.load %arg5[%c0_47, %c0_48, %c0_49] : memref<9x4x4xbf16, #tpu.memory_space<vmem>>, vector<1x4x4xbf16>
    %65 = vector.shape_cast %64 : vector<1x4x4xbf16> to vector<4x4xbf16>
    %cst_50 = arith.constant dense<0.000000e+00> : vector<32x4xf32>
    %66 = tpu.matmul %63, %65, %cst_50 {dimension_numbers = #tpu.dot_dimension_numbers<[1], [0], [0], [1], [0, 0, 1, 1], [], []>} : vector<32x4xbf16>, vector<4x4xbf16>, vector<32x4xf32> -> vector<32x4xf32>
    %67 = arith.addf %61, %66 : vector<32x4xf32>
    %c257 = arith.constant 257 : index
    %c0_51 = arith.constant 0 : index
    %68 = vector.load %arg8[%c257, %c0_51] : memref<342x4xf32, #tpu.memory_space<vmem>>, vector<32x4xf32>
    %69 = arith.truncf %68 : vector<32x4xf32> to vector<32x4xbf16>
    %c1_52 = arith.constant 1 : index
    %c0_53 = arith.constant 0 : index
    %c0_54 = arith.constant 0 : index
    %70 = vector.load %arg5[%c1_52, %c0_53, %c0_54] : memref<9x4x4xbf16, #tpu.memory_space<vmem>>, vector<1x4x4xbf16>
    %71 = vector.shape_cast %70 : vector<1x4x4xbf16> to vector<4x4xbf16>
    %cst_55 = arith.constant dense<0.000000e+00> : vector<32x4xf32>
    %72 = tpu.matmul %69, %71, %cst_55 {dimension_numbers = #tpu.dot_dimension_numbers<[1], [0], [0], [1], [0, 0, 1, 1], [], []>} : vector<32x4xbf16>, vector<4x4xbf16>, vector<32x4xf32> -> vector<32x4xf32>
    %73 = arith.addf %67, %72 : vector<32x4xf32>
    %c258 = arith.constant 258 : index
    %c0_56 = arith.constant 0 : index
    %74 = vector.load %arg8[%c258, %c0_56] : memref<342x4xf32, #tpu.memory_space<vmem>>, vector<32x4xf32>
    %75 = arith.truncf %74 : vector<32x4xf32> to vector<32x4xbf16>
    %c2_57 = arith.constant 2 : index
    %c0_58 = arith.constant 0 : index
    %c0_59 = arith.constant 0 : index
    %76 = vector.load %arg5[%c2_57, %c0_58, %c0_59] : memref<9x4x4xbf16, #tpu.memory_space<vmem>>, vector<1x4x4xbf16>
    %77 = vector.shape_cast %76 : vector<1x4x4xbf16> to vector<4x4xbf16>
    %cst_60 = arith.constant dense<0.000000e+00> : vector<32x4xf32>
    %78 = tpu.matmul %75, %77, %cst_60 {dimension_numbers = #tpu.dot_dimension_numbers<[1], [0], [0], [1], [0, 0, 1, 1], [], []>} : vector<32x4xbf16>, vector<4x4xbf16>, vector<32x4xf32> -> vector<32x4xf32>
    %79 = arith.addf %73, %78 : vector<32x4xf32>
    %c274 = arith.constant 274 : index
    %c0_61 = arith.constant 0 : index
    %80 = vector.load %arg8[%c274, %c0_61] : memref<342x4xf32, #tpu.memory_space<vmem>>, vector<32x4xf32>
    %81 = arith.truncf %80 : vector<32x4xf32> to vector<32x4xbf16>
    %c3_62 = arith.constant 3 : index
    %c0_63 = arith.constant 0 : index
    %c0_64 = arith.constant 0 : index
    %82 = vector.load %arg5[%c3_62, %c0_63, %c0_64] : memref<9x4x4xbf16, #tpu.memory_space<vmem>>, vector<1x4x4xbf16>
    %83 = vector.shape_cast %82 : vector<1x4x4xbf16> to vector<4x4xbf16>
    %cst_65 = arith.constant dense<0.000000e+00> : vector<32x4xf32>
    %84 = tpu.matmul %81, %83, %cst_65 {dimension_numbers = #tpu.dot_dimension_numbers<[1], [0], [0], [1], [0, 0, 1, 1], [], []>} : vector<32x4xbf16>, vector<4x4xbf16>, vector<32x4xf32> -> vector<32x4xf32>
    %85 = arith.addf %79, %84 : vector<32x4xf32>
    %c275 = arith.constant 275 : index
    %c0_66 = arith.constant 0 : index
    %86 = vector.load %arg8[%c275, %c0_66] : memref<342x4xf32, #tpu.memory_space<vmem>>, vector<32x4xf32>
    %87 = arith.truncf %86 : vector<32x4xf32> to vector<32x4xbf16>
    %c4_67 = arith.constant 4 : index
    %c0_68 = arith.constant 0 : index
    %c0_69 = arith.constant 0 : index
    %88 = vector.load %arg5[%c4_67, %c0_68, %c0_69] : memref<9x4x4xbf16, #tpu.memory_space<vmem>>, vector<1x4x4xbf16>
    %89 = vector.shape_cast %88 : vector<1x4x4xbf16> to vector<4x4xbf16>
    %cst_70 = arith.constant dense<0.000000e+00> : vector<32x4xf32>
    %90 = tpu.matmul %87, %89, %cst_70 {dimension_numbers = #tpu.dot_dimension_numbers<[1], [0], [0], [1], [0, 0, 1, 1], [], []>} : vector<32x4xbf16>, vector<4x4xbf16>, vector<32x4xf32> -> vector<32x4xf32>
    %91 = arith.addf %85, %90 : vector<32x4xf32>
    %c276 = arith.constant 276 : index
    %c0_71 = arith.constant 0 : index
    %92 = vector.load %arg8[%c276, %c0_71] : memref<342x4xf32, #tpu.memory_space<vmem>>, vector<32x4xf32>
    %93 = arith.truncf %92 : vector<32x4xf32> to vector<32x4xbf16>
    %c5_72 = arith.constant 5 : index
    %c0_73 = arith.constant 0 : index
    %c0_74 = arith.constant 0 : index
    %94 = vector.load %arg5[%c5_72, %c0_73, %c0_74] : memref<9x4x4xbf16, #tpu.memory_space<vmem>>, vector<1x4x4xbf16>
    %95 = vector.shape_cast %94 : vector<1x4x4xbf16> to vector<4x4xbf16>
    %cst_75 = arith.constant dense<0.000000e+00> : vector<32x4xf32>
    %96 = tpu.matmul %93, %95, %cst_75 {dimension_numbers = #tpu.dot_dimension_numbers<[1], [0], [0], [1], [0, 0, 1, 1], [], []>} : vector<32x4xbf16>, vector<4x4xbf16>, vector<32x4xf32> -> vector<32x4xf32>
    %97 = arith.addf %91, %96 : vector<32x4xf32>
    %c292 = arith.constant 292 : index
    %c0_76 = arith.constant 0 : index
    %98 = vector.load %arg8[%c292, %c0_76] : memref<342x4xf32, #tpu.memory_space<vmem>>, vector<32x4xf32>
    %99 = arith.truncf %98 : vector<32x4xf32> to vector<32x4xbf16>
    %c6_77 = arith.constant 6 : index
    %c0_78 = arith.constant 0 : index
    %c0_79 = arith.constant 0 : index
    %100 = vector.load %arg5[%c6_77, %c0_78, %c0_79] : memref<9x4x4xbf16, #tpu.memory_space<vmem>>, vector<1x4x4xbf16>
    %101 = vector.shape_cast %100 : vector<1x4x4xbf16> to vector<4x4xbf16>
    %cst_80 = arith.constant dense<0.000000e+00> : vector<32x4xf32>
    %102 = tpu.matmul %99, %101, %cst_80 {dimension_numbers = #tpu.dot_dimension_numbers<[1], [0], [0], [1], [0, 0, 1, 1], [], []>} : vector<32x4xbf16>, vector<4x4xbf16>, vector<32x4xf32> -> vector<32x4xf32>
    %103 = arith.addf %97, %102 : vector<32x4xf32>
    %c293 = arith.constant 293 : index
    %c0_81 = arith.constant 0 : index
    %104 = vector.load %arg8[%c293, %c0_81] : memref<342x4xf32, #tpu.memory_space<vmem>>, vector<32x4xf32>
    %105 = arith.truncf %104 : vector<32x4xf32> to vector<32x4xbf16>
    %c7_82 = arith.constant 7 : index
    %c0_83 = arith.constant 0 : index
    %c0_84 = arith.constant 0 : index
    %106 = vector.load %arg5[%c7_82, %c0_83, %c0_84] : memref<9x4x4xbf16, #tpu.memory_space<vmem>>, vector<1x4x4xbf16>
    %107 = vector.shape_cast %106 : vector<1x4x4xbf16> to vector<4x4xbf16>
    %cst_85 = arith.constant dense<0.000000e+00> : vector<32x4xf32>
    %108 = tpu.matmul %105, %107, %cst_85 {dimension_numbers = #tpu.dot_dimension_numbers<[1], [0], [0], [1], [0, 0, 1, 1], [], []>} : vector<32x4xbf16>, vector<4x4xbf16>, vector<32x4xf32> -> vector<32x4xf32>
    %109 = arith.addf %103, %108 : vector<32x4xf32>
    %c294 = arith.constant 294 : index
    %c0_86 = arith.constant 0 : index
    %110 = vector.load %arg8[%c294, %c0_86] : memref<342x4xf32, #tpu.memory_space<vmem>>, vector<32x4xf32>
    %111 = arith.truncf %110 : vector<32x4xf32> to vector<32x4xbf16>
    %c8_87 = arith.constant 8 : index
    %c0_88 = arith.constant 0 : index
    %c0_89 = arith.constant 0 : index
    %112 = vector.load %arg5[%c8_87, %c0_88, %c0_89] : memref<9x4x4xbf16, #tpu.memory_space<vmem>>, vector<1x4x4xbf16>
    %113 = vector.shape_cast %112 : vector<1x4x4xbf16> to vector<4x4xbf16>
    %cst_90 = arith.constant dense<0.000000e+00> : vector<32x4xf32>
    %114 = tpu.matmul %111, %113, %cst_90 {dimension_numbers = #tpu.dot_dimension_numbers<[1], [0], [0], [1], [0, 0, 1, 1], [], []>} : vector<32x4xbf16>, vector<4x4xbf16>, vector<32x4xf32> -> vector<32x4xf32>
    %115 = arith.addf %109, %114 : vector<32x4xf32>
    %c0_i32_91 = arith.constant 0 : i32
    %c0_i32_92 = arith.constant 0 : i32
    %c0_i32_93 = arith.constant 0 : i32
    %116 = tpu.memref_slice %arg7[%c0_i32_91, %c0_i32_92, %c0_i32_93] : memref<1x288x4xf32, #tpu.memory_space<vmem>> -> memref<1x288x4xf32, #tpu.memory_space<vmem>>
    %117 = tpu.memref_squeeze %116 : memref<1x288x4xf32, #tpu.memory_space<vmem>> -> memref<288x4xf32, #tpu.memory_space<vmem>>
    %c256_94 = arith.constant 256 : index
    %c0_95 = arith.constant 0 : index
    %118 = vector.load %117[%c256_94, %c0_95] : memref<288x4xf32, #tpu.memory_space<vmem>>, vector<32x4xf32>
    tpu.vector_store %117[%c256_94, %c0_95], %115 {strides = array<i32>} : memref<288x4xf32, #tpu.memory_space<vmem>>, vector<32x4xf32>,
    %c0_i32_96 = arith.constant 0 : i32
    %c0_i32_97 = arith.constant 0 : i32
    %c0_i32_98 = arith.constant 0 : i32
    %119 = tpu.memref_slice %arg7[%c0_i32_96, %c0_i32_97, %c0_i32_98] : memref<1x288x4xf32, #tpu.memory_space<vmem>> -> memref<1x288x4xf32, #tpu.memory_space<vmem>>
    %120 = tpu.memref_squeeze %119 : memref<1x288x4xf32, #tpu.memory_space<vmem>> -> memref<288x4xf32, #tpu.memory_space<vmem>>
    %c0_99 = arith.constant 0 : index
    %c0_100 = arith.constant 0 : index
    %121 = vector.load %120[%c0_99, %c0_100] : memref<288x4xf32, #tpu.memory_space<vmem>>, vector<16x4xf32>
    %c0_i32_101 = arith.constant 0 : i32
    %c0_i32_102 = arith.constant 0 : i32
    %c0_i32_103 = arith.constant 0 : i32
    %122 = tpu.memref_slice %arg6[%c0_i32_101, %c0_i32_102, %c0_i32_103] : memref<1x256x4xf32, #tpu.memory_space<vmem>> -> memref<1x256x4xf32, #tpu.memory_space<vmem>>
    %123 = tpu.memref_squeeze %122 : memref<1x256x4xf32, #tpu.memory_space<vmem>> -> memref<256x4xf32, #tpu.memory_space<vmem>>
    %c0_104 = arith.constant 0 : index
    %c0_105 = arith.constant 0 : index
    %124 = vector.load %123[%c0_104, %c0_105] : memref<256x4xf32, #tpu.memory_space<vmem>>, vector<16x4xf32>
    %125 = arith.addf %121, %124 : vector<16x4xf32>
    %c0_i32_106 = arith.constant 0 : i32
    %c0_i32_107 = arith.constant 0 : i32
    %c0_i32_108 = arith.constant 0 : i32
    %126 = tpu.memref_slice %arg7[%c0_i32_106, %c0_i32_107, %c0_i32_108] : memref<1x288x4xf32, #tpu.memory_space<vmem>> -> memref<1x288x4xf32, #tpu.memory_space<vmem>>
    %127 = tpu.memref_squeeze %126 : memref<1x288x4xf32, #tpu.memory_space<vmem>> -> memref<288x4xf32, #tpu.memory_space<vmem>>
    %c0_109 = arith.constant 0 : index
    %c0_110 = arith.constant 0 : index
    %128 = vector.load %127[%c0_109, %c0_110] : memref<288x4xf32, #tpu.memory_space<vmem>>, vector<16x4xf32>
    tpu.vector_store %127[%c0_109, %c0_110], %125 {strides = array<i32>} : memref<288x4xf32, #tpu.memory_space<vmem>>, vector<16x4xf32>,
    %c0_i32_111 = arith.constant 0 : i32
    %c0_i32_112 = arith.constant 0 : i32
    %c0_i32_113 = arith.constant 0 : i32
    %129 = tpu.memref_slice %arg7[%c0_i32_111, %c0_i32_112, %c0_i32_113] : memref<1x288x4xf32, #tpu.memory_space<vmem>> -> memref<1x288x4xf32, #tpu.memory_space<vmem>>
    %130 = tpu.memref_squeeze %129 : memref<1x288x4xf32, #tpu.memory_space<vmem>> -> memref<288x4xf32, #tpu.memory_space<vmem>>
    %c18_114 = arith.constant 18 : index
    %c0_115 = arith.constant 0 : index
    %131 = vector.load %130[%c18_114, %c0_115] : memref<288x4xf32, #tpu.memory_space<vmem>>, vector<16x4xf32>
    %c0_i32_116 = arith.constant 0 : i32
    %c0_i32_117 = arith.constant 0 : i32
    %c0_i32_118 = arith.constant 0 : i32
    %132 = tpu.memref_slice %arg6[%c0_i32_116, %c0_i32_117, %c0_i32_118] : memref<1x256x4xf32, #tpu.memory_space<vmem>> -> memref<1x256x4xf32, #tpu.memory_space<vmem>>
    %133 = tpu.memref_squeeze %132 : memref<1x256x4xf32, #tpu.memory_space<vmem>> -> memref<256x4xf32, #tpu.memory_space<vmem>>
    %c16 = arith.constant 16 : index
    %c0_119 = arith.constant 0 : index
    %134 = vector.load %133[%c16, %c0_119] : memref<256x4xf32, #tpu.memory_space<vmem>>, vector<16x4xf32>
    %135 = arith.addf %131, %134 : vector<16x4xf32>
    %c0_i32_120 = arith.constant 0 : i32
    %c0_i32_121 = arith.constant 0 : i32
    %c0_i32_122 = arith.constant 0 : i32
    %136 = tpu.memref_slice %arg7[%c0_i32_120, %c0_i32_121, %c0_i32_122] : memref<1x288x4xf32, #tpu.memory_space<vmem>> -> memref<1x288x4xf32, #tpu.memory_space<vmem>>
    %137 = tpu.memref_squeeze %136 : memref<1x288x4xf32, #tpu.memory_space<vmem>> -> memref<288x4xf32, #tpu.memory_space<vmem>>
    %c18_123 = arith.constant 18 : index
    %c0_124 = arith.constant 0 : index
    %138 = vector.load %137[%c18_123, %c0_124] : memref<288x4xf32, #tpu.memory_space<vmem>>, vector<16x4xf32>
    tpu.vector_store %137[%c18_123, %c0_124], %135 {strides = array<i32>} : memref<288x4xf32, #tpu.memory_space<vmem>>, vector<16x4xf32>,
    %c0_i32_125 = arith.constant 0 : i32
    %c0_i32_126 = arith.constant 0 : i32
    %c0_i32_127 = arith.constant 0 : i32
    %139 = tpu.memref_slice %arg7[%c0_i32_125, %c0_i32_126, %c0_i32_127] : memref<1x288x4xf32, #tpu.memory_space<vmem>> -> memref<1x288x4xf32, #tpu.memory_space<vmem>>
    %140 = tpu.memref_squeeze %139 : memref<1x288x4xf32, #tpu.memory_space<vmem>> -> memref<288x4xf32, #tpu.memory_space<vmem>>
    %c36_128 = arith.constant 36 : index
    %c0_129 = arith.constant 0 : index
    %141 = vector.load %140[%c36_128, %c0_129] : memref<288x4xf32, #tpu.memory_space<vmem>>, vector<16x4xf32>
    %c0_i32_130 = arith.constant 0 : i32
    %c0_i32_131 = arith.constant 0 : i32
    %c0_i32_132 = arith.constant 0 : i32
    %142 = tpu.memref_slice %arg6[%c0_i32_130, %c0_i32_131, %c0_i32_132] : memref<1x256x4xf32, #tpu.memory_space<vmem>> -> memref<1x256x4xf32, #tpu.memory_space<vmem>>
    %143 = tpu.memref_squeeze %142 : memref<1x256x4xf32, #tpu.memory_space<vmem>> -> memref<256x4xf32, #tpu.memory_space<vmem>>
    %c32 = arith.constant 32 : index
    %c0_133 = arith.constant 0 : index
    %144 = vector.load %143[%c32, %c0_133] : memref<256x4xf32, #tpu.memory_space<vmem>>, vector<16x4xf32>
    %145 = arith.addf %141, %144 : vector<16x4xf32>
    %c0_i32_134 = arith.constant 0 : i32
    %c0_i32_135 = arith.constant 0 : i32
    %c0_i32_136 = arith.constant 0 : i32
    %146 = tpu.memref_slice %arg7[%c0_i32_134, %c0_i32_135, %c0_i32_136] : memref<1x288x4xf32, #tpu.memory_space<vmem>> -> memref<1x288x4xf32, #tpu.memory_space<vmem>>
    %147 = tpu.memref_squeeze %146 : memref<1x288x4xf32, #tpu.memory_space<vmem>> -> memref<288x4xf32, #tpu.memory_space<vmem>>
    %c36_137 = arith.constant 36 : index
    %c0_138 = arith.constant 0 : index
    %148 = vector.load %147[%c36_137, %c0_138] : memref<288x4xf32, #tpu.memory_space<vmem>>, vector<16x4xf32>
    tpu.vector_store %147[%c36_137, %c0_138], %145 {strides = array<i32>} : memref<288x4xf32, #tpu.memory_space<vmem>>, vector<16x4xf32>,
    %c0_i32_139 = arith.constant 0 : i32
    %c0_i32_140 = arith.constant 0 : i32
    %c0_i32_141 = arith.constant 0 : i32
    %149 = tpu.memref_slice %arg7[%c0_i32_139, %c0_i32_140, %c0_i32_141] : memref<1x288x4xf32, #tpu.memory_space<vmem>> -> memref<1x288x4xf32, #tpu.memory_space<vmem>>
    %150 = tpu.memref_squeeze %149 : memref<1x288x4xf32, #tpu.memory_space<vmem>> -> memref<288x4xf32, #tpu.memory_space<vmem>>
    %c54 = arith.constant 54 : index
    %c0_142 = arith.constant 0 : index
    %151 = vector.load %150[%c54, %c0_142] : memref<288x4xf32, #tpu.memory_space<vmem>>, vector<16x4xf32>
    %c0_i32_143 = arith.constant 0 : i32
    %c0_i32_144 = arith.constant 0 : i32
    %c0_i32_145 = arith.constant 0 : i32
    %152 = tpu.memref_slice %arg6[%c0_i32_143, %c0_i32_144, %c0_i32_145] : memref<1x256x4xf32, #tpu.memory_space<vmem>> -> memref<1x256x4xf32, #tpu.memory_space<vmem>>
    %153 = tpu.memref_squeeze %152 : memref<1x256x4xf32, #tpu.memory_space<vmem>> -> memref<256x4xf32, #tpu.memory_space<vmem>>
    %c48 = arith.constant 48 : index
    %c0_146 = arith.constant 0 : index
    %154 = vector.load %153[%c48, %c0_146] : memref<256x4xf32, #tpu.memory_space<vmem>>, vector<16x4xf32>
    %155 = arith.addf %151, %154 : vector<16x4xf32>
    %c0_i32_147 = arith.constant 0 : i32
    %c0_i32_148 = arith.constant 0 : i32
    %c0_i32_149 = arith.constant 0 : i32
    %156 = tpu.memref_slice %arg7[%c0_i32_147, %c0_i32_148, %c0_i32_149] : memref<1x288x4xf32, #tpu.memory_space<vmem>> -> memref<1x288x4xf32, #tpu.memory_space<vmem>>
    %157 = tpu.memref_squeeze %156 : memref<1x288x4xf32, #tpu.memory_space<vmem>> -> memref<288x4xf32, #tpu.memory_space<vmem>>
    %c54_150 = arith.constant 54 : index
    %c0_151 = arith.constant 0 : index
    %158 = vector.load %157[%c54_150, %c0_151] : memref<288x4xf32, #tpu.memory_space<vmem>>, vector<16x4xf32>
    tpu.vector_store %157[%c54_150, %c0_151], %155 {strides = array<i32>} : memref<288x4xf32, #tpu.memory_space<vmem>>, vector<16x4xf32>,
    %c0_i32_152 = arith.constant 0 : i32
    %c0_i32_153 = arith.constant 0 : i32
    %c0_i32_154 = arith.constant 0 : i32
    %159 = tpu.memref_slice %arg7[%c0_i32_152, %c0_i32_153, %c0_i32_154] : memref<1x288x4xf32, #tpu.memory_space<vmem>> -> memref<1x288x4xf32, #tpu.memory_space<vmem>>
    %160 = tpu.memref_squeeze %159 : memref<1x288x4xf32, #tpu.memory_space<vmem>> -> memref<288x4xf32, #tpu.memory_space<vmem>>
    %c72 = arith.constant 72 : index
    %c0_155 = arith.constant 0 : index
    %161 = vector.load %160[%c72, %c0_155] : memref<288x4xf32, #tpu.memory_space<vmem>>, vector<16x4xf32>
    %c0_i32_156 = arith.constant 0 : i32
    %c0_i32_157 = arith.constant 0 : i32
    %c0_i32_158 = arith.constant 0 : i32
    %162 = tpu.memref_slice %arg6[%c0_i32_156, %c0_i32_157, %c0_i32_158] : memref<1x256x4xf32, #tpu.memory_space<vmem>> -> memref<1x256x4xf32, #tpu.memory_space<vmem>>
    %163 = tpu.memref_squeeze %162 : memref<1x256x4xf32, #tpu.memory_space<vmem>> -> memref<256x4xf32, #tpu.memory_space<vmem>>
    %c64 = arith.constant 64 : index
    %c0_159 = arith.constant 0 : index
    %164 = vector.load %163[%c64, %c0_159] : memref<256x4xf32, #tpu.memory_space<vmem>>, vector<16x4xf32>
    %165 = arith.addf %161, %164 : vector<16x4xf32>
    %c0_i32_160 = arith.constant 0 : i32
    %c0_i32_161 = arith.constant 0 : i32
    %c0_i32_162 = arith.constant 0 : i32
    %166 = tpu.memref_slice %arg7[%c0_i32_160, %c0_i32_161, %c0_i32_162] : memref<1x288x4xf32, #tpu.memory_space<vmem>> -> memref<1x288x4xf32, #tpu.memory_space<vmem>>
    %167 = tpu.memref_squeeze %166 : memref<1x288x4xf32, #tpu.memory_space<vmem>> -> memref<288x4xf32, #tpu.memory_space<vmem>>
    %c72_163 = arith.constant 72 : index
    %c0_164 = arith.constant 0 : index
    %168 = vector.load %167[%c72_163, %c0_164] : memref<288x4xf32, #tpu.memory_space<vmem>>, vector<16x4xf32>
    tpu.vector_store %167[%c72_163, %c0_164], %165 {strides = array<i32>} : memref<288x4xf32, #tpu.memory_space<vmem>>, vector<16x4xf32>,
    %c0_i32_165 = arith.constant 0 : i32
    %c0_i32_166 = arith.constant 0 : i32
    %c0_i32_167 = arith.constant 0 : i32
    %169 = tpu.memref_slice %arg7[%c0_i32_165, %c0_i32_166, %c0_i32_167] : memref<1x288x4xf32, #tpu.memory_space<vmem>> -> memref<1x288x4xf32, #tpu.memory_space<vmem>>
    %170 = tpu.memref_squeeze %169 : memref<1x288x4xf32, #tpu.memory_space<vmem>> -> memref<288x4xf32, #tpu.memory_space<vmem>>
    %c90 = arith.constant 90 : index
    %c0_168 = arith.constant 0 : index
    %171 = vector.load %170[%c90, %c0_168] : memref<288x4xf32, #tpu.memory_space<vmem>>, vector<16x4xf32>
    %c0_i32_169 = arith.constant 0 : i32
    %c0_i32_170 = arith.constant 0 : i32
    %c0_i32_171 = arith.constant 0 : i32
    %172 = tpu.memref_slice %arg6[%c0_i32_169, %c0_i32_170, %c0_i32_171] : memref<1x256x4xf32, #tpu.memory_space<vmem>> -> memref<1x256x4xf32, #tpu.memory_space<vmem>>
    %173 = tpu.memref_squeeze %172 : memref<1x256x4xf32, #tpu.memory_space<vmem>> -> memref<256x4xf32, #tpu.memory_space<vmem>>
    %c80 = arith.constant 80 : index
    %c0_172 = arith.constant 0 : index
    %174 = vector.load %173[%c80, %c0_172] : memref<256x4xf32, #tpu.memory_space<vmem>>, vector<16x4xf32>
    %175 = arith.addf %171, %174 : vector<16x4xf32>
    %c0_i32_173 = arith.constant 0 : i32
    %c0_i32_174 = arith.constant 0 : i32
    %c0_i32_175 = arith.constant 0 : i32
    %176 = tpu.memref_slice %arg7[%c0_i32_173, %c0_i32_174, %c0_i32_175] : memref<1x288x4xf32, #tpu.memory_space<vmem>> -> memref<1x288x4xf32, #tpu.memory_space<vmem>>
    %177 = tpu.memref_squeeze %176 : memref<1x288x4xf32, #tpu.memory_space<vmem>> -> memref<288x4xf32, #tpu.memory_space<vmem>>
    %c90_176 = arith.constant 90 : index
    %c0_177 = arith.constant 0 : index
    %178 = vector.load %177[%c90_176, %c0_177] : memref<288x4xf32, #tpu.memory_space<vmem>>, vector<16x4xf32>
    tpu.vector_store %177[%c90_176, %c0_177], %175 {strides = array<i32>} : memref<288x4xf32, #tpu.memory_space<vmem>>, vector<16x4xf32>,
    %c0_i32_178 = arith.constant 0 : i32
    %c0_i32_179 = arith.constant 0 : i32
    %c0_i32_180 = arith.constant 0 : i32
    %179 = tpu.memref_slice %arg7[%c0_i32_178, %c0_i32_179, %c0_i32_180] : memref<1x288x4xf32, #tpu.memory_space<vmem>> -> memref<1x288x4xf32, #tpu.memory_space<vmem>>
    %180 = tpu.memref_squeeze %179 : memref<1x288x4xf32, #tpu.memory_space<vmem>> -> memref<288x4xf32, #tpu.memory_space<vmem>>
    %c108 = arith.constant 108 : index
    %c0_181 = arith.constant 0 : index
    %181 = vector.load %180[%c108, %c0_181] : memref<288x4xf32, #tpu.memory_space<vmem>>, vector<16x4xf32>
    %c0_i32_182 = arith.constant 0 : i32
    %c0_i32_183 = arith.constant 0 : i32
    %c0_i32_184 = arith.constant 0 : i32
    %182 = tpu.memref_slice %arg6[%c0_i32_182, %c0_i32_183, %c0_i32_184] : memref<1x256x4xf32, #tpu.memory_space<vmem>> -> memref<1x256x4xf32, #tpu.memory_space<vmem>>
    %183 = tpu.memref_squeeze %182 : memref<1x256x4xf32, #tpu.memory_space<vmem>> -> memref<256x4xf32, #tpu.memory_space<vmem>>
    %c96 = arith.constant 96 : index
    %c0_185 = arith.constant 0 : index
    %184 = vector.load %183[%c96, %c0_185] : memref<256x4xf32, #tpu.memory_space<vmem>>, vector<16x4xf32>
    %185 = arith.addf %181, %184 : vector<16x4xf32>
    %c0_i32_186 = arith.constant 0 : i32
    %c0_i32_187 = arith.constant 0 : i32
    %c0_i32_188 = arith.constant 0 : i32
    %186 = tpu.memref_slice %arg7[%c0_i32_186, %c0_i32_187, %c0_i32_188] : memref<1x288x4xf32, #tpu.memory_space<vmem>> -> memref<1x288x4xf32, #tpu.memory_space<vmem>>
    %187 = tpu.memref_squeeze %186 : memref<1x288x4xf32, #tpu.memory_space<vmem>> -> memref<288x4xf32, #tpu.memory_space<vmem>>
    %c108_189 = arith.constant 108 : index
    %c0_190 = arith.constant 0 : index
    %188 = vector.load %187[%c108_189, %c0_190] : memref<288x4xf32, #tpu.memory_space<vmem>>, vector<16x4xf32>
    tpu.vector_store %187[%c108_189, %c0_190], %185 {strides = array<i32>} : memref<288x4xf32, #tpu.memory_space<vmem>>, vector<16x4xf32>,
    %c0_i32_191 = arith.constant 0 : i32
    %c0_i32_192 = arith.constant 0 : i32
    %c0_i32_193 = arith.constant 0 : i32
    %189 = tpu.memref_slice %arg7[%c0_i32_191, %c0_i32_192, %c0_i32_193] : memref<1x288x4xf32, #tpu.memory_space<vmem>> -> memref<1x288x4xf32, #tpu.memory_space<vmem>>
    %190 = tpu.memref_squeeze %189 : memref<1x288x4xf32, #tpu.memory_space<vmem>> -> memref<288x4xf32, #tpu.memory_space<vmem>>
    %c126 = arith.constant 126 : index
    %c0_194 = arith.constant 0 : index
    %191 = vector.load %190[%c126, %c0_194] : memref<288x4xf32, #tpu.memory_space<vmem>>, vector<16x4xf32>
    %c0_i32_195 = arith.constant 0 : i32
    %c0_i32_196 = arith.constant 0 : i32
    %c0_i32_197 = arith.constant 0 : i32
    %192 = tpu.memref_slice %arg6[%c0_i32_195, %c0_i32_196, %c0_i32_197] : memref<1x256x4xf32, #tpu.memory_space<vmem>> -> memref<1x256x4xf32, #tpu.memory_space<vmem>>
    %193 = tpu.memref_squeeze %192 : memref<1x256x4xf32, #tpu.memory_space<vmem>> -> memref<256x4xf32, #tpu.memory_space<vmem>>
    %c112 = arith.constant 112 : index
    %c0_198 = arith.constant 0 : index
    %194 = vector.load %193[%c112, %c0_198] : memref<256x4xf32, #tpu.memory_space<vmem>>, vector<16x4xf32>
    %195 = arith.addf %191, %194 : vector<16x4xf32>
    %c0_i32_199 = arith.constant 0 : i32
    %c0_i32_200 = arith.constant 0 : i32
    %c0_i32_201 = arith.constant 0 : i32
    %196 = tpu.memref_slice %arg7[%c0_i32_199, %c0_i32_200, %c0_i32_201] : memref<1x288x4xf32, #tpu.memory_space<vmem>> -> memref<1x288x4xf32, #tpu.memory_space<vmem>>
    %197 = tpu.memref_squeeze %196 : memref<1x288x4xf32, #tpu.memory_space<vmem>> -> memref<288x4xf32, #tpu.memory_space<vmem>>
    %c126_202 = arith.constant 126 : index
    %c0_203 = arith.constant 0 : index
    %198 = vector.load %197[%c126_202, %c0_203] : memref<288x4xf32, #tpu.memory_space<vmem>>, vector<16x4xf32>
    tpu.vector_store %197[%c126_202, %c0_203], %195 {strides = array<i32>} : memref<288x4xf32, #tpu.memory_space<vmem>>, vector<16x4xf32>,
    %c0_i32_204 = arith.constant 0 : i32
    %c0_i32_205 = arith.constant 0 : i32
    %c0_i32_206 = arith.constant 0 : i32
    %199 = tpu.memref_slice %arg7[%c0_i32_204, %c0_i32_205, %c0_i32_206] : memref<1x288x4xf32, #tpu.memory_space<vmem>> -> memref<1x288x4xf32, #tpu.memory_space<vmem>>
    %200 = tpu.memref_squeeze %199 : memref<1x288x4xf32, #tpu.memory_space<vmem>> -> memref<288x4xf32, #tpu.memory_space<vmem>>
    %c144 = arith.constant 144 : index
    %c0_207 = arith.constant 0 : index
    %201 = vector.load %200[%c144, %c0_207] : memref<288x4xf32, #tpu.memory_space<vmem>>, vector<16x4xf32>
    %c0_i32_208 = arith.constant 0 : i32
    %c0_i32_209 = arith.constant 0 : i32
    %c0_i32_210 = arith.constant 0 : i32
    %202 = tpu.memref_slice %arg6[%c0_i32_208, %c0_i32_209, %c0_i32_210] : memref<1x256x4xf32, #tpu.memory_space<vmem>> -> memref<1x256x4xf32, #tpu.memory_space<vmem>>
    %203 = tpu.memref_squeeze %202 : memref<1x256x4xf32, #tpu.memory_space<vmem>> -> memref<256x4xf32, #tpu.memory_space<vmem>>
    %c128 = arith.constant 128 : index
    %c0_211 = arith.constant 0 : index
    %204 = vector.load %203[%c128, %c0_211] : memref<256x4xf32, #tpu.memory_space<vmem>>, vector<16x4xf32>
    %205 = arith.addf %201, %204 : vector<16x4xf32>
    %c0_i32_212 = arith.constant 0 : i32
    %c0_i32_213 = arith.constant 0 : i32
    %c0_i32_214 = arith.constant 0 : i32
    %206 = tpu.memref_slice %arg7[%c0_i32_212, %c0_i32_213, %c0_i32_214] : memref<1x288x4xf32, #tpu.memory_space<vmem>> -> memref<1x288x4xf32, #tpu.memory_space<vmem>>
    %207 = tpu.memref_squeeze %206 : memref<1x288x4xf32, #tpu.memory_space<vmem>> -> memref<288x4xf32, #tpu.memory_space<vmem>>
    %c144_215 = arith.constant 144 : index
    %c0_216 = arith.constant 0 : index
    %208 = vector.load %207[%c144_215, %c0_216] : memref<288x4xf32, #tpu.memory_space<vmem>>, vector<16x4xf32>
    tpu.vector_store %207[%c144_215, %c0_216], %205 {strides = array<i32>} : memref<288x4xf32, #tpu.memory_space<vmem>>, vector<16x4xf32>,
    %c0_i32_217 = arith.constant 0 : i32
    %c0_i32_218 = arith.constant 0 : i32
    %c0_i32_219 = arith.constant 0 : i32
    %209 = tpu.memref_slice %arg7[%c0_i32_217, %c0_i32_218, %c0_i32_219] : memref<1x288x4xf32, #tpu.memory_space<vmem>> -> memref<1x288x4xf32, #tpu.memory_space<vmem>>
    %210 = tpu.memref_squeeze %209 : memref<1x288x4xf32, #tpu.memory_space<vmem>> -> memref<288x4xf32, #tpu.memory_space<vmem>>
    %c162 = arith.constant 162 : index
    %c0_220 = arith.constant 0 : index
    %211 = vector.load %210[%c162, %c0_220] : memref<288x4xf32, #tpu.memory_space<vmem>>, vector<16x4xf32>
    %c0_i32_221 = arith.constant 0 : i32
    %c0_i32_222 = arith.constant 0 : i32
    %c0_i32_223 = arith.constant 0 : i32
    %212 = tpu.memref_slice %arg6[%c0_i32_221, %c0_i32_222, %c0_i32_223] : memref<1x256x4xf32, #tpu.memory_space<vmem>> -> memref<1x256x4xf32, #tpu.memory_space<vmem>>
    %213 = tpu.memref_squeeze %212 : memref<1x256x4xf32, #tpu.memory_space<vmem>> -> memref<256x4xf32, #tpu.memory_space<vmem>>
    %c144_224 = arith.constant 144 : index
    %c0_225 = arith.constant 0 : index
    %214 = vector.load %213[%c144_224, %c0_225] : memref<256x4xf32, #tpu.memory_space<vmem>>, vector<16x4xf32>
    %215 = arith.addf %211, %214 : vector<16x4xf32>
    %c0_i32_226 = arith.constant 0 : i32
    %c0_i32_227 = arith.constant 0 : i32
    %c0_i32_228 = arith.constant 0 : i32
    %216 = tpu.memref_slice %arg7[%c0_i32_226, %c0_i32_227, %c0_i32_228] : memref<1x288x4xf32, #tpu.memory_space<vmem>> -> memref<1x288x4xf32, #tpu.memory_space<vmem>>
    %217 = tpu.memref_squeeze %216 : memref<1x288x4xf32, #tpu.memory_space<vmem>> -> memref<288x4xf32, #tpu.memory_space<vmem>>
    %c162_229 = arith.constant 162 : index
    %c0_230 = arith.constant 0 : index
    %218 = vector.load %217[%c162_229, %c0_230] : memref<288x4xf32, #tpu.memory_space<vmem>>, vector<16x4xf32>
    tpu.vector_store %217[%c162_229, %c0_230], %215 {strides = array<i32>} : memref<288x4xf32, #tpu.memory_space<vmem>>, vector<16x4xf32>,
    %c0_i32_231 = arith.constant 0 : i32
    %c0_i32_232 = arith.constant 0 : i32
    %c0_i32_233 = arith.constant 0 : i32
    %219 = tpu.memref_slice %arg7[%c0_i32_231, %c0_i32_232, %c0_i32_233] : memref<1x288x4xf32, #tpu.memory_space<vmem>> -> memref<1x288x4xf32, #tpu.memory_space<vmem>>
    %220 = tpu.memref_squeeze %219 : memref<1x288x4xf32, #tpu.memory_space<vmem>> -> memref<288x4xf32, #tpu.memory_space<vmem>>
    %c180 = arith.constant 180 : index
    %c0_234 = arith.constant 0 : index
    %221 = vector.load %220[%c180, %c0_234] : memref<288x4xf32, #tpu.memory_space<vmem>>, vector<16x4xf32>
    %c0_i32_235 = arith.constant 0 : i32
    %c0_i32_236 = arith.constant 0 : i32
    %c0_i32_237 = arith.constant 0 : i32
    %222 = tpu.memref_slice %arg6[%c0_i32_235, %c0_i32_236, %c0_i32_237] : memref<1x256x4xf32, #tpu.memory_space<vmem>> -> memref<1x256x4xf32, #tpu.memory_space<vmem>>
    %223 = tpu.memref_squeeze %222 : memref<1x256x4xf32, #tpu.memory_space<vmem>> -> memref<256x4xf32, #tpu.memory_space<vmem>>
    %c160 = arith.constant 160 : index
    %c0_238 = arith.constant 0 : index
    %224 = vector.load %223[%c160, %c0_238] : memref<256x4xf32, #tpu.memory_space<vmem>>, vector<16x4xf32>
    %225 = arith.addf %221, %224 : vector<16x4xf32>
    %c0_i32_239 = arith.constant 0 : i32
    %c0_i32_240 = arith.constant 0 : i32
    %c0_i32_241 = arith.constant 0 : i32
    %226 = tpu.memref_slice %arg7[%c0_i32_239, %c0_i32_240, %c0_i32_241] : memref<1x288x4xf32, #tpu.memory_space<vmem>> -> memref<1x288x4xf32, #tpu.memory_space<vmem>>
    %227 = tpu.memref_squeeze %226 : memref<1x288x4xf32, #tpu.memory_space<vmem>> -> memref<288x4xf32, #tpu.memory_space<vmem>>
    %c180_242 = arith.constant 180 : index
    %c0_243 = arith.constant 0 : index
    %228 = vector.load %227[%c180_242, %c0_243] : memref<288x4xf32, #tpu.memory_space<vmem>>, vector<16x4xf32>
    tpu.vector_store %227[%c180_242, %c0_243], %225 {strides = array<i32>} : memref<288x4xf32, #tpu.memory_space<vmem>>, vector<16x4xf32>,
    %c0_i32_244 = arith.constant 0 : i32
    %c0_i32_245 = arith.constant 0 : i32
    %c0_i32_246 = arith.constant 0 : i32
    %229 = tpu.memref_slice %arg7[%c0_i32_244, %c0_i32_245, %c0_i32_246] : memref<1x288x4xf32, #tpu.memory_space<vmem>> -> memref<1x288x4xf32, #tpu.memory_space<vmem>>
    %230 = tpu.memref_squeeze %229 : memref<1x288x4xf32, #tpu.memory_space<vmem>> -> memref<288x4xf32, #tpu.memory_space<vmem>>
    %c198 = arith.constant 198 : index
    %c0_247 = arith.constant 0 : index
    %231 = vector.load %230[%c198, %c0_247] : memref<288x4xf32, #tpu.memory_space<vmem>>, vector<16x4xf32>
    %c0_i32_248 = arith.constant 0 : i32
    %c0_i32_249 = arith.constant 0 : i32
    %c0_i32_250 = arith.constant 0 : i32
    %232 = tpu.memref_slice %arg6[%c0_i32_248, %c0_i32_249, %c0_i32_250] : memref<1x256x4xf32, #tpu.memory_space<vmem>> -> memref<1x256x4xf32, #tpu.memory_space<vmem>>
    %233 = tpu.memref_squeeze %232 : memref<1x256x4xf32, #tpu.memory_space<vmem>> -> memref<256x4xf32, #tpu.memory_space<vmem>>
    %c176 = arith.constant 176 : index
    %c0_251 = arith.constant 0 : index
    %234 = vector.load %233[%c176, %c0_251] : memref<256x4xf32, #tpu.memory_space<vmem>>, vector<16x4xf32>
    %235 = arith.addf %231, %234 : vector<16x4xf32>
    %c0_i32_252 = arith.constant 0 : i32
    %c0_i32_253 = arith.constant 0 : i32
    %c0_i32_254 = arith.constant 0 : i32
    %236 = tpu.memref_slice %arg7[%c0_i32_252, %c0_i32_253, %c0_i32_254] : memref<1x288x4xf32, #tpu.memory_space<vmem>> -> memref<1x288x4xf32, #tpu.memory_space<vmem>>
    %237 = tpu.memref_squeeze %236 : memref<1x288x4xf32, #tpu.memory_space<vmem>> -> memref<288x4xf32, #tpu.memory_space<vmem>>
    %c198_255 = arith.constant 198 : index
    %c0_256 = arith.constant 0 : index
    %238 = vector.load %237[%c198_255, %c0_256] : memref<288x4xf32, #tpu.memory_space<vmem>>, vector<16x4xf32>
    tpu.vector_store %237[%c198_255, %c0_256], %235 {strides = array<i32>} : memref<288x4xf32, #tpu.memory_space<vmem>>, vector<16x4xf32>,
    %c0_i32_257 = arith.constant 0 : i32
    %c0_i32_258 = arith.constant 0 : i32
    %c0_i32_259 = arith.constant 0 : i32
    %239 = tpu.memref_slice %arg7[%c0_i32_257, %c0_i32_258, %c0_i32_259] : memref<1x288x4xf32, #tpu.memory_space<vmem>> -> memref<1x288x4xf32, #tpu.memory_space<vmem>>
    %240 = tpu.memref_squeeze %239 : memref<1x288x4xf32, #tpu.memory_space<vmem>> -> memref<288x4xf32, #tpu.memory_space<vmem>>
    %c216 = arith.constant 216 : index
    %c0_260 = arith.constant 0 : index
    %241 = vector.load %240[%c216, %c0_260] : memref<288x4xf32, #tpu.memory_space<vmem>>, vector<16x4xf32>
    %c0_i32_261 = arith.constant 0 : i32
    %c0_i32_262 = arith.constant 0 : i32
    %c0_i32_263 = arith.constant 0 : i32
    %242 = tpu.memref_slice %arg6[%c0_i32_261, %c0_i32_262, %c0_i32_263] : memref<1x256x4xf32, #tpu.memory_space<vmem>> -> memref<1x256x4xf32, #tpu.memory_space<vmem>>
    %243 = tpu.memref_squeeze %242 : memref<1x256x4xf32, #tpu.memory_space<vmem>> -> memref<256x4xf32, #tpu.memory_space<vmem>>
    %c192 = arith.constant 192 : index
    %c0_264 = arith.constant 0 : index
    %244 = vector.load %243[%c192, %c0_264] : memref<256x4xf32, #tpu.memory_space<vmem>>, vector<16x4xf32>
    %245 = arith.addf %241, %244 : vector<16x4xf32>
    %c0_i32_265 = arith.constant 0 : i32
    %c0_i32_266 = arith.constant 0 : i32
    %c0_i32_267 = arith.constant 0 : i32
    %246 = tpu.memref_slice %arg7[%c0_i32_265, %c0_i32_266, %c0_i32_267] : memref<1x288x4xf32, #tpu.memory_space<vmem>> -> memref<1x288x4xf32, #tpu.memory_space<vmem>>
    %247 = tpu.memref_squeeze %246 : memref<1x288x4xf32, #tpu.memory_space<vmem>> -> memref<288x4xf32, #tpu.memory_space<vmem>>
    %c216_268 = arith.constant 216 : index
    %c0_269 = arith.constant 0 : index
    %248 = vector.load %247[%c216_268, %c0_269] : memref<288x4xf32, #tpu.memory_space<vmem>>, vector<16x4xf32>
    tpu.vector_store %247[%c216_268, %c0_269], %245 {strides = array<i32>} : memref<288x4xf32, #tpu.memory_space<vmem>>, vector<16x4xf32>,
    %c0_i32_270 = arith.constant 0 : i32
    %c0_i32_271 = arith.constant 0 : i32
    %c0_i32_272 = arith.constant 0 : i32
    %249 = tpu.memref_slice %arg7[%c0_i32_270, %c0_i32_271, %c0_i32_272] : memref<1x288x4xf32, #tpu.memory_space<vmem>> -> memref<1x288x4xf32, #tpu.memory_space<vmem>>
    %250 = tpu.memref_squeeze %249 : memref<1x288x4xf32, #tpu.memory_space<vmem>> -> memref<288x4xf32, #tpu.memory_space<vmem>>
    %c234 = arith.constant 234 : index
    %c0_273 = arith.constant 0 : index
    %251 = vector.load %250[%c234, %c0_273] : memref<288x4xf32, #tpu.memory_space<vmem>>, vector<16x4xf32>
    %c0_i32_274 = arith.constant 0 : i32
    %c0_i32_275 = arith.constant 0 : i32
    %c0_i32_276 = arith.constant 0 : i32
    %252 = tpu.memref_slice %arg6[%c0_i32_274, %c0_i32_275, %c0_i32_276] : memref<1x256x4xf32, #tpu.memory_space<vmem>> -> memref<1x256x4xf32, #tpu.memory_space<vmem>>
    %253 = tpu.memref_squeeze %252 : memref<1x256x4xf32, #tpu.memory_space<vmem>> -> memref<256x4xf32, #tpu.memory_space<vmem>>
    %c208 = arith.constant 208 : index
    %c0_277 = arith.constant 0 : index
    %254 = vector.load %253[%c208, %c0_277] : memref<256x4xf32, #tpu.memory_space<vmem>>, vector<16x4xf32>
    %255 = arith.addf %251, %254 : vector<16x4xf32>
    %c0_i32_278 = arith.constant 0 : i32
    %c0_i32_279 = arith.constant 0 : i32
    %c0_i32_280 = arith.constant 0 : i32
    %256 = tpu.memref_slice %arg7[%c0_i32_278, %c0_i32_279, %c0_i32_280] : memref<1x288x4xf32, #tpu.memory_space<vmem>> -> memref<1x288x4xf32, #tpu.memory_space<vmem>>
    %257 = tpu.memref_squeeze %256 : memref<1x288x4xf32, #tpu.memory_space<vmem>> -> memref<288x4xf32, #tpu.memory_space<vmem>>
    %c234_281 = arith.constant 234 : index
    %c0_282 = arith.constant 0 : index
    %258 = vector.load %257[%c234_281, %c0_282] : memref<288x4xf32, #tpu.memory_space<vmem>>, vector<16x4xf32>
    tpu.vector_store %257[%c234_281, %c0_282], %255 {strides = array<i32>} : memref<288x4xf32, #tpu.memory_space<vmem>>, vector<16x4xf32>,
    %c0_i32_283 = arith.constant 0 : i32
    %c0_i32_284 = arith.constant 0 : i32
    %c0_i32_285 = arith.constant 0 : i32
    %259 = tpu.memref_slice %arg7[%c0_i32_283, %c0_i32_284, %c0_i32_285] : memref<1x288x4xf32, #tpu.memory_space<vmem>> -> memref<1x288x4xf32, #tpu.memory_space<vmem>>
    %260 = tpu.memref_squeeze %259 : memref<1x288x4xf32, #tpu.memory_space<vmem>> -> memref<288x4xf32, #tpu.memory_space<vmem>>
    %c252 = arith.constant 252 : index
    %c0_286 = arith.constant 0 : index
    %261 = vector.load %260[%c252, %c0_286] : memref<288x4xf32, #tpu.memory_space<vmem>>, vector<16x4xf32>
    %c0_i32_287 = arith.constant 0 : i32
    %c0_i32_288 = arith.constant 0 : i32
    %c0_i32_289 = arith.constant 0 : i32
    %262 = tpu.memref_slice %arg6[%c0_i32_287, %c0_i32_288, %c0_i32_289] : memref<1x256x4xf32, #tpu.memory_space<vmem>> -> memref<1x256x4xf32, #tpu.memory_space<vmem>>
    %263 = tpu.memref_squeeze %262 : memref<1x256x4xf32, #tpu.memory_space<vmem>> -> memref<256x4xf32, #tpu.memory_space<vmem>>
    %c224 = arith.constant 224 : index
    %c0_290 = arith.constant 0 : index
    %264 = vector.load %263[%c224, %c0_290] : memref<256x4xf32, #tpu.memory_space<vmem>>, vector<16x4xf32>
    %265 = arith.addf %261, %264 : vector<16x4xf32>
    %c0_i32_291 = arith.constant 0 : i32
    %c0_i32_292 = arith.constant 0 : i32
    %c0_i32_293 = arith.constant 0 : i32
    %266 = tpu.memref_slice %arg7[%c0_i32_291, %c0_i32_292, %c0_i32_293] : memref<1x288x4xf32, #tpu.memory_space<vmem>> -> memref<1x288x4xf32, #tpu.memory_space<vmem>>
    %267 = tpu.memref_squeeze %266 : memref<1x288x4xf32, #tpu.memory_space<vmem>> -> memref<288x4xf32, #tpu.memory_space<vmem>>
    %c252_294 = arith.constant 252 : index
    %c0_295 = arith.constant 0 : index
    %268 = vector.load %267[%c252_294, %c0_295] : memref<288x4xf32, #tpu.memory_space<vmem>>, vector<16x4xf32>
    tpu.vector_store %267[%c252_294, %c0_295], %265 {strides = array<i32>} : memref<288x4xf32, #tpu.memory_space<vmem>>, vector<16x4xf32>,
    %c0_i32_296 = arith.constant 0 : i32
    %c0_i32_297 = arith.constant 0 : i32
    %c0_i32_298 = arith.constant 0 : i32
    %269 = tpu.memref_slice %arg7[%c0_i32_296, %c0_i32_297, %c0_i32_298] : memref<1x288x4xf32, #tpu.memory_space<vmem>> -> memref<1x288x4xf32, #tpu.memory_space<vmem>>
    %270 = tpu.memref_squeeze %269 : memref<1x288x4xf32, #tpu.memory_space<vmem>> -> memref<288x4xf32, #tpu.memory_space<vmem>>
    %c270 = arith.constant 270 : index
    %c0_299 = arith.constant 0 : index
    %271 = vector.load %270[%c270, %c0_299] : memref<288x4xf32, #tpu.memory_space<vmem>>, vector<16x4xf32>
    %c0_i32_300 = arith.constant 0 : i32
    %c0_i32_301 = arith.constant 0 : i32
    %c0_i32_302 = arith.constant 0 : i32
    %272 = tpu.memref_slice %arg6[%c0_i32_300, %c0_i32_301, %c0_i32_302] : memref<1x256x4xf32, #tpu.memory_space<vmem>> -> memref<1x256x4xf32, #tpu.memory_space<vmem>>
    %273 = tpu.memref_squeeze %272 : memref<1x256x4xf32, #tpu.memory_space<vmem>> -> memref<256x4xf32, #tpu.memory_space<vmem>>
    %c240 = arith.constant 240 : index
    %c0_303 = arith.constant 0 : index
    %274 = vector.load %273[%c240, %c0_303] : memref<256x4xf32, #tpu.memory_space<vmem>>, vector<16x4xf32>
    %275 = arith.addf %271, %274 : vector<16x4xf32>
    %c0_i32_304 = arith.constant 0 : i32
    %c0_i32_305 = arith.constant 0 : i32
    %c0_i32_306 = arith.constant 0 : i32
    %276 = tpu.memref_slice %arg7[%c0_i32_304, %c0_i32_305, %c0_i32_306] : memref<1x288x4xf32, #tpu.memory_space<vmem>> -> memref<1x288x4xf32, #tpu.memory_space<vmem>>
    %277 = tpu.memref_squeeze %276 : memref<1x288x4xf32, #tpu.memory_space<vmem>> -> memref<288x4xf32, #tpu.memory_space<vmem>>
    %c270_307 = arith.constant 270 : index
    %c0_308 = arith.constant 0 : index
    %278 = vector.load %277[%c270_307, %c0_308] : memref<288x4xf32, #tpu.memory_space<vmem>>, vector<16x4xf32>
    tpu.vector_store %277[%c270_307, %c0_308], %275 {strides = array<i32>} : memref<288x4xf32, #tpu.memory_space<vmem>>, vector<16x4xf32>,
    return
  }
  func.func @transform_0(%arg0: i32, %arg1: i32) -> (i32, i32, i32) {
    %c0_i32 = arith.constant 0 : i32
    %c0_i32_0 = arith.constant 0 : i32
    %c0_i32_1 = arith.constant 0 : i32
    return %arg0, %c0_i32, %c0_i32_0 : i32, i32, i32
  }
  func.func @transform_1(%arg0: i32, %arg1: i32) -> (i32, i32) {
    %c0_i32 = arith.constant 0 : i32
    %c0_i32_0 = arith.constant 0 : i32
    %c0_i32_1 = arith.constant 0 : i32
    return %c0_i32, %c0_i32_0 : i32, i32
  }
  func.func @transform_2(%arg0: i32, %arg1: i32) -> (i32, i32) {
    %c0_i32 = arith.constant 0 : i32
    %c0_i32_0 = arith.constant 0 : i32
    %c0_i32_1 = arith.constant 0 : i32
    return %c0_i32, %c0_i32_0 : i32, i32
  }
  func.func @transform_3(%arg0: i32, %arg1: i32) -> (i32, i32, i32) {
    %c0_i32 = arith.constant 0 : i32
    %c0_i32_0 = arith.constant 0 : i32
    %c0_i32_1 = arith.constant 0 : i32
    return %c0_i32, %c0_i32_0, %arg1 : i32, i32, i32
  }
  func.func @transform_4(%arg0: i32, %arg1: i32) -> (i32, i32, i32) {
    %c0_i32 = arith.constant 0 : i32
    %c0_i32_0 = arith.constant 0 : i32
    return %arg0, %c0_i32, %arg1 : i32, i32, i32
  }
  func.func @transform_5(%arg0: i32, %arg1: i32) -> (i32, i32, i32) {
    %c0_i32 = arith.constant 0 : i32
    %c0_i32_0 = arith.constant 0 : i32
    return %arg0, %c0_i32, %arg1 : i32, i32, i32
  }
}

</mosaic_0001>

<bundles_post_ra>
// kernel: wide_basic_block_forward.2
= control target key start
LH: loop header
LB: loop body
LE: loop exit
PB: predicated region body
PF: predicated region fallthrough
CT: control target
= control target key end

     0   :  { %s4850_s15 = smov 0   ;;  %s4852_s16 = smov 0   ;;  %s6056_s0 = inlined_call_operand.vmem [shape: f32[2,256,4], index: 0, kind: input, shape index: {}]   ;;  %s6057_s1 = inlined_call_operand.vmem [shape: f32[1,4], index: 1, kind: input, shape index: {}]   ;;  %s6058_s2 = inlined_call_operand.vmem [shape: f32[1,4], index: 2, kind: input, shape index: {}]   ;;  %s6059_s3 = inlined_call_operand.vmem [shape: bf16[9,4,4], index: 3, kind: input, shape index: {}]   ;;  %s6060_s4 = inlined_call_operand.vmem [shape: f32[2,288,4], index: 4, kind: output, shape index: {}]  }
   0x1   :  { %s4854_s17 = smov 0  }
   0x2 LB: > { %s26_s18 = sadd.s32 1, %s4818_s16  ;;  %p3999_p0 = scmp.ge.s32.totalorder %s4822_s17, 1  ;;  %s4822_s17 = sphi %s4854_s17, %s14_s17   ;;  %s4818_s16 = sphi %s4852_s16, %s6138_s16   ;;  %s4814_s15 = sphi %s4850_s15, %s6137_s15  }
   0x3   : > { %p28_p1 = scmp.ge.s32.totalorder %s26_s18, 2  ;;  %p185_p2 = scmp.lt.s32.totalorder %s4822_s17, 3 }
   0x5   : > { %s6140_s18 = smov (%p28_p1, %s26_s18), 0  ;;  %p186_p3 = pnand %p3999_p0, %p185_p2 }
   0x7   : > { %189 = sbr.rel (%p186_p3) target bundleno = 567 (0x237), region = 36 }
   0xc   : > { %v4035_v0 = vld [vmem:[%s6059_s3 + $0x2] sm:$0x3]  ;;  %vm817_vm0 = vcmask 1041408   ;;  %v717_v1 = vld [vmem:[%s6059_s3] sm:$0x3]  ;;  %vm240_vm1 = vcmask 31744  }
   0xd   : > { %4756 = vmatprep.subr.msk.bf16.mxu0 %vm817_vm0, %v4035_v0  ;;  %v819_v2 = vsel %vm817_vm0, %v4035_v0, 0  ;;  %4757 = vmatprep.subr.msk.bf16.mxu1 %vm817_vm0, %v717_v1  ;;  %v1031_v3 = vsel %vm817_vm0, %v717_v1, 0  ;;  %v4883_v4 = vld [vmem:[%s6059_s3 + $0x4] sm:$0x3]  ;;  %v4824_v5 = vmov 0.0   ;;  %p218_p4 = scmp.lt.s32.totalorder %s4814_s15, 1 }
   0xe   : > { %4397 = vmatpush3.bf16.msra.mxu0 %v819_v2  ;;  %4431 = vmatpush3.bf16.msra.mxu1 %v1031_v3  ;;  %241 = vst.msk [vmem:[#allocation2] sm:$0xff] %vm240_vm1, %v4824_v5  ;;  %242 = vst.msk [vmem:[#allocation2 + $0x8] sm:$0xff] %vm240_vm1, %v4824_v5  ;;  %v4085_v6 = vld [vmem:[%s6059_s3 + $0x6] sm:$0x3]  ;;  %v4940_v7 = vld [vmem:[%s6057_s1] ss:$0 sm:$0xff] }
   0xf   : > { %243 = vst.msk [vmem:[#allocation2 + $0x10] sm:$0xff] %vm240_vm1, %v4824_v5  ;;  %244 = vst.msk [vmem:[#allocation2 + $0x18] sm:$0xff] %vm240_vm1, %v4824_v5  ;;  %4758 = vmatprep.subr.msk.bf16.mxu0 %vm817_vm0, %v4883_v4  ;;  %s6142_s15 = smov (!%p218_p4, %s4814_s15), 1  ;;  %4759 = vmatprep.subr.msk.bf16.mxu1 %vm817_vm0, %v4085_v6  ;;  %v4950_v8 = vld [vmem:[%s6058_s2] ss:$0 sm:$0xff]  ;;  %v4960_v20 = vsel %vm817_vm0, %v4883_v4, 0 }
  0x10   : > { %245 = vst.msk [vmem:[#allocation2 + $0x20] sm:$0xff] %vm240_vm1, %v4824_v5  ;;  %246 = vst.msk [vmem:[#allocation2 + $0x28] sm:$0xff] %vm240_vm1, %v4824_v5  ;;  %s4215_s27 = sshll.u32 %s6142_s15, 8  ;;  %v4963_v21 = vsel %vm817_vm0, %v4085_v6, 0  ;;  %s4774_s23 = smul.u32 288, %s6142_s15 }
  0x11   : > { %247 = vst.msk [vmem:[#allocation2 + $0x30] sm:$0xff] %vm240_vm1, %v4824_v5  ;;  %248 = vst.msk [vmem:[#allocation2 + $0x38] sm:$0xff] %vm240_vm1, %v4824_v5  ;;  %s4945_s6 = scalar_lea.vmem %s6056_s0, %s4215_s27 }
  0x12   : > { %249 = vst.msk [vmem:[#allocation2 + $0x40] sm:$0xff] %vm240_vm1, %v4824_v5  ;;  %250 = vst.msk [vmem:[#allocation2 + $0x48] sm:$0xff] %vm240_vm1, %v4824_v5  ;;  %v285_v9 = vld [vmem:[%s4945_s6] sm:$0xff]  ;;  %v286_v10 = vld [vmem:[%s4945_s6 + $0x8] sm:$0xff]  ;;  %s5812_s26 = scalar_lea.vmem %s6060_s4, %s4774_s23 }
  0x13   : > { %251 = vst.msk [vmem:[#allocation2 + $0x50] sm:$0xff] %vm240_vm1, %v4824_v5  ;;  %252 = vst.msk [vmem:[#allocation2 + $0x58] sm:$0xff] %vm240_vm1, %v4824_v5  ;;  %v309_v11 = vld [vmem:[%s4945_s6 + $0x10] sm:$0xff]  ;;  %v294_v15 = vmul.f32 %v4940_v7, %v285_v9  ;;  %v295_v16 = vmul.f32 %v4940_v7, %v286_v10  ;;  %v310_v22 = vld [vmem:[%s4945_s6 + $0x18] sm:$0xff] }
  0x14   : > { %253 = vst.msk [vmem:[#allocation2 + $0x60] sm:$0xff] %vm240_vm1, %v4824_v5  ;;  %254 = vst.msk [vmem:[#allocation2 + $0x68] sm:$0xff] %vm240_vm1, %v4824_v5  ;;  %v318_v17 = vmul.f32 %v4940_v7, %v309_v11  ;;  %v333_v23 = vld [vmem:[%s4945_s6 + $0x20] sm:$0xff]  ;;  %v319_v27 = vmul.f32 %v4940_v7, %v310_v22  ;;  %v334_v28 = vld [vmem:[%s4945_s6 + $0x28] sm:$0xff] }
  0x15   : > { %255 = vst.msk [vmem:[#allocation2 + $0x70] sm:$0xff] %vm240_vm1, %v4824_v5  ;;  %256 = vst.msk [vmem:[#allocation2 + $0x78] sm:$0xff] %vm240_vm1, %v4824_v5  ;;  %v718_v12 = vld [vmem:[#allocation2 + $0x1] sm:$0xff]  ;;  %v303_v25 = vadd.f32 %v4950_v8, %v294_v15  ;;  %v304_v26 = vadd.f32 %v4950_v8, %v295_v16  ;;  %v357_v29 = vld [vmem:[%s4945_s6 + $0x30] sm:$0xff]  ;;  %v342_v32 = vmul.f32 %v4940_v7, %v333_v23 }
  0x16   : > { %257 = vst.msk [vmem:[#allocation2 + $0x80] sm:$0xff] %vm240_vm1, %v4824_v5  ;;  %258 = vst.msk [vmem:[#allocation2 + $0x88] sm:$0xff] %vm240_vm1, %v4824_v5  ;;  %v719_v13 = vld [vmem:[#allocation2 + $0x9] sm:$0xff]  ;;  %v669_v14 = vld [vmem:[#allocation2] sm:$0xff]  ;;  %v327_v31 = vadd.f32 %v4950_v8, %v318_v17  ;;  %v343_v33 = vmul.f32 %v4940_v7, %v334_v28  ;;  %v366_v34 = vmul.f32 %v4940_v7, %v357_v29 }
  0x17   : > { %259 = vst.msk [vmem:[#allocation2 + $0x90] sm:$0xff] %vm240_vm1, %v4824_v5  ;;  %260 = vst.msk [vmem:[#allocation2 + $0x98] sm:$0xff] %vm240_vm1, %v4824_v5  ;;  %v750_v18 = vpack.c.bf16 %v719_v13, %v718_v12  ;;  %v670_v19 = vld [vmem:[#allocation2 + $0x8] sm:$0xff]  ;;  %v358_v30 = vld [vmem:[%s4945_s6 + $0x38] sm:$0xff]  ;;  %v305_v37 = vmax.f32 %v303_v25, 0.0  ;;  %v306_v38 = vmax.f32 %v304_v26, 0.0  ;;  %v328_v39 = vadd.f32 %v4950_v8, %v319_v27 }
  0x18   : > { %261 = vst.msk [vmem:[#allocation2 + $0xa0] sm:$0xff] %vm240_vm1, %v4824_v5  ;;  %262 = vst.msk [vmem:[#allocation2 + $0xa8] sm:$0xff] %vm240_vm1, %v4824_v5  ;;  %v701_v24 = vpack.c.bf16 %v670_v19, %v669_v14  ;;  %v381_v35 = vld [vmem:[%s4945_s6 + $0x40] sm:$0xff]  ;;  %v382_v36 = vld [vmem:[%s4945_s6 + $0x48] sm:$0xff]  ;;  %v367_v40 = vmul.f32 %v4940_v7, %v358_v30  ;;  %v329_v42 = vmax.f32 %v327_v31, 0.0  ;;  %v351_v43 = vadd.f32 %v4950_v8, %v342_v32 }
  0x19   : > { %263 = vst.msk [vmem:[#allocation2 + $0xb0] sm:$0xff] %vm240_vm1, %v4824_v5  ;;  %264 = vst.msk [vmem:[#allocation2 + $0xb8] sm:$0xff] %vm240_vm1, %v4824_v5  ;;  %4398 = vmatprep.mubr.msk.bf16.mxu0 %vm240_vm1, %v750_v18  ;;  %v405_v41 = vld [vmem:[%s4945_s6 + $0x50] sm:$0xff]  ;;  %v352_v44 = vadd.f32 %v4950_v8, %v343_v33  ;;  %v375_v45 = vadd.f32 %v4950_v8, %v366_v34  ;;  %v406_v46 = vld [vmem:[%s4945_s6 + $0x58] sm:$0xff]  ;;  %v330_v47 = vmax.f32 %v328_v39, 0.0 }
  0x1a   : > { %265 = vst.msk [vmem:[#allocation2 + $0xc0] sm:$0xff] %vm240_vm1, %v4824_v5  ;;  %266 = vst.msk [vmem:[#allocation2 + $0xc8] sm:$0xff] %vm240_vm1, %v4824_v5  ;;  %4432 = vmatprep.mubr.msk.bf16.mxu1 %vm240_vm1, %v701_v24  ;;  %v376_v48 = vadd.f32 %v4950_v8, %v367_v40  ;;  %v390_v49 = vmul.f32 %v4940_v7, %v381_v35  ;;  %v391_v50 = vmul.f32 %v4940_v7, %v382_v36  ;;  %v429_v51 = vld [vmem:[%s4945_s6 + $0x60] sm:$0xff]  ;;  %v430_v52 = vld [vmem:[%s4945_s6 + $0x68] sm:$0xff] }
  0x1b   : > { %267 = vst.msk [vmem:[#allocation2 + $0xd0] sm:$0xff] %vm240_vm1, %v4824_v5  ;;  %268 = vst.msk [vmem:[#allocation2 + $0xd8] sm:$0xff] %vm240_vm1, %v4824_v5  ;;  %v453_v53 = vld [vmem:[%s4945_s6 + $0x70] sm:$0xff]  ;;  %v353_v54 = vmax.f32 %v351_v43, 0.0  ;;  %v354_v55 = vmax.f32 %v352_v44, 0.0  ;;  %v377_v56 = vmax.f32 %v375_v45, 0.0  ;;  %v414_v57 = vmul.f32 %v4940_v7, %v405_v41 }
  0x1c   : > { %269 = vst.msk [vmem:[#allocation2 + $0xe0] sm:$0xff] %vm240_vm1, %v4824_v5  ;;  %270 = vst.msk [vmem:[#allocation2 + $0xe8] sm:$0xff] %vm240_vm1, %v4824_v5  ;;  %v454_v58 = vld [vmem:[%s4945_s6 + $0x78] sm:$0xff]  ;;  %v378_v59 = vmax.f32 %v376_v48, 0.0  ;;  %v399_v60 = vadd.f32 %v4950_v8, %v390_v49  ;;  %v400_v61 = vadd.f32 %v4950_v8, %v391_v50  ;;  %v415_v62 = vmul.f32 %v4940_v7, %v406_v46  ;;  %v477_v3 = vld [vmem:[%s4945_s6 + $0x80] sm:$0xff] }
  0x1d   : > { %271 = vst.msk [vmem:[#allocation2 + $0xf0] sm:$0xff] %vm240_vm1, %v4824_v5  ;;  %272 = vst.msk [vmem:[#allocation2 + $0xf8] sm:$0xff] %vm240_vm1, %v4824_v5  ;;  %v423_v63 = vadd.f32 %v4950_v8, %v414_v57  ;;  %v438_v0 = vmul.f32 %v4940_v7, %v429_v51  ;;  %v439_v1 = vmul.f32 %v4940_v7, %v430_v52  ;;  %v478_v4 = vld [vmem:[%s4945_s6 + $0x88] sm:$0xff]  ;;  %v501_v11 = vld [vmem:[%s4945_s6 + $0x90] sm:$0xff] }
  0x1e   : > { %273 = vst.msk [vmem:[#allocation2 + $0x100] sm:$0xff] %vm240_vm1, %v4824_v5  ;;  %274 = vst.msk [vmem:[#allocation2 + $0x108] sm:$0xff] %vm240_vm1, %v4824_v5  ;;  %v462_v2 = vmul.f32 %v4940_v7, %v453_v53  ;;  %v402_v6 = vmax.f32 %v400_v61, 0.0  ;;  %v424_v9 = vadd.f32 %v4950_v8, %v415_v62  ;;  %v463_v10 = vmul.f32 %v4940_v7, %v454_v58  ;;  %v502_v22 = vld [vmem:[%s4945_s6 + $0x98] sm:$0xff]  ;;  %v525_v23 = vld [vmem:[%s4945_s6 + $0xa0] sm:$0xff] }
  0x1f   : > { %275 = vst.msk [vmem:[#allocation2 + $0x110] sm:$0xff] %vm240_vm1, %v4824_v5  ;;  %276 = vst.msk [vmem:[#allocation2 + $0x118] sm:$0xff] %vm240_vm1, %v4824_v5  ;;  %v425_v12 = vmax.f32 %v423_v63, 0.0  ;;  %v447_v13 = vadd.f32 %v4950_v8, %v438_v0  ;;  %v448_v14 = vadd.f32 %v4950_v8, %v439_v1  ;;  %v486_v18 = vmul.f32 %v4940_v7, %v477_v3  ;;  %v526_v24 = vld [vmem:[%s4945_s6 + $0xa8] sm:$0xff]  ;;  %v549_v46 = vld [vmem:[%s4945_s6 + $0xb0] sm:$0xff] }
  0x20   : > { %277 = vst.msk [vmem:[#allocation2 + $0x120] sm:$0xff] %vm240_vm1, %v4824_v5  ;;  %278 = vst.msk [vmem:[#allocation2 + $0x128] sm:$0xff] %vm240_vm1, %v4824_v5  ;;  %v471_v15 = vadd.f32 %v4950_v8, %v462_v2  ;;  %v426_v16 = vmax.f32 %v424_v9, 0.0  ;;  %v472_v17 = vadd.f32 %v4950_v8, %v463_v10  ;;  %v487_v19 = vmul.f32 %v4940_v7, %v478_v4  ;;  %v5035_v39 = vld [vmem:[%s6059_s3 + $0x8] sm:$0x3]  ;;  %v550_v53 = vld [vmem:[%s4945_s6 + $0xb8] sm:$0xff] }
  0x21   : > { %279 = vst.msk [vmem:[#allocation2 + $0x130] sm:$0xff] %vm240_vm1, %v4824_v5  ;;  %280 = vst.msk [vmem:[#allocation2 + $0x138] sm:$0xff] %vm240_vm1, %v4824_v5  ;;  %v449_v28 = vmax.f32 %v447_v13, 0.0  ;;  %v450_v29 = vmax.f32 %v448_v14, 0.0  ;;  %v510_v31 = vmul.f32 %v4940_v7, %v501_v11  ;;  %v511_v43 = vmul.f32 %v4940_v7, %v502_v22  ;;  %v574_v63 = vld [vmem:[%s4945_s6 + $0xc8] sm:$0xff]  ;;  %v597_v4 = vld [vmem:[%s4945_s6 + $0xd0] sm:$0xff] }
  0x22   : > { %281 = vst.msk [vmem:[#allocation2 + $0x140] sm:$0xff] %vm240_vm1, %v4824_v5  ;;  %307 = vst.msk [vmem:[#allocation2 + $0x13] sm:$0xff] %vm240_vm1, %v305_v37  ;;  %v401_v5 = vmax.f32 %v399_v60, 0.0  ;;  %v473_v30 = vmax.f32 %v471_v15, 0.0  ;;  %v474_v36 = vmax.f32 %v472_v17, 0.0  ;;  %v495_v37 = vadd.f32 %v4950_v8, %v486_v18 }
  0x23   : > { %308 = vst.msk [vmem:[#allocation2 + $0x1b] sm:$0xff] %vm240_vm1, %v306_v38  ;;  %331 = vst.msk [vmem:[#allocation2 + $0x25] sm:$0xff] %vm240_vm1, %v329_v42  ;;  %v496_v38 = vadd.f32 %v4950_v8, %v487_v19  ;;  %v519_v44 = vadd.f32 %v4950_v8, %v510_v31  ;;  %v534_v45 = vmul.f32 %v4940_v7, %v525_v23  ;;  %v598_v23 = vld [vmem:[%s4945_s6 + $0xd8] sm:$0xff] }
  0x24   : > { %332 = vst.msk [vmem:[#allocation2 + $0x2d] sm:$0xff] %vm240_vm1, %v330_v47  ;;  %355 = vst.msk [vmem:[#allocation2 + $0x37] sm:$0xff] %vm240_vm1, %v353_v54  ;;  %v5047_v47 = vld [vmem:[%s6059_s3 + $0xa] sm:$0x3]  ;;  %v497_v51 = vmax.f32 %v495_v37, 0.0  ;;  %v573_v54 = vld [vmem:[%s4945_s6 + $0xc0] sm:$0xff]  ;;  %v520_v58 = vadd.f32 %v4950_v8, %v511_v43  ;;  %v535_v60 = vmul.f32 %v4940_v7, %v526_v24  ;;  %v558_v3 = vmul.f32 %v4940_v7, %v549_v46 }
  0x25   : > { %356 = vst.msk [vmem:[#allocation2 + $0x3f] sm:$0xff] %vm240_vm1, %v354_v55  ;;  %379 = vst.msk [vmem:[#allocation2 + $0x49] sm:$0xff] %vm240_vm1, %v377_v56  ;;  %v498_v52 = vmax.f32 %v496_v38, 0.0  ;;  %v559_v10 = vmul.f32 %v4940_v7, %v550_v53  ;;  %v582_v14 = vmul.f32 %v4940_v7, %v573_v54  ;;  %v583_v17 = vmul.f32 %v4940_v7, %v574_v63 }
  0x26   : > { %380 = vst.msk [vmem:[#allocation2 + $0x51] sm:$0xff] %vm240_vm1, %v378_v59  ;;  %403 = vst.msk [vmem:[#allocation2 + $0x5b] sm:$0xff] %vm240_vm1, %v401_v5  ;;  %v521_v59 = vmax.f32 %v519_v44, 0.0  ;;  %v522_v2 = vmax.f32 %v520_v58, 0.0  ;;  %v567_v13 = vadd.f32 %v4950_v8, %v558_v3  ;;  %v606_v18 = vmul.f32 %v4940_v7, %v597_v4 }
  0x27   : > { %404 = vst.msk [vmem:[#allocation2 + $0x63] sm:$0xff] %vm240_vm1, %v402_v6  ;;  %427 = vst.msk [vmem:[#allocation2 + $0x6d] sm:$0xff] %vm240_vm1, %v425_v12  ;;  %v591_v22 = vadd.f32 %v4950_v8, %v582_v14  ;;  %v607_v37 = vmul.f32 %v4940_v7, %v598_v23 }
  0x28   : > { %428 = vst.msk [vmem:[#allocation2 + $0x75] sm:$0xff] %vm240_vm1, %v426_v16  ;;  %451 = vst.msk [vmem:[#allocation2 + $0x7f] sm:$0xff] %vm240_vm1, %v449_v28  ;;  %v568_v16 = vadd.f32 %v4950_v8, %v559_v10  ;;  %v569_v19 = vmax.f32 %v567_v13, 0.0 }
  0x29   : > { %v720_v25 = vld [vmem:[#allocation2 + $0x11] sm:$0xff]  ;;  %452 = vst.msk [vmem:[#allocation2 + $0x87] sm:$0xff] %vm240_vm1, %v450_v29  ;;  %475 = vst.msk [vmem:[#allocation2 + $0x91] sm:$0xff] %vm240_vm1, %v473_v30  ;;  %v593_v31 = vmax.f32 %v591_v22, 0.0 }
  0x2a   : > { %v721_v26 = vld [vmem:[#allocation2 + $0x19] sm:$0xff]  ;;  %v671_v27 = vld [vmem:[#allocation2 + $0x10] sm:$0xff]  ;;  %v722_v34 = vld [vmem:[#allocation2 + $0x21] sm:$0xff]  ;;  %476 = vst.msk [vmem:[#allocation2 + $0x99] sm:$0xff] %vm240_vm1, %v474_v36  ;;  %v570_v24 = vmax.f32 %v568_v16, 0.0 }
  0x2b   : > { %v751_v32 = vpack.c.bf16 %v721_v26, %v720_v25  ;;  %v672_v33 = vld [vmem:[#allocation2 + $0x18] sm:$0xff]  ;;  %v673_v35 = vld [vmem:[#allocation2 + $0x20] sm:$0xff]  ;;  %v723_v41 = vld [vmem:[#allocation2 + $0x29] sm:$0xff]  ;;  %499 = vst.msk [vmem:[#allocation2 + $0xa3] sm:$0xff] %vm240_vm1, %v497_v51  ;;  %v592_v25 = vadd.f32 %v4950_v8, %v583_v17 }
  0x2c   : > { %v702_v40 = vpack.c.bf16 %v672_v33, %v671_v27  ;;  %v674_v42 = vld [vmem:[#allocation2 + $0x28] sm:$0xff]  ;;  %v752_v48 = vpack.c.bf16 %v723_v41, %v722_v34  ;;  %v724_v50 = vld [vmem:[#allocation2 + $0x31] sm:$0xff]  ;;  %v725_v55 = vld [vmem:[#allocation2 + $0x39] sm:$0xff]  ;;  %500 = vst.msk [vmem:[#allocation2 + $0xab] sm:$0xff] %vm240_vm1, %v498_v52 }
  0x2d   : > { %4399 = vmatmul.mubr.msk.bf16.vlgmr.msra.gmra.mxu0 %vm240_vm1, %v751_v32  ;;  %v703_v49 = vpack.c.bf16 %v674_v42, %v673_v35  ;;  %v675_v56 = vld [vmem:[#allocation2 + $0x30] sm:$0xff]  ;;  %v676_v57 = vld [vmem:[#allocation2 + $0x38] sm:$0xff]  ;;  %v726_v61 = vld [vmem:[#allocation2 + $0x41] sm:$0xff]  ;;  %523 = vst.msk [vmem:[#allocation2 + $0xb5] sm:$0xff] %vm240_vm1, %v521_v59  ;;  %v753_v5 = vpack.c.bf16 %v725_v55, %v724_v50  ;;  %v615_v32 = vadd.f32 %v4950_v8, %v606_v18  ;;  %v594_v36 = vmax.f32 %v592_v25, 0.0 }
  0x2e   : > { %4433 = vmatmul.mubr.msk.bf16.vlgmr.msra.gmra.mxu1 %vm240_vm1, %v702_v40  ;;  %4465 = vmatpush3.bf16.msra.mxu0 %v4960_v20  ;;  %v727_v62 = vld [vmem:[#allocation2 + $0x49] sm:$0xff]  ;;  %v543_v20 = vadd.f32 %v4950_v8, %v534_v45  ;;  %v677_v0 = vld [vmem:[#allocation2 + $0x40] sm:$0xff]  ;;  %v704_v6 = vpack.c.bf16 %v676_v57, %v675_v56  ;;  %524 = vst.msk [vmem:[#allocation2 + $0xbd] sm:$0xff] %vm240_vm1, %v522_v2  ;;  %v728_v28 = vld [vmem:[#allocation2 + $0x51] sm:$0xff] }
  0x2f   : > { %4499 = vmatpush3.bf16.msra.mxu1 %v4963_v21  ;;  %4402 = vmatprep.mubr.msk.bf16.mxu0 %vm240_vm1, %v752_v48  ;;  %v678_v1 = vld [vmem:[#allocation2 + $0x48] sm:$0xff]  ;;  %v544_v21 = vadd.f32 %v4950_v8, %v535_v60  ;;  %v754_v11 = vpack.c.bf16 %v727_v62, %v726_v61  ;;  %v621_v26 = vld [vmem:[%s4945_s6 + $0xe0] sm:$0xff]  ;;  %v679_v30 = vld [vmem:[#allocation2 + $0x50] sm:$0xff]  ;;  %571 = vst.msk [vmem:[#allocation2 + $0xd9] sm:$0xff] %vm240_vm1, %v569_v19  ;;  %v617_v41 = vmax.f32 %v615_v32, 0.0 }
  0x30   : > { %4436 = vmatprep.mubr.msk.bf16.mxu1 %vm240_vm1, %v703_v49  ;;  %4760 = vmatprep.subr.msk.bf16.mxu0 %vm817_vm0, %v5035_v39  ;;  %v545_v9 = vmax.f32 %v543_v20, 0.0  ;;  %v705_v15 = vpack.c.bf16 %v678_v1, %v677_v0  ;;  %v622_v27 = vld [vmem:[%s4945_s6 + $0xe8] sm:$0xff]  ;;  %v729_v29 = vld [vmem:[#allocation2 + $0x59] sm:$0xff]  ;;  %572 = vst.msk [vmem:[#allocation2 + $0xe1] sm:$0xff] %vm240_vm1, %v570_v24  ;;  %595 = vst.msk [vmem:[#allocation2 + $0xeb] sm:$0xff] %vm240_vm1, %v593_v31  ;;  %v630_v42 = vmul.f32 %v4940_v7, %v621_v26 }
  0x31   : > { %4761 = vmatprep.subr.msk.bf16.mxu1 %vm817_vm0, %v5047_v47  ;;  %v546_v12 = vmax.f32 %v544_v21, 0.0  ;;  %v680_v33 = vld [vmem:[#allocation2 + $0x58] sm:$0xff]  ;;  %v730_v34 = vld [vmem:[#allocation2 + $0x61] sm:$0xff]  ;;  %v731_v35 = vld [vmem:[#allocation2 + $0x69] sm:$0xff]  ;;  %v631_v43 = vmul.f32 %v4940_v7, %v622_v27  ;;  %v755_v44 = vpack.c.bf16 %v729_v29, %v728_v28  ;;  %596 = vst.msk [vmem:[#allocation2 + $0xf3] sm:$0xff] %vm240_vm1, %v594_v36  ;;  %v616_v45 = vadd.f32 %v4950_v8, %v607_v37 }
  0x32   : > { %547 = vst.msk [vmem:[#allocation2 + $0xc7] sm:$0xff] %vm240_vm1, %v545_v9  ;;  %v681_v38 = vld [vmem:[#allocation2 + $0x60] sm:$0xff]  ;;  %v682_v40 = vld [vmem:[#allocation2 + $0x68] sm:$0xff]  ;;  %v706_v46 = vpack.c.bf16 %v680_v33, %v679_v30  ;;  %v756_v48 = vpack.c.bf16 %v731_v35, %v730_v34  ;;  %619 = vst.msk [vmem:[#allocation2 + $0xfd] sm:$0xff] %vm240_vm1, %v617_v41  ;;  %v639_v49 = vadd.f32 %v4950_v8, %v630_v42 }
  0x33   : > { %548 = vst.msk [vmem:[#allocation2 + $0xcf] sm:$0xff] %vm240_vm1, %v546_v12  ;;  %v707_v50 = vpack.c.bf16 %v682_v40, %v681_v38  ;;  %v618_v51 = vmax.f32 %v616_v45, 0.0  ;;  %v640_v52 = vadd.f32 %v4950_v8, %v631_v43  ;;  %v732_v54 = vld [vmem:[#allocation2 + $0x71] sm:$0xff]  ;;  %v733_v55 = vld [vmem:[#allocation2 + $0x79] sm:$0xff]  ;;  %v734_v58 = vld [vmem:[#allocation2 + $0x81] sm:$0xff] }
  0x34   : > { %v641_v53 = vmax.f32 %v639_v49, 0.0  ;;  %v683_v56 = vld [vmem:[#allocation2 + $0x70] sm:$0xff]  ;;  %v684_v57 = vld [vmem:[#allocation2 + $0x78] sm:$0xff]  ;;  %v685_v59 = vld [vmem:[#allocation2 + $0x80] sm:$0xff]  ;;  %v757_v61 = vpack.c.bf16 %v733_v55, %v732_v54 }
  0x35   : > { %4403 = vmatmul.mubr.msk.bf16.gmra.mxu0 %vm240_vm1, %v753_v5  ;;  %620 = vst.msk [vmem:[#allocation2 + $0x105] sm:$0xff] %vm240_vm1, %v618_v51  ;;  %v642_v7 = vmax.f32 %v640_v52, 0.0  ;;  %v735_v8 = vld [vmem:[#allocation2 + $0x89] sm:$0xff]  ;;  %v708_v62 = vpack.c.bf16 %v684_v57, %v683_v56  ;;  %v736_v0 = vld [vmem:[#allocation2 + $0x91] sm:$0xff]  ;;  %v737_v1 = vld [vmem:[#allocation2 + $0x99] sm:$0xff]  ;;  %v1881_v57 = vsel %vm817_vm0, %v5035_v39, 0 }
  0x36   : > { %4437 = vmatmul.mubr.msk.bf16.gmra.mxu1 %vm240_vm1, %v704_v6  ;;  %4406 = vmatprep.mubr.msk.bf16.mxu0 %vm240_vm1, %v754_v11  ;;  %643 = vst.msk [vmem:[#allocation2 + $0x10f] sm:$0xff] %vm240_vm1, %v641_v53  ;;  %v686_v60 = vld [vmem:[#allocation2 + $0x88] sm:$0xff]  ;;  %v758_v20 = vpack.c.bf16 %v735_v8, %v734_v58  ;;  %v687_v2 = vld [vmem:[#allocation2 + $0x90] sm:$0xff]  ;;  %v688_v21 = vld [vmem:[#allocation2 + $0x98] sm:$0xff]  ;;  %v759_v9 = vpack.c.bf16 %v737_v1, %v736_v0  ;;  %v2175_v58 = vsel %vm817_vm0, %v5047_v47, 0 }
  0x37   : > { %4440 = vmatprep.mubr.msk.bf16.mxu1 %vm240_vm1, %v705_v15  ;;  %644 = vst.msk [vmem:[#allocation2 + $0x117] sm:$0xff] %vm240_vm1, %v642_v7  ;;  %v709_v63 = vpack.c.bf16 %v686_v60, %v685_v59  ;;  %v738_v3 = vld [vmem:[#allocation2 + $0xa1] sm:$0xff]  ;;  %v739_v4 = vld [vmem:[#allocation2 + $0xa9] sm:$0xff]  ;;  %v710_v10 = vpack.c.bf16 %v688_v21, %v687_v2  ;;  %v740_v13 = vld [vmem:[#allocation2 + $0xb1] sm:$0xff] }
  0x38   : > { %v689_v5 = vld [vmem:[#allocation2 + $0xa0] sm:$0xff]  ;;  %v690_v6 = vld [vmem:[#allocation2 + $0xa8] sm:$0xff]  ;;  %v760_v11 = vpack.c.bf16 %v739_v4, %v738_v3  ;;  %v691_v15 = vld [vmem:[#allocation2 + $0xb0] sm:$0xff] }
  0x39   : > { %v711_v12 = vpack.c.bf16 %v690_v6, %v689_v5  ;;  %v741_v14 = vld [vmem:[#allocation2 + $0xb9] sm:$0xff]  ;;  %v742_v17 = vld [vmem:[#allocation2 + $0xc1] sm:$0xff]  ;;  %v747_v32 = vld [vmem:[#allocation2 + $0xe9] sm:$0xff] }
  0x3a   : > { %v692_v16 = vld [vmem:[#allocation2 + $0xb8] sm:$0xff]  ;;  %v743_v18 = vld [vmem:[#allocation2 + $0xc9] sm:$0xff]  ;;  %v693_v19 = vld [vmem:[#allocation2 + $0xc0] sm:$0xff]  ;;  %v761_v23 = vpack.c.bf16 %v741_v14, %v740_v13 }
  0x3b   : > { %v694_v22 = vld [vmem:[#allocation2 + $0xc8] sm:$0xff]  ;;  %v712_v24 = vpack.c.bf16 %v692_v16, %v691_v15  ;;  %v762_v25 = vpack.c.bf16 %v743_v18, %v742_v17  ;;  %v744_v27 = vld [vmem:[#allocation2 + $0xd1] sm:$0xff]  ;;  %v745_v28 = vld [vmem:[#allocation2 + $0xd9] sm:$0xff] }
  0x3c   : > { %v713_v26 = vpack.c.bf16 %v694_v22, %v693_v19  ;;  %v695_v29 = vld [vmem:[#allocation2 + $0xd0] sm:$0xff]  ;;  %v696_v30 = vld [vmem:[#allocation2 + $0xd8] sm:$0xff]  ;;  %v746_v31 = vld [vmem:[#allocation2 + $0xe1] sm:$0xff]  ;;  %v763_v35 = vpack.c.bf16 %v745_v28, %v744_v27 }
  0x3d   : > { %4407 = vmatmul.mubr.msk.bf16.gmra.mxu0 %vm240_vm1, %v755_v44  ;;  %v697_v33 = vld [vmem:[#allocation2 + $0xe0] sm:$0xff]  ;;  %v698_v34 = vld [vmem:[#allocation2 + $0xe8] sm:$0xff]  ;;  %v714_v36 = vpack.c.bf16 %v696_v30, %v695_v29  ;;  %v764_v37 = vpack.c.bf16 %v747_v32, %v746_v31  ;;  %v748_v40 = vld [vmem:[#allocation2 + $0xf1] sm:$0xff] }
  0x3e   : > { %4441 = vmatmul.mubr.msk.bf16.gmra.mxu1 %vm240_vm1, %v706_v46  ;;  %4410 = vmatprep.mubr.msk.bf16.mxu0 %vm240_vm1, %v756_v48  ;;  %v715_v38 = vpack.c.bf16 %v698_v34, %v697_v33  ;;  %v749_v41 = vld [vmem:[#allocation2 + $0xf9] sm:$0xff]  ;;  %v1194_v42 = vld [vmem:[#allocation2 + $0x2] sm:$0xff]  ;;  %v699_v43 = vld [vmem:[#allocation2 + $0xf0] sm:$0xff] }
  0x3f   : > { %4444 = vmatprep.mubr.msk.bf16.mxu1 %vm240_vm1, %v707_v50  ;;  %v700_v44 = vld [vmem:[#allocation2 + $0xf8] sm:$0xff]  ;;  %v1195_v45 = vld [vmem:[#allocation2 + $0xa] sm:$0xff]  ;;  %v765_v49 = vpack.c.bf16 %v749_v41, %v748_v40  ;;  %v1490_v53 = vld [vmem:[#allocation2 + $0x22] sm:$0xff] }
  0x40   : > { %v1488_v46 = vld [vmem:[#allocation2 + $0x12] sm:$0xff]  ;;  %v1489_v48 = vld [vmem:[#allocation2 + $0x1a] sm:$0xff]  ;;  %v716_v50 = vpack.c.bf16 %v700_v44, %v699_v43  ;;  %v1226_v51 = vpack.c.bf16 %v1195_v45, %v1194_v42  ;;  %v1491_v7 = vld [vmem:[#allocation2 + $0x2a] sm:$0xff] }
  0x41   : > { %v1520_v52 = vpack.c.bf16 %v1489_v48, %v1488_v46  ;;  %v1492_v54 = vld [vmem:[#allocation2 + $0x32] sm:$0xff]  ;;  %v1493_v55 = vld [vmem:[#allocation2 + $0x3a] sm:$0xff]  ;;  %v1521_v56 = vpack.c.bf16 %v1491_v7, %v1490_v53  ;;  %v5137_v59 = vld [vmem:[%s6059_s3 + $0xc] sm:$0x3] }
  0x42   : > { %v1522_v8 = vpack.c.bf16 %v1493_v55, %v1492_v54  ;;  %v5143_v60 = vld [vmem:[%s6059_s3 + $0xe] sm:$0x3]  ;;  %v1494_v39 = vld [vmem:[#allocation2 + $0x42] sm:$0xff]  ;;  %v1500_v2 = vld [vmem:[#allocation2 + $0x72] sm:$0xff] }
  0x43   : > { %v1495_v47 = vld [vmem:[#allocation2 + $0x4a] sm:$0xff]  ;;  %v1498_v0 = vld [vmem:[#allocation2 + $0x62] sm:$0xff]  ;;  %v1501_v21 = vld [vmem:[#allocation2 + $0x7a] sm:$0xff] }
  0x44   : > { %v1499_v1 = vld [vmem:[#allocation2 + $0x6a] sm:$0xff]  ;;  %v1526_v4 = vpack.c.bf16 %v1501_v21, %v1500_v2  ;;  %v1502_v5 = vld [vmem:[#allocation2 + $0x82] sm:$0xff]  ;;  %v1508_v15 = vld [vmem:[#allocation2 + $0xb2] sm:$0xff] }
  0x45   : > { %4411 = vmatmul.mubr.msk.bf16.gmra.mxu0 %vm240_vm1, %v757_v61  ;;  %v1496_v61 = vld [vmem:[#allocation2 + $0x52] sm:$0xff]  ;;  %v1525_v3 = vpack.c.bf16 %v1499_v1, %v1498_v0  ;;  %v1503_v6 = vld [vmem:[#allocation2 + $0x8a] sm:$0xff]  ;;  %v1506_v13 = vld [vmem:[#allocation2 + $0xa2] sm:$0xff] }
  0x46   : > { %4445 = vmatmul.mubr.msk.bf16.gmra.mxu1 %vm240_vm1, %v708_v62  ;;  %4414 = vmatprep.mubr.msk.bf16.mxu0 %vm240_vm1, %v758_v20  ;;  %v1497_v62 = vld [vmem:[#allocation2 + $0x5a] sm:$0xff]  ;;  %v1523_v20 = vpack.c.bf16 %v1495_v47, %v1494_v39  ;;  %v1507_v14 = vld [vmem:[#allocation2 + $0xaa] sm:$0xff]  ;;  %v1510_v19 = vld [vmem:[#allocation2 + $0xc2] sm:$0xff] }
  0x47   : > { %4448 = vmatprep.mubr.msk.bf16.mxu1 %vm240_vm1, %v709_v63  ;;  %v1524_v63 = vpack.c.bf16 %v1497_v62, %v1496_v61  ;;  %v1509_v16 = vld [vmem:[#allocation2 + $0xba] sm:$0xff]  ;;  %v1529_v17 = vpack.c.bf16 %v1507_v14, %v1506_v13  ;;  %v1511_v22 = vld [vmem:[#allocation2 + $0xca] sm:$0xff]  ;;  %v1514_v30 = vld [vmem:[#allocation2 + $0xe2] sm:$0xff]  ;;  %v2469_v61 = vsel %vm817_vm0, %v5137_v59, 0 }
  0x48   : > { %v1530_v18 = vpack.c.bf16 %v1509_v16, %v1508_v15  ;;  %v645_v27 = vld [vmem:[%s4945_s6 + $0xf0] sm:$0xff]  ;;  %v4033_v28 = vld [vmem:[%s6057_s1] ss:$0 sm:$0xff]  ;;  %v1518_v40 = vld [vmem:[#allocation2 + $0x102] sm:$0xff] }
  0x49   : > { %v654_v29 = vmul.f32 %v4033_v28, %v645_v27  ;;  %v1515_v31 = vld [vmem:[#allocation2 + $0xea] sm:$0xff]  ;;  %v4034_v32 = vld [vmem:[%s6058_s2] ss:$0 sm:$0xff]  ;;  %v1516_v33 = vld [vmem:[#allocation2 + $0xf2] sm:$0xff] }
  0x4a   : > { %v1517_v34 = vld [vmem:[#allocation2 + $0xfa] sm:$0xff]  ;;  %v1519_v41 = vld [vmem:[#allocation2 + $0x10a] sm:$0xff] }
  0x4b   : > { %v1782_v42 = vld [vmem:[#allocation2 + $0x13] sm:$0xff]  ;;  %v1783_v43 = vld [vmem:[#allocation2 + $0x1b] sm:$0xff]  ;;  %v5183_v46 = vpack.c.bf16 %v1519_v41, %v1518_v40  ;;  %v1788_v1 = vld [vmem:[#allocation2 + $0x43] sm:$0xff] }
  0x4c   : > { %v2076_v44 = vld [vmem:[#allocation2 + $0x14] sm:$0xff]  ;;  %v2077_v45 = vld [vmem:[#allocation2 + $0x1c] sm:$0xff]  ;;  %v1814_v48 = vpack.c.bf16 %v1783_v43, %v1782_v42  ;;  %v2079_v53 = vld [vmem:[#allocation2 + $0x2c] sm:$0xff] }
  0x4d   : > { %4415 = vmatmul.mubr.msk.bf16.gmra.mxu0 %vm240_vm1, %v759_v9  ;;  %v1504_v9 = vld [vmem:[#allocation2 + $0x92] sm:$0xff]  ;;  %v1787_v55 = vld [vmem:[#allocation2 + $0x3b] sm:$0xff]  ;;  %v5203_v2 = vld [vmem:[%s6059_s3 + $0x10] sm:$0x3] }
  0x4e   : > { %4449 = vmatmul.mubr.msk.bf16.gmra.mxu1 %vm240_vm1, %v710_v10  ;;  %4418 = vmatprep.mubr.msk.bf16.mxu0 %vm240_vm1, %v760_v11  ;;  %v1505_v10 = vld [vmem:[#allocation2 + $0x9a] sm:$0xff]  ;;  %v1527_v11 = vpack.c.bf16 %v1503_v6, %v1502_v5  ;;  %v2082_v21 = vld [vmem:[#allocation2 + $0x44] sm:$0xff] }
  0x4f   : > { %4452 = vmatprep.mubr.msk.bf16.mxu1 %vm240_vm1, %v711_v12  ;;  %v1528_v12 = vpack.c.bf16 %v1505_v10, %v1504_v9  ;;  %v646_v7 = vld [vmem:[%s4945_s6 + $0xf8] sm:$0xff]  ;;  %v1792_v14 = vld [vmem:[#allocation2 + $0x63] sm:$0xff]  ;;  %v1793_v15 = vld [vmem:[#allocation2 + $0x6b] sm:$0xff] }
  0x50   : > { %v1786_v54 = vld [vmem:[#allocation2 + $0x33] sm:$0xff]  ;;  %v1791_v5 = vld [vmem:[#allocation2 + $0x5b] sm:$0xff]  ;;  %v2086_v16 = vld [vmem:[#allocation2 + $0x64] sm:$0xff] }
  0x51   : > { %v1816_v62 = vpack.c.bf16 %v1787_v55, %v1786_v54  ;;  %v2084_v6 = vld [vmem:[#allocation2 + $0x54] sm:$0xff]  ;;  %v2085_v9 = vld [vmem:[#allocation2 + $0x5c] sm:$0xff]  ;;  %v1801_v42 = vld [vmem:[#allocation2 + $0xab] sm:$0xff] }
  0x52   : > { %v5222_v13 = vpack.c.bf16 %v2085_v9, %v2084_v6  ;;  %v1800_v41 = vld [vmem:[#allocation2 + $0xa3] sm:$0xff]  ;;  %v1805_v55 = vld [vmem:[#allocation2 + $0xcb] sm:$0xff]  ;;  %v1811_v6 = vld [vmem:[#allocation2 + $0xfb] sm:$0xff] }
  0x53   : > { %v2094_v43 = vld [vmem:[#allocation2 + $0xa4] sm:$0xff]  ;;  %v2104_v9 = vld [vmem:[#allocation2 + $0xf4] sm:$0xff] }
  0x54   : > { %v1804_v54 = vld [vmem:[#allocation2 + $0xc3] sm:$0xff] }
  0x55   : > { %4419 = vmatmul.mubr.msk.bf16.gmra.mxu0 %vm240_vm1, %v761_v23  ;;  %v1512_v23 = vld [vmem:[#allocation2 + $0xd2] sm:$0xff] }
  0x56   : > { %4453 = vmatmul.mubr.msk.bf16.gmra.mxu1 %vm240_vm1, %v712_v24  ;;  %4422 = vmatprep.mubr.msk.bf16.mxu0 %vm240_vm1, %v762_v25  ;;  %v1513_v24 = vld [vmem:[#allocation2 + $0xda] sm:$0xff]  ;;  %v1531_v25 = vpack.c.bf16 %v1511_v22, %v1510_v19 }
  0x57   : > { %4456 = vmatprep.mubr.msk.bf16.mxu1 %vm240_vm1, %v713_v26  ;;  %v1532_v26 = vpack.c.bf16 %v1513_v24, %v1512_v23  ;;  %v1795_v19 = vld [vmem:[#allocation2 + $0x7b] sm:$0xff]  ;;  %v1819_v24 = vpack.c.bf16 %v1793_v15, %v1792_v14 }
  0x58   : > { %v2088_v22 = vld [vmem:[#allocation2 + $0x74] sm:$0xff]  ;;  %v2089_v23 = vld [vmem:[#allocation2 + $0x7c] sm:$0xff] }
  0x59   : > { %v5232_v27 = vpack.c.bf16 %v2089_v23, %v2088_v22  ;;  %v2107_v22 = vld [vmem:[#allocation2 + $0x10c] sm:$0xff] }
  0x5a   : > { %v2664_v23 = vld [vmem:[#allocation2 + $0x25] sm:$0xff] }
  0x5d   : > { %4423 = vmatmul.mubr.msk.bf16.gmra.mxu0 %vm240_vm1, %v763_v35  ;;  %v663_v35 = vadd.f32 %v4034_v32, %v654_v29  ;;  %v1797_v29 = vld [vmem:[#allocation2 + $0x8b] sm:$0xff] }
  0x5e   : > { %4457 = vmatmul.mubr.msk.bf16.gmra.mxu1 %vm240_vm1, %v714_v36  ;;  %4426 = vmatprep.mubr.msk.bf16.mxu0 %vm240_vm1, %v764_v37  ;;  %v1533_v36 = vpack.c.bf16 %v1515_v31, %v1514_v30  ;;  %v2090_v30 = vld [vmem:[#allocation2 + $0x84] sm:$0xff]  ;;  %v2091_v31 = vld [vmem:[#allocation2 + $0x8c] sm:$0xff] }
  0x5f   : > { %4460 = vmatprep.mubr.msk.bf16.mxu1 %vm240_vm1, %v715_v38  ;;  %v665_v37 = vmax.f32 %v663_v35, 0.0  ;;  %v1534_v38 = vpack.c.bf16 %v1517_v34, %v1516_v33  ;;  %v1799_v33 = vld [vmem:[#allocation2 + $0x9b] sm:$0xff] }
  0x60   : > { %v2092_v34 = vld [vmem:[#allocation2 + $0x94] sm:$0xff]  ;;  %v2093_v35 = vld [vmem:[#allocation2 + $0x9c] sm:$0xff] }
  0x61   : > { %667 = vst.msk [vmem:[#allocation2 + $0x121] sm:$0xff] %vm240_vm1, %v665_v37  ;;  %v5240_v37 = vpack.c.bf16 %v2091_v31, %v2090_v30  ;;  %v5242_v40 = vpack.c.bf16 %v2093_v35, %v2092_v34  ;;  %v2666_v30 = vld [vmem:[#allocation2 + $0x35] sm:$0xff]  ;;  %v2667_v31 = vld [vmem:[#allocation2 + $0x3d] sm:$0xff]  ;;  %v3057_v35 = vsel %vm817_vm0, %v5203_v2, 0 }
  0x62   : > { %v2697_v34 = vpack.c.bf16 %v2667_v31, %v2666_v30  ;;  %v2680_v30 = vld [vmem:[#allocation2 + $0xa5] sm:$0xff]  ;;  %v2681_v31 = vld [vmem:[#allocation2 + $0xad] sm:$0xff] }
  0x65   : > { %4427 = vmatmul.mubr.msk.bf16.gmra.mxu0 %vm240_vm1, %v765_v49  ;;  %v2108_v49 = vpack.c.bf16 %v2077_v45, %v2076_v44  ;;  %v2095_v44 = vld [vmem:[#allocation2 + $0xac] sm:$0xff] }
  0x66   : > { %4461 = vmatmul.mubr.msk.bf16.gmra.mxu1 %vm240_vm1, %v716_v50  ;;  %4466 = vmatprep.mubr.msk.bf16.mxu0 %vm240_vm1, %v1226_v51  ;;  %v1784_v50 = vld [vmem:[#allocation2 + $0x23] sm:$0xff]  ;;  %v1785_v51 = vld [vmem:[#allocation2 + $0x2b] sm:$0xff]  ;;  %v1802_v45 = vld [vmem:[#allocation2 + $0xb3] sm:$0xff] }
  0x67   : > { %4500 = vmatprep.mubr.msk.bf16.mxu1 %vm240_vm1, %v1520_v52 }
  0x6d   : > { %4467 = vmatmul.mubr.msk.bf16.vlgmr.msra.gmra.mxu0 %vm240_vm1, %v1520_v52  ;;  %v2078_v52 = vld [vmem:[#allocation2 + $0x24] sm:$0xff] }
  0x6e   : > { %4501 = vmatmul.mubr.msk.bf16.vlgmr.msra.gmra.mxu1 %vm240_vm1, %v1521_v56  ;;  %4533 = vmatpush3.bf16.msra.mxu0 %v1881_v57  ;;  %v1815_v57 = vpack.c.bf16 %v1785_v51, %v1784_v50  ;;  %v5191_v39 = vpack.c.bf16 %v2079_v53, %v2078_v52  ;;  %v2097_v50 = vld [vmem:[#allocation2 + $0xbc] sm:$0xff]  ;;  %v1823_v51 = vpack.c.bf16 %v1801_v42, %v1800_v41 }
  0x6f   : > { %4567 = vmatpush3.bf16.msra.mxu1 %v2175_v58  ;;  %4470 = vmatprep.mubr.msk.bf16.mxu0 %vm240_vm1, %v1521_v56  ;;  %v655_v56 = vmul.f32 %v4033_v28, %v646_v7  ;;  %v2080_v58 = vld [vmem:[#allocation2 + $0x34] sm:$0xff]  ;;  %v1796_v28 = vld [vmem:[#allocation2 + $0x83] sm:$0xff]  ;;  %v5250_v52 = vpack.c.bf16 %v2095_v44, %v2094_v43 }
  0x70   : > { %4504 = vmatprep.mubr.msk.bf16.mxu1 %vm240_vm1, %v1522_v8  ;;  %4762 = vmatprep.subr.msk.bf16.mxu0 %vm817_vm0, %v5137_v59  ;;  %v1789_v59 = vld [vmem:[#allocation2 + $0x4b] sm:$0xff]  ;;  %v2671_v44 = vld [vmem:[#allocation2 + $0x5d] sm:$0xff] }
  0x71   : > { %4763 = vmatprep.subr.msk.bf16.mxu1 %vm817_vm0, %v5143_v60  ;;  %v664_v47 = vadd.f32 %v4034_v32, %v655_v56  ;;  %v1817_v10 = vpack.c.bf16 %v1789_v59, %v1788_v1  ;;  %v1798_v32 = vld [vmem:[#allocation2 + $0x93] sm:$0xff]  ;;  %v2098_v56 = vld [vmem:[#allocation2 + $0xc4] sm:$0xff] }
  0x72   : > { %v1808_v59 = vld [vmem:[#allocation2 + $0xe3] sm:$0xff] }
  0x73   : > { %v666_v0 = vmax.f32 %v664_v47, 0.0  ;;  %v2100_v47 = vld [vmem:[#allocation2 + $0xd4] sm:$0xff] }
  0x75   : > { %4471 = vmatmul.mubr.msk.bf16.gmra.mxu0 %vm240_vm1, %v1522_v8  ;;  %v2081_v8 = vld [vmem:[#allocation2 + $0x3c] sm:$0xff]  ;;  %668 = vst.msk [vmem:[#allocation2 + $0x129] sm:$0xff] %vm240_vm1, %v666_v0 }
  0x76   : > { %4505 = vmatmul.mubr.msk.bf16.gmra.mxu1 %vm240_vm1, %v1523_v20  ;;  %4474 = vmatprep.mubr.msk.bf16.mxu0 %vm240_vm1, %v1523_v20  ;;  %v2763_v20 = vsel %vm817_vm0, %v5143_v60, 0  ;;  %v5210_v60 = vld [vmem:[%s6059_s3 + $0x2] sm:$0x3] }
  0x77   : > { %4508 = vmatprep.mubr.msk.bf16.mxu1 %vm240_vm1, %v1524_v63 }
  0x7d   : > { %4475 = vmatmul.mubr.msk.bf16.gmra.mxu0 %vm240_vm1, %v1524_v63  ;;  %v5197_v63 = vpack.c.bf16 %v2081_v8, %v2080_v58  ;;  %v1806_v58 = vld [vmem:[#allocation2 + $0xd3] sm:$0xff]  ;;  %v1807_v8 = vld [vmem:[#allocation2 + $0xdb] sm:$0xff] }
  0x7e   : > { %4509 = vmatmul.mubr.msk.bf16.gmra.mxu1 %vm240_vm1, %v1525_v3  ;;  %4478 = vmatprep.mubr.msk.bf16.mxu0 %vm240_vm1, %v1525_v3  ;;  %v2083_v3 = vld [vmem:[#allocation2 + $0x4c] sm:$0xff]  ;;  %v1826_v0 = vpack.c.bf16 %v1807_v8, %v1806_v58 }
  0x7f   : > { %4512 = vmatprep.mubr.msk.bf16.mxu1 %vm240_vm1, %v1526_v4 }
  0x85   : > { %4479 = vmatmul.mubr.msk.bf16.gmra.mxu0 %vm240_vm1, %v1526_v4  ;;  %v1790_v4 = vld [vmem:[#allocation2 + $0x53] sm:$0xff] }
  0x86   : > { %4513 = vmatmul.mubr.msk.bf16.gmra.mxu1 %vm240_vm1, %v1527_v11  ;;  %4482 = vmatprep.mubr.msk.bf16.mxu0 %vm240_vm1, %v1527_v11  ;;  %v5220_v11 = vpack.c.bf16 %v2083_v3, %v2082_v21  ;;  %v1809_v21 = vld [vmem:[#allocation2 + $0xeb] sm:$0xff] }
  0x87   : > { %4516 = vmatprep.mubr.msk.bf16.mxu1 %vm240_vm1, %v1528_v12  ;;  %v2102_v3 = vld [vmem:[#allocation2 + $0xe4] sm:$0xff] }
  0x8d   : > { %4483 = vmatmul.mubr.msk.bf16.gmra.mxu0 %vm240_vm1, %v1528_v12  ;;  %v1818_v12 = vpack.c.bf16 %v1791_v5, %v1790_v4  ;;  %v2103_v4 = vld [vmem:[#allocation2 + $0xec] sm:$0xff] }
  0x8e   : > { %4517 = vmatmul.mubr.msk.bf16.gmra.mxu1 %vm240_vm1, %v1529_v17  ;;  %4486 = vmatprep.mubr.msk.bf16.mxu0 %vm240_vm1, %v1529_v17  ;;  %v2087_v17 = vld [vmem:[#allocation2 + $0x6c] sm:$0xff]  ;;  %v5270_v14 = vpack.c.bf16 %v2103_v4, %v2102_v3 }
  0x8f   : > { %4520 = vmatprep.mubr.msk.bf16.mxu1 %vm240_vm1, %v1530_v18  ;;  %v1810_v5 = vld [vmem:[#allocation2 + $0xf3] sm:$0xff]  ;;  %v2676_v3 = vld [vmem:[#allocation2 + $0x85] sm:$0xff] }
  0x90   : > { %v1828_v15 = vpack.c.bf16 %v1811_v6, %v1810_v5  ;;  %v2677_v4 = vld [vmem:[#allocation2 + $0x8d] sm:$0xff] }
  0x95   : > { %4487 = vmatmul.mubr.msk.bf16.gmra.mxu0 %vm240_vm1, %v1530_v18  ;;  %v1794_v18 = vld [vmem:[#allocation2 + $0x73] sm:$0xff] }
  0x96   : > { %4521 = vmatmul.mubr.msk.bf16.gmra.mxu1 %vm240_vm1, %v1531_v25  ;;  %4490 = vmatprep.mubr.msk.bf16.mxu0 %vm240_vm1, %v1531_v25  ;;  %v5230_v25 = vpack.c.bf16 %v2087_v17, %v2086_v16  ;;  %v1812_v17 = vld [vmem:[#allocation2 + $0x103] sm:$0xff] }
  0x97   : > { %4524 = vmatprep.mubr.msk.bf16.mxu1 %vm240_vm1, %v1532_v26 }
  0x9d   : > { %4491 = vmatmul.mubr.msk.bf16.gmra.mxu0 %vm240_vm1, %v1532_v26  ;;  %v1820_v26 = vpack.c.bf16 %v1795_v19, %v1794_v18  ;;  %v1813_v18 = vld [vmem:[#allocation2 + $0x10b] sm:$0xff] }
  0x9e   : > { %4525 = vmatmul.mubr.msk.bf16.gmra.mxu1 %vm240_vm1, %v1533_v36  ;;  %4494 = vmatprep.mubr.msk.bf16.mxu0 %vm240_vm1, %v1533_v36  ;;  %v1821_v36 = vpack.c.bf16 %v1797_v29, %v1796_v28  ;;  %v2106_v19 = vld [vmem:[#allocation2 + $0x104] sm:$0xff] }
  0x9f   : > { %4528 = vmatprep.mubr.msk.bf16.mxu1 %vm240_vm1, %v1534_v38  ;;  %v5280_v28 = vpack.c.bf16 %v2107_v22, %v2106_v19 }
  0xa5   : > { %4495 = vmatmul.mubr.msk.bf16.gmra.mxu0 %vm240_vm1, %v1534_v38  ;;  %v1822_v38 = vpack.c.bf16 %v1799_v33, %v1798_v32  ;;  %v2668_v32 = vld [vmem:[#allocation2 + $0x45] sm:$0xff]  ;;  %v2669_v33 = vld [vmem:[#allocation2 + $0x4d] sm:$0xff] }
  0xa6   : > { %4529 = vmatmul.mubr.msk.bf16.gmra.mxu1 %vm240_vm1, %v5183_v46  ;;  %4534 = vmatprep.mubr.msk.bf16.mxu0 %vm240_vm1, %v1814_v48  ;;  %v1803_v48 = vld [vmem:[#allocation2 + $0xbb] sm:$0xff] }
  0xa7   : > { %4568 = vmatprep.mubr.msk.bf16.mxu1 %vm240_vm1, %v2108_v49  ;;  %v2096_v49 = vld [vmem:[#allocation2 + $0xb4] sm:$0xff]  ;;  %v1824_v53 = vpack.c.bf16 %v1803_v48, %v1802_v45  ;;  %v2672_v48 = vld [vmem:[#allocation2 + $0x65] sm:$0xff] }
  0xa8   : > { %v5252_v7 = vpack.c.bf16 %v2097_v50, %v2096_v49  ;;  %v2673_v49 = vld [vmem:[#allocation2 + $0x6d] sm:$0xff] }
  0xad   : > { %4535 = vmatmul.mubr.msk.bf16.vlgmr.msra.gmra.mxu0 %vm240_vm1, %v1815_v57  ;;  %v2099_v57 = vld [vmem:[#allocation2 + $0xcc] sm:$0xff] }
  0xae   : > { %4569 = vmatmul.mubr.msk.bf16.vlgmr.msra.gmra.mxu1 %vm240_vm1, %v5191_v39  ;;  %4601 = vmatpush3.bf16.msra.mxu0 %v2469_v61  ;;  %v2101_v61 = vld [vmem:[#allocation2 + $0xdc] sm:$0xff] }
  0xaf   : > { %4635 = vmatpush3.bf16.msra.mxu1 %v2763_v20  ;;  %4538 = vmatprep.mubr.msk.bf16.mxu0 %vm240_vm1, %v1816_v62  ;;  %v1825_v62 = vpack.c.bf16 %v1805_v55, %v1804_v54  ;;  %v5260_v20 = vpack.c.bf16 %v2099_v57, %v2098_v56  ;;  %v5262_v1 = vpack.c.bf16 %v2101_v61, %v2100_v47 }
  0xb0   : > { %4572 = vmatprep.mubr.msk.bf16.mxu1 %vm240_vm1, %v5197_v63  ;;  %4764 = vmatprep.subr.msk.bf16.mxu0 %vm817_vm0, %v5203_v2  ;;  %v5303_v2 = vld [vmem:[%s6059_s3] sm:$0x3]  ;;  %v2700_v56 = vpack.c.bf16 %v2673_v49, %v2672_v48 }
  0xb1   : > { %4765 = vmatprep.subr.msk.bf16.mxu1 %vm817_vm0, %v5210_v60  ;;  %v2683_v48 = vld [vmem:[#allocation2 + $0xbd] sm:$0xff] }
  0xb5   : > { %4539 = vmatmul.mubr.msk.bf16.gmra.mxu0 %vm240_vm1, %v1817_v10  ;;  %v2105_v10 = vld [vmem:[#allocation2 + $0xfc] sm:$0xff] }
  0xb6   : > { %4573 = vmatmul.mubr.msk.bf16.gmra.mxu1 %vm240_vm1, %v5220_v11  ;;  %4542 = vmatprep.mubr.msk.bf16.mxu0 %vm240_vm1, %v1818_v12  ;;  %v1827_v12 = vpack.c.bf16 %v1809_v21, %v1808_v59  ;;  %v5272_v16 = vpack.c.bf16 %v2105_v10, %v2104_v9  ;;  %v2675_v59 = vld [vmem:[#allocation2 + $0x7d] sm:$0xff] }
  0xb7   : > { %4576 = vmatprep.mubr.msk.bf16.mxu1 %vm240_vm1, %v5222_v13 }
  0xbd   : > { %4543 = vmatmul.mubr.msk.bf16.gmra.mxu0 %vm240_vm1, %v1819_v24  ;;  %v2665_v24 = vld [vmem:[#allocation2 + $0x2d] sm:$0xff] }
  0xbe   : > { %4577 = vmatmul.mubr.msk.bf16.gmra.mxu1 %vm240_vm1, %v5230_v25  ;;  %4546 = vmatprep.mubr.msk.bf16.mxu0 %vm240_vm1, %v1820_v26  ;;  %v1829_v26 = vpack.c.bf16 %v1813_v18, %v1812_v17  ;;  %v2696_v29 = vpack.c.bf16 %v2665_v24, %v2664_v23  ;;  %v2678_v24 = vld [vmem:[#allocation2 + $0x95] sm:$0xff] }
  0xbf   : > { %4580 = vmatprep.mubr.msk.bf16.mxu1 %vm240_vm1, %v5232_v27 }
  0xc5   : > { %4547 = vmatmul.mubr.msk.bf16.gmra.mxu0 %vm240_vm1, %v1821_v36  ;;  %v3305_v36 = vsel %vm817_vm0, %v5210_v60, 0 }
  0xc6   : > { %4581 = vmatmul.mubr.msk.bf16.gmra.mxu1 %vm240_vm1, %v5240_v37  ;;  %4550 = vmatprep.mubr.msk.bf16.mxu0 %vm240_vm1, %v1822_v38  ;;  %v2698_v38 = vpack.c.bf16 %v2669_v33, %v2668_v32 }
  0xc7   : > { %4584 = vmatprep.mubr.msk.bf16.mxu1 %vm240_vm1, %v5242_v40 }
  0xcd   : > { %4551 = vmatmul.mubr.msk.bf16.gmra.mxu0 %vm240_vm1, %v1823_v51 }
  0xce   : > { %4585 = vmatmul.mubr.msk.bf16.gmra.mxu1 %vm240_vm1, %v5250_v52  ;;  %4554 = vmatprep.mubr.msk.bf16.mxu0 %vm240_vm1, %v1824_v53 }
  0xcf   : > { %4588 = vmatprep.mubr.msk.bf16.mxu1 %vm240_vm1, %v5252_v7 }
  0xd5   : > { %4555 = vmatmul.mubr.msk.bf16.gmra.mxu0 %vm240_vm1, %v1825_v62 }
  0xd6   : > { %4589 = vmatmul.mubr.msk.bf16.gmra.mxu1 %vm240_vm1, %v5260_v20  ;;  %4558 = vmatprep.mubr.msk.bf16.mxu0 %vm240_vm1, %v1826_v0  ;;  %v2674_v0 = vld [vmem:[#allocation2 + $0x75] sm:$0xff] }
  0xd7   : > { %4592 = vmatprep.mubr.msk.bf16.mxu1 %vm240_vm1, %v5262_v1  ;;  %v2701_v9 = vpack.c.bf16 %v2675_v59, %v2674_v0 }
  0xdd   : > { %4559 = vmatmul.mubr.msk.bf16.gmra.mxu0 %vm240_vm1, %v1827_v12 }
  0xde   : > { %4593 = vmatmul.mubr.msk.bf16.gmra.mxu1 %vm240_vm1, %v5270_v14  ;;  %4562 = vmatprep.mubr.msk.bf16.mxu0 %vm240_vm1, %v1828_v15  ;;  %v2702_v15 = vpack.c.bf16 %v2677_v4, %v2676_v3  ;;  %v2686_v4 = vld [vmem:[#allocation2 + $0xd5] sm:$0xff] }
  0xdf   : > { %4596 = vmatprep.mubr.msk.bf16.mxu1 %vm240_vm1, %v5272_v16 }
  0xe5   : > { %4563 = vmatmul.mubr.msk.bf16.gmra.mxu0 %vm240_vm1, %v1829_v26  ;;  %v2679_v26 = vld [vmem:[#allocation2 + $0x9d] sm:$0xff] }
  0xe6   : > { %4597 = vmatmul.mubr.msk.bf16.gmra.mxu1 %vm240_vm1, %v5280_v28  ;;  %4602 = vmatprep.mubr.msk.bf16.mxu0 %vm240_vm1, %v5191_v39  ;;  %v5297_v39 = vld [vmem:[%s6059_s3 + $0x10] sm:$0x3] }
  0xe7   : > { %4636 = vmatprep.mubr.msk.bf16.mxu1 %vm240_vm1, %v2696_v29 }
  0xed   : > { %v4400_v41 = vpop.f32.mrf.mxu0  ;;  %4603 = vmatmul.mubr.msk.bf16.vlgmr.msra.gmra.mxu0 %vm240_vm1, %v5197_v63  ;;  %v2670_v63 = vld [vmem:[#allocation2 + $0x55] sm:$0xff] }
  0xee   : > { %v4434_v42 = vpop.f32.mrf.mxu1  ;;  %4637 = vmatmul.mubr.msk.bf16.vlgmr.msra.gmra.mxu1 %vm240_vm1, %v2697_v34  ;;  %4669 = vmatpush3.bf16.msra.mxu0 %v3057_v35  ;;  %v2699_v54 = vpack.c.bf16 %v2671_v44, %v2670_v63  ;;  %v2703_v34 = vpack.c.bf16 %v2679_v26, %v2678_v24 }
  0xef   : > { %v5305_v60 = vadd.f32 %v4434_v42, %v4400_v41  ;;  %v855_v43 = vpop.f32.mrf.mxu0  ;;  %4703 = vmatpush3.bf16.msra.mxu1 %v3305_v36  ;;  %4606 = vmatprep.mubr.msk.bf16.mxu0 %vm240_vm1, %v5220_v11 }
  0xf0   : > { %v1067_v45 = vpop.f32.mrf.mxu1  ;;  %4640 = vmatprep.mubr.msk.bf16.mxu1 %vm240_vm1, %v2698_v38  ;;  %4773 = vmatprep.subr.msk.bf16.mxu0 %vm817_vm0, %v5297_v39  ;;  %v2704_v38 = vpack.c.bf16 %v2681_v31, %v2680_v30 }
  0xf1   : > { %v5312_v50 = vadd.f32 %v1067_v45, %v855_v43  ;;  %v4401_v51 = vpop.f32.mrf.mxu0  ;;  %4766 = vmatprep.subr.msk.bf16.mxu1 %vm817_vm0, %v5303_v2  ;;  %v2682_v45 = vld [vmem:[#allocation2 + $0xb5] sm:$0xff] }
  0xf2   : > { %v4435_v53 = vpop.f32.mrf.mxu1 }
  0xf3   : > { %v5316_v55 = vadd.f32 %v4435_v53, %v4401_v51  ;;  %v858_v11 = vpop.f32.mrf.mxu0  ;;  %v2684_v51 = vld [vmem:[#allocation2 + $0xc5] sm:$0xff]  ;;  %v2685_v53 = vld [vmem:[#allocation2 + $0xcd] sm:$0xff] }
  0xf4   : > { %v1070_v57 = vpop.f32.mrf.mxu1 }
  0xf5   : > { %v5318_v58 = vadd.f32 %v1070_v57, %v858_v11  ;;  %v4404_v8 = vpop.f32.mrf.mxu0  ;;  %4607 = vmatmul.mubr.msk.bf16.gmra.mxu0 %vm240_vm1, %v5222_v13 }
  0xf6   : > { %v4438_v47 = vpop.f32.mrf.mxu1  ;;  %4641 = vmatmul.mubr.msk.bf16.gmra.mxu1 %vm240_vm1, %v2699_v54  ;;  %4610 = vmatprep.mubr.msk.bf16.mxu0 %vm240_vm1, %v5230_v25 }
  0xf7   : > { %v5325_v61 = vadd.f32 %v4438_v47, %v4404_v8  ;;  %v871_v62 = vpop.f32.mrf.mxu0  ;;  %4644 = vmatprep.mubr.msk.bf16.mxu1 %vm240_vm1, %v2700_v56  ;;  %v2705_v56 = vpack.c.bf16 %v2683_v48, %v2682_v45  ;;  %v2706_v47 = vpack.c.bf16 %v2685_v53, %v2684_v51 }
  0xf8   : > { %v1083_v21 = vpop.f32.mrf.mxu1 }
  0xf9   : > { %v5328_v5 = vadd.f32 %v1083_v21, %v871_v62  ;;  %v4405_v6 = vpop.f32.mrf.mxu0 }
  0xfa   : > { %v4439_v13 = vpop.f32.mrf.mxu1 }
  0xfb   : > { %v5330_v10 = vadd.f32 %v4439_v13, %v4405_v6  ;;  %v874_v12 = vpop.f32.mrf.mxu0  ;;  %v2687_v6 = vld [vmem:[#allocation2 + $0xdd] sm:$0xff] }
  0xfc   : > { %v1086_v25 = vpop.f32.mrf.mxu1 }
  0xfd   : > { %v5332_v17 = vadd.f32 %v1086_v25, %v874_v12  ;;  %v4408_v18 = vpop.f32.mrf.mxu0  ;;  %4611 = vmatmul.mubr.msk.bf16.gmra.mxu0 %vm240_vm1, %v5232_v27  ;;  %v2689_v12 = vld [vmem:[#allocation2 + $0xed] sm:$0xff] }
  0xfe   : > { %v4442_v19 = vpop.f32.mrf.mxu1  ;;  %4645 = vmatmul.mubr.msk.bf16.gmra.mxu1 %vm240_vm1, %v2701_v9  ;;  %4614 = vmatprep.mubr.msk.bf16.mxu0 %vm240_vm1, %v5240_v37  ;;  %v2688_v9 = vld [vmem:[#allocation2 + $0xe5] sm:$0xff] }
  0xff   : > { %v5339_v22 = vadd.f32 %v4442_v19, %v4408_v18  ;;  %v887_v23 = vpop.f32.mrf.mxu0  ;;  %4648 = vmatprep.mubr.msk.bf16.mxu1 %vm240_vm1, %v2702_v15  ;;  %v2707_v18 = vpack.c.bf16 %v2687_v6, %v2686_v4  ;;  %v2708_v24 = vpack.c.bf16 %v2689_v12, %v2688_v9  ;;  %v3291_v6 = vld [vmem:[#allocation2 + $0x101] sm:$0xff] }
 0x100   : > { %v1099_v29 = vpop.f32.mrf.mxu1 }
 0x101   : > { %v5342_v32 = vadd.f32 %v1099_v29, %v887_v23  ;;  %v4409_v33 = vpop.f32.mrf.mxu0 }
 0x102   : > { %v4443_v27 = vpop.f32.mrf.mxu1 }
 0x103   : > { %v5344_v35 = vadd.f32 %v4443_v27, %v4409_v33  ;;  %v890_v36 = vpop.f32.mrf.mxu0  ;;  %v2690_v27 = vld [vmem:[#allocation2 + $0xf5] sm:$0xff] }
 0x104   : > { %v1102_v37 = vpop.f32.mrf.mxu1 }
 0x105   : > { %v5346_v41 = vadd.f32 %v1102_v37, %v890_v36  ;;  %v4412_v42 = vpop.f32.mrf.mxu0  ;;  %4615 = vmatmul.mubr.msk.bf16.gmra.mxu0 %vm240_vm1, %v5242_v40  ;;  %v2693_v37 = vld [vmem:[#allocation2 + $0x10d] sm:$0xff] }
 0x106   : > { %v4446_v43 = vpop.f32.mrf.mxu1  ;;  %4649 = vmatmul.mubr.msk.bf16.gmra.mxu1 %vm240_vm1, %v2703_v34  ;;  %4618 = vmatprep.mubr.msk.bf16.mxu0 %vm240_vm1, %v5250_v52  ;;  %v2691_v34 = vld [vmem:[#allocation2 + $0xfd] sm:$0xff] }
 0x107   : > { %v5353_v63 = vadd.f32 %v4446_v43, %v4412_v42  ;;  %v903_v44 = vpop.f32.mrf.mxu0  ;;  %4652 = vmatprep.mubr.msk.bf16.mxu1 %vm240_vm1, %v2704_v38  ;;  %v2692_v38 = vld [vmem:[#allocation2 + $0x105] sm:$0xff] }
 0x108   : > { %v1115_v49 = vpop.f32.mrf.mxu1 }
 0x109   : > { %v5356_v54 = vadd.f32 %v1115_v49, %v903_v44  ;;  %v4413_v11 = vpop.f32.mrf.mxu0  ;;  %v2709_v44 = vpack.c.bf16 %v2691_v34, %v2690_v27  ;;  %v2710_v49 = vpack.c.bf16 %v2693_v37, %v2692_v38  ;;  %v2960_v27 = vld [vmem:[#allocation2 + $0x36] sm:$0xff]  ;;  %v2961_v34 = vld [vmem:[#allocation2 + $0x3e] sm:$0xff] }
 0x10a   : > { %v4447_v40 = vpop.f32.mrf.mxu1  ;;  %v3293_v37 = vld [vmem:[#allocation2 + $0x111] sm:$0xff] }
 0x10b   : > { %v5358_v57 = vadd.f32 %v4447_v40, %v4413_v11  ;;  %v906_v8 = vpop.f32.mrf.mxu0  ;;  %v2400_v40 = vld [vmem:[#allocation2 + $0x114] sm:$0xff] }
 0x10c   : > { %v1118_v52 = vpop.f32.mrf.mxu1 }
 0x10d   : > { %v5360_v62 = vadd.f32 %v1118_v52, %v906_v8  ;;  %v4416_v0 = vpop.f32.mrf.mxu0  ;;  %4619 = vmatmul.mubr.msk.bf16.gmra.mxu0 %vm240_vm1, %v5252_v7  ;;  %v2694_v8 = vld [vmem:[#allocation2 + $0x115] sm:$0xff] }
 0x10e   : > { %v4450_v59 = vpop.f32.mrf.mxu1  ;;  %4653 = vmatmul.mubr.msk.bf16.gmra.mxu1 %vm240_vm1, %v2705_v56  ;;  %4622 = vmatprep.mubr.msk.bf16.mxu0 %vm240_vm1, %v5260_v20  ;;  %v2401_v56 = vld [vmem:[#allocation2 + $0x11c] sm:$0xff] }
 0x10f   : > { %v5367_v21 = vadd.f32 %v4450_v59, %v4416_v0  ;;  %v919_v3 = vpop.f32.mrf.mxu0  ;;  %4656 = vmatprep.mubr.msk.bf16.mxu1 %vm240_vm1, %v2706_v47  ;;  %v2695_v0 = vld [vmem:[#allocation2 + $0x11d] sm:$0xff]  ;;  %v2958_v59 = vld [vmem:[#allocation2 + $0x26] sm:$0xff]  ;;  %v5400_v12 = vpack.c.bf16 %v2401_v56, %v2400_v40 }
 0x110   : > { %v1131_v13 = vpop.f32.mrf.mxu1  ;;  %v3285_v40 = vld [vmem:[#allocation2 + $0x108] sm:$0xff] }
 0x111   : > { %v5370_v15 = vadd.f32 %v1131_v13, %v919_v3  ;;  %v4417_v25 = vpop.f32.mrf.mxu0  ;;  %v2959_v3 = vld [vmem:[#allocation2 + $0x2e] sm:$0xff] }
 0x112   : > { %v4451_v7 = vpop.f32.mrf.mxu1 }
 0x113   : > { %v5372_v19 = vadd.f32 %v4451_v7, %v4417_v25  ;;  %v922_v23 = vpop.f32.mrf.mxu0  ;;  %v2711_v25 = vpack.c.bf16 %v2695_v0, %v2694_v8  ;;  %v2990_v7 = vpack.c.bf16 %v2959_v3, %v2958_v59  ;;  %v3842_v59 = vsel %vm817_vm0, %v5297_v39, 0  ;;  %v2964_v39 = vld [vmem:[#allocation2 + $0x56] sm:$0xff] }
 0x114   : > { %v1134_v20 = vpop.f32.mrf.mxu1 }
 0x115   : > { %v5374_v26 = vadd.f32 %v1134_v20, %v922_v23  ;;  %v4420_v29 = vpop.f32.mrf.mxu0  ;;  %4623 = vmatmul.mubr.msk.bf16.gmra.mxu0 %vm240_vm1, %v5262_v1 }
 0x116   : > { %v4454_v30 = vpop.f32.mrf.mxu1  ;;  %4657 = vmatmul.mubr.msk.bf16.gmra.mxu1 %vm240_vm1, %v2707_v18  ;;  %4626 = vmatprep.mubr.msk.bf16.mxu0 %vm240_vm1, %v5270_v14 }
 0x117   : > { %v5381_v31 = vadd.f32 %v4454_v30, %v4420_v29  ;;  %v935_v33 = vpop.f32.mrf.mxu0  ;;  %4660 = vmatprep.mubr.msk.bf16.mxu1 %vm240_vm1, %v2708_v24 }
 0x118   : > { %v1147_v36 = vpop.f32.mrf.mxu1 }
 0x119   : > { %v5384_v42 = vadd.f32 %v1147_v36, %v935_v33  ;;  %v4421_v43 = vpop.f32.mrf.mxu0 }
 0x11a   : > { %v4455_v1 = vpop.f32.mrf.mxu1 }
 0x11b   : > { %v5386_v45 = vadd.f32 %v4455_v1, %v4421_v43  ;;  %v938_v48 = vpop.f32.mrf.mxu0  ;;  %v3294_v43 = vld [vmem:[#allocation2 + $0x119] sm:$0xff] }
 0x11c   : > { %v1150_v14 = vpop.f32.mrf.mxu1  ;;  %v3296_v8 = vpack.c.bf16 %v3294_v43, %v3293_v37 }
 0x11d   : > { %v5388_v51 = vadd.f32 %v1150_v14, %v938_v48  ;;  %v4424_v53 = vpop.f32.mrf.mxu0  ;;  %4627 = vmatmul.mubr.msk.bf16.gmra.mxu0 %vm240_vm1, %v5272_v16  ;;  %v3292_v16 = vld [vmem:[#allocation2 + $0x109] sm:$0xff] }
 0x11e   : > { %v4458_v11 = vpop.f32.mrf.mxu1  ;;  %4661 = vmatmul.mubr.msk.bf16.gmra.mxu1 %vm240_vm1, %v2709_v44  ;;  %4630 = vmatprep.mubr.msk.bf16.mxu0 %vm240_vm1, %v5280_v28  ;;  %v3295_v24 = vpack.c.bf16 %v3292_v16, %v3291_v6  ;;  %v2962_v44 = vld [vmem:[#allocation2 + $0x46] sm:$0xff]  ;;  %v2963_v48 = vld [vmem:[#allocation2 + $0x4e] sm:$0xff]  ;;  %v3363_v6 = vsel %vm817_vm0, %v5303_v2, 0 }
 0x11f   : > { %v5395_v47 = vadd.f32 %v4458_v11, %v4424_v53  ;;  %v951_v52 = vpop.f32.mrf.mxu0  ;;  %4664 = vmatprep.mubr.msk.bf16.mxu1 %vm240_vm1, %v2710_v49  ;;  %v2991_v53 = vpack.c.bf16 %v2961_v34, %v2960_v27  ;;  %v3284_v11 = vld [vmem:[#allocation2 + $0x100] sm:$0xff]  ;;  %v2992_v3 = vpack.c.bf16 %v2963_v48, %v2962_v44  ;;  %v2967_v27 = vld [vmem:[#allocation2 + $0x6e] sm:$0xff] }
 0x120   : > { %v1163_v4 = vpop.f32.mrf.mxu1  ;;  %v3288_v16 = vpack.c.bf16 %v3285_v40, %v3284_v11 }
 0x121   : > { %v5398_v13 = vadd.f32 %v1163_v4, %v951_v52  ;;  %v4425_v9 = vpop.f32.mrf.mxu0 }
 0x122   : > { %v4459_v28 = vpop.f32.mrf.mxu1 }
 0x123   : > { %v5402_v18 = vadd.f32 %v4459_v28, %v4425_v9  ;;  %v954_v23 = vpop.f32.mrf.mxu0 }
 0x124   : > { %v1166_v20 = vpop.f32.mrf.mxu1 }
 0x125   : > { %v5404_v29 = vadd.f32 %v1166_v20, %v954_v23  ;;  %v4428_v30 = vpop.f32.mrf.mxu0  ;;  %4631 = vmatmul.mubr.msk.bf16.gmra.mxu0 %vm240_vm1, %v5400_v12  ;;  %v3286_v20 = vld [vmem:[#allocation2 + $0x110] sm:$0xff] }
 0x126   : > { %v4462_v33 = vpop.f32.mrf.mxu1  ;;  %4665 = vmatmul.mubr.msk.bf16.gmra.mxu1 %vm240_vm1, %v2711_v25  ;;  %4670 = vmatprep.mubr.msk.bf16.mxu0 %vm240_vm1, %v2990_v7  ;;  %v4192_v25 = vld [vmem:[%s6059_s3 + $0x4] sm:$0x3] }
 0x127   : > { %v5410_v36 = vadd.f32 %v4462_v33, %v4428_v30  ;;  %v967_v38 = vpop.f32.mrf.mxu0  ;;  %4704 = vmatprep.mubr.msk.bf16.mxu1 %vm240_vm1, %v3295_v24  ;;  %v2965_v24 = vld [vmem:[#allocation2 + $0x5e] sm:$0xff]  ;;  %v2966_v33 = vld [vmem:[#allocation2 + $0x66] sm:$0xff] }
 0x128   : > { %v1179_v1 = vpop.f32.mrf.mxu1  ;;  %v3287_v30 = vld [vmem:[#allocation2 + $0x118] sm:$0xff]  ;;  %v2993_v43 = vpack.c.bf16 %v2965_v24, %v2964_v39 }
 0x129   : > { %v5413_v49 = vadd.f32 %v1179_v1, %v967_v38  ;;  %v4429_v14 = vpop.f32.mrf.mxu0 }
 0x12a   : > { %v4463_v56 = vpop.f32.mrf.mxu1 }
 0x12b   : > { %v5415_v52 = vadd.f32 %v4463_v56, %v4429_v14  ;;  %v970_v0 = vpop.f32.mrf.mxu0  ;;  %v3289_v14 = vpack.c.bf16 %v3287_v30, %v3286_v20 }
 0x12c   : > { %v1182_v4 = vpop.f32.mrf.mxu1 }
 0x12d   : > { %v5421_v9 = vadd.f32 %v1182_v4, %v970_v0  ;;  %v4468_v28 = vpop.f32.mrf.mxu0  ;;  %4671 = vmatmul.mubr.msk.bf16.vlgmr.msra.gmra.mxu0 %vm240_vm1, %v2991_v53  ;;  %v2994_v53 = vpack.c.bf16 %v2967_v27, %v2966_v33 }
 0x12e   : > { %v1458_v7 = vadd.f32 %v4468_v28, %v5305_v60  ;;  %v4502_v23 = vpop.f32.mrf.mxu1  ;;  %4705 = vmatmul.mubr.msk.bf16.vlgmr.msra.gmra.mxu1 %vm240_vm1, %v3296_v8  ;;  %4751 = vmatpush3.bf16.msra.mxu0 %v3842_v59  ;;  %v3428_v8 = vsel %vm817_vm0, %v4192_v25, 0  ;;  %v4195_v59 = vld [vmem:[%s6059_s3 + $0x6] sm:$0x3] }
 0x12f   : > { %v1329_v2 = vpop.f32.mrf.mxu0  ;;  %4709 = vmatpush3.bf16.msra.mxu1 %v3363_v6  ;;  %4674 = vmatprep.mubr.msk.bf16.mxu0 %vm240_vm1, %v2992_v3  ;;  %v2969_v6 = vld [vmem:[#allocation2 + $0x7e] sm:$0xff] }
 0x130   : > { %v5430_v34 = vadd.f32 %v4502_v23, %v1458_v7  ;;  %v1456_v38 = vadd.f32 %v1329_v2, %v5312_v50  ;;  %v1623_v37 = vpop.f32.mrf.mxu1  ;;  %4710 = vmatprep.mubr.msk.bf16.mxu1 %vm240_vm1, %v3288_v16  ;;  %4767 = vmatprep.subr.msk.bf16.mxu1 %vm817_vm0, %v4192_v25  ;;  %v3416_v16 = vld [vmem:[#allocation2 + $0x112] sm:$0xff]  ;;  %v3417_v25 = vld [vmem:[#allocation2 + $0x11a] sm:$0xff]  ;;  %v2970_v7 = vld [vmem:[#allocation2 + $0x86] sm:$0xff] }
 0x131   : > { %v4469_v60 = vpop.f32.mrf.mxu0  ;;  %v2971_v23 = vld [vmem:[#allocation2 + $0x8e] sm:$0xff] }
 0x132   : > { %v5435_v1 = vadd.f32 %v1623_v37, %v1456_v38  ;;  %v1459_v44 = vadd.f32 %v4469_v60, %v5316_v55  ;;  %v4503_v48 = vpop.f32.mrf.mxu1  ;;  %v3419_v38 = vpack.c.bf16 %v3417_v25, %v3416_v16  ;;  %v2996_v37 = vpack.c.bf16 %v2971_v23, %v2970_v7  ;;  %v3553_v16 = vld [vmem:[#allocation2 + $0x11b] sm:$0xff] }
 0x133   : > { %v1332_v11 = vpop.f32.mrf.mxu0 }
 0x134   : > { %v5438_v40 = vadd.f32 %v4503_v48, %v1459_v44  ;;  %v1457_v56 = vadd.f32 %v1332_v11, %v5318_v58  ;;  %v1626_v50 = vpop.f32.mrf.mxu1  ;;  %v2968_v58 = vld [vmem:[#allocation2 + $0x76] sm:$0xff] }
 0x135   : > { %v4472_v0 = vpop.f32.mrf.mxu0  ;;  %4675 = vmatmul.mubr.msk.bf16.gmra.mxu0 %vm240_vm1, %v2993_v43  ;;  %v2995_v2 = vpack.c.bf16 %v2969_v6, %v2968_v58  ;;  %v3552_v6 = vld [vmem:[#allocation2 + $0x113] sm:$0xff] }
 0x136   : > { %v5446_v3 = vadd.f32 %v1626_v50, %v1457_v56  ;;  %v1462_v55 = vadd.f32 %v4472_v0, %v5325_v61  ;;  %v4506_v4 = vpop.f32.mrf.mxu1  ;;  %4711 = vmatmul.mubr.msk.bf16.vlgmr.msra.gmra.mxu1 %vm240_vm1, %v3289_v14  ;;  %4678 = vmatprep.mubr.msk.bf16.mxu0 %vm240_vm1, %v2994_v53  ;;  %v4198_v14 = vld [vmem:[%s6059_s3 + $0x8] sm:$0x3]  ;;  %v2973_v56 = vld [vmem:[#allocation2 + $0x9e] sm:$0xff]  ;;  %v3486_v0 = vld [vmem:[#allocation2 + $0x12a] sm:$0xff] }
 0x137   : > { %v1345_v28 = vpop.f32.mrf.mxu0  ;;  %4715 = vmatpush3.bf16.msra.mxu1 %v3428_v8  ;;  %4716 = vmatprep.mubr.msk.bf16.mxu1 %vm240_vm1, %v5183_v46  ;;  %v3485_v50 = vld [vmem:[#allocation2 + $0x122] sm:$0xff] }
 0x138   : > { %v5453_v39 = vadd.f32 %v4506_v4, %v1462_v55  ;;  %v1460_v61 = vadd.f32 %v1345_v28, %v5328_v5  ;;  %v1639_v24 = vpop.f32.mrf.mxu1  ;;  %4768 = vmatprep.subr.msk.bf16.mxu1 %vm817_vm0, %v4195_v59  ;;  %v3497_v5 = vsel %vm817_vm0, %v4195_v59, 0  ;;  %v2974_v59 = vld [vmem:[#allocation2 + $0xa6] sm:$0xff]  ;;  %v2975_v55 = vld [vmem:[#allocation2 + $0xae] sm:$0xff] }
 0x139   : > { %v4473_v20 = vpop.f32.mrf.mxu0 }
 0x13a   : > { %v5457_v30 = vadd.f32 %v1639_v24, %v1460_v61  ;;  %v1463_v33 = vadd.f32 %v4473_v20, %v5330_v10  ;;  %v4507_v27 = vpop.f32.mrf.mxu1  ;;  %v3488_v24 = vpack.c.bf16 %v3486_v0, %v3485_v50  ;;  %v2998_v20 = vpack.c.bf16 %v2975_v55, %v2974_v59 }
 0x13b   : > { %v1348_v46 = vpop.f32.mrf.mxu0 }
 0x13c   : > { %v5460_v60 = vadd.f32 %v4507_v27, %v1463_v33  ;;  %v1461_v43 = vadd.f32 %v1348_v46, %v5332_v17  ;;  %v1642_v44 = vpop.f32.mrf.mxu1  ;;  %v2972_v17 = vld [vmem:[#allocation2 + $0x96] sm:$0xff]  ;;  %v3556_v33 = vpack.c.bf16 %v3553_v16, %v3552_v6 }
 0x13d   : > { %v4476_v48 = vpop.f32.mrf.mxu0  ;;  %4679 = vmatmul.mubr.msk.bf16.gmra.mxu0 %vm240_vm1, %v2995_v2  ;;  %v2997_v25 = vpack.c.bf16 %v2973_v56, %v2972_v17  ;;  %v2978_v17 = vld [vmem:[#allocation2 + $0xc6] sm:$0xff]  ;;  %v2979_v56 = vld [vmem:[#allocation2 + $0xce] sm:$0xff] }
 0x13e   : > { %v5468_v53 = vadd.f32 %v1642_v44, %v1461_v43  ;;  %v1466_v10 = vadd.f32 %v4476_v48, %v5339_v22  ;;  %v4510_v11 = vpop.f32.mrf.mxu1  ;;  %4717 = vmatmul.mubr.msk.bf16.vlgmr.msra.gmra.mxu1 %vm240_vm1, %v3419_v38  ;;  %4682 = vmatprep.mubr.msk.bf16.mxu0 %vm240_vm1, %v2996_v37  ;;  %v3566_v37 = vsel %vm817_vm0, %v4198_v14, 0  ;;  %v4201_v43 = vld [vmem:[%s6059_s3 + $0xa] sm:$0x3]  ;;  %v2977_v48 = vld [vmem:[#allocation2 + $0xbe] sm:$0xff]  ;;  %v3000_v16 = vpack.c.bf16 %v2979_v56, %v2978_v17 }
 0x13f   : > { %v1361_v8 = vpop.f32.mrf.mxu0  ;;  %4721 = vmatpush3.bf16.msra.mxu1 %v3497_v5  ;;  %4722 = vmatprep.mubr.msk.bf16.mxu1 %vm240_vm1, %v3419_v38 }
 0x140   : > { %v5474_v4 = vadd.f32 %v4510_v11, %v1466_v10  ;;  %v1464_v58 = vadd.f32 %v1361_v8, %v5342_v32  ;;  %v1655_v22 = vpop.f32.mrf.mxu1  ;;  %4769 = vmatprep.subr.msk.bf16.mxu1 %vm817_vm0, %v4198_v14  ;;  %v3554_v10 = vld [vmem:[#allocation2 + $0x123] sm:$0xff]  ;;  %v3555_v11 = vld [vmem:[#allocation2 + $0x12b] sm:$0xff] }
 0x141   : > { %v4477_v28 = vpop.f32.mrf.mxu0  ;;  %v3557_v6 = vpack.c.bf16 %v3555_v11, %v3554_v10 }
 0x142   : > { %v5478_v7 = vadd.f32 %v1655_v22, %v1464_v58  ;;  %v1467_v23 = vadd.f32 %v4477_v28, %v5344_v35  ;;  %v4511_v61 = vpop.f32.mrf.mxu1 }
 0x143   : > { %v1364_v2 = vpop.f32.mrf.mxu0 }
 0x144   : > { %v5481_v27 = vadd.f32 %v4511_v61, %v1467_v23  ;;  %v1465_v32 = vadd.f32 %v1364_v2, %v5346_v41  ;;  %v1658_v38 = vpop.f32.mrf.mxu1  ;;  %v2976_v41 = vld [vmem:[#allocation2 + $0xb6] sm:$0xff] }
 0x145   : > { %v4480_v46 = vpop.f32.mrf.mxu0  ;;  %4683 = vmatmul.mubr.msk.bf16.gmra.mxu0 %vm240_vm1, %v2997_v25  ;;  %v2999_v59 = vpack.c.bf16 %v2977_v48, %v2976_v41 }
 0x146   : > { %v5489_v35 = vadd.f32 %v1658_v38, %v1465_v32  ;;  %v1470_v44 = vadd.f32 %v4480_v46, %v5353_v63  ;;  %v4514_v5 = vpop.f32.mrf.mxu1  ;;  %4723 = vmatmul.mubr.msk.bf16.vlgmr.msra.gmra.mxu1 %vm240_vm1, %v3488_v24  ;;  %4686 = vmatprep.mubr.msk.bf16.mxu0 %vm240_vm1, %v2998_v20  ;;  %v4204_v20 = vld [vmem:[%s6059_s3 + $0xc] sm:$0x3]  ;;  %v2981_v32 = vld [vmem:[#allocation2 + $0xde] sm:$0xff] }
 0x147   : > { %v1377_v14 = vpop.f32.mrf.mxu0  ;;  %4727 = vmatpush3.bf16.msra.mxu1 %v3566_v37  ;;  %4728 = vmatprep.mubr.msk.bf16.mxu1 %vm240_vm1, %v3556_v33  ;;  %v3623_v38 = vld [vmem:[#allocation2 + $0x124] sm:$0xff]  ;;  %v3624_v46 = vld [vmem:[#allocation2 + $0x12c] sm:$0xff] }
 0x148   : > { %v5495_v50 = vadd.f32 %v4514_v5, %v1470_v44  ;;  %v1468_v8 = vadd.f32 %v1377_v14, %v5356_v54  ;;  %v1671_v63 = vpop.f32.mrf.mxu1  ;;  %4770 = vmatprep.subr.msk.bf16.mxu1 %vm817_vm0, %v4201_v43  ;;  %v3635_v54 = vsel %vm817_vm0, %v4201_v43, 0  ;;  %v2982_v43 = vld [vmem:[#allocation2 + $0xe6] sm:$0xff]  ;;  %v2983_v44 = vld [vmem:[#allocation2 + $0xee] sm:$0xff]  ;;  %v3626_v56 = vpack.c.bf16 %v3624_v46, %v3623_v38 }
 0x149   : > { %v4481_v0 = vpop.f32.mrf.mxu0 }
 0x14a   : > { %v5499_v55 = vadd.f32 %v1671_v63, %v1468_v8  ;;  %v1471_v58 = vadd.f32 %v4481_v0, %v5358_v57  ;;  %v4515_v22 = vpop.f32.mrf.mxu1  ;;  %v3002_v8 = vpack.c.bf16 %v2983_v44, %v2982_v43 }
 0x14b   : > { %v1380_v28 = vpop.f32.mrf.mxu0 }
 0x14c   : > { %v5502_v25 = vadd.f32 %v4515_v22, %v1471_v58  ;;  %v1469_v23 = vadd.f32 %v1380_v28, %v5360_v62  ;;  %v1674_v61 = vpop.f32.mrf.mxu1  ;;  %v2980_v62 = vld [vmem:[#allocation2 + $0xd6] sm:$0xff]  ;;  %v4207_v22 = vld [vmem:[%s6059_s3 + $0xe] sm:$0x3]  ;;  %v2985_v28 = vld [vmem:[#allocation2 + $0xfe] sm:$0xff] }
 0x14d   : > { %v4484_v24 = vpop.f32.mrf.mxu0  ;;  %4687 = vmatmul.mubr.msk.bf16.gmra.mxu0 %vm240_vm1, %v2999_v59  ;;  %v3001_v10 = vpack.c.bf16 %v2981_v32, %v2980_v62  ;;  %v3759_v62 = vld [vmem:[#allocation2 + $0x125] sm:$0xff]  ;;  %v3760_v32 = vld [vmem:[#allocation2 + $0x12d] sm:$0xff] }
 0x14e   : > { %v5510_v2 = vadd.f32 %v1674_v61, %v1469_v23  ;;  %v1474_v57 = vadd.f32 %v4484_v24, %v5367_v21  ;;  %v4518_v33 = vpop.f32.mrf.mxu1  ;;  %4729 = vmatmul.mubr.msk.bf16.vlgmr.msra.gmra.mxu1 %vm240_vm1, %v3557_v6  ;;  %4690 = vmatprep.mubr.msk.bf16.mxu0 %vm240_vm1, %v3000_v16  ;;  %v3692_v23 = vld [vmem:[#allocation2 + $0x134] sm:$0xff]  ;;  %v2986_v24 = vld [vmem:[#allocation2 + $0x106] sm:$0xff] }
 0x14f   : > { %v1393_v37 = vpop.f32.mrf.mxu0  ;;  %4733 = vmatpush3.bf16.msra.mxu1 %v3635_v54  ;;  %4734 = vmatprep.mubr.msk.bf16.mxu1 %vm240_vm1, %v5400_v12  ;;  %v3693_v54 = vld [vmem:[#allocation2 + $0x13c] sm:$0xff] }
 0x150   : > { %v5517_v5 = vadd.f32 %v4518_v33, %v1474_v57  ;;  %v1472_v21 = vadd.f32 %v1393_v37, %v5370_v15  ;;  %v1687_v41 = vpop.f32.mrf.mxu1  ;;  %4771 = vmatprep.subr.msk.bf16.mxu1 %vm817_vm0, %v4204_v20  ;;  %v3704_v15 = vsel %vm817_vm0, %v4204_v20, 0  ;;  %v2987_v20 = vld [vmem:[#allocation2 + $0x10e] sm:$0xff] }
 0x151   : > { %v4485_v48 = vpop.f32.mrf.mxu0 }
 0x152   : > { %v5521_v14 = vadd.f32 %v1687_v41, %v1472_v21  ;;  %v1475_v11 = vadd.f32 %v4485_v48, %v5372_v19  ;;  %v4519_v17 = vpop.f32.mrf.mxu1  ;;  %v3695_v21 = vpack.c.bf16 %v3693_v54, %v3692_v23  ;;  %v3004_v41 = vpack.c.bf16 %v2987_v20, %v2986_v24 }
 0x153   : > { %v1396_v12 = vpop.f32.mrf.mxu0 }
 0x154   : > { %v5524_v63 = vadd.f32 %v4519_v17, %v1475_v11  ;;  %v1473_v0 = vadd.f32 %v1396_v12, %v5374_v26  ;;  %v1690_v59 = vpop.f32.mrf.mxu1  ;;  %v2984_v26 = vld [vmem:[#allocation2 + $0xf6] sm:$0xff] }
 0x155   : > { %v4488_v58 = vpop.f32.mrf.mxu0  ;;  %4691 = vmatmul.mubr.msk.bf16.gmra.mxu0 %vm240_vm1, %v3001_v10  ;;  %v3003_v37 = vpack.c.bf16 %v2985_v28, %v2984_v26  ;;  %v3763_v10 = vpack.c.bf16 %v3760_v32, %v3759_v62 }
 0x156   : > { %v5532_v6 = vadd.f32 %v1690_v59, %v1473_v0  ;;  %v1478_v19 = vadd.f32 %v4488_v58, %v5381_v31  ;;  %v4522_v16 = vpop.f32.mrf.mxu1  ;;  %4735 = vmatmul.mubr.msk.bf16.vlgmr.msra.gmra.mxu1 %vm240_vm1, %v3626_v56  ;;  %4694 = vmatprep.mubr.msk.bf16.mxu0 %vm240_vm1, %v3002_v8  ;;  %v2988_v59 = vld [vmem:[#allocation2 + $0x116] sm:$0xff] }
 0x157   : > { %v1409_v61 = vpop.f32.mrf.mxu0  ;;  %4739 = vmatpush3.bf16.msra.mxu1 %v3704_v15  ;;  %4740 = vmatprep.mubr.msk.bf16.mxu1 %vm240_vm1, %v3626_v56  ;;  %v3773_v56 = vsel %vm817_vm0, %v4207_v22, 0  ;;  %v2989_v15 = vld [vmem:[#allocation2 + $0x11e] sm:$0xff]  ;;  %v3761_v58 = vld [vmem:[#allocation2 + $0x135] sm:$0xff] }
 0x158   : > { %v5538_v57 = vadd.f32 %v4522_v16, %v1478_v19  ;;  %v1476_v33 = vadd.f32 %v1409_v61, %v5384_v42  ;;  %v1703_v31 = vpop.f32.mrf.mxu1  ;;  %4772 = vmatprep.subr.msk.bf16.mxu1 %vm817_vm0, %v4207_v22  ;;  %v3828_v22 = vld [vmem:[#allocation2 + $0x126] sm:$0xff]  ;;  %v3829_v16 = vld [vmem:[#allocation2 + $0x12e] sm:$0xff]  ;;  %v3005_v61 = vpack.c.bf16 %v2989_v15, %v2988_v59 }
 0x159   : > { %v4489_v38 = vpop.f32.mrf.mxu0 }
 0x15a   : > { %v5542_v46 = vadd.f32 %v1703_v31, %v1476_v33  ;;  %v1479_v43 = vadd.f32 %v4489_v38, %v5386_v45  ;;  %v4523_v44 = vpop.f32.mrf.mxu1  ;;  %v3832_v31 = vpack.c.bf16 %v3829_v16, %v3828_v22 }
 0x15b   : > { %v1412_v48 = vpop.f32.mrf.mxu0 }
 0x15c   : > { %v5545_v11 = vadd.f32 %v4523_v44, %v1479_v43  ;;  %v1477_v42 = vadd.f32 %v1412_v48, %v5388_v51  ;;  %v1706_v17 = vpop.f32.mrf.mxu1  ;;  %v3762_v51 = vld [vmem:[#allocation2 + $0x13d] sm:$0xff] }
 0x15d   : > { %v4492_v8 = vpop.f32.mrf.mxu0  ;;  %4695 = vmatmul.mubr.msk.bf16.gmra.mxu0 %vm240_vm1, %v3003_v37  ;;  %v3764_v33 = vpack.c.bf16 %v3762_v51, %v3761_v58 }
 0x15e   : > { %v5550_v12 = vadd.f32 %v1706_v17, %v1477_v42  ;;  %v1482_v0 = vadd.f32 %v4492_v8, %v5395_v47  ;;  %v4526_v45 = vpop.f32.mrf.mxu1  ;;  %4741 = vmatmul.mubr.msk.bf16.vlgmr.msra.gmra.mxu1 %vm240_vm1, %v3695_v21  ;;  %4698 = vmatprep.mubr.msk.bf16.mxu0 %vm240_vm1, %v3004_v41  ;;  %v3831_v41 = vld [vmem:[#allocation2 + $0x13e] sm:$0xff] }
 0x15f   : > { %v1425_v19 = vpop.f32.mrf.mxu0  ;;  %4745 = vmatpush3.bf16.msra.mxu1 %v3773_v56  ;;  %4746 = vmatprep.mubr.msk.bf16.mxu1 %vm240_vm1, %v3763_v10 }
 0x160   : > { %v5556_v26 = vadd.f32 %v4526_v45, %v1482_v0  ;;  %v1480_v28 = vadd.f32 %v1425_v19, %v5398_v13  ;;  %v1719_v47 = vpop.f32.mrf.mxu1 }
 0x161   : > { %v4493_v23 = vpop.f32.mrf.mxu0 }
 0x162   : > { %v5559_v54 = vadd.f32 %v1719_v47, %v1480_v28  ;;  %v1483_v24 = vadd.f32 %v4493_v23, %v5402_v18  ;;  %v4527_v20 = vpop.f32.mrf.mxu1  ;;  %v3830_v18 = vld [vmem:[#allocation2 + $0x136] sm:$0xff] }
 0x163   : > { %v1428_v62 = vpop.f32.mrf.mxu0  ;;  %v3833_v56 = vpack.c.bf16 %v3831_v41, %v3830_v18 }
 0x164   : > { %v5562_v32 = vadd.f32 %v4527_v20, %v1483_v24  ;;  %v1481_v38 = vadd.f32 %v1428_v62, %v5404_v29  ;;  %v1722_v37 = vpop.f32.mrf.mxu1 }
 0x165   : > { %v4496_v43 = vpop.f32.mrf.mxu0  ;;  %4699 = vmatmul.mubr.msk.bf16.gmra.mxu0 %vm240_vm1, %v3005_v61 }
 0x166   : > { %v5566_v13 = vadd.f32 %v1722_v37, %v1481_v38  ;;  %v1486_v44 = vadd.f32 %v4496_v43, %v5410_v36  ;;  %v4530_v21 = vpop.f32.mrf.mxu1  ;;  %4747 = vmatmul.mubr.msk.bf16.vlgmr.msra.gmra.mxu1 %vm240_vm1, %v3764_v33  ;;  %4752 = vmatprep.mubr.msk.bf16.mxu0 %vm240_vm1, %v3832_v31 }
 0x167   : > { %v1441_v48 = vpop.f32.mrf.mxu0 }
 0x168   : > { %v5571_v10 = vadd.f32 %v4530_v21, %v1486_v44  ;;  %v1484_v29 = vadd.f32 %v1441_v48, %v5413_v49  ;;  %v1735_v42 = vpop.f32.mrf.mxu1 }
 0x169   : > { %v4497_v17 = vpop.f32.mrf.mxu0 }
 0x16a   : > { %v5574_v8 = vadd.f32 %v1735_v42, %v1484_v29  ;;  %v1487_v0 = vadd.f32 %v4497_v17, %v5415_v52  ;;  %v4531_v36 = vpop.f32.mrf.mxu1 }
 0x16b   : > { %v1444_v45 = vpop.f32.mrf.mxu0 }
 0x16c   : > { %v5577_v59 = vadd.f32 %v4531_v36, %v1487_v0  ;;  %v1485_v15 = vadd.f32 %v1444_v45, %v5421_v9  ;;  %v1738_v58 = vpop.f32.mrf.mxu1 }
 0x16d   : > { %v4536_v19 = vpop.f32.mrf.mxu0  ;;  %4753 = vmatmul.mubr.msk.bf16.vlgmr.msra.gmra.mxu0 %vm240_vm1, %v3833_v56 }
 0x16e   : > { %v5581_v51 = vadd.f32 %v1738_v58, %v1485_v15  ;;  %v2046_v49 = vadd.f32 %v4536_v19, %v5430_v34  ;;  %v4570_v22 = vpop.f32.mrf.mxu1 }
 0x16f   : > { %v1917_v16 = vpop.f32.mrf.mxu0 }
 0x170   : > { %v5584_v28 = vadd.f32 %v4570_v22, %v2046_v49  ;;  %v2044_v52 = vadd.f32 %v1917_v16, %v5435_v1  ;;  %v2211_v47 = vpop.f32.mrf.mxu1 }
 0x171   : > { %v4537_v23 = vpop.f32.mrf.mxu0 }
 0x172   : > { %v5587_v61 = vadd.f32 %v2211_v47, %v2044_v52  ;;  %v2047_v9 = vadd.f32 %v4537_v23, %v5438_v40  ;;  %v4571_v24 = vpop.f32.mrf.mxu1 }
 0x173   : > { %v1920_v20 = vpop.f32.mrf.mxu0 }
 0x174   : > { %v5590_v33 = vadd.f32 %v4571_v24, %v2047_v9  ;;  %v2045_v31 = vadd.f32 %v1920_v20, %v5446_v3  ;;  %v2214_v62 = vpop.f32.mrf.mxu1 }
 0x175   : > { %v4540_v34 = vpop.f32.mrf.mxu0 }
 0x176   : > { %v5593_v38 = vadd.f32 %v2214_v62, %v2045_v31  ;;  %v2050_v37 = vadd.f32 %v4540_v34, %v5453_v39  ;;  %v4574_v43 = vpop.f32.mrf.mxu1 }
 0x177   : > { %v1933_v1 = vpop.f32.mrf.mxu0 }
 0x178   : > { %v5596_v44 = vadd.f32 %v4574_v43, %v2050_v37  ;;  %v2048_v21 = vadd.f32 %v1933_v1, %v5457_v30  ;;  %v2227_v18 = vpop.f32.mrf.mxu1 }
 0x179   : > { %v4541_v40 = vpop.f32.mrf.mxu0 }
 0x17a   : > { %v5599_v41 = vadd.f32 %v2227_v18, %v2048_v21  ;;  %v2051_v48 = vadd.f32 %v4541_v40, %v5460_v60  ;;  %v4575_v29 = vpop.f32.mrf.mxu1 }
 0x17b   : > { %v1936_v3 = vpop.f32.mrf.mxu0 }
 0x17c   : > { %v5602_v42 = vadd.f32 %v4575_v29, %v2051_v48  ;;  %v2049_v17 = vadd.f32 %v1936_v3, %v5468_v53  ;;  %v2230_v56 = vpop.f32.mrf.mxu1 }
 0x17d   : > { %v4544_v39 = vpop.f32.mrf.mxu0 }
 0x17e   : > { %v5605_v0 = vadd.f32 %v2230_v56, %v2049_v17  ;;  %v2054_v36 = vadd.f32 %v4544_v39, %v5474_v4  ;;  %v4578_v45 = vpop.f32.mrf.mxu1 }
 0x17f   : > { %v1949_v30 = vpop.f32.mrf.mxu0 }
 0x180   : > { %v5608_v15 = vadd.f32 %v4578_v45, %v2054_v36  ;;  %v2052_v58 = vadd.f32 %v1949_v30, %v5478_v7  ;;  %v2243_v19 = vpop.f32.mrf.mxu1 }
 0x181   : > { %v4545_v60 = vpop.f32.mrf.mxu0 }
 0x182   : > { %v5611_v49 = vadd.f32 %v2243_v19, %v2052_v58  ;;  %v2055_v22 = vadd.f32 %v4545_v60, %v5481_v27  ;;  %v4579_v16 = vpop.f32.mrf.mxu1 }
 0x183   : > { %v1952_v53 = vpop.f32.mrf.mxu0 }
 0x184   : > { %v5614_v52 = vadd.f32 %v4579_v16, %v2055_v22  ;;  %v2053_v47 = vadd.f32 %v1952_v53, %v5489_v35  ;;  %v2246_v23 = vpop.f32.mrf.mxu1 }
 0x185   : > { %v4548_v4 = vpop.f32.mrf.mxu0 }
 0x186   : > { %v5617_v9 = vadd.f32 %v2246_v23, %v2053_v47  ;;  %v2058_v24 = vadd.f32 %v4548_v4, %v5495_v50  ;;  %v4582_v20 = vpop.f32.mrf.mxu1 }
 0x187   : > { %v1965_v7 = vpop.f32.mrf.mxu0 }
 0x188   : > { %v5620_v31 = vadd.f32 %v4582_v20, %v2058_v24  ;;  %v2056_v62 = vadd.f32 %v1965_v7, %v5499_v55  ;;  %v2259_v34 = vpop.f32.mrf.mxu1 }
 0x189   : > { %v4549_v27 = vpop.f32.mrf.mxu0 }
 0x18a   : > { %v5623_v37 = vadd.f32 %v2259_v34, %v2056_v62  ;;  %v2059_v43 = vadd.f32 %v4549_v27, %v5502_v25  ;;  %v4583_v1 = vpop.f32.mrf.mxu1 }
 0x18b   : > { %v1968_v35 = vpop.f32.mrf.mxu0 }
 0x18c   : > { %v5626_v21 = vadd.f32 %v4583_v1, %v2059_v43  ;;  %v2057_v18 = vadd.f32 %v1968_v35, %v5510_v2  ;;  %v2262_v40 = vpop.f32.mrf.mxu1 }
 0x18d   : > { %v4552_v50 = vpop.f32.mrf.mxu0 }
 0x18e   : > { %v5629_v48 = vadd.f32 %v2262_v40, %v2057_v18  ;;  %v2062_v29 = vadd.f32 %v4552_v50, %v5517_v5  ;;  %v4586_v3 = vpop.f32.mrf.mxu1 }
 0x18f   : > { %v1981_v55 = vpop.f32.mrf.mxu0 }
 0x190   : > { %v5632_v17 = vadd.f32 %v4586_v3, %v2062_v29  ;;  %v2060_v56 = vadd.f32 %v1981_v55, %v5521_v14  ;;  %v2275_v39 = vpop.f32.mrf.mxu1 }
 0x191   : > { %v4553_v25 = vpop.f32.mrf.mxu0 }
 0x192   : > { %v5635_v36 = vadd.f32 %v2275_v39, %v2060_v56  ;;  %v2063_v45 = vadd.f32 %v4553_v25, %v5524_v63  ;;  %v4587_v30 = vpop.f32.mrf.mxu1 }
 0x193   : > { %v1984_v2 = vpop.f32.mrf.mxu0 }
 0x194   : > { %v5638_v58 = vadd.f32 %v4587_v30, %v2063_v45  ;;  %v2061_v19 = vadd.f32 %v1984_v2, %v5532_v6  ;;  %v2278_v60 = vpop.f32.mrf.mxu1 }
 0x195   : > { %v4556_v5 = vpop.f32.mrf.mxu0 }
 0x196   : > { %6061 = vst [vmem:[#allocation3_spill] sm:$0xff] %v5638_v58  ;;  %v5641_v22 = vadd.f32 %v2278_v60, %v2061_v19  ;;  %v2066_v16 = vadd.f32 %v4556_v5, %v5538_v57  ;;  %v4590_v53 = vpop.f32.mrf.mxu1 }
 0x197   : > { %v1997_v14 = vpop.f32.mrf.mxu0 }
 0x198   : > { %6062 = vst [vmem:[#allocation4_spill] sm:$0xff] %v5641_v22  ;;  %v5644_v47 = vadd.f32 %v4590_v53, %v2066_v16  ;;  %v2064_v23 = vadd.f32 %v1997_v14, %v5542_v46  ;;  %v2291_v4 = vpop.f32.mrf.mxu1 }
 0x199   : > { %v4557_v63 = vpop.f32.mrf.mxu0 }
 0x19a   : > { %6063 = vst [vmem:[#allocation5_spill] sm:$0xff] %v5644_v47  ;;  %v5647_v24 = vadd.f32 %v2291_v4, %v2064_v23  ;;  %v2067_v20 = vadd.f32 %v4557_v63, %v5545_v11  ;;  %v4591_v7 = vpop.f32.mrf.mxu1 }
 0x19b   : > { %v2000_v6 = vpop.f32.mrf.mxu0 }
 0x19c   : > { %6064 = vst [vmem:[#allocation6_spill] sm:$0xff] %v5647_v24  ;;  %v5650_v62 = vadd.f32 %v4591_v7, %v2067_v20  ;;  %v2065_v34 = vadd.f32 %v2000_v6, %v5550_v12  ;;  %v2294_v27 = vpop.f32.mrf.mxu1 }
 0x19d   : > { %v4560_v57 = vpop.f32.mrf.mxu0 }
 0x19e   : > { %6065 = vst [vmem:[#allocation7_spill] sm:$0xff] %v5650_v62  ;;  %v5653_v43 = vadd.f32 %v2294_v27, %v2065_v34  ;;  %v2070_v1 = vadd.f32 %v4560_v57, %v5556_v26  ;;  %v4594_v35 = vpop.f32.mrf.mxu1 }
 0x19f   : > { %v2013_v46 = vpop.f32.mrf.mxu0 }
 0x1a0   : > { %6066 = vst [vmem:[#allocation8_spill] sm:$0xff] %v5653_v43  ;;  %v5656_v18 = vadd.f32 %v4594_v35, %v2070_v1  ;;  %v2068_v40 = vadd.f32 %v2013_v46, %v5559_v54  ;;  %v2307_v50 = vpop.f32.mrf.mxu1 }
 0x1a1   : > { %v4561_v11 = vpop.f32.mrf.mxu0 }
 0x1a2   : > { %6067 = vst [vmem:[#allocation9_spill] sm:$0xff] %v5656_v18  ;;  %v5659_v29 = vadd.f32 %v2307_v50, %v2068_v40  ;;  %v2071_v3 = vadd.f32 %v4561_v11, %v5562_v32  ;;  %v4595_v55 = vpop.f32.mrf.mxu1 }
 0x1a3   : > { %v2016_v12 = vpop.f32.mrf.mxu0 }
 0x1a4   : > { %6068 = vst [vmem:[#allocation10_spill] sm:$0xff] %v5659_v29  ;;  %v5662_v56 = vadd.f32 %v4595_v55, %v2071_v3  ;;  %v2069_v39 = vadd.f32 %v2016_v12, %v5566_v13  ;;  %v2310_v25 = vpop.f32.mrf.mxu1 }
 0x1a5   : > { %v4564_v26 = vpop.f32.mrf.mxu0 }
 0x1a6   : > { %6069 = vst [vmem:[#allocation11_spill] sm:$0xff] %v5662_v56  ;;  %v5665_v45 = vadd.f32 %v2310_v25, %v2069_v39  ;;  %v2074_v30 = vadd.f32 %v4564_v26, %v5571_v10  ;;  %v4598_v2 = vpop.f32.mrf.mxu1 }
 0x1a7   : > { %v2029_v54 = vpop.f32.mrf.mxu0 }
 0x1a8   : > { %6070 = vst [vmem:[#allocation12_spill] sm:$0xff] %v5665_v45  ;;  %v5668_v19 = vadd.f32 %v4598_v2, %v2074_v30  ;;  %v2072_v60 = vadd.f32 %v2029_v54, %v5574_v8  ;;  %v2323_v5 = vpop.f32.mrf.mxu1 }
 0x1a9   : > { %v4565_v32 = vpop.f32.mrf.mxu0 }
 0x1aa   : > { %6071 = vst [vmem:[#allocation13_spill] sm:$0xff] %v5668_v19  ;;  %v5671_v16 = vadd.f32 %v2323_v5, %v2072_v60  ;;  %v2075_v53 = vadd.f32 %v4565_v32, %v5577_v59  ;;  %v4599_v14 = vpop.f32.mrf.mxu1 }
 0x1ab   : > { %v2032_v13 = vpop.f32.mrf.mxu0 }
 0x1ac   : > { %6072 = vst [vmem:[#allocation14_spill] sm:$0xff] %v5671_v16  ;;  %v5674_v23 = vadd.f32 %v4599_v14, %v2075_v53  ;;  %v2073_v4 = vadd.f32 %v2032_v13, %v5581_v51  ;;  %v2326_v63 = vpop.f32.mrf.mxu1 }
 0x1ad   : > { %v4604_v10 = vpop.f32.mrf.mxu0 }
 0x1ae   : > { %6073 = vst [vmem:[#allocation15_spill] sm:$0xff] %v5674_v23  ;;  %v5677_v20 = vadd.f32 %v2326_v63, %v2073_v4  ;;  %v5679_v7 = vpop.f32.mrf.mxu1 }
 0x1af   : > { %v2505_v6 = vpop.f32.mrf.mxu0 }
 0x1b0   : > { %6074 = vst [vmem:[#allocation16_spill] sm:$0xff] %v5677_v20  ;;  %v5681_v8 = vpop.f32.mrf.mxu1 }
 0x1b1   : > { %v5683_v34 = vpop.f32.mrf.mxu0 }
 0x1b2   : > { %v5685_v27 = vpop.f32.mrf.mxu1 }
 0x1b3   : > { %v5687_v59 = vpop.f32.mrf.mxu0 }
 0x1b4   : > { %v5689_v57 = vpop.f32.mrf.mxu1 }
 0x1b5   : > { %v5691_v1 = vpop.f32.mrf.mxu0 }
 0x1b6   : > { %v5693_v51 = vpop.f32.mrf.mxu1 }
 0x1b7   : > { %v5695_v35 = vpop.f32.mrf.mxu0 }
 0x1b8   : > { %v5697_v46 = vpop.f32.mrf.mxu1 }
 0x1b9   : > { %v5699_v40 = vpop.f32.mrf.mxu0 }
 0x1ba   : > { %v5701_v50 = vpop.f32.mrf.mxu1 }
 0x1bb   : > { %v5703_v11 = vpop.f32.mrf.mxu0 }
 0x1bc   : > { %v5705_v3 = vpop.f32.mrf.mxu1 }
 0x1bd   : > { %v5707_v55 = vpop.f32.mrf.mxu0 }
 0x1be   : > { %v5709_v12 = vpop.f32.mrf.mxu1 }
 0x1bf   : > { %v5711_v39 = vpop.f32.mrf.mxu0 }
 0x1c0   : > { %v5713_v25 = vpop.f32.mrf.mxu1 }
 0x1c1   : > { %v5715_v26 = vpop.f32.mrf.mxu0 }
 0x1c2   : > { %v5717_v30 = vpop.f32.mrf.mxu1 }
 0x1c3   : > { %v5719_v2 = vpop.f32.mrf.mxu0 }
 0x1c4   : > { %v5721_v54 = vpop.f32.mrf.mxu1 }
 0x1c5   : > { %v5723_v60 = vpop.f32.mrf.mxu0 }
 0x1c6   : > { %v5725_v5 = vpop.f32.mrf.mxu1 }
 0x1c7   : > { %v5727_v32 = vpop.f32.mrf.mxu0 }
 0x1c8   : > { %v5729_v53 = vpop.f32.mrf.mxu1 }
 0x1c9   : > { %v5731_v14 = vpop.f32.mrf.mxu0 }
 0x1ca   : > { %v5733_v13 = vpop.f32.mrf.mxu1 }
 0x1cb   : > { %v5735_v4 = vpop.f32.mrf.mxu0 }
 0x1cc   : > { %v5737_v63 = vpop.f32.mrf.mxu1 }
 0x1cd   : > { %v5739_v20 = vpop.f32.mrf.mxu0 }
 0x1ce   : > { %v5741_v23 = vpop.f32.mrf.mxu1 }
 0x1cf   : > { %v5743_v16 = vpop.f32.mrf.mxu0 }
 0x1d0   : > { %v5745_v19 = vpop.f32.mrf.mxu1 }
 0x1d1   : > { %6075 = vst [vmem:[#allocation17_spill] sm:$0xff] %v5745_v19  ;;  %v5747_v45 = vpop.f32.mrf.mxu0 }
 0x1d2   : > { %6076 = vst [vmem:[#allocation18_spill] sm:$0xff] %v5747_v45  ;;  %v5749_v56 = vpop.f32.mrf.mxu1 }
 0x1d3   : > { %6077 = vst [vmem:[#allocation19_spill] sm:$0xff] %v5749_v56  ;;  %v5751_v29 = vpop.f32.mrf.mxu0 }
 0x1d4   : > { %6078 = vst [vmem:[#allocation20_spill] sm:$0xff] %v5751_v29  ;;  %v5753_v18 = vpop.f32.mrf.mxu1 }
 0x1d5   : > { %6079 = vst [vmem:[#allocation21_spill] sm:$0xff] %v5753_v18  ;;  %v5755_v43 = vpop.f32.mrf.mxu0 }
 0x1d6   : > { %6080 = vst [vmem:[#allocation22_spill] sm:$0xff] %v5755_v43  ;;  %v5757_v62 = vpop.f32.mrf.mxu1 }
 0x1d7   : > { %6081 = vst [vmem:[#allocation23_spill] sm:$0xff] %v5757_v62  ;;  %v5759_v24 = vpop.f32.mrf.mxu0 }
 0x1d8   : > { %6082 = vst [vmem:[#allocation24_spill] sm:$0xff] %v5759_v24  ;;  %v5761_v47 = vpop.f32.mrf.mxu1 }
 0x1d9   : > { %6083 = vst [vmem:[#allocation25_spill] sm:$0xff] %v5761_v47  ;;  %v5763_v22 = vpop.f32.mrf.mxu0 }
 0x1da   : > { %6084 = vst [vmem:[#allocation26_spill] sm:$0xff] %v5763_v22  ;;  %v5765_v58 = vpop.f32.mrf.mxu1 }
 0x1db   : > { %6085 = vst [vmem:[#allocation27_spill] sm:$0xff] %v5765_v58  ;;  %v5767_v19 = vpop.f32.mrf.mxu0 }
 0x1dc   : > { %6086 = vst [vmem:[#allocation28_spill] sm:$0xff] %v5767_v19  ;;  %v5769_v56 = vpop.f32.mrf.mxu1 }
 0x1dd   : > { %6087 = vst [vmem:[#allocation29_spill] sm:$0xff] %v5769_v56  ;;  %v5771_v29 = vpop.f32.mrf.mxu0 }
 0x1de   : > { %6088 = vst [vmem:[#allocation30_spill] sm:$0xff] %v5771_v29  ;;  %v5773_v18 = vpop.f32.mrf.mxu1 }
 0x1df   : > { %6089 = vst [vmem:[#allocation31_spill] sm:$0xff] %v5773_v18  ;;  %v5775_v43 = vpop.f32.mrf.mxu0  ;;  %v2634_v18 = vadd.f32 %v4604_v10, %v5584_v28  ;;  %v2633_v10 = vadd.f32 %v5687_v59, %v5593_v38  ;;  %v2636_v38 = vadd.f32 %v5695_v35, %v5599_v41 }
 0x1e0   : > { %v5777_v62 = vpop.f32.mrf.mxu1 }
 0x1e1   : > { %6090 = vst [vmem:[#allocation32_spill] sm:$0xff] %v5777_v62  ;;  %v5779_v24 = vpop.f32.mrf.mxu0  ;;  %v2930_v41 = vadd.f32 %v5697_v46, %v2636_v38 }
 0x1e2   : > { %6091 = vst [vmem:[#allocation33_spill] sm:$0xff] %v5779_v24  ;;  %v5781_v47 = vpop.f32.mrf.mxu1  ;;  %v2632_v24 = vadd.f32 %v2505_v6, %v5587_v61 }
 0x1e3   : > { %6092 = vst [vmem:[#allocation34_spill] sm:$0xff] %v5781_v47  ;;  %v5783_v22 = vpop.f32.mrf.mxu0 }
 0x1e4   : > { %6093 = vst [vmem:[#allocation35_spill] sm:$0xff] %v5783_v22  ;;  %v5785_v58 = vpop.f32.mrf.mxu1  ;;  %v2926_v61 = vadd.f32 %v5681_v8, %v2632_v24  ;;  %v2927_v8 = vadd.f32 %v5689_v57, %v2633_v10 }
 0x1e5   : > { %6094 = vst [vmem:[#allocation36_spill] sm:$0xff] %v5785_v58  ;;  %v5787_v45 = vpop.f32.mrf.mxu0  ;;  %v2928_v58 = vadd.f32 %v5679_v7, %v2634_v18 }
 0x1e6   : > { %6095 = vst [vmem:[#allocation37_spill] sm:$0xff] %v5787_v45  ;;  %v5789_v19 = vpop.f32.mrf.mxu1 }
 0x1e7   : > { %6096 = vst [vmem:[#allocation38_spill] sm:$0xff] %v5789_v19  ;;  %v5791_v56 = vpop.f32.mrf.mxu0  ;;  %v2635_v19 = vadd.f32 %v5683_v34, %v5590_v33  ;;  %v2638_v34 = vadd.f32 %v5691_v1, %v5596_v44 }
 0x1e8   : > { %v5794_v29 = vpop.f32.mrf.mxu1 }
 0x1e9   : > { %v5797_v62 = vpop.f32.mrf.mxu0  ;;  %v2929_v7 = vadd.f32 %v5685_v27, %v2635_v19  ;;  %v2932_v44 = vadd.f32 %v5693_v51, %v2638_v34  ;;  %v2639_v27 = vadd.f32 %v5699_v40, %v5602_v42  ;;  %v2642_v40 = vadd.f32 %v5707_v55, %v5608_v15 }
 0x1ea   : > { %v5800_v47 = vpop.f32.mrf.mxu1  ;;  %v2643_v55 = vadd.f32 %v5715_v26, %v5614_v52  ;;  %v2646_v26 = vadd.f32 %v5723_v60, %v5620_v31  ;;  %v2647_v60 = vadd.f32 %v5731_v14, %v5626_v21  ;;  %v2650_v14 = vadd.f32 %v5739_v20, %v5632_v17  ;;  %v6099_v20 = vld [vmem:[#allocation3_spill] sm:$0xff] }
 0x1eb   : > { %6097 = vst [vmem:[#allocation39_spill] sm:$0xff] %v5800_v47  ;;  %v5802_v22 = vpop.f32.mrf.mxu0  ;;  %v2933_v42 = vadd.f32 %v5701_v50, %v2639_v27  ;;  %v2936_v15 = vadd.f32 %v5709_v12, %v2642_v40 }
 0x1ec   : > { %v5807_v45 = vpop.f32.mrf.mxu1  ;;  %v2937_v52 = vadd.f32 %v5717_v30, %v2643_v55  ;;  %v2940_v31 = vadd.f32 %v5725_v5, %v2646_v26  ;;  %v2941_v21 = vadd.f32 %v5733_v13, %v2647_v60  ;;  %v2944_v17 = vadd.f32 %v5741_v23, %v2650_v14 }
 0x1ed   : > { %6098 = vst [vmem:[#allocation40_spill] sm:$0xff] %v5807_v45  ;;  %v4672_v28 = vpop.f32.mrf.mxu0 }
 0x1ee   : > { %v3222_v6 = vadd.f32 %v4672_v28, %v2928_v58  ;;  %v5817_v18 = vpop.f32.mrf.mxu1 }
 0x1ef   : > { %v3093_v33 = vpop.f32.mrf.mxu0 }
 0x1f0   : > { %3254 = vst.msk [vmem:[%s5812_s26 + $0x10] sm:$0xff] %vm240_vm1, %v3222_v6  ;;  %v3220_v45 = vadd.f32 %v3093_v33, %v2926_v61  ;;  %v5824_v47 = vpop.f32.mrf.mxu1 }
 0x1f1   : > { %v4673_v24 = vpop.f32.mrf.mxu0 }
 0x1f2   : > { %3252 = vst.msk [vmem:[%s5812_s26] sm:$0xff] %vm240_vm1, %v3220_v45  ;;  %v3223_v58 = vadd.f32 %v4673_v24, %v2929_v7  ;;  %v5831_v59 = vpop.f32.mrf.mxu1  ;;  %v2637_v45 = vadd.f32 %v5703_v11, %v5605_v0  ;;  %v2640_v11 = vadd.f32 %v5711_v39, %v5611_v49  ;;  %v2641_v39 = vadd.f32 %v5719_v2, %v5617_v9 }
 0x1f3   : > { %v3096_v19 = vpop.f32.mrf.mxu0  ;;  %v2644_v2 = vadd.f32 %v5727_v32, %v5623_v37  ;;  %v2645_v32 = vadd.f32 %v5735_v4, %v5629_v48  ;;  %v2648_v4 = vadd.f32 %v5743_v16, %v5635_v36  ;;  %v6101_v36 = vld [vmem:[#allocation17_spill] sm:$0xff] }
 0x1f4   : > { %3255 = vst.msk [vmem:[%s5812_s26 + $0x18] sm:$0xff] %vm240_vm1, %v3223_v58  ;;  %v3221_v1 = vadd.f32 %v3096_v19, %v2927_v8  ;;  %v5838_v28 = vpop.f32.mrf.mxu1  ;;  %v2931_v0 = vadd.f32 %v5705_v3, %v2637_v45  ;;  %v2934_v49 = vadd.f32 %v5713_v25, %v2640_v11  ;;  %v2935_v9 = vadd.f32 %v5721_v54, %v2641_v39  ;;  %v6105_v39 = vld [vmem:[#allocation5_spill] sm:$0xff] }
 0x1f5   : > { %v4676_v57 = vpop.f32.mrf.mxu0  ;;  %v2938_v37 = vadd.f32 %v5729_v53, %v2644_v2  ;;  %v2939_v48 = vadd.f32 %v5737_v63, %v2645_v32  ;;  %v2942_v16 = vadd.f32 %v6101_v36, %v2648_v4  ;;  %v6108_v2 = vld [vmem:[#allocation6_spill] sm:$0xff]  ;;  %v6111_v32 = vld [vmem:[#allocation7_spill] sm:$0xff]  ;;  %v6114_v4 = vld [vmem:[#allocation8_spill] sm:$0xff] }
 0x1f6   : > { %3253 = vst.msk [vmem:[%s5812_s26 + $0x8] sm:$0xff] %vm240_vm1, %v3221_v1  ;;  %v3226_v35 = vadd.f32 %v4676_v57, %v2932_v44  ;;  %v5845_v61 = vpop.f32.mrf.mxu1  ;;  %v6118_v36 = vld [vmem:[#allocation30_spill] sm:$0xff] }
 0x1f7   : > { %v3109_v51 = vpop.f32.mrf.mxu0 }
 0x1f8   : > { %3258 = vst.msk [vmem:[%s5812_s26 + $0x30] sm:$0xff] %vm240_vm1, %v3226_v35  ;;  %v3224_v10 = vadd.f32 %v3109_v51, %v2930_v41  ;;  %v5852_v6 = vpop.f32.mrf.mxu1 }
 0x1f9   : > { %v4677_v46 = vpop.f32.mrf.mxu0 }
 0x1fa   : > { %3256 = vst.msk [vmem:[%s5812_s26 + $0x20] sm:$0xff] %vm240_vm1, %v3224_v10  ;;  %v3227_v33 = vadd.f32 %v4677_v46, %v2933_v42  ;;  %v5859_v7 = vpop.f32.mrf.mxu1  ;;  %v6100_v10 = vld [vmem:[#allocation18_spill] sm:$0xff] }
 0x1fb   : > { %v3112_v50 = vpop.f32.mrf.mxu0  ;;  %v2651_v46 = vadd.f32 %v6100_v10, %v6099_v20 }
 0x1fc   : > { %3259 = vst.msk [vmem:[%s5812_s26 + $0x38] sm:$0xff] %vm240_vm1, %v3227_v33  ;;  %v3225_v34 = vadd.f32 %v3112_v50, %v2931_v0  ;;  %v5866_v24 = vpop.f32.mrf.mxu1  ;;  %v6102_v33 = vld [vmem:[#allocation4_spill] sm:$0xff] }
 0x1fd   : > { %v4680_v3 = vpop.f32.mrf.mxu0  ;;  %v6103_v50 = vld [vmem:[#allocation20_spill] sm:$0xff] }
 0x1fe   : > { %3257 = vst.msk [vmem:[%s5812_s26 + $0x28] sm:$0xff] %vm240_vm1, %v3225_v34  ;;  %v3230_v8 = vadd.f32 %v4680_v3, %v2936_v15  ;;  %v5873_v38 = vpop.f32.mrf.mxu1  ;;  %v2649_v15 = vadd.f32 %v6103_v50, %v6102_v33  ;;  %v6104_v3 = vld [vmem:[#allocation19_spill] sm:$0xff] }
 0x1ff   : > { %v3125_v12 = vpop.f32.mrf.mxu0 }
 0x200   : > { %3262 = vst.msk [vmem:[%s5812_s26 + $0x50] sm:$0xff] %vm240_vm1, %v3230_v8  ;;  %v3228_v58 = vadd.f32 %v3125_v12, %v2934_v49  ;;  %v5880_v19 = vpop.f32.mrf.mxu1  ;;  %v2945_v49 = vadd.f32 %v6104_v3, %v2651_v46  ;;  %v6106_v8 = vld [vmem:[#allocation22_spill] sm:$0xff]  ;;  %v6116_v46 = vld [vmem:[#allocation27_spill] sm:$0xff] }
 0x201   : > { %v4681_v25 = vpop.f32.mrf.mxu0  ;;  %v2654_v12 = vadd.f32 %v6106_v8, %v6105_v39  ;;  %v6120_v3 = vld [vmem:[#allocation10_spill] sm:$0xff] }
 0x202   : > { %3260 = vst.msk [vmem:[%s5812_s26 + $0x40] sm:$0xff] %vm240_vm1, %v3228_v58  ;;  %v3231_v44 = vadd.f32 %v4681_v25, %v2937_v52  ;;  %v5887_v27 = vpop.f32.mrf.mxu1  ;;  %v6107_v25 = vld [vmem:[#allocation21_spill] sm:$0xff] }
 0x203   : > { %v3128_v30 = vpop.f32.mrf.mxu0 }
 0x204   : > { %3263 = vst.msk [vmem:[%s5812_s26 + $0x58] sm:$0xff] %vm240_vm1, %v3231_v44  ;;  %v3229_v1 = vadd.f32 %v3128_v30, %v2935_v9  ;;  %v5894_v57 = vpop.f32.mrf.mxu1  ;;  %v2943_v9 = vadd.f32 %v6107_v25, %v2649_v15  ;;  %v6109_v44 = vld [vmem:[#allocation24_spill] sm:$0xff]  ;;  %v6122_v25 = vld [vmem:[#allocation11_spill] sm:$0xff] }
 0x205   : > { %v4684_v54 = vpop.f32.mrf.mxu0  ;;  %v2652_v30 = vadd.f32 %v6109_v44, %v6108_v2 }
 0x206   : > { %3261 = vst.msk [vmem:[%s5812_s26 + $0x48] sm:$0xff] %vm240_vm1, %v3229_v1  ;;  %v3234_v41 = vadd.f32 %v4684_v54, %v2940_v31  ;;  %v5901_v45 = vpop.f32.mrf.mxu1  ;;  %v6110_v54 = vld [vmem:[#allocation23_spill] sm:$0xff] }
 0x207   : > { %v3141_v5 = vpop.f32.mrf.mxu0 }
 0x208   : > { %3266 = vst.msk [vmem:[%s5812_s26 + $0x70] sm:$0xff] %vm240_vm1, %v3234_v41  ;;  %v3232_v35 = vadd.f32 %v3141_v5, %v2938_v37  ;;  %v5908_v51 = vpop.f32.mrf.mxu1  ;;  %v2948_v37 = vadd.f32 %v6110_v54, %v2654_v12  ;;  %v6112_v41 = vld [vmem:[#allocation26_spill] sm:$0xff]  ;;  %v6125_v54 = vld [vmem:[#allocation12_spill] sm:$0xff] }
 0x209   : > { %v4685_v53 = vpop.f32.mrf.mxu0  ;;  %v2655_v5 = vadd.f32 %v6112_v41, %v6111_v32 }
 0x20a   : > { %3264 = vst.msk [vmem:[%s5812_s26 + $0x60] sm:$0xff] %vm240_vm1, %v3232_v35  ;;  %v3235_v42 = vadd.f32 %v4685_v53, %v2941_v21  ;;  %v5915_v40 = vpop.f32.mrf.mxu1  ;;  %v6113_v53 = vld [vmem:[#allocation25_spill] sm:$0xff] }
 0x20b   : > { %v3144_v13 = vpop.f32.mrf.mxu0 }
 0x20c   : > { %3267 = vst.msk [vmem:[%s5812_s26 + $0x78] sm:$0xff] %vm240_vm1, %v3235_v42  ;;  %v3233_v0 = vadd.f32 %v3144_v13, %v2939_v48  ;;  %v5922_v11 = vpop.f32.mrf.mxu1  ;;  %v2946_v48 = vadd.f32 %v6113_v53, %v2652_v30  ;;  %v6115_v42 = vld [vmem:[#allocation28_spill] sm:$0xff] }
 0x20d   : > { %v4688_v63 = vpop.f32.mrf.mxu0  ;;  %v2653_v13 = vadd.f32 %v6115_v42, %v6114_v4  ;;  %v6129_v4 = vld [vmem:[#allocation34_spill] sm:$0xff] }
 0x20e   : > { %3265 = vst.msk [vmem:[%s5812_s26 + $0x68] sm:$0xff] %vm240_vm1, %v3233_v0  ;;  %v3238_v55 = vadd.f32 %v4688_v63, %v2944_v17  ;;  %v5929_v34 = vpop.f32.mrf.mxu1  ;;  %v2949_v0 = vadd.f32 %v6116_v46, %v2655_v5  ;;  %v6117_v63 = vld [vmem:[#allocation9_spill] sm:$0xff]  ;;  %v6130_v46 = vld [vmem:[#allocation14_spill] sm:$0xff] }
 0x20f   : > { %v3157_v23 = vpop.f32.mrf.mxu0 }
 0x210   : > { %3270 = vst.msk [vmem:[%s5812_s26 + $0x90] sm:$0xff] %vm240_vm1, %v3238_v55  ;;  %v3236_v52 = vadd.f32 %v3157_v23, %v2942_v16  ;;  %v5936_v26 = vpop.f32.mrf.mxu1  ;;  %v2658_v16 = vadd.f32 %v6118_v36, %v6117_v63  ;;  %v6119_v55 = vld [vmem:[#allocation29_spill] sm:$0xff]  ;;  %v6131_v36 = vld [vmem:[#allocation36_spill] sm:$0xff] }
 0x211   : > { %v4689_v58 = vpop.f32.mrf.mxu0  ;;  %v2947_v23 = vadd.f32 %v6119_v55, %v2653_v13  ;;  %v3408_v13 = vadd.f32 %v5845_v61, %v5817_v18  ;;  %v6132_v61 = vld [vmem:[#allocation38_spill] sm:$0xff] }
 0x212   : > { %3268 = vst.msk [vmem:[%s5812_s26 + $0x80] sm:$0xff] %vm240_vm1, %v3236_v52  ;;  %v3239_v31 = vadd.f32 %v4689_v58, %v2945_v49  ;;  %v5943_v60 = vpop.f32.mrf.mxu1  ;;  %v2656_v49 = vadd.f32 %v5775_v43, %v6120_v3  ;;  %v6121_v52 = vld [vmem:[#allocation31_spill] sm:$0xff] }
 0x213   : > { %v3160_v1 = vpop.f32.mrf.mxu0  ;;  %v2952_v58 = vadd.f32 %v6121_v52, %v2658_v16  ;;  %v6133_v3 = vld [vmem:[#allocation15_spill] sm:$0xff] }
 0x214   : > { %3271 = vst.msk [vmem:[%s5812_s26 + $0x98] sm:$0xff] %vm240_vm1, %v3239_v31  ;;  %v3237_v21 = vadd.f32 %v3160_v1, %v2943_v9  ;;  %v5950_v14 = vpop.f32.mrf.mxu1  ;;  %v6123_v9 = vld [vmem:[#allocation33_spill] sm:$0xff]  ;;  %v6124_v1 = vld [vmem:[#allocation32_spill] sm:$0xff] }
 0x215   : > { %v4692_v35 = vpop.f32.mrf.mxu0  ;;  %v2659_v2 = vadd.f32 %v6123_v9, %v6122_v25  ;;  %v2950_v43 = vadd.f32 %v6124_v1, %v2656_v49  ;;  %v2663_v49 = vadd.f32 %v5797_v62, %v6133_v3  ;;  %v3403_v62 = vadd.f32 %v5866_v24, %v5838_v28 }
 0x216   : > { %3269 = vst.msk [vmem:[%s5812_s26 + $0x88] sm:$0xff] %vm240_vm1, %v3237_v21  ;;  %v3242_v17 = vadd.f32 %v4692_v35, %v2948_v37  ;;  %v5957_v20 = vpop.f32.mrf.mxu1  ;;  %v6126_v37 = vld [vmem:[#allocation35_spill] sm:$0xff]  ;;  %v6127_v21 = vld [vmem:[#allocation13_spill] sm:$0xff] }
 0x217   : > { %v3173_v10 = vpop.f32.mrf.mxu0  ;;  %v2657_v32 = vadd.f32 %v6126_v37, %v6125_v54  ;;  %v6128_v35 = vld [vmem:[#allocation37_spill] sm:$0xff]  ;;  %v2953_v42 = vadd.f32 %v6129_v4, %v2659_v2 }
 0x218   : > { %3274 = vst.msk [vmem:[%s5812_s26 + $0xb0] sm:$0xff] %vm240_vm1, %v3242_v17  ;;  %v3240_v33 = vadd.f32 %v3173_v10, %v2946_v48  ;;  %v5964_v50 = vpop.f32.mrf.mxu1  ;;  %v2662_v53 = vadd.f32 %v6128_v35, %v6127_v21 }
 0x219   : > { %v4693_v15 = vpop.f32.mrf.mxu0  ;;  %v2951_v16 = vadd.f32 %v6131_v36, %v2657_v32 }
 0x21a   : > { %3272 = vst.msk [vmem:[%s5812_s26 + $0xa0] sm:$0xff] %vm240_vm1, %v3240_v33  ;;  %v3243_v39 = vadd.f32 %v4693_v15, %v2949_v0  ;;  %v5971_v8 = vpop.f32.mrf.mxu1  ;;  %v2660_v0 = vadd.f32 %v5791_v56, %v6130_v46  ;;  %v3400_v33 = vadd.f32 %v5852_v6, %v5824_v47  ;;  %v3481_v15 = vadd.f32 %v5873_v38, %v3408_v13 }
 0x21b   : > { %v3176_v12 = vpop.f32.mrf.mxu0  ;;  %v3411_v56 = vadd.f32 %v5859_v7, %v5831_v59 }
 0x21c   : > { %3275 = vst.msk [vmem:[%s5812_s26 + $0xb8] sm:$0xff] %vm240_vm1, %v3243_v39  ;;  %v3241_v44 = vadd.f32 %v3176_v12, %v2947_v23  ;;  %v5978_v30 = vpop.f32.mrf.mxu1  ;;  %v2956_v23 = vadd.f32 %v6132_v61, %v2662_v53  ;;  %v3479_v12 = vadd.f32 %v5880_v19, %v3400_v33  ;;  %v3550_v47 = vadd.f32 %v5901_v45, %v3481_v15 }
 0x21d   : > { %v4696_v31 = vpop.f32.mrf.mxu0  ;;  %v2954_v52 = vadd.f32 %v5794_v29, %v2660_v0  ;;  %v3482_v59 = vadd.f32 %v5887_v27, %v3411_v56 }
 0x21e   : > { %3273 = vst.msk [vmem:[%s5812_s26 + $0xa8] sm:$0xff] %vm240_vm1, %v3241_v44  ;;  %v3246_v41 = vadd.f32 %v4696_v31, %v2952_v58  ;;  %v4742_v5 = vpop.f32.mrf.mxu1  ;;  %v6134_v58 = vld [vmem:[#allocation16_spill] sm:$0xff]  ;;  %v3548_v7 = vadd.f32 %v5908_v51, %v3479_v12  ;;  %v3619_v19 = vadd.f32 %v5929_v34, %v3550_v47  ;;  %v6135_v44 = vld [vmem:[#allocation39_spill] sm:$0xff]  ;;  %v3480_v31 = vadd.f32 %v5894_v57, %v3403_v62 }
 0x21f   : > { %v3189_v48 = vpop.f32.mrf.mxu0  ;;  %v2661_v25 = vadd.f32 %v5802_v22, %v6134_v58  ;;  %v2957_v29 = vadd.f32 %v6135_v44, %v2663_v49  ;;  %v3551_v1 = vadd.f32 %v5915_v40, %v3482_v59  ;;  %v6136_v34 = vld [vmem:[#allocation40_spill] sm:$0xff] }
 0x220   : > { %3278 = vst.msk [vmem:[%s5812_s26 + $0xd0] sm:$0xff] %vm240_vm1, %v3246_v41  ;;  %v3244_v17 = vadd.f32 %v3189_v48, %v2950_v43  ;;  %v3740_v10 = vpop.f32.mrf.mxu1  ;;  %v3617_v28 = vadd.f32 %v5936_v26, %v3548_v7  ;;  %v3688_v24 = vadd.f32 %v5957_v20, %v3619_v19  ;;  %v3549_v54 = vadd.f32 %v5922_v11, %v3480_v31 }
 0x221   : > { %v4697_v63 = vpop.f32.mrf.mxu0  ;;  %v2955_v43 = vadd.f32 %v6136_v34, %v2661_v25  ;;  %v3620_v32 = vadd.f32 %v5943_v60, %v3551_v1 }
 0x222   : > { %3276 = vst.msk [vmem:[%s5812_s26 + $0xc0] sm:$0xff] %vm240_vm1, %v3244_v17  ;;  %v3247_v55 = vadd.f32 %v4697_v63, %v2953_v42  ;;  %v4743_v18 = vpop.f32.mrf.mxu1  ;;  %v3686_v57 = vadd.f32 %v5964_v50, %v3617_v28  ;;  %v3757_v40 = vadd.f32 %v4742_v5, %v3688_v24  ;;  %v3618_v20 = vadd.f32 %v5950_v14, %v3549_v54 }
 0x223   : > { %v3192_v39 = vpop.f32.mrf.mxu0  ;;  %v3689_v35 = vadd.f32 %v5971_v8, %v3620_v32 }
 0x224   : > { %3279 = vst.msk [vmem:[%s5812_s26 + $0xd8] sm:$0xff] %vm240_vm1, %v3247_v55  ;;  %v3245_v6 = vadd.f32 %v3192_v39, %v2951_v16  ;;  %v3743_v38 = vpop.f32.mrf.mxu1  ;;  %v3755_v53 = vadd.f32 %v3740_v10, %v3686_v57  ;;  %v3687_v50 = vadd.f32 %v5978_v30, %v3618_v20 }
 0x225   : > { %v4700_v9 = vpop.f32.mrf.mxu0  ;;  %v3758_v5 = vadd.f32 %v4743_v18, %v3689_v35 }
 0x226   : > { %3277 = vst.msk [vmem:[%s5812_s26 + $0xc8] sm:$0xff] %vm240_vm1, %v3245_v6  ;;  %v3250_v45 = vadd.f32 %v4700_v9, %v2956_v23  ;;  %v4748_v2 = vpop.f32.mrf.mxu1  ;;  %v3756_v17 = vadd.f32 %v3743_v38, %v3687_v50 }
 0x227   : > { %v3205_v22 = vpop.f32.mrf.mxu0  ;;  %v3826_v48 = vadd.f32 %v4748_v2, %v3757_v40 }
 0x228   : > { %3282 = vst.msk [vmem:[%s5812_s26 + $0xf0] sm:$0xff] %vm240_vm1, %v3250_v45  ;;  %v3248_v27 = vadd.f32 %v3205_v22, %v2954_v52  ;;  %v3809_v51 = vpop.f32.mrf.mxu1 }
 0x229   : > { %v4701_v37 = vpop.f32.mrf.mxu0  ;;  %v3824_v4 = vadd.f32 %v3809_v51, %v3755_v53 }
 0x22a   : > { %3280 = vst.msk [vmem:[%s5812_s26 + $0xe0] sm:$0xff] %vm240_vm1, %v3248_v27  ;;  %v3251_v26 = vadd.f32 %v4701_v37, %v2957_v29  ;;  %v4749_v41 = vpop.f32.mrf.mxu1 }
 0x22b   : > { %v3208_v21 = vpop.f32.mrf.mxu0  ;;  %v3827_v8 = vadd.f32 %v4749_v41, %v3758_v5 }
 0x22c   : > { %3283 = vst.msk [vmem:[%s5812_s26 + $0xf8] sm:$0xff] %vm240_vm1, %v3251_v26  ;;  %v3249_v11 = vadd.f32 %v3208_v21, %v2955_v43  ;;  %v3812_v42 = vpop.f32.mrf.mxu1 }
 0x22d   : > { %v4754_v60 = vpop.f32.mrf.mxu0  ;;  %v3825_v0 = vadd.f32 %v3812_v42, %v3756_v17 }
 0x22e   : > { %3281 = vst.msk [vmem:[%s5812_s26 + $0xe8] sm:$0xff] %vm240_vm1, %v3249_v11  ;;  %v3895_v14 = vadd.f32 %v4754_v60, %v3826_v48 }
 0x22f   : > { %v3878_v13 = vpop.f32.mrf.mxu0 }
 0x230   : > { %3899 = vst.msk [vmem:[%s5812_s26 + $0x110] sm:$0xff] %vm240_vm1, %v3895_v14  ;;  %v3893_v10 = vadd.f32 %v3878_v13, %v3824_v4 }
 0x231   : > { %v4755_v46 = vpop.f32.mrf.mxu0 }
 0x232   : > { %3897 = vst.msk [vmem:[%s5812_s26 + $0x100] sm:$0xff] %vm240_vm1, %v3893_v10  ;;  %v3896_v63 = vadd.f32 %v4755_v46, %v3827_v8 }
 0x233   : > { %v3881_v30 = vpop.f32.mrf.mxu0 }
 0x234   : > { %3900 = vst.msk [vmem:[%s5812_s26 + $0x118] sm:$0xff] %vm240_vm1, %v3896_v63  ;;  %v3894_v36 = vadd.f32 %v3881_v30, %v3825_v0 }
 0x236   : > { %3898 = vst.msk [vmem:[%s5812_s26 + $0x108] sm:$0xff] %vm240_vm1, %v3894_v36 }
 0x237 PF: > { %s14_s17 = sadd.s32 1, %s4822_s17   ;;  %s6137_s15 = smov %s4818_s16 }
 0x238   : > { %p11_p5 = scmp.ge.s32.totalorder %s14_s17, 4   ;;  %s6138_s16 = smov %s6140_s18 }
 0x23a   :  { %13 = sbr.rel (!%p11_p5) target bundleno = 2 (0x2), region = 81 }

// kernel: wide_basic_block_forward.3
= control target key start
LH: loop header
LB: loop body
LE: loop exit
PB: predicated region body
PF: predicated region fallthrough
CT: control target
= control target key end

     0   :  { %s5062_s18 = smov 0   ;;  %s5064_s19 = smov 0   ;;  %s6417_s0 = inlined_call_operand.vmem [shape: f32[2,256,4], index: 0, kind: input, shape index: {}]   ;;  %s6418_s1 = inlined_call_operand.vmem [shape: f32[1,4], index: 1, kind: input, shape index: {}]   ;;  %s6419_s2 = inlined_call_operand.vmem [shape: f32[1,4], index: 2, kind: input, shape index: {}]   ;;  %s6420_s3 = inlined_call_operand.vmem [shape: bf16[9,4,4], index: 3, kind: input, shape index: {}]   ;;  %s6421_s4 = inlined_call_operand.vmem [shape: f32[2,256,4], index: 4, kind: input, shape index: {}]   ;;  %s6422_s5 = inlined_call_operand.vmem [shape: f32[2,288,4], index: 5, kind: output, shape index: {}]  }
   0x1   :  { %s5066_s20 = smov 0  }
   0x2 LB: > { %s27_s21 = sadd.s32 1, %s5025_s19  ;;  %p4203_p0 = scmp.ge.s32.totalorder %s5029_s20, 1  ;;  %s5029_s20 = sphi %s5066_s20, %s15_s20   ;;  %s5025_s19 = sphi %s5064_s19, %s6500_s19   ;;  %s5021_s18 = sphi %s5062_s18, %s6499_s18  }
   0x3   : > { %p29_p1 = scmp.ge.s32.totalorder %s27_s21, 2  ;;  %p225_p2 = scmp.lt.s32.totalorder %s5029_s20, 3 }
   0x5   : > { %s6502_s21 = smov (%p29_p1, %s27_s21), 0  ;;  %p226_p3 = pnand %p4203_p0, %p225_p2 }
   0x7   : > { %229 = sbr.rel (%p226_p3) target bundleno = 577 (0x241), region = 40 }
   0xc   : > { %v4241_v0 = vld [vmem:[%s6420_s3 + $0x2] sm:$0x3]  ;;  %vm875_vm0 = vcmask 1041408   ;;  %v775_v1 = vld [vmem:[%s6420_s3] sm:$0x3]  ;;  %vm298_vm1 = vcmask 31744  }
   0xd   : > { %4963 = vmatprep.subr.msk.bf16.mxu0 %vm875_vm0, %v4241_v0  ;;  %v877_v2 = vsel %vm875_vm0, %v4241_v0, 0  ;;  %4964 = vmatprep.subr.msk.bf16.mxu1 %vm875_vm0, %v775_v1  ;;  %v1089_v3 = vsel %vm875_vm0, %v775_v1, 0  ;;  %v5095_v4 = vld [vmem:[%s6420_s3 + $0x4] sm:$0x3]  ;;  %v5031_v5 = vmov 0.0   ;;  %p268_p4 = scmp.lt.s32.totalorder %s5021_s18, 1 }
   0xe   : > { %4604 = vmatpush3.bf16.msra.mxu0 %v877_v2  ;;  %4638 = vmatpush3.bf16.msra.mxu1 %v1089_v3  ;;  %299 = vst.msk [vmem:[#allocation2] sm:$0xff] %vm298_vm1, %v5031_v5  ;;  %300 = vst.msk [vmem:[#allocation2 + $0x8] sm:$0xff] %vm298_vm1, %v5031_v5  ;;  %v4291_v6 = vld [vmem:[%s6420_s3 + $0x6] sm:$0x3]  ;;  %v5152_v7 = vld [vmem:[%s6418_s1] ss:$0 sm:$0xff] }
   0xf   : > { %301 = vst.msk [vmem:[#allocation2 + $0x10] sm:$0xff] %vm298_vm1, %v5031_v5  ;;  %302 = vst.msk [vmem:[#allocation2 + $0x18] sm:$0xff] %vm298_vm1, %v5031_v5  ;;  %4965 = vmatprep.subr.msk.bf16.mxu0 %vm875_vm0, %v5095_v4  ;;  %s6504_s18 = smov (!%p268_p4, %s5021_s18), 1  ;;  %4966 = vmatprep.subr.msk.bf16.mxu1 %vm875_vm0, %v4291_v6  ;;  %v5164_v8 = vld [vmem:[%s6419_s2] ss:$0 sm:$0xff]  ;;  %v5174_v20 = vsel %vm875_vm0, %v5095_v4, 0 }
  0x10   : > { %303 = vst.msk [vmem:[#allocation2 + $0x20] sm:$0xff] %vm298_vm1, %v5031_v5  ;;  %304 = vst.msk [vmem:[#allocation2 + $0x28] sm:$0xff] %vm298_vm1, %v5031_v5  ;;  %s4421_s30 = sshll.u32 %s6504_s18, 8  ;;  %v5177_v21 = vsel %vm875_vm0, %v4291_v6, 0  ;;  %s4981_s29 = smul.u32 288, %s6504_s18 }
  0x11   : > { %305 = vst.msk [vmem:[#allocation2 + $0x30] sm:$0xff] %vm298_vm1, %v5031_v5  ;;  %306 = vst.msk [vmem:[#allocation2 + $0x38] sm:$0xff] %vm298_vm1, %v5031_v5  ;;  %s5159_s10 = scalar_lea.vmem %s6417_s0, %s4421_s30  ;;  %s6055_s11 = scalar_lea.vmem %s6421_s4, %s4421_s30 }
  0x12   : > { %307 = vst.msk [vmem:[#allocation2 + $0x40] sm:$0xff] %vm298_vm1, %v5031_v5  ;;  %308 = vst.msk [vmem:[#allocation2 + $0x48] sm:$0xff] %vm298_vm1, %v5031_v5  ;;  %v343_v9 = vld [vmem:[%s5159_s10] sm:$0xff]  ;;  %v344_v10 = vld [vmem:[%s5159_s10 + $0x8] sm:$0xff]  ;;  %s6026_s8 = scalar_lea.vmem %s6422_s5, %s4981_s29 }
  0x13   : > { %309 = vst.msk [vmem:[#allocation2 + $0x50] sm:$0xff] %vm298_vm1, %v5031_v5  ;;  %310 = vst.msk [vmem:[#allocation2 + $0x58] sm:$0xff] %vm298_vm1, %v5031_v5  ;;  %v367_v11 = vld [vmem:[%s5159_s10 + $0x10] sm:$0xff]  ;;  %v352_v15 = vmul.f32 %v5152_v7, %v343_v9  ;;  %v353_v16 = vmul.f32 %v5152_v7, %v344_v10  ;;  %v368_v22 = vld [vmem:[%s5159_s10 + $0x18] sm:$0xff] }
  0x14   : > { %311 = vst.msk [vmem:[#allocation2 + $0x60] sm:$0xff] %vm298_vm1, %v5031_v5  ;;  %312 = vst.msk [vmem:[#allocation2 + $0x68] sm:$0xff] %vm298_vm1, %v5031_v5  ;;  %v376_v17 = vmul.f32 %v5152_v7, %v367_v11  ;;  %v391_v23 = vld [vmem:[%s5159_s10 + $0x20] sm:$0xff]  ;;  %v377_v27 = vmul.f32 %v5152_v7, %v368_v22  ;;  %v392_v28 = vld [vmem:[%s5159_s10 + $0x28] sm:$0xff] }
  0x15   : > { %313 = vst.msk [vmem:[#allocation2 + $0x70] sm:$0xff] %vm298_vm1, %v5031_v5  ;;  %314 = vst.msk [vmem:[#allocation2 + $0x78] sm:$0xff] %vm298_vm1, %v5031_v5  ;;  %v776_v12 = vld [vmem:[#allocation2 + $0x1] sm:$0xff]  ;;  %v361_v25 = vadd.f32 %v5164_v8, %v352_v15  ;;  %v362_v26 = vadd.f32 %v5164_v8, %v353_v16  ;;  %v415_v29 = vld [vmem:[%s5159_s10 + $0x30] sm:$0xff]  ;;  %v400_v32 = vmul.f32 %v5152_v7, %v391_v23 }
  0x16   : > { %315 = vst.msk [vmem:[#allocation2 + $0x80] sm:$0xff] %vm298_vm1, %v5031_v5  ;;  %316 = vst.msk [vmem:[#allocation2 + $0x88] sm:$0xff] %vm298_vm1, %v5031_v5  ;;  %v777_v13 = vld [vmem:[#allocation2 + $0x9] sm:$0xff]  ;;  %v727_v14 = vld [vmem:[#allocation2] sm:$0xff]  ;;  %v385_v31 = vadd.f32 %v5164_v8, %v376_v17  ;;  %v401_v33 = vmul.f32 %v5152_v7, %v392_v28  ;;  %v424_v34 = vmul.f32 %v5152_v7, %v415_v29 }
  0x17   : > { %317 = vst.msk [vmem:[#allocation2 + $0x90] sm:$0xff] %vm298_vm1, %v5031_v5  ;;  %318 = vst.msk [vmem:[#allocation2 + $0x98] sm:$0xff] %vm298_vm1, %v5031_v5  ;;  %v808_v18 = vpack.c.bf16 %v777_v13, %v776_v12  ;;  %v728_v19 = vld [vmem:[#allocation2 + $0x8] sm:$0xff]  ;;  %v416_v30 = vld [vmem:[%s5159_s10 + $0x38] sm:$0xff]  ;;  %v363_v37 = vmax.f32 %v361_v25, 0.0  ;;  %v364_v38 = vmax.f32 %v362_v26, 0.0  ;;  %v386_v39 = vadd.f32 %v5164_v8, %v377_v27 }
  0x18   : > { %319 = vst.msk [vmem:[#allocation2 + $0xa0] sm:$0xff] %vm298_vm1, %v5031_v5  ;;  %320 = vst.msk [vmem:[#allocation2 + $0xa8] sm:$0xff] %vm298_vm1, %v5031_v5  ;;  %v759_v24 = vpack.c.bf16 %v728_v19, %v727_v14  ;;  %v439_v35 = vld [vmem:[%s5159_s10 + $0x40] sm:$0xff]  ;;  %v440_v36 = vld [vmem:[%s5159_s10 + $0x48] sm:$0xff]  ;;  %v425_v40 = vmul.f32 %v5152_v7, %v416_v30  ;;  %v387_v42 = vmax.f32 %v385_v31, 0.0  ;;  %v409_v43 = vadd.f32 %v5164_v8, %v400_v32 }
  0x19   : > { %321 = vst.msk [vmem:[#allocation2 + $0xb0] sm:$0xff] %vm298_vm1, %v5031_v5  ;;  %322 = vst.msk [vmem:[#allocation2 + $0xb8] sm:$0xff] %vm298_vm1, %v5031_v5  ;;  %4605 = vmatprep.mubr.msk.bf16.mxu0 %vm298_vm1, %v808_v18  ;;  %v463_v41 = vld [vmem:[%s5159_s10 + $0x50] sm:$0xff]  ;;  %v410_v44 = vadd.f32 %v5164_v8, %v401_v33  ;;  %v433_v45 = vadd.f32 %v5164_v8, %v424_v34  ;;  %v464_v46 = vld [vmem:[%s5159_s10 + $0x58] sm:$0xff]  ;;  %v388_v47 = vmax.f32 %v386_v39, 0.0 }
  0x1a   : > { %323 = vst.msk [vmem:[#allocation2 + $0xc0] sm:$0xff] %vm298_vm1, %v5031_v5  ;;  %324 = vst.msk [vmem:[#allocation2 + $0xc8] sm:$0xff] %vm298_vm1, %v5031_v5  ;;  %4639 = vmatprep.mubr.msk.bf16.mxu1 %vm298_vm1, %v759_v24  ;;  %v434_v48 = vadd.f32 %v5164_v8, %v425_v40  ;;  %v448_v49 = vmul.f32 %v5152_v7, %v439_v35  ;;  %v449_v50 = vmul.f32 %v5152_v7, %v440_v36  ;;  %v487_v51 = vld [vmem:[%s5159_s10 + $0x60] sm:$0xff]  ;;  %v488_v52 = vld [vmem:[%s5159_s10 + $0x68] sm:$0xff] }
  0x1b   : > { %325 = vst.msk [vmem:[#allocation2 + $0xd0] sm:$0xff] %vm298_vm1, %v5031_v5  ;;  %326 = vst.msk [vmem:[#allocation2 + $0xd8] sm:$0xff] %vm298_vm1, %v5031_v5  ;;  %v511_v53 = vld [vmem:[%s5159_s10 + $0x70] sm:$0xff]  ;;  %v411_v54 = vmax.f32 %v409_v43, 0.0  ;;  %v412_v55 = vmax.f32 %v410_v44, 0.0  ;;  %v435_v56 = vmax.f32 %v433_v45, 0.0  ;;  %v472_v57 = vmul.f32 %v5152_v7, %v463_v41 }
  0x1c   : > { %327 = vst.msk [vmem:[#allocation2 + $0xe0] sm:$0xff] %vm298_vm1, %v5031_v5  ;;  %328 = vst.msk [vmem:[#allocation2 + $0xe8] sm:$0xff] %vm298_vm1, %v5031_v5  ;;  %v512_v58 = vld [vmem:[%s5159_s10 + $0x78] sm:$0xff]  ;;  %v436_v59 = vmax.f32 %v434_v48, 0.0  ;;  %v457_v60 = vadd.f32 %v5164_v8, %v448_v49  ;;  %v458_v61 = vadd.f32 %v5164_v8, %v449_v50  ;;  %v473_v62 = vmul.f32 %v5152_v7, %v464_v46  ;;  %v535_v3 = vld [vmem:[%s5159_s10 + $0x80] sm:$0xff] }
  0x1d   : > { %329 = vst.msk [vmem:[#allocation2 + $0xf0] sm:$0xff] %vm298_vm1, %v5031_v5  ;;  %330 = vst.msk [vmem:[#allocation2 + $0xf8] sm:$0xff] %vm298_vm1, %v5031_v5  ;;  %v481_v63 = vadd.f32 %v5164_v8, %v472_v57  ;;  %v496_v0 = vmul.f32 %v5152_v7, %v487_v51  ;;  %v497_v1 = vmul.f32 %v5152_v7, %v488_v52  ;;  %v536_v4 = vld [vmem:[%s5159_s10 + $0x88] sm:$0xff]  ;;  %v559_v11 = vld [vmem:[%s5159_s10 + $0x90] sm:$0xff] }
  0x1e   : > { %331 = vst.msk [vmem:[#allocation2 + $0x100] sm:$0xff] %vm298_vm1, %v5031_v5  ;;  %332 = vst.msk [vmem:[#allocation2 + $0x108] sm:$0xff] %vm298_vm1, %v5031_v5  ;;  %v520_v2 = vmul.f32 %v5152_v7, %v511_v53  ;;  %v460_v6 = vmax.f32 %v458_v61, 0.0  ;;  %v482_v9 = vadd.f32 %v5164_v8, %v473_v62  ;;  %v521_v10 = vmul.f32 %v5152_v7, %v512_v58  ;;  %v560_v22 = vld [vmem:[%s5159_s10 + $0x98] sm:$0xff]  ;;  %v583_v23 = vld [vmem:[%s5159_s10 + $0xa0] sm:$0xff] }
  0x1f   : > { %333 = vst.msk [vmem:[#allocation2 + $0x110] sm:$0xff] %vm298_vm1, %v5031_v5  ;;  %334 = vst.msk [vmem:[#allocation2 + $0x118] sm:$0xff] %vm298_vm1, %v5031_v5  ;;  %v483_v12 = vmax.f32 %v481_v63, 0.0  ;;  %v505_v13 = vadd.f32 %v5164_v8, %v496_v0  ;;  %v506_v14 = vadd.f32 %v5164_v8, %v497_v1  ;;  %v544_v18 = vmul.f32 %v5152_v7, %v535_v3  ;;  %v584_v24 = vld [vmem:[%s5159_s10 + $0xa8] sm:$0xff]  ;;  %v607_v46 = vld [vmem:[%s5159_s10 + $0xb0] sm:$0xff] }
  0x20   : > { %335 = vst.msk [vmem:[#allocation2 + $0x120] sm:$0xff] %vm298_vm1, %v5031_v5  ;;  %336 = vst.msk [vmem:[#allocation2 + $0x128] sm:$0xff] %vm298_vm1, %v5031_v5  ;;  %v529_v15 = vadd.f32 %v5164_v8, %v520_v2  ;;  %v484_v16 = vmax.f32 %v482_v9, 0.0  ;;  %v530_v17 = vadd.f32 %v5164_v8, %v521_v10  ;;  %v545_v19 = vmul.f32 %v5152_v7, %v536_v4  ;;  %v5249_v39 = vld [vmem:[%s6420_s3 + $0x8] sm:$0x3]  ;;  %v608_v53 = vld [vmem:[%s5159_s10 + $0xb8] sm:$0xff] }
  0x21   : > { %337 = vst.msk [vmem:[#allocation2 + $0x130] sm:$0xff] %vm298_vm1, %v5031_v5  ;;  %338 = vst.msk [vmem:[#allocation2 + $0x138] sm:$0xff] %vm298_vm1, %v5031_v5  ;;  %v507_v28 = vmax.f32 %v505_v13, 0.0  ;;  %v508_v29 = vmax.f32 %v506_v14, 0.0  ;;  %v568_v31 = vmul.f32 %v5152_v7, %v559_v11  ;;  %v569_v43 = vmul.f32 %v5152_v7, %v560_v22  ;;  %v632_v63 = vld [vmem:[%s5159_s10 + $0xc8] sm:$0xff]  ;;  %v655_v4 = vld [vmem:[%s5159_s10 + $0xd0] sm:$0xff] }
  0x22   : > { %339 = vst.msk [vmem:[#allocation2 + $0x140] sm:$0xff] %vm298_vm1, %v5031_v5  ;;  %365 = vst.msk [vmem:[#allocation2 + $0x13] sm:$0xff] %vm298_vm1, %v363_v37  ;;  %v459_v5 = vmax.f32 %v457_v60, 0.0  ;;  %v531_v30 = vmax.f32 %v529_v15, 0.0  ;;  %v532_v36 = vmax.f32 %v530_v17, 0.0  ;;  %v553_v37 = vadd.f32 %v5164_v8, %v544_v18 }
  0x23   : > { %366 = vst.msk [vmem:[#allocation2 + $0x1b] sm:$0xff] %vm298_vm1, %v364_v38  ;;  %389 = vst.msk [vmem:[#allocation2 + $0x25] sm:$0xff] %vm298_vm1, %v387_v42  ;;  %v554_v38 = vadd.f32 %v5164_v8, %v545_v19  ;;  %v577_v44 = vadd.f32 %v5164_v8, %v568_v31  ;;  %v592_v45 = vmul.f32 %v5152_v7, %v583_v23  ;;  %v656_v23 = vld [vmem:[%s5159_s10 + $0xd8] sm:$0xff] }
  0x24   : > { %390 = vst.msk [vmem:[#allocation2 + $0x2d] sm:$0xff] %vm298_vm1, %v388_v47  ;;  %413 = vst.msk [vmem:[#allocation2 + $0x37] sm:$0xff] %vm298_vm1, %v411_v54  ;;  %v5261_v47 = vld [vmem:[%s6420_s3 + $0xa] sm:$0x3]  ;;  %v555_v51 = vmax.f32 %v553_v37, 0.0  ;;  %v631_v54 = vld [vmem:[%s5159_s10 + $0xc0] sm:$0xff]  ;;  %v578_v58 = vadd.f32 %v5164_v8, %v569_v43  ;;  %v593_v60 = vmul.f32 %v5152_v7, %v584_v24  ;;  %v616_v3 = vmul.f32 %v5152_v7, %v607_v46 }
  0x25   : > { %414 = vst.msk [vmem:[#allocation2 + $0x3f] sm:$0xff] %vm298_vm1, %v412_v55  ;;  %437 = vst.msk [vmem:[#allocation2 + $0x49] sm:$0xff] %vm298_vm1, %v435_v56  ;;  %v556_v52 = vmax.f32 %v554_v38, 0.0  ;;  %v617_v10 = vmul.f32 %v5152_v7, %v608_v53  ;;  %v640_v14 = vmul.f32 %v5152_v7, %v631_v54  ;;  %v641_v17 = vmul.f32 %v5152_v7, %v632_v63 }
  0x26   : > { %438 = vst.msk [vmem:[#allocation2 + $0x51] sm:$0xff] %vm298_vm1, %v436_v59  ;;  %461 = vst.msk [vmem:[#allocation2 + $0x5b] sm:$0xff] %vm298_vm1, %v459_v5  ;;  %v579_v59 = vmax.f32 %v577_v44, 0.0  ;;  %v580_v2 = vmax.f32 %v578_v58, 0.0  ;;  %v625_v13 = vadd.f32 %v5164_v8, %v616_v3  ;;  %v664_v18 = vmul.f32 %v5152_v7, %v655_v4 }
  0x27   : > { %462 = vst.msk [vmem:[#allocation2 + $0x63] sm:$0xff] %vm298_vm1, %v460_v6  ;;  %485 = vst.msk [vmem:[#allocation2 + $0x6d] sm:$0xff] %vm298_vm1, %v483_v12  ;;  %v649_v22 = vadd.f32 %v5164_v8, %v640_v14  ;;  %v665_v37 = vmul.f32 %v5152_v7, %v656_v23 }
  0x28   : > { %486 = vst.msk [vmem:[#allocation2 + $0x75] sm:$0xff] %vm298_vm1, %v484_v16  ;;  %509 = vst.msk [vmem:[#allocation2 + $0x7f] sm:$0xff] %vm298_vm1, %v507_v28  ;;  %v626_v16 = vadd.f32 %v5164_v8, %v617_v10  ;;  %v627_v19 = vmax.f32 %v625_v13, 0.0 }
  0x29   : > { %v778_v25 = vld [vmem:[#allocation2 + $0x11] sm:$0xff]  ;;  %510 = vst.msk [vmem:[#allocation2 + $0x87] sm:$0xff] %vm298_vm1, %v508_v29  ;;  %533 = vst.msk [vmem:[#allocation2 + $0x91] sm:$0xff] %vm298_vm1, %v531_v30  ;;  %v651_v31 = vmax.f32 %v649_v22, 0.0 }
  0x2a   : > { %v779_v26 = vld [vmem:[#allocation2 + $0x19] sm:$0xff]  ;;  %v729_v27 = vld [vmem:[#allocation2 + $0x10] sm:$0xff]  ;;  %v780_v34 = vld [vmem:[#allocation2 + $0x21] sm:$0xff]  ;;  %534 = vst.msk [vmem:[#allocation2 + $0x99] sm:$0xff] %vm298_vm1, %v532_v36  ;;  %v628_v24 = vmax.f32 %v626_v16, 0.0 }
  0x2b   : > { %v809_v32 = vpack.c.bf16 %v779_v26, %v778_v25  ;;  %v730_v33 = vld [vmem:[#allocation2 + $0x18] sm:$0xff]  ;;  %v731_v35 = vld [vmem:[#allocation2 + $0x20] sm:$0xff]  ;;  %v781_v41 = vld [vmem:[#allocation2 + $0x29] sm:$0xff]  ;;  %557 = vst.msk [vmem:[#allocation2 + $0xa3] sm:$0xff] %vm298_vm1, %v555_v51  ;;  %v650_v25 = vadd.f32 %v5164_v8, %v641_v17 }
  0x2c   : > { %v760_v40 = vpack.c.bf16 %v730_v33, %v729_v27  ;;  %v732_v42 = vld [vmem:[#allocation2 + $0x28] sm:$0xff]  ;;  %v810_v48 = vpack.c.bf16 %v781_v41, %v780_v34  ;;  %v782_v50 = vld [vmem:[#allocation2 + $0x31] sm:$0xff]  ;;  %v783_v55 = vld [vmem:[#allocation2 + $0x39] sm:$0xff]  ;;  %558 = vst.msk [vmem:[#allocation2 + $0xab] sm:$0xff] %vm298_vm1, %v556_v52 }
  0x2d   : > { %4606 = vmatmul.mubr.msk.bf16.vlgmr.msra.gmra.mxu0 %vm298_vm1, %v809_v32  ;;  %v761_v49 = vpack.c.bf16 %v732_v42, %v731_v35  ;;  %v733_v56 = vld [vmem:[#allocation2 + $0x30] sm:$0xff]  ;;  %v734_v57 = vld [vmem:[#allocation2 + $0x38] sm:$0xff]  ;;  %v784_v61 = vld [vmem:[#allocation2 + $0x41] sm:$0xff]  ;;  %581 = vst.msk [vmem:[#allocation2 + $0xb5] sm:$0xff] %vm298_vm1, %v579_v59  ;;  %v811_v5 = vpack.c.bf16 %v783_v55, %v782_v50  ;;  %v673_v32 = vadd.f32 %v5164_v8, %v664_v18  ;;  %v652_v36 = vmax.f32 %v650_v25, 0.0 }
  0x2e   : > { %4640 = vmatmul.mubr.msk.bf16.vlgmr.msra.gmra.mxu1 %vm298_vm1, %v760_v40  ;;  %4672 = vmatpush3.bf16.msra.mxu0 %v5174_v20  ;;  %v785_v62 = vld [vmem:[#allocation2 + $0x49] sm:$0xff]  ;;  %v601_v20 = vadd.f32 %v5164_v8, %v592_v45  ;;  %v735_v0 = vld [vmem:[#allocation2 + $0x40] sm:$0xff]  ;;  %v762_v6 = vpack.c.bf16 %v734_v57, %v733_v56  ;;  %582 = vst.msk [vmem:[#allocation2 + $0xbd] sm:$0xff] %vm298_vm1, %v580_v2  ;;  %v786_v28 = vld [vmem:[#allocation2 + $0x51] sm:$0xff] }
  0x2f   : > { %4706 = vmatpush3.bf16.msra.mxu1 %v5177_v21  ;;  %4609 = vmatprep.mubr.msk.bf16.mxu0 %vm298_vm1, %v810_v48  ;;  %v736_v1 = vld [vmem:[#allocation2 + $0x48] sm:$0xff]  ;;  %v602_v21 = vadd.f32 %v5164_v8, %v593_v60  ;;  %v812_v11 = vpack.c.bf16 %v785_v62, %v784_v61  ;;  %v679_v26 = vld [vmem:[%s5159_s10 + $0xe0] sm:$0xff]  ;;  %v737_v30 = vld [vmem:[#allocation2 + $0x50] sm:$0xff]  ;;  %629 = vst.msk [vmem:[#allocation2 + $0xd9] sm:$0xff] %vm298_vm1, %v627_v19  ;;  %v675_v41 = vmax.f32 %v673_v32, 0.0 }
  0x30   : > { %4643 = vmatprep.mubr.msk.bf16.mxu1 %vm298_vm1, %v761_v49  ;;  %4967 = vmatprep.subr.msk.bf16.mxu0 %vm875_vm0, %v5249_v39  ;;  %v603_v9 = vmax.f32 %v601_v20, 0.0  ;;  %v763_v15 = vpack.c.bf16 %v736_v1, %v735_v0  ;;  %v680_v27 = vld [vmem:[%s5159_s10 + $0xe8] sm:$0xff]  ;;  %v787_v29 = vld [vmem:[#allocation2 + $0x59] sm:$0xff]  ;;  %630 = vst.msk [vmem:[#allocation2 + $0xe1] sm:$0xff] %vm298_vm1, %v628_v24  ;;  %653 = vst.msk [vmem:[#allocation2 + $0xeb] sm:$0xff] %vm298_vm1, %v651_v31  ;;  %v688_v42 = vmul.f32 %v5152_v7, %v679_v26 }
  0x31   : > { %4968 = vmatprep.subr.msk.bf16.mxu1 %vm875_vm0, %v5261_v47  ;;  %v604_v12 = vmax.f32 %v602_v21, 0.0  ;;  %v738_v33 = vld [vmem:[#allocation2 + $0x58] sm:$0xff]  ;;  %v788_v34 = vld [vmem:[#allocation2 + $0x61] sm:$0xff]  ;;  %v789_v35 = vld [vmem:[#allocation2 + $0x69] sm:$0xff]  ;;  %v689_v43 = vmul.f32 %v5152_v7, %v680_v27  ;;  %v813_v44 = vpack.c.bf16 %v787_v29, %v786_v28  ;;  %654 = vst.msk [vmem:[#allocation2 + $0xf3] sm:$0xff] %vm298_vm1, %v652_v36  ;;  %v674_v45 = vadd.f32 %v5164_v8, %v665_v37 }
  0x32   : > { %605 = vst.msk [vmem:[#allocation2 + $0xc7] sm:$0xff] %vm298_vm1, %v603_v9  ;;  %v739_v38 = vld [vmem:[#allocation2 + $0x60] sm:$0xff]  ;;  %v740_v40 = vld [vmem:[#allocation2 + $0x68] sm:$0xff]  ;;  %v764_v46 = vpack.c.bf16 %v738_v33, %v737_v30  ;;  %v814_v48 = vpack.c.bf16 %v789_v35, %v788_v34  ;;  %677 = vst.msk [vmem:[#allocation2 + $0xfd] sm:$0xff] %vm298_vm1, %v675_v41  ;;  %v697_v49 = vadd.f32 %v5164_v8, %v688_v42 }
  0x33   : > { %606 = vst.msk [vmem:[#allocation2 + $0xcf] sm:$0xff] %vm298_vm1, %v604_v12  ;;  %v765_v50 = vpack.c.bf16 %v740_v40, %v739_v38  ;;  %v676_v51 = vmax.f32 %v674_v45, 0.0  ;;  %v698_v52 = vadd.f32 %v5164_v8, %v689_v43  ;;  %v790_v54 = vld [vmem:[#allocation2 + $0x71] sm:$0xff]  ;;  %v791_v55 = vld [vmem:[#allocation2 + $0x79] sm:$0xff]  ;;  %v792_v58 = vld [vmem:[#allocation2 + $0x81] sm:$0xff] }
  0x34   : > { %v699_v53 = vmax.f32 %v697_v49, 0.0  ;;  %v741_v56 = vld [vmem:[#allocation2 + $0x70] sm:$0xff]  ;;  %v742_v57 = vld [vmem:[#allocation2 + $0x78] sm:$0xff]  ;;  %v743_v59 = vld [vmem:[#allocation2 + $0x80] sm:$0xff]  ;;  %v815_v61 = vpack.c.bf16 %v791_v55, %v790_v54 }
  0x35   : > { %4610 = vmatmul.mubr.msk.bf16.gmra.mxu0 %vm298_vm1, %v811_v5  ;;  %678 = vst.msk [vmem:[#allocation2 + $0x105] sm:$0xff] %vm298_vm1, %v676_v51  ;;  %v700_v7 = vmax.f32 %v698_v52, 0.0  ;;  %v793_v8 = vld [vmem:[#allocation2 + $0x89] sm:$0xff]  ;;  %v766_v62 = vpack.c.bf16 %v742_v57, %v741_v56  ;;  %v794_v0 = vld [vmem:[#allocation2 + $0x91] sm:$0xff]  ;;  %v795_v1 = vld [vmem:[#allocation2 + $0x99] sm:$0xff]  ;;  %v1939_v57 = vsel %vm875_vm0, %v5249_v39, 0 }
  0x36   : > { %4644 = vmatmul.mubr.msk.bf16.gmra.mxu1 %vm298_vm1, %v762_v6  ;;  %4613 = vmatprep.mubr.msk.bf16.mxu0 %vm298_vm1, %v812_v11  ;;  %701 = vst.msk [vmem:[#allocation2 + $0x10f] sm:$0xff] %vm298_vm1, %v699_v53  ;;  %v744_v60 = vld [vmem:[#allocation2 + $0x88] sm:$0xff]  ;;  %v816_v20 = vpack.c.bf16 %v793_v8, %v792_v58  ;;  %v745_v2 = vld [vmem:[#allocation2 + $0x90] sm:$0xff]  ;;  %v746_v21 = vld [vmem:[#allocation2 + $0x98] sm:$0xff]  ;;  %v817_v9 = vpack.c.bf16 %v795_v1, %v794_v0  ;;  %v2233_v58 = vsel %vm875_vm0, %v5261_v47, 0 }
  0x37   : > { %4647 = vmatprep.mubr.msk.bf16.mxu1 %vm298_vm1, %v763_v15  ;;  %702 = vst.msk [vmem:[#allocation2 + $0x117] sm:$0xff] %vm298_vm1, %v700_v7  ;;  %v767_v63 = vpack.c.bf16 %v744_v60, %v743_v59  ;;  %v796_v3 = vld [vmem:[#allocation2 + $0xa1] sm:$0xff]  ;;  %v797_v4 = vld [vmem:[#allocation2 + $0xa9] sm:$0xff]  ;;  %v768_v10 = vpack.c.bf16 %v746_v21, %v745_v2  ;;  %v798_v13 = vld [vmem:[#allocation2 + $0xb1] sm:$0xff] }
  0x38   : > { %v747_v5 = vld [vmem:[#allocation2 + $0xa0] sm:$0xff]  ;;  %v748_v6 = vld [vmem:[#allocation2 + $0xa8] sm:$0xff]  ;;  %v818_v11 = vpack.c.bf16 %v797_v4, %v796_v3  ;;  %v749_v15 = vld [vmem:[#allocation2 + $0xb0] sm:$0xff] }
  0x39   : > { %v769_v12 = vpack.c.bf16 %v748_v6, %v747_v5  ;;  %v799_v14 = vld [vmem:[#allocation2 + $0xb9] sm:$0xff]  ;;  %v800_v17 = vld [vmem:[#allocation2 + $0xc1] sm:$0xff]  ;;  %v805_v32 = vld [vmem:[#allocation2 + $0xe9] sm:$0xff] }
  0x3a   : > { %v750_v16 = vld [vmem:[#allocation2 + $0xb8] sm:$0xff]  ;;  %v801_v18 = vld [vmem:[#allocation2 + $0xc9] sm:$0xff]  ;;  %v751_v19 = vld [vmem:[#allocation2 + $0xc0] sm:$0xff]  ;;  %v819_v23 = vpack.c.bf16 %v799_v14, %v798_v13 }
  0x3b   : > { %v752_v22 = vld [vmem:[#allocation2 + $0xc8] sm:$0xff]  ;;  %v770_v24 = vpack.c.bf16 %v750_v16, %v749_v15  ;;  %v820_v25 = vpack.c.bf16 %v801_v18, %v800_v17  ;;  %v802_v27 = vld [vmem:[#allocation2 + $0xd1] sm:$0xff]  ;;  %v803_v28 = vld [vmem:[#allocation2 + $0xd9] sm:$0xff] }
  0x3c   : > { %v771_v26 = vpack.c.bf16 %v752_v22, %v751_v19  ;;  %v753_v29 = vld [vmem:[#allocation2 + $0xd0] sm:$0xff]  ;;  %v754_v30 = vld [vmem:[#allocation2 + $0xd8] sm:$0xff]  ;;  %v804_v31 = vld [vmem:[#allocation2 + $0xe1] sm:$0xff]  ;;  %v821_v35 = vpack.c.bf16 %v803_v28, %v802_v27 }
  0x3d   : > { %4614 = vmatmul.mubr.msk.bf16.gmra.mxu0 %vm298_vm1, %v813_v44  ;;  %v755_v33 = vld [vmem:[#allocation2 + $0xe0] sm:$0xff]  ;;  %v756_v34 = vld [vmem:[#allocation2 + $0xe8] sm:$0xff]  ;;  %v772_v36 = vpack.c.bf16 %v754_v30, %v753_v29  ;;  %v822_v37 = vpack.c.bf16 %v805_v32, %v804_v31  ;;  %v806_v40 = vld [vmem:[#allocation2 + $0xf1] sm:$0xff] }
  0x3e   : > { %4648 = vmatmul.mubr.msk.bf16.gmra.mxu1 %vm298_vm1, %v764_v46  ;;  %4617 = vmatprep.mubr.msk.bf16.mxu0 %vm298_vm1, %v814_v48  ;;  %v773_v38 = vpack.c.bf16 %v756_v34, %v755_v33  ;;  %v807_v41 = vld [vmem:[#allocation2 + $0xf9] sm:$0xff]  ;;  %v1252_v42 = vld [vmem:[#allocation2 + $0x2] sm:$0xff]  ;;  %v757_v43 = vld [vmem:[#allocation2 + $0xf0] sm:$0xff] }
  0x3f   : > { %4651 = vmatprep.mubr.msk.bf16.mxu1 %vm298_vm1, %v765_v50  ;;  %v758_v44 = vld [vmem:[#allocation2 + $0xf8] sm:$0xff]  ;;  %v1253_v45 = vld [vmem:[#allocation2 + $0xa] sm:$0xff]  ;;  %v823_v49 = vpack.c.bf16 %v807_v41, %v806_v40  ;;  %v1548_v53 = vld [vmem:[#allocation2 + $0x22] sm:$0xff] }
  0x40   : > { %v1546_v46 = vld [vmem:[#allocation2 + $0x12] sm:$0xff]  ;;  %v1547_v48 = vld [vmem:[#allocation2 + $0x1a] sm:$0xff]  ;;  %v774_v50 = vpack.c.bf16 %v758_v44, %v757_v43  ;;  %v1284_v51 = vpack.c.bf16 %v1253_v45, %v1252_v42  ;;  %v1549_v7 = vld [vmem:[#allocation2 + $0x2a] sm:$0xff] }
  0x41   : > { %v1578_v52 = vpack.c.bf16 %v1547_v48, %v1546_v46  ;;  %v1550_v54 = vld [vmem:[#allocation2 + $0x32] sm:$0xff]  ;;  %v1551_v55 = vld [vmem:[#allocation2 + $0x3a] sm:$0xff]  ;;  %v1579_v56 = vpack.c.bf16 %v1549_v7, %v1548_v53  ;;  %v5351_v59 = vld [vmem:[%s6420_s3 + $0xc] sm:$0x3] }
  0x42   : > { %v1580_v8 = vpack.c.bf16 %v1551_v55, %v1550_v54  ;;  %v5357_v60 = vld [vmem:[%s6420_s3 + $0xe] sm:$0x3]  ;;  %v1552_v39 = vld [vmem:[#allocation2 + $0x42] sm:$0xff]  ;;  %v1558_v2 = vld [vmem:[#allocation2 + $0x72] sm:$0xff] }
  0x43   : > { %v1553_v47 = vld [vmem:[#allocation2 + $0x4a] sm:$0xff]  ;;  %v1556_v0 = vld [vmem:[#allocation2 + $0x62] sm:$0xff]  ;;  %v1559_v21 = vld [vmem:[#allocation2 + $0x7a] sm:$0xff] }
  0x44   : > { %v1557_v1 = vld [vmem:[#allocation2 + $0x6a] sm:$0xff]  ;;  %v1584_v4 = vpack.c.bf16 %v1559_v21, %v1558_v2  ;;  %v1560_v5 = vld [vmem:[#allocation2 + $0x82] sm:$0xff]  ;;  %v1566_v15 = vld [vmem:[#allocation2 + $0xb2] sm:$0xff] }
  0x45   : > { %4618 = vmatmul.mubr.msk.bf16.gmra.mxu0 %vm298_vm1, %v815_v61  ;;  %v1554_v61 = vld [vmem:[#allocation2 + $0x52] sm:$0xff]  ;;  %v1583_v3 = vpack.c.bf16 %v1557_v1, %v1556_v0  ;;  %v1561_v6 = vld [vmem:[#allocation2 + $0x8a] sm:$0xff]  ;;  %v1564_v13 = vld [vmem:[#allocation2 + $0xa2] sm:$0xff] }
  0x46   : > { %4652 = vmatmul.mubr.msk.bf16.gmra.mxu1 %vm298_vm1, %v766_v62  ;;  %4621 = vmatprep.mubr.msk.bf16.mxu0 %vm298_vm1, %v816_v20  ;;  %v1555_v62 = vld [vmem:[#allocation2 + $0x5a] sm:$0xff]  ;;  %v1581_v20 = vpack.c.bf16 %v1553_v47, %v1552_v39  ;;  %v1565_v14 = vld [vmem:[#allocation2 + $0xaa] sm:$0xff]  ;;  %v1568_v19 = vld [vmem:[#allocation2 + $0xc2] sm:$0xff] }
  0x47   : > { %4655 = vmatprep.mubr.msk.bf16.mxu1 %vm298_vm1, %v767_v63  ;;  %v1582_v63 = vpack.c.bf16 %v1555_v62, %v1554_v61  ;;  %v1567_v16 = vld [vmem:[#allocation2 + $0xba] sm:$0xff]  ;;  %v1587_v17 = vpack.c.bf16 %v1565_v14, %v1564_v13  ;;  %v1569_v22 = vld [vmem:[#allocation2 + $0xca] sm:$0xff]  ;;  %v1572_v30 = vld [vmem:[#allocation2 + $0xe2] sm:$0xff]  ;;  %v2527_v61 = vsel %vm875_vm0, %v5351_v59, 0 }
  0x48   : > { %v1588_v18 = vpack.c.bf16 %v1567_v16, %v1566_v15  ;;  %v703_v27 = vld [vmem:[%s5159_s10 + $0xf0] sm:$0xff]  ;;  %v4239_v28 = vld [vmem:[%s6418_s1] ss:$0 sm:$0xff]  ;;  %v1576_v40 = vld [vmem:[#allocation2 + $0x102] sm:$0xff] }
  0x49   : > { %v712_v29 = vmul.f32 %v4239_v28, %v703_v27  ;;  %v1573_v31 = vld [vmem:[#allocation2 + $0xea] sm:$0xff]  ;;  %v4240_v32 = vld [vmem:[%s6419_s2] ss:$0 sm:$0xff]  ;;  %v1574_v33 = vld [vmem:[#allocation2 + $0xf2] sm:$0xff] }
  0x4a   : > { %v1575_v34 = vld [vmem:[#allocation2 + $0xfa] sm:$0xff]  ;;  %v1577_v41 = vld [vmem:[#allocation2 + $0x10a] sm:$0xff] }
  0x4b   : > { %v1840_v42 = vld [vmem:[#allocation2 + $0x13] sm:$0xff]  ;;  %v1841_v43 = vld [vmem:[#allocation2 + $0x1b] sm:$0xff]  ;;  %v5397_v46 = vpack.c.bf16 %v1577_v41, %v1576_v40  ;;  %v1846_v1 = vld [vmem:[#allocation2 + $0x43] sm:$0xff] }
  0x4c   : > { %v2134_v44 = vld [vmem:[#allocation2 + $0x14] sm:$0xff]  ;;  %v2135_v45 = vld [vmem:[#allocation2 + $0x1c] sm:$0xff]  ;;  %v1872_v48 = vpack.c.bf16 %v1841_v43, %v1840_v42  ;;  %v2137_v53 = vld [vmem:[#allocation2 + $0x2c] sm:$0xff] }
  0x4d   : > { %4622 = vmatmul.mubr.msk.bf16.gmra.mxu0 %vm298_vm1, %v817_v9  ;;  %v1562_v9 = vld [vmem:[#allocation2 + $0x92] sm:$0xff]  ;;  %v1845_v55 = vld [vmem:[#allocation2 + $0x3b] sm:$0xff]  ;;  %v5417_v2 = vld [vmem:[%s6420_s3 + $0x10] sm:$0x3] }
  0x4e   : > { %4656 = vmatmul.mubr.msk.bf16.gmra.mxu1 %vm298_vm1, %v768_v10  ;;  %4625 = vmatprep.mubr.msk.bf16.mxu0 %vm298_vm1, %v818_v11  ;;  %v1563_v10 = vld [vmem:[#allocation2 + $0x9a] sm:$0xff]  ;;  %v1585_v11 = vpack.c.bf16 %v1561_v6, %v1560_v5  ;;  %v2140_v21 = vld [vmem:[#allocation2 + $0x44] sm:$0xff] }
  0x4f   : > { %4659 = vmatprep.mubr.msk.bf16.mxu1 %vm298_vm1, %v769_v12  ;;  %v1586_v12 = vpack.c.bf16 %v1563_v10, %v1562_v9  ;;  %v704_v7 = vld [vmem:[%s5159_s10 + $0xf8] sm:$0xff]  ;;  %v1850_v14 = vld [vmem:[#allocation2 + $0x63] sm:$0xff]  ;;  %v1851_v15 = vld [vmem:[#allocation2 + $0x6b] sm:$0xff] }
  0x50   : > { %v1844_v54 = vld [vmem:[#allocation2 + $0x33] sm:$0xff]  ;;  %v1849_v5 = vld [vmem:[#allocation2 + $0x5b] sm:$0xff]  ;;  %v2144_v16 = vld [vmem:[#allocation2 + $0x64] sm:$0xff] }
  0x51   : > { %v1874_v62 = vpack.c.bf16 %v1845_v55, %v1844_v54  ;;  %v2142_v6 = vld [vmem:[#allocation2 + $0x54] sm:$0xff]  ;;  %v2143_v9 = vld [vmem:[#allocation2 + $0x5c] sm:$0xff]  ;;  %v1859_v42 = vld [vmem:[#allocation2 + $0xab] sm:$0xff] }
  0x52   : > { %v5436_v13 = vpack.c.bf16 %v2143_v9, %v2142_v6  ;;  %v1858_v41 = vld [vmem:[#allocation2 + $0xa3] sm:$0xff]  ;;  %v1863_v55 = vld [vmem:[#allocation2 + $0xcb] sm:$0xff]  ;;  %v1869_v6 = vld [vmem:[#allocation2 + $0xfb] sm:$0xff] }
  0x53   : > { %v2152_v43 = vld [vmem:[#allocation2 + $0xa4] sm:$0xff]  ;;  %v2162_v9 = vld [vmem:[#allocation2 + $0xf4] sm:$0xff] }
  0x54   : > { %v1862_v54 = vld [vmem:[#allocation2 + $0xc3] sm:$0xff] }
  0x55   : > { %4626 = vmatmul.mubr.msk.bf16.gmra.mxu0 %vm298_vm1, %v819_v23  ;;  %v1570_v23 = vld [vmem:[#allocation2 + $0xd2] sm:$0xff] }
  0x56   : > { %4660 = vmatmul.mubr.msk.bf16.gmra.mxu1 %vm298_vm1, %v770_v24  ;;  %4629 = vmatprep.mubr.msk.bf16.mxu0 %vm298_vm1, %v820_v25  ;;  %v1571_v24 = vld [vmem:[#allocation2 + $0xda] sm:$0xff]  ;;  %v1589_v25 = vpack.c.bf16 %v1569_v22, %v1568_v19 }
  0x57   : > { %4663 = vmatprep.mubr.msk.bf16.mxu1 %vm298_vm1, %v771_v26  ;;  %v1590_v26 = vpack.c.bf16 %v1571_v24, %v1570_v23  ;;  %v1853_v19 = vld [vmem:[#allocation2 + $0x7b] sm:$0xff]  ;;  %v1877_v24 = vpack.c.bf16 %v1851_v15, %v1850_v14 }
  0x58   : > { %v2146_v22 = vld [vmem:[#allocation2 + $0x74] sm:$0xff]  ;;  %v2147_v23 = vld [vmem:[#allocation2 + $0x7c] sm:$0xff] }
  0x59   : > { %v5446_v27 = vpack.c.bf16 %v2147_v23, %v2146_v22  ;;  %v2165_v22 = vld [vmem:[#allocation2 + $0x10c] sm:$0xff] }
  0x5a   : > { %v2722_v23 = vld [vmem:[#allocation2 + $0x25] sm:$0xff] }
  0x5d   : > { %4630 = vmatmul.mubr.msk.bf16.gmra.mxu0 %vm298_vm1, %v821_v35  ;;  %v721_v35 = vadd.f32 %v4240_v32, %v712_v29  ;;  %v1855_v29 = vld [vmem:[#allocation2 + $0x8b] sm:$0xff] }
  0x5e   : > { %4664 = vmatmul.mubr.msk.bf16.gmra.mxu1 %vm298_vm1, %v772_v36  ;;  %4633 = vmatprep.mubr.msk.bf16.mxu0 %vm298_vm1, %v822_v37  ;;  %v1591_v36 = vpack.c.bf16 %v1573_v31, %v1572_v30  ;;  %v2148_v30 = vld [vmem:[#allocation2 + $0x84] sm:$0xff]  ;;  %v2149_v31 = vld [vmem:[#allocation2 + $0x8c] sm:$0xff] }
  0x5f   : > { %4667 = vmatprep.mubr.msk.bf16.mxu1 %vm298_vm1, %v773_v38  ;;  %v723_v37 = vmax.f32 %v721_v35, 0.0  ;;  %v1592_v38 = vpack.c.bf16 %v1575_v34, %v1574_v33  ;;  %v1857_v33 = vld [vmem:[#allocation2 + $0x9b] sm:$0xff] }
  0x60   : > { %v2150_v34 = vld [vmem:[#allocation2 + $0x94] sm:$0xff]  ;;  %v2151_v35 = vld [vmem:[#allocation2 + $0x9c] sm:$0xff] }
  0x61   : > { %725 = vst.msk [vmem:[#allocation2 + $0x121] sm:$0xff] %vm298_vm1, %v723_v37  ;;  %v5454_v37 = vpack.c.bf16 %v2149_v31, %v2148_v30  ;;  %v5456_v40 = vpack.c.bf16 %v2151_v35, %v2150_v34  ;;  %v2724_v30 = vld [vmem:[#allocation2 + $0x35] sm:$0xff]  ;;  %v2725_v31 = vld [vmem:[#allocation2 + $0x3d] sm:$0xff]  ;;  %v3115_v35 = vsel %vm875_vm0, %v5417_v2, 0 }
  0x62   : > { %v2755_v34 = vpack.c.bf16 %v2725_v31, %v2724_v30  ;;  %v2738_v30 = vld [vmem:[#allocation2 + $0xa5] sm:$0xff]  ;;  %v2739_v31 = vld [vmem:[#allocation2 + $0xad] sm:$0xff] }
  0x65   : > { %4634 = vmatmul.mubr.msk.bf16.gmra.mxu0 %vm298_vm1, %v823_v49  ;;  %v2166_v49 = vpack.c.bf16 %v2135_v45, %v2134_v44  ;;  %v2153_v44 = vld [vmem:[#allocation2 + $0xac] sm:$0xff] }
  0x66   : > { %4668 = vmatmul.mubr.msk.bf16.gmra.mxu1 %vm298_vm1, %v774_v50  ;;  %4673 = vmatprep.mubr.msk.bf16.mxu0 %vm298_vm1, %v1284_v51  ;;  %v1842_v50 = vld [vmem:[#allocation2 + $0x23] sm:$0xff]  ;;  %v1843_v51 = vld [vmem:[#allocation2 + $0x2b] sm:$0xff]  ;;  %v1860_v45 = vld [vmem:[#allocation2 + $0xb3] sm:$0xff] }
  0x67   : > { %4707 = vmatprep.mubr.msk.bf16.mxu1 %vm298_vm1, %v1578_v52 }
  0x6d   : > { %4674 = vmatmul.mubr.msk.bf16.vlgmr.msra.gmra.mxu0 %vm298_vm1, %v1578_v52  ;;  %v2136_v52 = vld [vmem:[#allocation2 + $0x24] sm:$0xff] }
  0x6e   : > { %4708 = vmatmul.mubr.msk.bf16.vlgmr.msra.gmra.mxu1 %vm298_vm1, %v1579_v56  ;;  %4740 = vmatpush3.bf16.msra.mxu0 %v1939_v57  ;;  %v1873_v57 = vpack.c.bf16 %v1843_v51, %v1842_v50  ;;  %v5405_v39 = vpack.c.bf16 %v2137_v53, %v2136_v52  ;;  %v2155_v50 = vld [vmem:[#allocation2 + $0xbc] sm:$0xff]  ;;  %v1881_v51 = vpack.c.bf16 %v1859_v42, %v1858_v41 }
  0x6f   : > { %4774 = vmatpush3.bf16.msra.mxu1 %v2233_v58  ;;  %4677 = vmatprep.mubr.msk.bf16.mxu0 %vm298_vm1, %v1579_v56  ;;  %v713_v56 = vmul.f32 %v4239_v28, %v704_v7  ;;  %v2138_v58 = vld [vmem:[#allocation2 + $0x34] sm:$0xff]  ;;  %v1854_v28 = vld [vmem:[#allocation2 + $0x83] sm:$0xff]  ;;  %v5464_v52 = vpack.c.bf16 %v2153_v44, %v2152_v43 }
  0x70   : > { %4711 = vmatprep.mubr.msk.bf16.mxu1 %vm298_vm1, %v1580_v8  ;;  %4969 = vmatprep.subr.msk.bf16.mxu0 %vm875_vm0, %v5351_v59  ;;  %v1847_v59 = vld [vmem:[#allocation2 + $0x4b] sm:$0xff]  ;;  %v2729_v44 = vld [vmem:[#allocation2 + $0x5d] sm:$0xff] }
  0x71   : > { %4970 = vmatprep.subr.msk.bf16.mxu1 %vm875_vm0, %v5357_v60  ;;  %v722_v47 = vadd.f32 %v4240_v32, %v713_v56  ;;  %v1875_v10 = vpack.c.bf16 %v1847_v59, %v1846_v1  ;;  %v1856_v32 = vld [vmem:[#allocation2 + $0x93] sm:$0xff]  ;;  %v2156_v56 = vld [vmem:[#allocation2 + $0xc4] sm:$0xff] }
  0x72   : > { %v1866_v59 = vld [vmem:[#allocation2 + $0xe3] sm:$0xff] }
  0x73   : > { %v724_v0 = vmax.f32 %v722_v47, 0.0  ;;  %v2158_v47 = vld [vmem:[#allocation2 + $0xd4] sm:$0xff] }
  0x75   : > { %4678 = vmatmul.mubr.msk.bf16.gmra.mxu0 %vm298_vm1, %v1580_v8  ;;  %v2139_v8 = vld [vmem:[#allocation2 + $0x3c] sm:$0xff]  ;;  %726 = vst.msk [vmem:[#allocation2 + $0x129] sm:$0xff] %vm298_vm1, %v724_v0 }
  0x76   : > { %4712 = vmatmul.mubr.msk.bf16.gmra.mxu1 %vm298_vm1, %v1581_v20  ;;  %4681 = vmatprep.mubr.msk.bf16.mxu0 %vm298_vm1, %v1581_v20  ;;  %v2821_v20 = vsel %vm875_vm0, %v5357_v60, 0  ;;  %v5424_v60 = vld [vmem:[%s6420_s3 + $0x2] sm:$0x3] }
  0x77   : > { %4715 = vmatprep.mubr.msk.bf16.mxu1 %vm298_vm1, %v1582_v63 }
  0x7d   : > { %4682 = vmatmul.mubr.msk.bf16.gmra.mxu0 %vm298_vm1, %v1582_v63  ;;  %v5411_v63 = vpack.c.bf16 %v2139_v8, %v2138_v58  ;;  %v1864_v58 = vld [vmem:[#allocation2 + $0xd3] sm:$0xff]  ;;  %v1865_v8 = vld [vmem:[#allocation2 + $0xdb] sm:$0xff] }
  0x7e   : > { %4716 = vmatmul.mubr.msk.bf16.gmra.mxu1 %vm298_vm1, %v1583_v3  ;;  %4685 = vmatprep.mubr.msk.bf16.mxu0 %vm298_vm1, %v1583_v3  ;;  %v2141_v3 = vld [vmem:[#allocation2 + $0x4c] sm:$0xff]  ;;  %v1884_v0 = vpack.c.bf16 %v1865_v8, %v1864_v58 }
  0x7f   : > { %4719 = vmatprep.mubr.msk.bf16.mxu1 %vm298_vm1, %v1584_v4 }
  0x85   : > { %4686 = vmatmul.mubr.msk.bf16.gmra.mxu0 %vm298_vm1, %v1584_v4  ;;  %v1848_v4 = vld [vmem:[#allocation2 + $0x53] sm:$0xff] }
  0x86   : > { %4720 = vmatmul.mubr.msk.bf16.gmra.mxu1 %vm298_vm1, %v1585_v11  ;;  %4689 = vmatprep.mubr.msk.bf16.mxu0 %vm298_vm1, %v1585_v11  ;;  %v5434_v11 = vpack.c.bf16 %v2141_v3, %v2140_v21  ;;  %v1867_v21 = vld [vmem:[#allocation2 + $0xeb] sm:$0xff] }
  0x87   : > { %4723 = vmatprep.mubr.msk.bf16.mxu1 %vm298_vm1, %v1586_v12  ;;  %v2160_v3 = vld [vmem:[#allocation2 + $0xe4] sm:$0xff] }
  0x8d   : > { %4690 = vmatmul.mubr.msk.bf16.gmra.mxu0 %vm298_vm1, %v1586_v12  ;;  %v1876_v12 = vpack.c.bf16 %v1849_v5, %v1848_v4  ;;  %v2161_v4 = vld [vmem:[#allocation2 + $0xec] sm:$0xff] }
  0x8e   : > { %4724 = vmatmul.mubr.msk.bf16.gmra.mxu1 %vm298_vm1, %v1587_v17  ;;  %4693 = vmatprep.mubr.msk.bf16.mxu0 %vm298_vm1, %v1587_v17  ;;  %v2145_v17 = vld [vmem:[#allocation2 + $0x6c] sm:$0xff]  ;;  %v5484_v14 = vpack.c.bf16 %v2161_v4, %v2160_v3 }
  0x8f   : > { %4727 = vmatprep.mubr.msk.bf16.mxu1 %vm298_vm1, %v1588_v18  ;;  %v1868_v5 = vld [vmem:[#allocation2 + $0xf3] sm:$0xff]  ;;  %v2734_v3 = vld [vmem:[#allocation2 + $0x85] sm:$0xff] }
  0x90   : > { %v1886_v15 = vpack.c.bf16 %v1869_v6, %v1868_v5  ;;  %v2735_v4 = vld [vmem:[#allocation2 + $0x8d] sm:$0xff] }
  0x95   : > { %4694 = vmatmul.mubr.msk.bf16.gmra.mxu0 %vm298_vm1, %v1588_v18  ;;  %v1852_v18 = vld [vmem:[#allocation2 + $0x73] sm:$0xff] }
  0x96   : > { %4728 = vmatmul.mubr.msk.bf16.gmra.mxu1 %vm298_vm1, %v1589_v25  ;;  %4697 = vmatprep.mubr.msk.bf16.mxu0 %vm298_vm1, %v1589_v25  ;;  %v5444_v25 = vpack.c.bf16 %v2145_v17, %v2144_v16  ;;  %v1870_v17 = vld [vmem:[#allocation2 + $0x103] sm:$0xff] }
  0x97   : > { %4731 = vmatprep.mubr.msk.bf16.mxu1 %vm298_vm1, %v1590_v26 }
  0x9d   : > { %4698 = vmatmul.mubr.msk.bf16.gmra.mxu0 %vm298_vm1, %v1590_v26  ;;  %v1878_v26 = vpack.c.bf16 %v1853_v19, %v1852_v18  ;;  %v1871_v18 = vld [vmem:[#allocation2 + $0x10b] sm:$0xff] }
  0x9e   : > { %4732 = vmatmul.mubr.msk.bf16.gmra.mxu1 %vm298_vm1, %v1591_v36  ;;  %4701 = vmatprep.mubr.msk.bf16.mxu0 %vm298_vm1, %v1591_v36  ;;  %v1879_v36 = vpack.c.bf16 %v1855_v29, %v1854_v28  ;;  %v2164_v19 = vld [vmem:[#allocation2 + $0x104] sm:$0xff] }
  0x9f   : > { %4735 = vmatprep.mubr.msk.bf16.mxu1 %vm298_vm1, %v1592_v38  ;;  %v5494_v28 = vpack.c.bf16 %v2165_v22, %v2164_v19 }
  0xa5   : > { %4702 = vmatmul.mubr.msk.bf16.gmra.mxu0 %vm298_vm1, %v1592_v38  ;;  %v1880_v38 = vpack.c.bf16 %v1857_v33, %v1856_v32  ;;  %v2726_v32 = vld [vmem:[#allocation2 + $0x45] sm:$0xff]  ;;  %v2727_v33 = vld [vmem:[#allocation2 + $0x4d] sm:$0xff] }
  0xa6   : > { %4736 = vmatmul.mubr.msk.bf16.gmra.mxu1 %vm298_vm1, %v5397_v46  ;;  %4741 = vmatprep.mubr.msk.bf16.mxu0 %vm298_vm1, %v1872_v48  ;;  %v1861_v48 = vld [vmem:[#allocation2 + $0xbb] sm:$0xff] }
  0xa7   : > { %4775 = vmatprep.mubr.msk.bf16.mxu1 %vm298_vm1, %v2166_v49  ;;  %v2154_v49 = vld [vmem:[#allocation2 + $0xb4] sm:$0xff]  ;;  %v1882_v53 = vpack.c.bf16 %v1861_v48, %v1860_v45  ;;  %v2730_v48 = vld [vmem:[#allocation2 + $0x65] sm:$0xff] }
  0xa8   : > { %v5466_v7 = vpack.c.bf16 %v2155_v50, %v2154_v49  ;;  %v2731_v49 = vld [vmem:[#allocation2 + $0x6d] sm:$0xff] }
  0xad   : > { %4742 = vmatmul.mubr.msk.bf16.vlgmr.msra.gmra.mxu0 %vm298_vm1, %v1873_v57  ;;  %v2157_v57 = vld [vmem:[#allocation2 + $0xcc] sm:$0xff] }
  0xae   : > { %4776 = vmatmul.mubr.msk.bf16.vlgmr.msra.gmra.mxu1 %vm298_vm1, %v5405_v39  ;;  %4808 = vmatpush3.bf16.msra.mxu0 %v2527_v61  ;;  %v2159_v61 = vld [vmem:[#allocation2 + $0xdc] sm:$0xff] }
  0xaf   : > { %4842 = vmatpush3.bf16.msra.mxu1 %v2821_v20  ;;  %4745 = vmatprep.mubr.msk.bf16.mxu0 %vm298_vm1, %v1874_v62  ;;  %v1883_v62 = vpack.c.bf16 %v1863_v55, %v1862_v54  ;;  %v5474_v20 = vpack.c.bf16 %v2157_v57, %v2156_v56  ;;  %v5476_v1 = vpack.c.bf16 %v2159_v61, %v2158_v47 }
  0xb0   : > { %4779 = vmatprep.mubr.msk.bf16.mxu1 %vm298_vm1, %v5411_v63  ;;  %4971 = vmatprep.subr.msk.bf16.mxu0 %vm875_vm0, %v5417_v2  ;;  %v5517_v2 = vld [vmem:[%s6420_s3] sm:$0x3]  ;;  %v2758_v56 = vpack.c.bf16 %v2731_v49, %v2730_v48 }
  0xb1   : > { %4972 = vmatprep.subr.msk.bf16.mxu1 %vm875_vm0, %v5424_v60  ;;  %v2741_v48 = vld [vmem:[#allocation2 + $0xbd] sm:$0xff] }
  0xb5   : > { %4746 = vmatmul.mubr.msk.bf16.gmra.mxu0 %vm298_vm1, %v1875_v10  ;;  %v2163_v10 = vld [vmem:[#allocation2 + $0xfc] sm:$0xff] }
  0xb6   : > { %4780 = vmatmul.mubr.msk.bf16.gmra.mxu1 %vm298_vm1, %v5434_v11  ;;  %4749 = vmatprep.mubr.msk.bf16.mxu0 %vm298_vm1, %v1876_v12  ;;  %v1885_v12 = vpack.c.bf16 %v1867_v21, %v1866_v59  ;;  %v5486_v16 = vpack.c.bf16 %v2163_v10, %v2162_v9  ;;  %v2733_v59 = vld [vmem:[#allocation2 + $0x7d] sm:$0xff] }
  0xb7   : > { %4783 = vmatprep.mubr.msk.bf16.mxu1 %vm298_vm1, %v5436_v13 }
  0xbd   : > { %4750 = vmatmul.mubr.msk.bf16.gmra.mxu0 %vm298_vm1, %v1877_v24  ;;  %v2723_v24 = vld [vmem:[#allocation2 + $0x2d] sm:$0xff] }
  0xbe   : > { %4784 = vmatmul.mubr.msk.bf16.gmra.mxu1 %vm298_vm1, %v5444_v25  ;;  %4753 = vmatprep.mubr.msk.bf16.mxu0 %vm298_vm1, %v1878_v26  ;;  %v1887_v26 = vpack.c.bf16 %v1871_v18, %v1870_v17  ;;  %v2754_v29 = vpack.c.bf16 %v2723_v24, %v2722_v23  ;;  %v2736_v24 = vld [vmem:[#allocation2 + $0x95] sm:$0xff] }
  0xbf   : > { %4787 = vmatprep.mubr.msk.bf16.mxu1 %vm298_vm1, %v5446_v27 }
  0xc5   : > { %4754 = vmatmul.mubr.msk.bf16.gmra.mxu0 %vm298_vm1, %v1879_v36  ;;  %v3363_v36 = vsel %vm875_vm0, %v5424_v60, 0 }
  0xc6   : > { %4788 = vmatmul.mubr.msk.bf16.gmra.mxu1 %vm298_vm1, %v5454_v37  ;;  %4757 = vmatprep.mubr.msk.bf16.mxu0 %vm298_vm1, %v1880_v38  ;;  %v2756_v38 = vpack.c.bf16 %v2727_v33, %v2726_v32 }
  0xc7   : > { %4791 = vmatprep.mubr.msk.bf16.mxu1 %vm298_vm1, %v5456_v40 }
  0xcd   : > { %4758 = vmatmul.mubr.msk.bf16.gmra.mxu0 %vm298_vm1, %v1881_v51 }
  0xce   : > { %4792 = vmatmul.mubr.msk.bf16.gmra.mxu1 %vm298_vm1, %v5464_v52  ;;  %4761 = vmatprep.mubr.msk.bf16.mxu0 %vm298_vm1, %v1882_v53 }
  0xcf   : > { %4795 = vmatprep.mubr.msk.bf16.mxu1 %vm298_vm1, %v5466_v7 }
  0xd5   : > { %4762 = vmatmul.mubr.msk.bf16.gmra.mxu0 %vm298_vm1, %v1883_v62 }
  0xd6   : > { %4796 = vmatmul.mubr.msk.bf16.gmra.mxu1 %vm298_vm1, %v5474_v20  ;;  %4765 = vmatprep.mubr.msk.bf16.mxu0 %vm298_vm1, %v1884_v0  ;;  %v2732_v0 = vld [vmem:[#allocation2 + $0x75] sm:$0xff] }
  0xd7   : > { %4799 = vmatprep.mubr.msk.bf16.mxu1 %vm298_vm1, %v5476_v1  ;;  %v2759_v9 = vpack.c.bf16 %v2733_v59, %v2732_v0 }
  0xdd   : > { %4766 = vmatmul.mubr.msk.bf16.gmra.mxu0 %vm298_vm1, %v1885_v12 }
  0xde   : > { %4800 = vmatmul.mubr.msk.bf16.gmra.mxu1 %vm298_vm1, %v5484_v14  ;;  %4769 = vmatprep.mubr.msk.bf16.mxu0 %vm298_vm1, %v1886_v15  ;;  %v2760_v15 = vpack.c.bf16 %v2735_v4, %v2734_v3  ;;  %v2744_v4 = vld [vmem:[#allocation2 + $0xd5] sm:$0xff] }
  0xdf   : > { %4803 = vmatprep.mubr.msk.bf16.mxu1 %vm298_vm1, %v5486_v16 }
  0xe5   : > { %4770 = vmatmul.mubr.msk.bf16.gmra.mxu0 %vm298_vm1, %v1887_v26  ;;  %v2737_v26 = vld [vmem:[#allocation2 + $0x9d] sm:$0xff] }
  0xe6   : > { %4804 = vmatmul.mubr.msk.bf16.gmra.mxu1 %vm298_vm1, %v5494_v28  ;;  %4809 = vmatprep.mubr.msk.bf16.mxu0 %vm298_vm1, %v5405_v39  ;;  %v5511_v39 = vld [vmem:[%s6420_s3 + $0x10] sm:$0x3] }
  0xe7   : > { %4843 = vmatprep.mubr.msk.bf16.mxu1 %vm298_vm1, %v2754_v29 }
  0xed   : > { %v4607_v41 = vpop.f32.mrf.mxu0  ;;  %4810 = vmatmul.mubr.msk.bf16.vlgmr.msra.gmra.mxu0 %vm298_vm1, %v5411_v63  ;;  %v2728_v63 = vld [vmem:[#allocation2 + $0x55] sm:$0xff] }
  0xee   : > { %v4641_v42 = vpop.f32.mrf.mxu1  ;;  %4844 = vmatmul.mubr.msk.bf16.vlgmr.msra.gmra.mxu1 %vm298_vm1, %v2755_v34  ;;  %4876 = vmatpush3.bf16.msra.mxu0 %v3115_v35  ;;  %v2757_v54 = vpack.c.bf16 %v2729_v44, %v2728_v63  ;;  %v2761_v34 = vpack.c.bf16 %v2737_v26, %v2736_v24 }
  0xef   : > { %v5519_v60 = vadd.f32 %v4641_v42, %v4607_v41  ;;  %v913_v43 = vpop.f32.mrf.mxu0  ;;  %4910 = vmatpush3.bf16.msra.mxu1 %v3363_v36  ;;  %4813 = vmatprep.mubr.msk.bf16.mxu0 %vm298_vm1, %v5434_v11 }
  0xf0   : > { %v1125_v45 = vpop.f32.mrf.mxu1  ;;  %4847 = vmatprep.mubr.msk.bf16.mxu1 %vm298_vm1, %v2756_v38  ;;  %4980 = vmatprep.subr.msk.bf16.mxu0 %vm875_vm0, %v5511_v39  ;;  %v2762_v38 = vpack.c.bf16 %v2739_v31, %v2738_v30 }
  0xf1   : > { %v5526_v50 = vadd.f32 %v1125_v45, %v913_v43  ;;  %v4608_v51 = vpop.f32.mrf.mxu0  ;;  %4973 = vmatprep.subr.msk.bf16.mxu1 %vm875_vm0, %v5517_v2  ;;  %v2740_v45 = vld [vmem:[#allocation2 + $0xb5] sm:$0xff] }
  0xf2   : > { %v4642_v53 = vpop.f32.mrf.mxu1 }
  0xf3   : > { %v5530_v55 = vadd.f32 %v4642_v53, %v4608_v51  ;;  %v916_v11 = vpop.f32.mrf.mxu0  ;;  %v2742_v51 = vld [vmem:[#allocation2 + $0xc5] sm:$0xff]  ;;  %v2743_v53 = vld [vmem:[#allocation2 + $0xcd] sm:$0xff] }
  0xf4   : > { %v1128_v57 = vpop.f32.mrf.mxu1 }
  0xf5   : > { %v5532_v58 = vadd.f32 %v1128_v57, %v916_v11  ;;  %v4611_v8 = vpop.f32.mrf.mxu0  ;;  %4814 = vmatmul.mubr.msk.bf16.gmra.mxu0 %vm298_vm1, %v5436_v13 }
  0xf6   : > { %v4645_v47 = vpop.f32.mrf.mxu1  ;;  %4848 = vmatmul.mubr.msk.bf16.gmra.mxu1 %vm298_vm1, %v2757_v54  ;;  %4817 = vmatprep.mubr.msk.bf16.mxu0 %vm298_vm1, %v5444_v25 }
  0xf7   : > { %v5539_v61 = vadd.f32 %v4645_v47, %v4611_v8  ;;  %v929_v62 = vpop.f32.mrf.mxu0  ;;  %4851 = vmatprep.mubr.msk.bf16.mxu1 %vm298_vm1, %v2758_v56  ;;  %v2763_v56 = vpack.c.bf16 %v2741_v48, %v2740_v45  ;;  %v2764_v47 = vpack.c.bf16 %v2743_v53, %v2742_v51 }
  0xf8   : > { %v1141_v21 = vpop.f32.mrf.mxu1 }
  0xf9   : > { %v5542_v5 = vadd.f32 %v1141_v21, %v929_v62  ;;  %v4612_v6 = vpop.f32.mrf.mxu0 }
  0xfa   : > { %v4646_v13 = vpop.f32.mrf.mxu1 }
  0xfb   : > { %v5544_v10 = vadd.f32 %v4646_v13, %v4612_v6  ;;  %v932_v12 = vpop.f32.mrf.mxu0  ;;  %v2745_v6 = vld [vmem:[#allocation2 + $0xdd] sm:$0xff] }
  0xfc   : > { %v1144_v25 = vpop.f32.mrf.mxu1 }
  0xfd   : > { %v5546_v17 = vadd.f32 %v1144_v25, %v932_v12  ;;  %v4615_v18 = vpop.f32.mrf.mxu0  ;;  %4818 = vmatmul.mubr.msk.bf16.gmra.mxu0 %vm298_vm1, %v5446_v27  ;;  %v2747_v12 = vld [vmem:[#allocation2 + $0xed] sm:$0xff] }
  0xfe   : > { %v4649_v19 = vpop.f32.mrf.mxu1  ;;  %4852 = vmatmul.mubr.msk.bf16.gmra.mxu1 %vm298_vm1, %v2759_v9  ;;  %4821 = vmatprep.mubr.msk.bf16.mxu0 %vm298_vm1, %v5454_v37  ;;  %v2746_v9 = vld [vmem:[#allocation2 + $0xe5] sm:$0xff] }
  0xff   : > { %v5553_v22 = vadd.f32 %v4649_v19, %v4615_v18  ;;  %v945_v23 = vpop.f32.mrf.mxu0  ;;  %4855 = vmatprep.mubr.msk.bf16.mxu1 %vm298_vm1, %v2760_v15  ;;  %v2765_v18 = vpack.c.bf16 %v2745_v6, %v2744_v4  ;;  %v2766_v24 = vpack.c.bf16 %v2747_v12, %v2746_v9  ;;  %v3349_v6 = vld [vmem:[#allocation2 + $0x101] sm:$0xff] }
 0x100   : > { %v1157_v29 = vpop.f32.mrf.mxu1 }
 0x101   : > { %v5556_v32 = vadd.f32 %v1157_v29, %v945_v23  ;;  %v4616_v33 = vpop.f32.mrf.mxu0 }
 0x102   : > { %v4650_v27 = vpop.f32.mrf.mxu1 }
 0x103   : > { %v5558_v35 = vadd.f32 %v4650_v27, %v4616_v33  ;;  %v948_v36 = vpop.f32.mrf.mxu0  ;;  %v2748_v27 = vld [vmem:[#allocation2 + $0xf5] sm:$0xff] }
 0x104   : > { %v1160_v37 = vpop.f32.mrf.mxu1 }
 0x105   : > { %v5560_v41 = vadd.f32 %v1160_v37, %v948_v36  ;;  %v4619_v42 = vpop.f32.mrf.mxu0  ;;  %4822 = vmatmul.mubr.msk.bf16.gmra.mxu0 %vm298_vm1, %v5456_v40  ;;  %v2751_v37 = vld [vmem:[#allocation2 + $0x10d] sm:$0xff] }
 0x106   : > { %v4653_v43 = vpop.f32.mrf.mxu1  ;;  %4856 = vmatmul.mubr.msk.bf16.gmra.mxu1 %vm298_vm1, %v2761_v34  ;;  %4825 = vmatprep.mubr.msk.bf16.mxu0 %vm298_vm1, %v5464_v52  ;;  %v2749_v34 = vld [vmem:[#allocation2 + $0xfd] sm:$0xff] }
 0x107   : > { %v5567_v63 = vadd.f32 %v4653_v43, %v4619_v42  ;;  %v961_v44 = vpop.f32.mrf.mxu0  ;;  %4859 = vmatprep.mubr.msk.bf16.mxu1 %vm298_vm1, %v2762_v38  ;;  %v2750_v38 = vld [vmem:[#allocation2 + $0x105] sm:$0xff] }
 0x108   : > { %v1173_v49 = vpop.f32.mrf.mxu1 }
 0x109   : > { %v5570_v54 = vadd.f32 %v1173_v49, %v961_v44  ;;  %v4620_v11 = vpop.f32.mrf.mxu0  ;;  %v2767_v44 = vpack.c.bf16 %v2749_v34, %v2748_v27  ;;  %v2768_v49 = vpack.c.bf16 %v2751_v37, %v2750_v38  ;;  %v3018_v27 = vld [vmem:[#allocation2 + $0x36] sm:$0xff]  ;;  %v3019_v34 = vld [vmem:[#allocation2 + $0x3e] sm:$0xff] }
 0x10a   : > { %v4654_v40 = vpop.f32.mrf.mxu1  ;;  %v3351_v37 = vld [vmem:[#allocation2 + $0x111] sm:$0xff] }
 0x10b   : > { %v5572_v57 = vadd.f32 %v4654_v40, %v4620_v11  ;;  %v964_v8 = vpop.f32.mrf.mxu0  ;;  %v2458_v40 = vld [vmem:[#allocation2 + $0x114] sm:$0xff] }
 0x10c   : > { %v1176_v52 = vpop.f32.mrf.mxu1 }
 0x10d   : > { %v5574_v62 = vadd.f32 %v1176_v52, %v964_v8  ;;  %v4623_v0 = vpop.f32.mrf.mxu0  ;;  %4826 = vmatmul.mubr.msk.bf16.gmra.mxu0 %vm298_vm1, %v5466_v7  ;;  %v2752_v8 = vld [vmem:[#allocation2 + $0x115] sm:$0xff] }
 0x10e   : > { %v4657_v59 = vpop.f32.mrf.mxu1  ;;  %4860 = vmatmul.mubr.msk.bf16.gmra.mxu1 %vm298_vm1, %v2763_v56  ;;  %4829 = vmatprep.mubr.msk.bf16.mxu0 %vm298_vm1, %v5474_v20  ;;  %v2459_v56 = vld [vmem:[#allocation2 + $0x11c] sm:$0xff] }
 0x10f   : > { %v5581_v21 = vadd.f32 %v4657_v59, %v4623_v0  ;;  %v977_v3 = vpop.f32.mrf.mxu0  ;;  %4863 = vmatprep.mubr.msk.bf16.mxu1 %vm298_vm1, %v2764_v47  ;;  %v2753_v0 = vld [vmem:[#allocation2 + $0x11d] sm:$0xff]  ;;  %v3016_v59 = vld [vmem:[#allocation2 + $0x26] sm:$0xff]  ;;  %v5614_v12 = vpack.c.bf16 %v2459_v56, %v2458_v40 }
 0x110   : > { %v1189_v13 = vpop.f32.mrf.mxu1  ;;  %v3343_v40 = vld [vmem:[#allocation2 + $0x108] sm:$0xff] }
 0x111   : > { %v5584_v15 = vadd.f32 %v1189_v13, %v977_v3  ;;  %v4624_v25 = vpop.f32.mrf.mxu0  ;;  %v3017_v3 = vld [vmem:[#allocation2 + $0x2e] sm:$0xff] }
 0x112   : > { %v4658_v7 = vpop.f32.mrf.mxu1 }
 0x113   : > { %v5586_v19 = vadd.f32 %v4658_v7, %v4624_v25  ;;  %v980_v23 = vpop.f32.mrf.mxu0  ;;  %v2769_v25 = vpack.c.bf16 %v2753_v0, %v2752_v8  ;;  %v3048_v7 = vpack.c.bf16 %v3017_v3, %v3016_v59  ;;  %v3900_v59 = vsel %vm875_vm0, %v5511_v39, 0  ;;  %v3022_v39 = vld [vmem:[#allocation2 + $0x56] sm:$0xff] }
 0x114   : > { %v1192_v20 = vpop.f32.mrf.mxu1 }
 0x115   : > { %v5588_v26 = vadd.f32 %v1192_v20, %v980_v23  ;;  %v4627_v29 = vpop.f32.mrf.mxu0  ;;  %4830 = vmatmul.mubr.msk.bf16.gmra.mxu0 %vm298_vm1, %v5476_v1 }
 0x116   : > { %v4661_v30 = vpop.f32.mrf.mxu1  ;;  %4864 = vmatmul.mubr.msk.bf16.gmra.mxu1 %vm298_vm1, %v2765_v18  ;;  %4833 = vmatprep.mubr.msk.bf16.mxu0 %vm298_vm1, %v5484_v14 }
 0x117   : > { %v5595_v31 = vadd.f32 %v4661_v30, %v4627_v29  ;;  %v993_v33 = vpop.f32.mrf.mxu0  ;;  %4867 = vmatprep.mubr.msk.bf16.mxu1 %vm298_vm1, %v2766_v24 }
 0x118   : > { %v1205_v36 = vpop.f32.mrf.mxu1 }
 0x119   : > { %v5598_v42 = vadd.f32 %v1205_v36, %v993_v33  ;;  %v4628_v43 = vpop.f32.mrf.mxu0 }
 0x11a   : > { %v4662_v1 = vpop.f32.mrf.mxu1 }
 0x11b   : > { %v5600_v45 = vadd.f32 %v4662_v1, %v4628_v43  ;;  %v996_v48 = vpop.f32.mrf.mxu0  ;;  %v3352_v43 = vld [vmem:[#allocation2 + $0x119] sm:$0xff] }
 0x11c   : > { %v1208_v14 = vpop.f32.mrf.mxu1  ;;  %v3354_v8 = vpack.c.bf16 %v3352_v43, %v3351_v37 }
 0x11d   : > { %v5602_v51 = vadd.f32 %v1208_v14, %v996_v48  ;;  %v4631_v53 = vpop.f32.mrf.mxu0  ;;  %4834 = vmatmul.mubr.msk.bf16.gmra.mxu0 %vm298_vm1, %v5486_v16  ;;  %v3350_v16 = vld [vmem:[#allocation2 + $0x109] sm:$0xff] }
 0x11e   : > { %v4665_v11 = vpop.f32.mrf.mxu1  ;;  %4868 = vmatmul.mubr.msk.bf16.gmra.mxu1 %vm298_vm1, %v2767_v44  ;;  %4837 = vmatprep.mubr.msk.bf16.mxu0 %vm298_vm1, %v5494_v28  ;;  %v3353_v24 = vpack.c.bf16 %v3350_v16, %v3349_v6  ;;  %v3020_v44 = vld [vmem:[#allocation2 + $0x46] sm:$0xff]  ;;  %v3021_v48 = vld [vmem:[#allocation2 + $0x4e] sm:$0xff]  ;;  %v3421_v6 = vsel %vm875_vm0, %v5517_v2, 0 }
 0x11f   : > { %v5609_v47 = vadd.f32 %v4665_v11, %v4631_v53  ;;  %v1009_v52 = vpop.f32.mrf.mxu0  ;;  %4871 = vmatprep.mubr.msk.bf16.mxu1 %vm298_vm1, %v2768_v49  ;;  %v3049_v53 = vpack.c.bf16 %v3019_v34, %v3018_v27  ;;  %v3342_v11 = vld [vmem:[#allocation2 + $0x100] sm:$0xff]  ;;  %v3050_v3 = vpack.c.bf16 %v3021_v48, %v3020_v44  ;;  %v3025_v27 = vld [vmem:[#allocation2 + $0x6e] sm:$0xff] }
 0x120   : > { %v1221_v4 = vpop.f32.mrf.mxu1  ;;  %v3346_v16 = vpack.c.bf16 %v3343_v40, %v3342_v11 }
 0x121   : > { %v5612_v13 = vadd.f32 %v1221_v4, %v1009_v52  ;;  %v4632_v9 = vpop.f32.mrf.mxu0 }
 0x122   : > { %v4666_v28 = vpop.f32.mrf.mxu1 }
 0x123   : > { %v5616_v18 = vadd.f32 %v4666_v28, %v4632_v9  ;;  %v1012_v23 = vpop.f32.mrf.mxu0 }
 0x124   : > { %v1224_v20 = vpop.f32.mrf.mxu1 }
 0x125   : > { %v5618_v29 = vadd.f32 %v1224_v20, %v1012_v23  ;;  %v4635_v30 = vpop.f32.mrf.mxu0  ;;  %4838 = vmatmul.mubr.msk.bf16.gmra.mxu0 %vm298_vm1, %v5614_v12  ;;  %v3344_v20 = vld [vmem:[#allocation2 + $0x110] sm:$0xff] }
 0x126   : > { %v4669_v33 = vpop.f32.mrf.mxu1  ;;  %4872 = vmatmul.mubr.msk.bf16.gmra.mxu1 %vm298_vm1, %v2769_v25  ;;  %4877 = vmatprep.mubr.msk.bf16.mxu0 %vm298_vm1, %v3048_v7  ;;  %v4398_v25 = vld [vmem:[%s6420_s3 + $0x4] sm:$0x3] }
 0x127   : > { %v5624_v36 = vadd.f32 %v4669_v33, %v4635_v30  ;;  %v1025_v38 = vpop.f32.mrf.mxu0  ;;  %4911 = vmatprep.mubr.msk.bf16.mxu1 %vm298_vm1, %v3353_v24  ;;  %v3023_v24 = vld [vmem:[#allocation2 + $0x5e] sm:$0xff]  ;;  %v3024_v33 = vld [vmem:[#allocation2 + $0x66] sm:$0xff] }
 0x128   : > { %v1237_v1 = vpop.f32.mrf.mxu1  ;;  %v3345_v30 = vld [vmem:[#allocation2 + $0x118] sm:$0xff]  ;;  %v3051_v43 = vpack.c.bf16 %v3023_v24, %v3022_v39 }
 0x129   : > { %v5627_v49 = vadd.f32 %v1237_v1, %v1025_v38  ;;  %v4636_v14 = vpop.f32.mrf.mxu0 }
 0x12a   : > { %v4670_v56 = vpop.f32.mrf.mxu1 }
 0x12b   : > { %v5629_v52 = vadd.f32 %v4670_v56, %v4636_v14  ;;  %v1028_v0 = vpop.f32.mrf.mxu0  ;;  %v3347_v14 = vpack.c.bf16 %v3345_v30, %v3344_v20 }
 0x12c   : > { %v1240_v4 = vpop.f32.mrf.mxu1 }
 0x12d   : > { %v5635_v9 = vadd.f32 %v1240_v4, %v1028_v0  ;;  %v4675_v28 = vpop.f32.mrf.mxu0  ;;  %4878 = vmatmul.mubr.msk.bf16.vlgmr.msra.gmra.mxu0 %vm298_vm1, %v3049_v53  ;;  %v3052_v53 = vpack.c.bf16 %v3025_v27, %v3024_v33 }
 0x12e   : > { %v1516_v7 = vadd.f32 %v4675_v28, %v5519_v60  ;;  %v4709_v23 = vpop.f32.mrf.mxu1  ;;  %4912 = vmatmul.mubr.msk.bf16.vlgmr.msra.gmra.mxu1 %vm298_vm1, %v3354_v8  ;;  %4958 = vmatpush3.bf16.msra.mxu0 %v3900_v59  ;;  %v3486_v8 = vsel %vm875_vm0, %v4398_v25, 0  ;;  %v4401_v59 = vld [vmem:[%s6420_s3 + $0x6] sm:$0x3] }
 0x12f   : > { %v1387_v2 = vpop.f32.mrf.mxu0  ;;  %4916 = vmatpush3.bf16.msra.mxu1 %v3421_v6  ;;  %4881 = vmatprep.mubr.msk.bf16.mxu0 %vm298_vm1, %v3050_v3  ;;  %v3027_v6 = vld [vmem:[#allocation2 + $0x7e] sm:$0xff] }
 0x130   : > { %v5644_v34 = vadd.f32 %v4709_v23, %v1516_v7  ;;  %v1514_v38 = vadd.f32 %v1387_v2, %v5526_v50  ;;  %v1681_v37 = vpop.f32.mrf.mxu1  ;;  %4917 = vmatprep.mubr.msk.bf16.mxu1 %vm298_vm1, %v3346_v16  ;;  %4974 = vmatprep.subr.msk.bf16.mxu1 %vm875_vm0, %v4398_v25  ;;  %v3474_v16 = vld [vmem:[#allocation2 + $0x112] sm:$0xff]  ;;  %v3475_v25 = vld [vmem:[#allocation2 + $0x11a] sm:$0xff]  ;;  %v3028_v7 = vld [vmem:[#allocation2 + $0x86] sm:$0xff] }
 0x131   : > { %v4676_v60 = vpop.f32.mrf.mxu0  ;;  %v3029_v23 = vld [vmem:[#allocation2 + $0x8e] sm:$0xff] }
 0x132   : > { %v5649_v1 = vadd.f32 %v1681_v37, %v1514_v38  ;;  %v1517_v44 = vadd.f32 %v4676_v60, %v5530_v55  ;;  %v4710_v48 = vpop.f32.mrf.mxu1  ;;  %v3477_v38 = vpack.c.bf16 %v3475_v25, %v3474_v16  ;;  %v3054_v37 = vpack.c.bf16 %v3029_v23, %v3028_v7  ;;  %v3611_v16 = vld [vmem:[#allocation2 + $0x11b] sm:$0xff] }
 0x133   : > { %v1390_v11 = vpop.f32.mrf.mxu0 }
 0x134   : > { %v5652_v40 = vadd.f32 %v4710_v48, %v1517_v44  ;;  %v1515_v56 = vadd.f32 %v1390_v11, %v5532_v58  ;;  %v1684_v50 = vpop.f32.mrf.mxu1  ;;  %v3026_v58 = vld [vmem:[#allocation2 + $0x76] sm:$0xff] }
 0x135   : > { %v4679_v0 = vpop.f32.mrf.mxu0  ;;  %4882 = vmatmul.mubr.msk.bf16.gmra.mxu0 %vm298_vm1, %v3051_v43  ;;  %v3053_v2 = vpack.c.bf16 %v3027_v6, %v3026_v58  ;;  %v3610_v6 = vld [vmem:[#allocation2 + $0x113] sm:$0xff] }
 0x136   : > { %v5660_v3 = vadd.f32 %v1684_v50, %v1515_v56  ;;  %v1520_v55 = vadd.f32 %v4679_v0, %v5539_v61  ;;  %v4713_v4 = vpop.f32.mrf.mxu1  ;;  %4918 = vmatmul.mubr.msk.bf16.vlgmr.msra.gmra.mxu1 %vm298_vm1, %v3347_v14  ;;  %4885 = vmatprep.mubr.msk.bf16.mxu0 %vm298_vm1, %v3052_v53  ;;  %v4404_v14 = vld [vmem:[%s6420_s3 + $0x8] sm:$0x3]  ;;  %v3031_v56 = vld [vmem:[#allocation2 + $0x9e] sm:$0xff]  ;;  %v3544_v0 = vld [vmem:[#allocation2 + $0x12a] sm:$0xff] }
 0x137   : > { %v1403_v28 = vpop.f32.mrf.mxu0  ;;  %4922 = vmatpush3.bf16.msra.mxu1 %v3486_v8  ;;  %4923 = vmatprep.mubr.msk.bf16.mxu1 %vm298_vm1, %v5397_v46  ;;  %v3543_v50 = vld [vmem:[#allocation2 + $0x122] sm:$0xff] }
 0x138   : > { %v5667_v39 = vadd.f32 %v4713_v4, %v1520_v55  ;;  %v1518_v61 = vadd.f32 %v1403_v28, %v5542_v5  ;;  %v1697_v24 = vpop.f32.mrf.mxu1  ;;  %4975 = vmatprep.subr.msk.bf16.mxu1 %vm875_vm0, %v4401_v59  ;;  %v3555_v5 = vsel %vm875_vm0, %v4401_v59, 0  ;;  %v3032_v59 = vld [vmem:[#allocation2 + $0xa6] sm:$0xff]  ;;  %v3033_v55 = vld [vmem:[#allocation2 + $0xae] sm:$0xff] }
 0x139   : > { %v4680_v20 = vpop.f32.mrf.mxu0 }
 0x13a   : > { %v5671_v30 = vadd.f32 %v1697_v24, %v1518_v61  ;;  %v1521_v33 = vadd.f32 %v4680_v20, %v5544_v10  ;;  %v4714_v27 = vpop.f32.mrf.mxu1  ;;  %v3546_v24 = vpack.c.bf16 %v3544_v0, %v3543_v50  ;;  %v3056_v20 = vpack.c.bf16 %v3033_v55, %v3032_v59 }
 0x13b   : > { %v1406_v46 = vpop.f32.mrf.mxu0 }
 0x13c   : > { %v5674_v60 = vadd.f32 %v4714_v27, %v1521_v33  ;;  %v1519_v43 = vadd.f32 %v1406_v46, %v5546_v17  ;;  %v1700_v44 = vpop.f32.mrf.mxu1  ;;  %v3030_v17 = vld [vmem:[#allocation2 + $0x96] sm:$0xff]  ;;  %v3614_v33 = vpack.c.bf16 %v3611_v16, %v3610_v6 }
 0x13d   : > { %v4683_v48 = vpop.f32.mrf.mxu0  ;;  %4886 = vmatmul.mubr.msk.bf16.gmra.mxu0 %vm298_vm1, %v3053_v2  ;;  %v3055_v25 = vpack.c.bf16 %v3031_v56, %v3030_v17  ;;  %v3036_v17 = vld [vmem:[#allocation2 + $0xc6] sm:$0xff]  ;;  %v3037_v56 = vld [vmem:[#allocation2 + $0xce] sm:$0xff] }
 0x13e   : > { %v5682_v53 = vadd.f32 %v1700_v44, %v1519_v43  ;;  %v1524_v10 = vadd.f32 %v4683_v48, %v5553_v22  ;;  %v4717_v11 = vpop.f32.mrf.mxu1  ;;  %4924 = vmatmul.mubr.msk.bf16.vlgmr.msra.gmra.mxu1 %vm298_vm1, %v3477_v38  ;;  %4889 = vmatprep.mubr.msk.bf16.mxu0 %vm298_vm1, %v3054_v37  ;;  %v3624_v37 = vsel %vm875_vm0, %v4404_v14, 0  ;;  %v4407_v43 = vld [vmem:[%s6420_s3 + $0xa] sm:$0x3]  ;;  %v3035_v48 = vld [vmem:[#allocation2 + $0xbe] sm:$0xff]  ;;  %v3058_v16 = vpack.c.bf16 %v3037_v56, %v3036_v17 }
 0x13f   : > { %v1419_v8 = vpop.f32.mrf.mxu0  ;;  %4928 = vmatpush3.bf16.msra.mxu1 %v3555_v5  ;;  %4929 = vmatprep.mubr.msk.bf16.mxu1 %vm298_vm1, %v3477_v38 }
 0x140   : > { %v5688_v4 = vadd.f32 %v4717_v11, %v1524_v10  ;;  %v1522_v58 = vadd.f32 %v1419_v8, %v5556_v32  ;;  %v1713_v22 = vpop.f32.mrf.mxu1  ;;  %4976 = vmatprep.subr.msk.bf16.mxu1 %vm875_vm0, %v4404_v14  ;;  %v3612_v10 = vld [vmem:[#allocation2 + $0x123] sm:$0xff]  ;;  %v3613_v11 = vld [vmem:[#allocation2 + $0x12b] sm:$0xff] }
 0x141   : > { %v4684_v28 = vpop.f32.mrf.mxu0  ;;  %v3615_v6 = vpack.c.bf16 %v3613_v11, %v3612_v10 }
 0x142   : > { %v5692_v7 = vadd.f32 %v1713_v22, %v1522_v58  ;;  %v1525_v23 = vadd.f32 %v4684_v28, %v5558_v35  ;;  %v4718_v61 = vpop.f32.mrf.mxu1 }
 0x143   : > { %v1422_v2 = vpop.f32.mrf.mxu0 }
 0x144   : > { %v5695_v27 = vadd.f32 %v4718_v61, %v1525_v23  ;;  %v1523_v32 = vadd.f32 %v1422_v2, %v5560_v41  ;;  %v1716_v38 = vpop.f32.mrf.mxu1  ;;  %v3034_v41 = vld [vmem:[#allocation2 + $0xb6] sm:$0xff] }
 0x145   : > { %v4687_v46 = vpop.f32.mrf.mxu0  ;;  %4890 = vmatmul.mubr.msk.bf16.gmra.mxu0 %vm298_vm1, %v3055_v25  ;;  %v3057_v59 = vpack.c.bf16 %v3035_v48, %v3034_v41 }
 0x146   : > { %v5703_v35 = vadd.f32 %v1716_v38, %v1523_v32  ;;  %v1528_v44 = vadd.f32 %v4687_v46, %v5567_v63  ;;  %v4721_v5 = vpop.f32.mrf.mxu1  ;;  %4930 = vmatmul.mubr.msk.bf16.vlgmr.msra.gmra.mxu1 %vm298_vm1, %v3546_v24  ;;  %4893 = vmatprep.mubr.msk.bf16.mxu0 %vm298_vm1, %v3056_v20  ;;  %v4410_v20 = vld [vmem:[%s6420_s3 + $0xc] sm:$0x3]  ;;  %v3039_v32 = vld [vmem:[#allocation2 + $0xde] sm:$0xff] }
 0x147   : > { %v1435_v14 = vpop.f32.mrf.mxu0  ;;  %4934 = vmatpush3.bf16.msra.mxu1 %v3624_v37  ;;  %4935 = vmatprep.mubr.msk.bf16.mxu1 %vm298_vm1, %v3614_v33  ;;  %v3681_v38 = vld [vmem:[#allocation2 + $0x124] sm:$0xff]  ;;  %v3682_v46 = vld [vmem:[#allocation2 + $0x12c] sm:$0xff] }
 0x148   : > { %v5709_v50 = vadd.f32 %v4721_v5, %v1528_v44  ;;  %v1526_v8 = vadd.f32 %v1435_v14, %v5570_v54  ;;  %v1729_v63 = vpop.f32.mrf.mxu1  ;;  %4977 = vmatprep.subr.msk.bf16.mxu1 %vm875_vm0, %v4407_v43  ;;  %v3693_v54 = vsel %vm875_vm0, %v4407_v43, 0  ;;  %v3040_v43 = vld [vmem:[#allocation2 + $0xe6] sm:$0xff]  ;;  %v3041_v44 = vld [vmem:[#allocation2 + $0xee] sm:$0xff]  ;;  %v3684_v56 = vpack.c.bf16 %v3682_v46, %v3681_v38 }
 0x149   : > { %v4688_v0 = vpop.f32.mrf.mxu0 }
 0x14a   : > { %v5713_v55 = vadd.f32 %v1729_v63, %v1526_v8  ;;  %v1529_v58 = vadd.f32 %v4688_v0, %v5572_v57  ;;  %v4722_v22 = vpop.f32.mrf.mxu1  ;;  %v3060_v8 = vpack.c.bf16 %v3041_v44, %v3040_v43 }
 0x14b   : > { %v1438_v28 = vpop.f32.mrf.mxu0 }
 0x14c   : > { %v5716_v25 = vadd.f32 %v4722_v22, %v1529_v58  ;;  %v1527_v23 = vadd.f32 %v1438_v28, %v5574_v62  ;;  %v1732_v61 = vpop.f32.mrf.mxu1  ;;  %v3038_v62 = vld [vmem:[#allocation2 + $0xd6] sm:$0xff]  ;;  %v4413_v22 = vld [vmem:[%s6420_s3 + $0xe] sm:$0x3]  ;;  %v3043_v28 = vld [vmem:[#allocation2 + $0xfe] sm:$0xff] }
 0x14d   : > { %v4691_v24 = vpop.f32.mrf.mxu0  ;;  %4894 = vmatmul.mubr.msk.bf16.gmra.mxu0 %vm298_vm1, %v3057_v59  ;;  %v3059_v10 = vpack.c.bf16 %v3039_v32, %v3038_v62  ;;  %v3817_v62 = vld [vmem:[#allocation2 + $0x125] sm:$0xff]  ;;  %v3818_v32 = vld [vmem:[#allocation2 + $0x12d] sm:$0xff] }
 0x14e   : > { %v5724_v2 = vadd.f32 %v1732_v61, %v1527_v23  ;;  %v1532_v57 = vadd.f32 %v4691_v24, %v5581_v21  ;;  %v4725_v33 = vpop.f32.mrf.mxu1  ;;  %4936 = vmatmul.mubr.msk.bf16.vlgmr.msra.gmra.mxu1 %vm298_vm1, %v3615_v6  ;;  %4897 = vmatprep.mubr.msk.bf16.mxu0 %vm298_vm1, %v3058_v16  ;;  %v3750_v23 = vld [vmem:[#allocation2 + $0x134] sm:$0xff]  ;;  %v3044_v24 = vld [vmem:[#allocation2 + $0x106] sm:$0xff] }
 0x14f   : > { %v1451_v37 = vpop.f32.mrf.mxu0  ;;  %4940 = vmatpush3.bf16.msra.mxu1 %v3693_v54  ;;  %4941 = vmatprep.mubr.msk.bf16.mxu1 %vm298_vm1, %v5614_v12  ;;  %v3751_v54 = vld [vmem:[#allocation2 + $0x13c] sm:$0xff] }
 0x150   : > { %v5731_v5 = vadd.f32 %v4725_v33, %v1532_v57  ;;  %v1530_v21 = vadd.f32 %v1451_v37, %v5584_v15  ;;  %v1745_v41 = vpop.f32.mrf.mxu1  ;;  %4978 = vmatprep.subr.msk.bf16.mxu1 %vm875_vm0, %v4410_v20  ;;  %v3762_v15 = vsel %vm875_vm0, %v4410_v20, 0  ;;  %v3045_v20 = vld [vmem:[#allocation2 + $0x10e] sm:$0xff] }
 0x151   : > { %v4692_v48 = vpop.f32.mrf.mxu0 }
 0x152   : > { %v5735_v14 = vadd.f32 %v1745_v41, %v1530_v21  ;;  %v1533_v11 = vadd.f32 %v4692_v48, %v5586_v19  ;;  %v4726_v17 = vpop.f32.mrf.mxu1  ;;  %v3753_v21 = vpack.c.bf16 %v3751_v54, %v3750_v23  ;;  %v3062_v41 = vpack.c.bf16 %v3045_v20, %v3044_v24 }
 0x153   : > { %v1454_v12 = vpop.f32.mrf.mxu0 }
 0x154   : > { %v5738_v63 = vadd.f32 %v4726_v17, %v1533_v11  ;;  %v1531_v0 = vadd.f32 %v1454_v12, %v5588_v26  ;;  %v1748_v59 = vpop.f32.mrf.mxu1  ;;  %v3042_v26 = vld [vmem:[#allocation2 + $0xf6] sm:$0xff] }
 0x155   : > { %v4695_v58 = vpop.f32.mrf.mxu0  ;;  %4898 = vmatmul.mubr.msk.bf16.gmra.mxu0 %vm298_vm1, %v3059_v10  ;;  %v3061_v37 = vpack.c.bf16 %v3043_v28, %v3042_v26  ;;  %v3821_v10 = vpack.c.bf16 %v3818_v32, %v3817_v62 }
 0x156   : > { %v5746_v6 = vadd.f32 %v1748_v59, %v1531_v0  ;;  %v1536_v19 = vadd.f32 %v4695_v58, %v5595_v31  ;;  %v4729_v16 = vpop.f32.mrf.mxu1  ;;  %4942 = vmatmul.mubr.msk.bf16.vlgmr.msra.gmra.mxu1 %vm298_vm1, %v3684_v56  ;;  %4901 = vmatprep.mubr.msk.bf16.mxu0 %vm298_vm1, %v3060_v8  ;;  %v3046_v59 = vld [vmem:[#allocation2 + $0x116] sm:$0xff] }
 0x157   : > { %v1467_v61 = vpop.f32.mrf.mxu0  ;;  %4946 = vmatpush3.bf16.msra.mxu1 %v3762_v15  ;;  %4947 = vmatprep.mubr.msk.bf16.mxu1 %vm298_vm1, %v3684_v56  ;;  %v3831_v56 = vsel %vm875_vm0, %v4413_v22, 0  ;;  %v3047_v15 = vld [vmem:[#allocation2 + $0x11e] sm:$0xff]  ;;  %v3819_v58 = vld [vmem:[#allocation2 + $0x135] sm:$0xff] }
 0x158   : > { %v5752_v57 = vadd.f32 %v4729_v16, %v1536_v19  ;;  %v1534_v33 = vadd.f32 %v1467_v61, %v5598_v42  ;;  %v1761_v31 = vpop.f32.mrf.mxu1  ;;  %4979 = vmatprep.subr.msk.bf16.mxu1 %vm875_vm0, %v4413_v22  ;;  %v3886_v22 = vld [vmem:[#allocation2 + $0x126] sm:$0xff]  ;;  %v3887_v16 = vld [vmem:[#allocation2 + $0x12e] sm:$0xff]  ;;  %v3063_v61 = vpack.c.bf16 %v3047_v15, %v3046_v59 }
 0x159   : > { %v4696_v38 = vpop.f32.mrf.mxu0 }
 0x15a   : > { %v5756_v46 = vadd.f32 %v1761_v31, %v1534_v33  ;;  %v1537_v43 = vadd.f32 %v4696_v38, %v5600_v45  ;;  %v4730_v44 = vpop.f32.mrf.mxu1  ;;  %v3890_v31 = vpack.c.bf16 %v3887_v16, %v3886_v22 }
 0x15b   : > { %v1470_v48 = vpop.f32.mrf.mxu0 }
 0x15c   : > { %v5759_v11 = vadd.f32 %v4730_v44, %v1537_v43  ;;  %v1535_v42 = vadd.f32 %v1470_v48, %v5602_v51  ;;  %v1764_v17 = vpop.f32.mrf.mxu1  ;;  %v3820_v51 = vld [vmem:[#allocation2 + $0x13d] sm:$0xff] }
 0x15d   : > { %v4699_v8 = vpop.f32.mrf.mxu0  ;;  %4902 = vmatmul.mubr.msk.bf16.gmra.mxu0 %vm298_vm1, %v3061_v37  ;;  %v3822_v33 = vpack.c.bf16 %v3820_v51, %v3819_v58 }
 0x15e   : > { %v5764_v12 = vadd.f32 %v1764_v17, %v1535_v42  ;;  %v1540_v0 = vadd.f32 %v4699_v8, %v5609_v47  ;;  %v4733_v45 = vpop.f32.mrf.mxu1  ;;  %4948 = vmatmul.mubr.msk.bf16.vlgmr.msra.gmra.mxu1 %vm298_vm1, %v3753_v21  ;;  %4905 = vmatprep.mubr.msk.bf16.mxu0 %vm298_vm1, %v3062_v41  ;;  %v3889_v41 = vld [vmem:[#allocation2 + $0x13e] sm:$0xff] }
 0x15f   : > { %v1483_v19 = vpop.f32.mrf.mxu0  ;;  %4952 = vmatpush3.bf16.msra.mxu1 %v3831_v56  ;;  %4953 = vmatprep.mubr.msk.bf16.mxu1 %vm298_vm1, %v3821_v10 }
 0x160   : > { %v5770_v26 = vadd.f32 %v4733_v45, %v1540_v0  ;;  %v1538_v28 = vadd.f32 %v1483_v19, %v5612_v13  ;;  %v1777_v47 = vpop.f32.mrf.mxu1 }
 0x161   : > { %v4700_v23 = vpop.f32.mrf.mxu0 }
 0x162   : > { %v5773_v54 = vadd.f32 %v1777_v47, %v1538_v28  ;;  %v1541_v24 = vadd.f32 %v4700_v23, %v5616_v18  ;;  %v4734_v20 = vpop.f32.mrf.mxu1  ;;  %v3888_v18 = vld [vmem:[#allocation2 + $0x136] sm:$0xff] }
 0x163   : > { %v1486_v62 = vpop.f32.mrf.mxu0  ;;  %v3891_v56 = vpack.c.bf16 %v3889_v41, %v3888_v18 }
 0x164   : > { %v5776_v32 = vadd.f32 %v4734_v20, %v1541_v24  ;;  %v1539_v38 = vadd.f32 %v1486_v62, %v5618_v29  ;;  %v1780_v37 = vpop.f32.mrf.mxu1 }
 0x165   : > { %v4703_v43 = vpop.f32.mrf.mxu0  ;;  %4906 = vmatmul.mubr.msk.bf16.gmra.mxu0 %vm298_vm1, %v3063_v61 }
 0x166   : > { %v5780_v13 = vadd.f32 %v1780_v37, %v1539_v38  ;;  %v1544_v44 = vadd.f32 %v4703_v43, %v5624_v36  ;;  %v4737_v21 = vpop.f32.mrf.mxu1  ;;  %4954 = vmatmul.mubr.msk.bf16.vlgmr.msra.gmra.mxu1 %vm298_vm1, %v3822_v33  ;;  %4959 = vmatprep.mubr.msk.bf16.mxu0 %vm298_vm1, %v3890_v31 }
 0x167   : > { %v1499_v48 = vpop.f32.mrf.mxu0 }
 0x168   : > { %v5785_v10 = vadd.f32 %v4737_v21, %v1544_v44  ;;  %v1542_v29 = vadd.f32 %v1499_v48, %v5627_v49  ;;  %v1793_v42 = vpop.f32.mrf.mxu1 }
 0x169   : > { %v4704_v17 = vpop.f32.mrf.mxu0 }
 0x16a   : > { %v5788_v8 = vadd.f32 %v1793_v42, %v1542_v29  ;;  %v1545_v0 = vadd.f32 %v4704_v17, %v5629_v52  ;;  %v4738_v36 = vpop.f32.mrf.mxu1 }
 0x16b   : > { %v1502_v45 = vpop.f32.mrf.mxu0 }
 0x16c   : > { %v5791_v59 = vadd.f32 %v4738_v36, %v1545_v0  ;;  %v1543_v15 = vadd.f32 %v1502_v45, %v5635_v9  ;;  %v1796_v58 = vpop.f32.mrf.mxu1 }
 0x16d   : > { %v4743_v19 = vpop.f32.mrf.mxu0  ;;  %4960 = vmatmul.mubr.msk.bf16.vlgmr.msra.gmra.mxu0 %vm298_vm1, %v3891_v56 }
 0x16e   : > { %v5795_v51 = vadd.f32 %v1796_v58, %v1543_v15  ;;  %v2104_v49 = vadd.f32 %v4743_v19, %v5644_v34  ;;  %v4777_v22 = vpop.f32.mrf.mxu1 }
 0x16f   : > { %v1975_v16 = vpop.f32.mrf.mxu0 }
 0x170   : > { %v5798_v28 = vadd.f32 %v4777_v22, %v2104_v49  ;;  %v2102_v52 = vadd.f32 %v1975_v16, %v5649_v1  ;;  %v2269_v47 = vpop.f32.mrf.mxu1 }
 0x171   : > { %v4744_v23 = vpop.f32.mrf.mxu0 }
 0x172   : > { %v5801_v61 = vadd.f32 %v2269_v47, %v2102_v52  ;;  %v2105_v9 = vadd.f32 %v4744_v23, %v5652_v40  ;;  %v4778_v24 = vpop.f32.mrf.mxu1 }
 0x173   : > { %v1978_v20 = vpop.f32.mrf.mxu0 }
 0x174   : > { %v5804_v33 = vadd.f32 %v4778_v24, %v2105_v9  ;;  %v2103_v31 = vadd.f32 %v1978_v20, %v5660_v3  ;;  %v2272_v62 = vpop.f32.mrf.mxu1 }
 0x175   : > { %v4747_v34 = vpop.f32.mrf.mxu0 }
 0x176   : > { %v5807_v38 = vadd.f32 %v2272_v62, %v2103_v31  ;;  %v2108_v37 = vadd.f32 %v4747_v34, %v5667_v39  ;;  %v4781_v43 = vpop.f32.mrf.mxu1 }
 0x177   : > { %v1991_v1 = vpop.f32.mrf.mxu0 }
 0x178   : > { %v5810_v44 = vadd.f32 %v4781_v43, %v2108_v37  ;;  %v2106_v21 = vadd.f32 %v1991_v1, %v5671_v30  ;;  %v2285_v18 = vpop.f32.mrf.mxu1 }
 0x179   : > { %v4748_v40 = vpop.f32.mrf.mxu0 }
 0x17a   : > { %v5813_v41 = vadd.f32 %v2285_v18, %v2106_v21  ;;  %v2109_v48 = vadd.f32 %v4748_v40, %v5674_v60  ;;  %v4782_v29 = vpop.f32.mrf.mxu1 }
 0x17b   : > { %v1994_v3 = vpop.f32.mrf.mxu0 }
 0x17c   : > { %v5816_v42 = vadd.f32 %v4782_v29, %v2109_v48  ;;  %v2107_v17 = vadd.f32 %v1994_v3, %v5682_v53  ;;  %v2288_v56 = vpop.f32.mrf.mxu1 }
 0x17d   : > { %v4751_v39 = vpop.f32.mrf.mxu0 }
 0x17e   : > { %v5819_v0 = vadd.f32 %v2288_v56, %v2107_v17  ;;  %v2112_v36 = vadd.f32 %v4751_v39, %v5688_v4  ;;  %v4785_v45 = vpop.f32.mrf.mxu1 }
 0x17f   : > { %v2007_v30 = vpop.f32.mrf.mxu0 }
 0x180   : > { %v5822_v15 = vadd.f32 %v4785_v45, %v2112_v36  ;;  %v2110_v58 = vadd.f32 %v2007_v30, %v5692_v7  ;;  %v2301_v19 = vpop.f32.mrf.mxu1 }
 0x181   : > { %v4752_v60 = vpop.f32.mrf.mxu0 }
 0x182   : > { %v5825_v49 = vadd.f32 %v2301_v19, %v2110_v58  ;;  %v2113_v22 = vadd.f32 %v4752_v60, %v5695_v27  ;;  %v4786_v16 = vpop.f32.mrf.mxu1 }
 0x183   : > { %v2010_v53 = vpop.f32.mrf.mxu0 }
 0x184   : > { %v5828_v52 = vadd.f32 %v4786_v16, %v2113_v22  ;;  %v2111_v47 = vadd.f32 %v2010_v53, %v5703_v35  ;;  %v2304_v23 = vpop.f32.mrf.mxu1 }
 0x185   : > { %v4755_v4 = vpop.f32.mrf.mxu0 }
 0x186   : > { %v5831_v9 = vadd.f32 %v2304_v23, %v2111_v47  ;;  %v2116_v24 = vadd.f32 %v4755_v4, %v5709_v50  ;;  %v4789_v20 = vpop.f32.mrf.mxu1 }
 0x187   : > { %v2023_v7 = vpop.f32.mrf.mxu0 }
 0x188   : > { %v5834_v31 = vadd.f32 %v4789_v20, %v2116_v24  ;;  %v2114_v62 = vadd.f32 %v2023_v7, %v5713_v55  ;;  %v2317_v34 = vpop.f32.mrf.mxu1 }
 0x189   : > { %v4756_v27 = vpop.f32.mrf.mxu0 }
 0x18a   : > { %v5837_v37 = vadd.f32 %v2317_v34, %v2114_v62  ;;  %v2117_v43 = vadd.f32 %v4756_v27, %v5716_v25  ;;  %v4790_v1 = vpop.f32.mrf.mxu1 }
 0x18b   : > { %v2026_v35 = vpop.f32.mrf.mxu0 }
 0x18c   : > { %v5840_v21 = vadd.f32 %v4790_v1, %v2117_v43  ;;  %v2115_v18 = vadd.f32 %v2026_v35, %v5724_v2  ;;  %v2320_v40 = vpop.f32.mrf.mxu1 }
 0x18d   : > { %v4759_v50 = vpop.f32.mrf.mxu0 }
 0x18e   : > { %v5843_v48 = vadd.f32 %v2320_v40, %v2115_v18  ;;  %v2120_v29 = vadd.f32 %v4759_v50, %v5731_v5  ;;  %v4793_v3 = vpop.f32.mrf.mxu1 }
 0x18f   : > { %v2039_v55 = vpop.f32.mrf.mxu0 }
 0x190   : > { %v5846_v17 = vadd.f32 %v4793_v3, %v2120_v29  ;;  %v2118_v56 = vadd.f32 %v2039_v55, %v5735_v14  ;;  %v2333_v39 = vpop.f32.mrf.mxu1 }
 0x191   : > { %v4760_v25 = vpop.f32.mrf.mxu0 }
 0x192   : > { %v5849_v36 = vadd.f32 %v2333_v39, %v2118_v56  ;;  %v2121_v45 = vadd.f32 %v4760_v25, %v5738_v63  ;;  %v4794_v30 = vpop.f32.mrf.mxu1 }
 0x193   : > { %v2042_v2 = vpop.f32.mrf.mxu0 }
 0x194   : > { %v5852_v58 = vadd.f32 %v4794_v30, %v2121_v45  ;;  %v2119_v19 = vadd.f32 %v2042_v2, %v5746_v6  ;;  %v2336_v60 = vpop.f32.mrf.mxu1 }
 0x195   : > { %v4763_v5 = vpop.f32.mrf.mxu0 }
 0x196   : > { %6423 = vst [vmem:[#allocation3_spill] sm:$0xff] %v5852_v58  ;;  %v5855_v22 = vadd.f32 %v2336_v60, %v2119_v19  ;;  %v2124_v16 = vadd.f32 %v4763_v5, %v5752_v57  ;;  %v4797_v53 = vpop.f32.mrf.mxu1 }
 0x197   : > { %v2055_v14 = vpop.f32.mrf.mxu0 }
 0x198   : > { %6424 = vst [vmem:[#allocation4_spill] sm:$0xff] %v5855_v22  ;;  %v5858_v47 = vadd.f32 %v4797_v53, %v2124_v16  ;;  %v2122_v23 = vadd.f32 %v2055_v14, %v5756_v46  ;;  %v2349_v4 = vpop.f32.mrf.mxu1 }
 0x199   : > { %v4764_v63 = vpop.f32.mrf.mxu0 }
 0x19a   : > { %6425 = vst [vmem:[#allocation5_spill] sm:$0xff] %v5858_v47  ;;  %v5861_v24 = vadd.f32 %v2349_v4, %v2122_v23  ;;  %v2125_v20 = vadd.f32 %v4764_v63, %v5759_v11  ;;  %v4798_v7 = vpop.f32.mrf.mxu1 }
 0x19b   : > { %v2058_v6 = vpop.f32.mrf.mxu0 }
 0x19c   : > { %6426 = vst [vmem:[#allocation6_spill] sm:$0xff] %v5861_v24  ;;  %v5864_v62 = vadd.f32 %v4798_v7, %v2125_v20  ;;  %v2123_v34 = vadd.f32 %v2058_v6, %v5764_v12  ;;  %v2352_v27 = vpop.f32.mrf.mxu1 }
 0x19d   : > { %v4767_v57 = vpop.f32.mrf.mxu0 }
 0x19e   : > { %6427 = vst [vmem:[#allocation7_spill] sm:$0xff] %v5864_v62  ;;  %v5867_v43 = vadd.f32 %v2352_v27, %v2123_v34  ;;  %v2128_v1 = vadd.f32 %v4767_v57, %v5770_v26  ;;  %v4801_v35 = vpop.f32.mrf.mxu1 }
 0x19f   : > { %v2071_v46 = vpop.f32.mrf.mxu0 }
 0x1a0   : > { %6428 = vst [vmem:[#allocation8_spill] sm:$0xff] %v5867_v43  ;;  %v5870_v18 = vadd.f32 %v4801_v35, %v2128_v1  ;;  %v2126_v40 = vadd.f32 %v2071_v46, %v5773_v54  ;;  %v2365_v50 = vpop.f32.mrf.mxu1 }
 0x1a1   : > { %v4768_v11 = vpop.f32.mrf.mxu0 }
 0x1a2   : > { %6429 = vst [vmem:[#allocation9_spill] sm:$0xff] %v5870_v18  ;;  %v5873_v29 = vadd.f32 %v2365_v50, %v2126_v40  ;;  %v2129_v3 = vadd.f32 %v4768_v11, %v5776_v32  ;;  %v4802_v55 = vpop.f32.mrf.mxu1 }
 0x1a3   : > { %v2074_v12 = vpop.f32.mrf.mxu0 }
 0x1a4   : > { %6430 = vst [vmem:[#allocation10_spill] sm:$0xff] %v5873_v29  ;;  %v5876_v56 = vadd.f32 %v4802_v55, %v2129_v3  ;;  %v2127_v39 = vadd.f32 %v2074_v12, %v5780_v13  ;;  %v2368_v25 = vpop.f32.mrf.mxu1 }
 0x1a5   : > { %v4771_v26 = vpop.f32.mrf.mxu0 }
 0x1a6   : > { %6431 = vst [vmem:[#allocation11_spill] sm:$0xff] %v5876_v56  ;;  %v5879_v45 = vadd.f32 %v2368_v25, %v2127_v39  ;;  %v2132_v30 = vadd.f32 %v4771_v26, %v5785_v10  ;;  %v4805_v2 = vpop.f32.mrf.mxu1 }
 0x1a7   : > { %v2087_v54 = vpop.f32.mrf.mxu0 }
 0x1a8   : > { %6432 = vst [vmem:[#allocation12_spill] sm:$0xff] %v5879_v45  ;;  %v5882_v19 = vadd.f32 %v4805_v2, %v2132_v30  ;;  %v2130_v60 = vadd.f32 %v2087_v54, %v5788_v8  ;;  %v2381_v5 = vpop.f32.mrf.mxu1 }
 0x1a9   : > { %v4772_v32 = vpop.f32.mrf.mxu0 }
 0x1aa   : > { %6433 = vst [vmem:[#allocation13_spill] sm:$0xff] %v5882_v19  ;;  %v5885_v16 = vadd.f32 %v2381_v5, %v2130_v60  ;;  %v2133_v53 = vadd.f32 %v4772_v32, %v5791_v59  ;;  %v4806_v14 = vpop.f32.mrf.mxu1 }
 0x1ab   : > { %v2090_v13 = vpop.f32.mrf.mxu0 }
 0x1ac   : > { %6434 = vst [vmem:[#allocation14_spill] sm:$0xff] %v5885_v16  ;;  %v5888_v23 = vadd.f32 %v4806_v14, %v2133_v53  ;;  %v2131_v4 = vadd.f32 %v2090_v13, %v5795_v51  ;;  %v2384_v63 = vpop.f32.mrf.mxu1 }
 0x1ad   : > { %v4811_v10 = vpop.f32.mrf.mxu0 }
 0x1ae   : > { %6435 = vst [vmem:[#allocation15_spill] sm:$0xff] %v5888_v23  ;;  %v5891_v20 = vadd.f32 %v2384_v63, %v2131_v4  ;;  %v5893_v7 = vpop.f32.mrf.mxu1 }
 0x1af   : > { %v2563_v6 = vpop.f32.mrf.mxu0 }
 0x1b0   : > { %6436 = vst [vmem:[#allocation16_spill] sm:$0xff] %v5891_v20  ;;  %v5895_v8 = vpop.f32.mrf.mxu1 }
 0x1b1   : > { %v5897_v34 = vpop.f32.mrf.mxu0 }
 0x1b2   : > { %v5899_v27 = vpop.f32.mrf.mxu1 }
 0x1b3   : > { %v5901_v59 = vpop.f32.mrf.mxu0 }
 0x1b4   : > { %v5903_v57 = vpop.f32.mrf.mxu1 }
 0x1b5   : > { %v5905_v1 = vpop.f32.mrf.mxu0 }
 0x1b6   : > { %v5907_v51 = vpop.f32.mrf.mxu1 }
 0x1b7   : > { %v5909_v35 = vpop.f32.mrf.mxu0 }
 0x1b8   : > { %v5911_v46 = vpop.f32.mrf.mxu1 }
 0x1b9   : > { %v5913_v40 = vpop.f32.mrf.mxu0 }
 0x1ba   : > { %v5915_v50 = vpop.f32.mrf.mxu1 }
 0x1bb   : > { %v5917_v11 = vpop.f32.mrf.mxu0 }
 0x1bc   : > { %v5919_v3 = vpop.f32.mrf.mxu1 }
 0x1bd   : > { %v5921_v55 = vpop.f32.mrf.mxu0 }
 0x1be   : > { %v5923_v12 = vpop.f32.mrf.mxu1 }
 0x1bf   : > { %v5925_v39 = vpop.f32.mrf.mxu0 }
 0x1c0   : > { %v5927_v25 = vpop.f32.mrf.mxu1 }
 0x1c1   : > { %v5929_v26 = vpop.f32.mrf.mxu0 }
 0x1c2   : > { %v5931_v30 = vpop.f32.mrf.mxu1 }
 0x1c3   : > { %v5933_v2 = vpop.f32.mrf.mxu0 }
 0x1c4   : > { %v5935_v54 = vpop.f32.mrf.mxu1 }
 0x1c5   : > { %v5937_v60 = vpop.f32.mrf.mxu0 }
 0x1c6   : > { %v5939_v5 = vpop.f32.mrf.mxu1 }
 0x1c7   : > { %v5941_v32 = vpop.f32.mrf.mxu0 }
 0x1c8   : > { %v5943_v53 = vpop.f32.mrf.mxu1 }
 0x1c9   : > { %v5945_v14 = vpop.f32.mrf.mxu0 }
 0x1ca   : > { %v5947_v13 = vpop.f32.mrf.mxu1 }
 0x1cb   : > { %v5949_v4 = vpop.f32.mrf.mxu0 }
 0x1cc   : > { %v5951_v63 = vpop.f32.mrf.mxu1 }
 0x1cd   : > { %v5953_v20 = vpop.f32.mrf.mxu0 }
 0x1ce   : > { %v5955_v23 = vpop.f32.mrf.mxu1 }
 0x1cf   : > { %v5957_v16 = vpop.f32.mrf.mxu0 }
 0x1d0   : > { %v5959_v19 = vpop.f32.mrf.mxu1 }
 0x1d1   : > { %6437 = vst [vmem:[#allocation17_spill] sm:$0xff] %v5959_v19  ;;  %v5961_v45 = vpop.f32.mrf.mxu0 }
 0x1d2   : > { %6438 = vst [vmem:[#allocation18_spill] sm:$0xff] %v5961_v45  ;;  %v5963_v56 = vpop.f32.mrf.mxu1 }
 0x1d3   : > { %6439 = vst [vmem:[#allocation19_spill] sm:$0xff] %v5963_v56  ;;  %v5965_v29 = vpop.f32.mrf.mxu0 }
 0x1d4   : > { %6440 = vst [vmem:[#allocation20_spill] sm:$0xff] %v5965_v29  ;;  %v5967_v18 = vpop.f32.mrf.mxu1 }
 0x1d5   : > { %6441 = vst [vmem:[#allocation21_spill] sm:$0xff] %v5967_v18  ;;  %v5969_v43 = vpop.f32.mrf.mxu0 }
 0x1d6   : > { %6442 = vst [vmem:[#allocation22_spill] sm:$0xff] %v5969_v43  ;;  %v5971_v62 = vpop.f32.mrf.mxu1 }
 0x1d7   : > { %6443 = vst [vmem:[#allocation23_spill] sm:$0xff] %v5971_v62  ;;  %v5973_v24 = vpop.f32.mrf.mxu0 }
 0x1d8   : > { %6444 = vst [vmem:[#allocation24_spill] sm:$0xff] %v5973_v24  ;;  %v5975_v47 = vpop.f32.mrf.mxu1 }
 0x1d9   : > { %6445 = vst [vmem:[#allocation25_spill] sm:$0xff] %v5975_v47  ;;  %v5977_v22 = vpop.f32.mrf.mxu0 }
 0x1da   : > { %6446 = vst [vmem:[#allocation26_spill] sm:$0xff] %v5977_v22  ;;  %v5979_v58 = vpop.f32.mrf.mxu1 }
 0x1db   : > { %6447 = vst [vmem:[#allocation27_spill] sm:$0xff] %v5979_v58  ;;  %v5981_v19 = vpop.f32.mrf.mxu0 }
 0x1dc   : > { %6448 = vst [vmem:[#allocation28_spill] sm:$0xff] %v5981_v19  ;;  %v5983_v56 = vpop.f32.mrf.mxu1 }
 0x1dd   : > { %6449 = vst [vmem:[#allocation29_spill] sm:$0xff] %v5983_v56  ;;  %v5985_v29 = vpop.f32.mrf.mxu0 }
 0x1de   : > { %6450 = vst [vmem:[#allocation30_spill] sm:$0xff] %v5985_v29  ;;  %v5987_v18 = vpop.f32.mrf.mxu1 }
 0x1df   : > { %6451 = vst [vmem:[#allocation31_spill] sm:$0xff] %v5987_v18  ;;  %v5989_v43 = vpop.f32.mrf.mxu0  ;;  %v2692_v18 = vadd.f32 %v4811_v10, %v5798_v28  ;;  %v2691_v10 = vadd.f32 %v5901_v59, %v5807_v38 }
 0x1e0   : > { %v5991_v62 = vpop.f32.mrf.mxu1 }
 0x1e1   : > { %6452 = vst [vmem:[#allocation32_spill] sm:$0xff] %v5991_v62  ;;  %v5993_v24 = vpop.f32.mrf.mxu0  ;;  %v2985_v38 = vadd.f32 %v5903_v57, %v2691_v10  ;;  %v2700_v10 = vadd.f32 %v5921_v55, %v5822_v15 }
 0x1e2   : > { %6453 = vst [vmem:[#allocation33_spill] sm:$0xff] %v5993_v24  ;;  %v5995_v47 = vpop.f32.mrf.mxu1  ;;  %v2690_v24 = vadd.f32 %v2563_v6, %v5801_v61 }
 0x1e3   : > { %6454 = vst [vmem:[#allocation34_spill] sm:$0xff] %v5995_v47  ;;  %v5997_v22 = vpop.f32.mrf.mxu0 }
 0x1e4   : > { %6455 = vst [vmem:[#allocation35_spill] sm:$0xff] %v5997_v22  ;;  %v5999_v58 = vpop.f32.mrf.mxu1  ;;  %v2984_v61 = vadd.f32 %v5895_v8, %v2690_v24 }
 0x1e5   : > { %6456 = vst [vmem:[#allocation36_spill] sm:$0xff] %v5999_v58  ;;  %v6001_v45 = vpop.f32.mrf.mxu0  ;;  %v2986_v58 = vadd.f32 %v5893_v7, %v2692_v18 }
 0x1e6   : > { %6457 = vst [vmem:[#allocation37_spill] sm:$0xff] %v6001_v45  ;;  %v6003_v19 = vpop.f32.mrf.mxu1 }
 0x1e7   : > { %6458 = vst [vmem:[#allocation38_spill] sm:$0xff] %v6003_v19  ;;  %v6005_v56 = vpop.f32.mrf.mxu0  ;;  %v2693_v19 = vadd.f32 %v5897_v34, %v5804_v33  ;;  %v2696_v34 = vadd.f32 %v5905_v1, %v5810_v44 }
 0x1e8   : > { %v6008_v29 = vpop.f32.mrf.mxu1 }
 0x1e9   : > { %v6011_v62 = vpop.f32.mrf.mxu0  ;;  %v2987_v7 = vadd.f32 %v5899_v27, %v2693_v19  ;;  %v2990_v44 = vadd.f32 %v5907_v51, %v2696_v34  ;;  %v2697_v27 = vadd.f32 %v5913_v40, %v5816_v42  ;;  %v2695_v42 = vadd.f32 %v5917_v11, %v5819_v0  ;;  %v3961_v40 = vld [vmem:[%s6055_s11] sm:$0xff] }
 0x1ea   : > { %v6014_v47 = vpop.f32.mrf.mxu1  ;;  %v2698_v34 = vadd.f32 %v5925_v39, %v5825_v49 }
 0x1eb   : > { %6459 = vst [vmem:[#allocation39_spill] sm:$0xff] %v6014_v47  ;;  %v6016_v22 = vpop.f32.mrf.mxu0 }
 0x1ec   : > { %v6021_v45 = vpop.f32.mrf.mxu1 }
 0x1ed   : > { %6460 = vst [vmem:[#allocation40_spill] sm:$0xff] %v6021_v45  ;;  %v4879_v28 = vpop.f32.mrf.mxu0 }
 0x1ee   : > { %v3280_v6 = vadd.f32 %v4879_v28, %v2986_v58  ;;  %v6031_v18 = vpop.f32.mrf.mxu1  ;;  %v2694_v58 = vadd.f32 %v5909_v35, %v5813_v41 }
 0x1ef   : > { %v3151_v33 = vpop.f32.mrf.mxu0 }
 0x1f0   : > { %3312 = vst.msk [vmem:[%s6026_s8 + $0x10] sm:$0xff] %vm298_vm1, %v3280_v6  ;;  %v3278_v45 = vadd.f32 %v3151_v33, %v2984_v61  ;;  %v6038_v47 = vpop.f32.mrf.mxu1  ;;  %v2988_v1 = vadd.f32 %v5911_v46, %v2694_v58  ;;  %v2991_v61 = vadd.f32 %v5915_v50, %v2697_v27  ;;  %v3969_v6 = vld [vmem:[%s6055_s11 + $0x10] sm:$0xff] }
 0x1f1   : > { %v4880_v24 = vpop.f32.mrf.mxu0 }
 0x1f2   : > { %3310 = vst.msk [vmem:[%s6026_s8] sm:$0xff] %vm298_vm1, %v3278_v45  ;;  %v3281_v8 = vadd.f32 %v4880_v24, %v2987_v7  ;;  %v6045_v59 = vpop.f32.mrf.mxu1  ;;  %v2989_v7 = vadd.f32 %v5919_v3, %v2695_v42  ;;  %v2701_v3 = vadd.f32 %v5929_v26, %v5828_v52 }
 0x1f3   : > { %v3154_v19 = vpop.f32.mrf.mxu0 }
 0x1f4   : > { %3313 = vst.msk [vmem:[%s6026_s8 + $0x18] sm:$0xff] %vm298_vm1, %v3281_v8  ;;  %v3279_v41 = vadd.f32 %v3154_v19, %v2985_v38  ;;  %v6059_v45 = vpop.f32.mrf.mxu1  ;;  %v3962_v38 = vld [vmem:[%s6055_s11 + $0x8] sm:$0xff]  ;;  %v2994_v8 = vadd.f32 %v5923_v12, %v2700_v10  ;;  %v2699_v12 = vadd.f32 %v5933_v2, %v5831_v9 }
 0x1f5   : > { %v4883_v57 = vpop.f32.mrf.mxu0 }
 0x1f6   : > { %3311 = vst.msk [vmem:[%s6026_s8 + $0x8] sm:$0xff] %vm298_vm1, %v3279_v41  ;;  %v3284_v51 = vadd.f32 %v4883_v57, %v2990_v44  ;;  %v6066_v35 = vpop.f32.mrf.mxu1  ;;  %v2992_v41 = vadd.f32 %v5927_v25, %v2698_v34  ;;  %v2704_v25 = vadd.f32 %v5937_v60, %v5834_v31  ;;  %v2993_v10 = vadd.f32 %v5935_v54, %v2699_v12 }
 0x1f7   : > { %v3167_v28 = vpop.f32.mrf.mxu0  ;;  %v2705_v54 = vadd.f32 %v5945_v14, %v5840_v21  ;;  %v2703_v21 = vadd.f32 %v5949_v4, %v5843_v48  ;;  %v2708_v48 = vadd.f32 %v5953_v20, %v5846_v17  ;;  %v2706_v17 = vadd.f32 %v5957_v16, %v5849_v36 }
 0x1f8   : > { %3316 = vst.msk [vmem:[%s6026_s8 + $0x30] sm:$0xff] %vm298_vm1, %v3284_v51  ;;  %v3282_v46 = vadd.f32 %v3167_v28, %v2988_v1  ;;  %v6074_v0 = vpop.f32.mrf.mxu1  ;;  %v3970_v1 = vld [vmem:[%s6055_s11 + $0x18] sm:$0xff]  ;;  %v2995_v51 = vadd.f32 %v5931_v30, %v2701_v3 }
 0x1f9   : > { %v3959_v11 = vld [vmem:[%s6026_s8] sm:$0xff]  ;;  %v4884_v33 = vpop.f32.mrf.mxu0 }
 0x1fa   : > { %v3963_v50 = vadd.f32 %v3961_v40, %v3959_v11  ;;  %3314 = vst.msk [vmem:[%s6026_s8 + $0x20] sm:$0xff] %vm298_vm1, %v3282_v46  ;;  %v3285_v15 = vadd.f32 %v4884_v33, %v2991_v61  ;;  %v6083_v55 = vpop.f32.mrf.mxu1  ;;  %v2702_v40 = vadd.f32 %v5941_v32, %v5837_v37  ;;  %v3985_v61 = vld [vmem:[%s6055_s11 + $0x30] sm:$0xff]  ;;  %v3978_v33 = vld [vmem:[%s6055_s11 + $0x28] sm:$0xff]  ;;  %v2998_v32 = vadd.f32 %v5939_v5, %v2704_v25 }
 0x1fb   : > { %v3967_v24 = vld [vmem:[%s6026_s8 + $0x12] sm:$0xff]  ;;  %v3170_v58 = vpop.f32.mrf.mxu0  ;;  %v3994_v5 = vld [vmem:[%s6055_s11 + $0x48] sm:$0xff] }
 0x1fc   : > { %3965 = vst.msk [vmem:[%s6026_s8] sm:$0xff] %vm298_vm1, %v3963_v50  ;;  %v3971_v49 = vadd.f32 %v3969_v6, %v3967_v24  ;;  %3317 = vst.msk [vmem:[%s6026_s8 + $0x38] sm:$0xff] %vm298_vm1, %v3285_v15  ;;  %v3283_v39 = vadd.f32 %v3170_v58, %v2989_v7  ;;  %v6094_v19 = vpop.f32.mrf.mxu1  ;;  %v3977_v6 = vld [vmem:[%s6055_s11 + $0x20] sm:$0xff]  ;;  %v2996_v15 = vadd.f32 %v5943_v53, %v2702_v40  ;;  %v6461_v40 = vld [vmem:[#allocation3_spill] sm:$0xff] }
 0x1fd   : > { %v3960_v44 = vld [vmem:[%s6026_s8 + $0x8] sm:$0xff]  ;;  %v4887_v27 = vpop.f32.mrf.mxu0 }
 0x1fe   : > { %3973 = vst.msk [vmem:[%s6026_s8 + $0x12] sm:$0xff] %vm298_vm1, %v3971_v49  ;;  %v3964_v52 = vadd.f32 %v3962_v38, %v3960_v44  ;;  %3315 = vst.msk [vmem:[%s6026_s8 + $0x28] sm:$0xff] %vm298_vm1, %v3283_v39  ;;  %v3288_v26 = vadd.f32 %v4887_v27, %v2994_v8  ;;  %v6104_v57 = vpop.f32.mrf.mxu1  ;;  %v3986_v39 = vld [vmem:[%s6055_s11 + $0x38] sm:$0xff]  ;;  %v2999_v27 = vadd.f32 %v5947_v13, %v2705_v54 }
 0x1ff   : > { %v3183_v42 = vpop.f32.mrf.mxu0  ;;  %v2997_v13 = vadd.f32 %v5951_v63, %v2703_v21  ;;  %v6469_v21 = vld [vmem:[#allocation6_spill] sm:$0xff] }
 0x200   : > { %3966 = vst.msk [vmem:[%s6026_s8 + $0x8] sm:$0xff] %vm298_vm1, %v3964_v52  ;;  %3320 = vst.msk [vmem:[%s6026_s8 + $0x50] sm:$0xff] %vm298_vm1, %v3288_v26  ;;  %v3286_v9 = vadd.f32 %v3183_v42, %v2992_v41  ;;  %v6114_v2 = vpop.f32.mrf.mxu1 }
 0x201   : > { %v3968_v28 = vld [vmem:[%s6026_s8 + $0x1a] sm:$0xff]  ;;  %v4888_v30 = vpop.f32.mrf.mxu0 }
 0x202   : > { %v3972_v46 = vadd.f32 %v3970_v1, %v3968_v28  ;;  %3318 = vst.msk [vmem:[%s6026_s8 + $0x40] sm:$0xff] %vm298_vm1, %v3286_v9  ;;  %v3289_v31 = vadd.f32 %v4888_v30, %v2995_v51  ;;  %v6123_v60 = vpop.f32.mrf.mxu1  ;;  %v3993_v51 = vld [vmem:[%s6055_s11 + $0x40] sm:$0xff]  ;;  %v3002_v9 = vadd.f32 %v5955_v23, %v2708_v48  ;;  %v6462_v28 = vld [vmem:[#allocation18_spill] sm:$0xff] }
 0x203   : > { %v3983_v11 = vld [vmem:[%s6026_s8 + $0x36] sm:$0xff]  ;;  %v3186_v37 = vpop.f32.mrf.mxu0  ;;  %v2709_v63 = vadd.f32 %v6462_v28, %v6461_v40 }
 0x204   : > { %3974 = vst.msk [vmem:[%s6026_s8 + $0x1a] sm:$0xff] %vm298_vm1, %v3972_v46  ;;  %v3987_v7 = vadd.f32 %v3985_v61, %v3983_v11  ;;  %3321 = vst.msk [vmem:[%s6026_s8 + $0x58] sm:$0xff] %vm298_vm1, %v3289_v31  ;;  %v3287_v34 = vadd.f32 %v3186_v37, %v2993_v10  ;;  %v6135_v50 = vpop.f32.mrf.mxu1  ;;  %v6463_v10 = vld [vmem:[#allocation17_spill] sm:$0xff]  ;;  %v6464_v31 = vld [vmem:[#allocation4_spill] sm:$0xff] }
 0x205   : > { %v3975_v24 = vld [vmem:[%s6026_s8 + $0x24] sm:$0xff]  ;;  %v3976_v38 = vld [vmem:[%s6026_s8 + $0x2c] sm:$0xff]  ;;  %v4891_v58 = vpop.f32.mrf.mxu0  ;;  %v3000_v46 = vadd.f32 %v6463_v10, %v2706_v17 }
 0x206   : > { %3989 = vst.msk [vmem:[%s6026_s8 + $0x36] sm:$0xff] %vm298_vm1, %v3987_v7  ;;  %v3979_v14 = vadd.f32 %v3977_v6, %v3975_v24  ;;  %v3980_v8 = vadd.f32 %v3978_v33, %v3976_v38  ;;  %3319 = vst.msk [vmem:[%s6026_s8 + $0x48] sm:$0xff] %vm298_vm1, %v3287_v34  ;;  %v3292_v3 = vadd.f32 %v4891_v58, %v2998_v32  ;;  %v6147_v49 = vpop.f32.mrf.mxu1  ;;  %v6465_v11 = vld [vmem:[#allocation20_spill] sm:$0xff]  ;;  %v4001_v32 = vld [vmem:[%s6055_s11 + $0x50] sm:$0xff] }
 0x207   : > { %v3992_v53 = vld [vmem:[%s6026_s8 + $0x50] sm:$0xff]  ;;  %v3199_v44 = vpop.f32.mrf.mxu0  ;;  %v2707_v23 = vadd.f32 %v6465_v11, %v6464_v31  ;;  %v6466_v7 = vld [vmem:[#allocation19_spill] sm:$0xff]  ;;  %v6476_v11 = vld [vmem:[#allocation8_spill] sm:$0xff] }
 0x208   : > { %3981 = vst.msk [vmem:[%s6026_s8 + $0x24] sm:$0xff] %vm298_vm1, %v3979_v14  ;;  %3982 = vst.msk [vmem:[%s6026_s8 + $0x2c] sm:$0xff] %vm298_vm1, %v3980_v8  ;;  %v3996_v4 = vadd.f32 %v3994_v5, %v3992_v53  ;;  %v3290_v41 = vadd.f32 %v3199_v44, %v2996_v15  ;;  %v6160_v12 = vpop.f32.mrf.mxu1  ;;  %v3003_v34 = vadd.f32 %v6466_v7, %v2709_v63  ;;  %v6467_v15 = vld [vmem:[#allocation5_spill] sm:$0xff]  ;;  %v6468_v24 = vld [vmem:[#allocation22_spill] sm:$0xff] }
 0x209   : > { %3324 = vst.msk [vmem:[%s6026_s8 + $0x70] sm:$0xff] %vm298_vm1, %v3292_v3  ;;  %v3984_v52 = vld [vmem:[%s6026_s8 + $0x3e] sm:$0xff]  ;;  %v4892_v26 = vpop.f32.mrf.mxu0  ;;  %v2712_v38 = vadd.f32 %v6468_v24, %v6467_v15  ;;  %v4010_v53 = vld [vmem:[%s6055_s11 + $0x68] sm:$0xff]  ;;  %v4017_v15 = vld [vmem:[%s6055_s11 + $0x70] sm:$0xff] }
 0x20a   : > { %3998 = vst.msk [vmem:[%s6026_s8 + $0x50] sm:$0xff] %vm298_vm1, %v3996_v4  ;;  %v3988_v20 = vadd.f32 %v3986_v39, %v3984_v52  ;;  %3322 = vst.msk [vmem:[%s6026_s8 + $0x60] sm:$0xff] %vm298_vm1, %v3290_v41  ;;  %v3293_v1 = vadd.f32 %v4892_v26, %v2999_v27  ;;  %v6170_v42 = vpop.f32.mrf.mxu1  ;;  %v6470_v14 = vld [vmem:[#allocation24_spill] sm:$0xff]  ;;  %v6471_v44 = vld [vmem:[#allocation21_spill] sm:$0xff] }
 0x20b   : > { %v3202_v25 = vpop.f32.mrf.mxu0  ;;  %v2710_v8 = vadd.f32 %v6470_v14, %v6469_v21  ;;  %v3001_v27 = vadd.f32 %v6471_v44, %v2707_v23  ;;  %v4002_v26 = vld [vmem:[%s6055_s11 + $0x58] sm:$0xff]  ;;  %v6477_v23 = vld [vmem:[#allocation28_spill] sm:$0xff]  ;;  %v6479_v21 = vld [vmem:[#allocation9_spill] sm:$0xff] }
 0x20c   : > { %3990 = vst.msk [vmem:[%s6026_s8 + $0x3e] sm:$0xff] %vm298_vm1, %v3988_v20  ;;  %3325 = vst.msk [vmem:[%s6026_s8 + $0x78] sm:$0xff] %vm298_vm1, %v3293_v1  ;;  %v3291_v36 = vadd.f32 %v3202_v25, %v2997_v13  ;;  %v6180_v16 = vpop.f32.mrf.mxu1  ;;  %v4009_v13 = vld [vmem:[%s6055_s11 + $0x60] sm:$0xff]  ;;  %v6472_v20 = vld [vmem:[#allocation23_spill] sm:$0xff] }
 0x20d   : > { %v3991_v61 = vld [vmem:[%s6026_s8 + $0x48] sm:$0xff]  ;;  %v4895_v30 = vpop.f32.mrf.mxu0  ;;  %v3006_v1 = vadd.f32 %v6472_v20, %v2712_v38  ;;  %v6474_v25 = vld [vmem:[#allocation26_spill] sm:$0xff]  ;;  %v6478_v38 = vld [vmem:[#allocation27_spill] sm:$0xff] }
 0x20e   : > { %v3995_v6 = vadd.f32 %v3993_v51, %v3991_v61  ;;  %3323 = vst.msk [vmem:[%s6026_s8 + $0x68] sm:$0xff] %vm298_vm1, %v3291_v36  ;;  %v3296_v33 = vadd.f32 %v4895_v30, %v3002_v9  ;;  %v6188_v37 = vpop.f32.mrf.mxu1  ;;  %v6473_v51 = vld [vmem:[#allocation7_spill] sm:$0xff]  ;;  %v6475_v36 = vld [vmem:[#allocation25_spill] sm:$0xff]  ;;  %v6480_v14 = vld [vmem:[#allocation30_spill] sm:$0xff] }
 0x20f   : > { %v3215_v54 = vpop.f32.mrf.mxu0  ;;  %v2713_v9 = vadd.f32 %v6474_v25, %v6473_v51  ;;  %v3004_v61 = vadd.f32 %v6475_v36, %v2710_v8  ;;  %v2716_v8 = vadd.f32 %v6480_v14, %v6479_v21  ;;  %v4018_v25 = vld [vmem:[%s6055_s11 + $0x78] sm:$0xff]  ;;  %v6491_v14 = vld [vmem:[#allocation14_spill] sm:$0xff] }
 0x210   : > { %3997 = vst.msk [vmem:[%s6026_s8 + $0x48] sm:$0xff] %vm298_vm1, %v3995_v6  ;;  %3328 = vst.msk [vmem:[%s6026_s8 + $0x90] sm:$0xff] %vm298_vm1, %v3296_v33  ;;  %v3294_v5 = vadd.f32 %v3215_v54, %v3000_v46  ;;  %v6198_v58 = vpop.f32.mrf.mxu1  ;;  %v4025_v46 = vld [vmem:[%s6055_s11 + $0x80] sm:$0xff]  ;;  %v2711_v6 = vadd.f32 %v6477_v23, %v6476_v11  ;;  %v6484_v36 = vld [vmem:[#allocation11_spill] sm:$0xff] }
 0x211   : > { %v3999_v3 = vld [vmem:[%s6026_s8 + $0x5a] sm:$0xff]  ;;  %v4896_v39 = vpop.f32.mrf.mxu0 }
 0x212   : > { %v4003_v48 = vadd.f32 %v4001_v32, %v3999_v3  ;;  %3326 = vst.msk [vmem:[%s6026_s8 + $0x80] sm:$0xff] %vm298_vm1, %v3294_v5  ;;  %v3297_v4 = vadd.f32 %v4896_v39, %v3003_v34  ;;  %v6207_v41 = vpop.f32.mrf.mxu1  ;;  %v3007_v5 = vadd.f32 %v6478_v38, %v2713_v9  ;;  %v6486_v23 = vld [vmem:[#allocation32_spill] sm:$0xff]  ;;  %v6489_v38 = vld [vmem:[#allocation13_spill] sm:$0xff] }
 0x213   : > { %v4008_v52 = vld [vmem:[%s6026_s8 + $0x74] sm:$0xff]  ;;  %v3218_v17 = vpop.f32.mrf.mxu0 }
 0x214   : > { %4005 = vst.msk [vmem:[%s6026_s8 + $0x5a] sm:$0xff] %vm298_vm1, %v4003_v48  ;;  %v4012_v40 = vadd.f32 %v4010_v53, %v4008_v52  ;;  %3329 = vst.msk [vmem:[%s6026_s8 + $0x98] sm:$0xff] %vm298_vm1, %v3297_v4  ;;  %v3295_v28 = vadd.f32 %v3218_v17, %v3001_v27  ;;  %v6219_v63 = vpop.f32.mrf.mxu1  ;;  %v4026_v27 = vld [vmem:[%s6055_s11 + $0x88] sm:$0xff] }
 0x215   : > { %v4000_v30 = vld [vmem:[%s6026_s8 + $0x62] sm:$0xff]  ;;  %v4007_v10 = vld [vmem:[%s6026_s8 + $0x6c] sm:$0xff]  ;;  %v4899_v31 = vpop.f32.mrf.mxu0 }
 0x216   : > { %4014 = vst.msk [vmem:[%s6026_s8 + $0x74] sm:$0xff] %vm298_vm1, %v4012_v40  ;;  %v4004_v33 = vadd.f32 %v4002_v26, %v4000_v30  ;;  %v4011_v32 = vadd.f32 %v4009_v13, %v4007_v10  ;;  %3327 = vst.msk [vmem:[%s6026_s8 + $0x88] sm:$0xff] %vm298_vm1, %v3295_v28  ;;  %v3300_v54 = vadd.f32 %v4899_v31, %v3006_v1  ;;  %v6231_v7 = vpop.f32.mrf.mxu1  ;;  %v6481_v4 = vld [vmem:[#allocation29_spill] sm:$0xff]  ;;  %v6482_v26 = vld [vmem:[#allocation10_spill] sm:$0xff] }
 0x217   : > { %v4023_v34 = vld [vmem:[%s6026_s8 + $0x90] sm:$0xff]  ;;  %v3231_v24 = vpop.f32.mrf.mxu0  ;;  %v3005_v52 = vadd.f32 %v6481_v4, %v2711_v6  ;;  %v2714_v13 = vadd.f32 %v5989_v43, %v6482_v26  ;;  %v6483_v40 = vld [vmem:[#allocation31_spill] sm:$0xff] }
 0x218   : > { %4006 = vst.msk [vmem:[%s6026_s8 + $0x62] sm:$0xff] %vm298_vm1, %v4004_v33  ;;  %4013 = vst.msk [vmem:[%s6026_s8 + $0x6c] sm:$0xff] %vm298_vm1, %v4011_v32  ;;  %v4027_v3 = vadd.f32 %v4025_v46, %v4023_v34  ;;  %v3298_v53 = vadd.f32 %v3231_v24, %v3004_v61  ;;  %v6244_v39 = vpop.f32.mrf.mxu1  ;;  %v3010_v28 = vadd.f32 %v6483_v40, %v2716_v8  ;;  %v6485_v61 = vld [vmem:[#allocation33_spill] sm:$0xff]  ;;  %v6487_v33 = vld [vmem:[#allocation12_spill] sm:$0xff] }
 0x219   : > { %3332 = vst.msk [vmem:[%s6026_s8 + $0xb0] sm:$0xff] %vm298_vm1, %v3300_v54  ;;  %v4015_v44 = vld [vmem:[%s6026_s8 + $0x7e] sm:$0xff]  ;;  %v4900_v48 = vpop.f32.mrf.mxu0  ;;  %v2717_v30 = vadd.f32 %v6485_v61, %v6484_v36  ;;  %v3008_v6 = vadd.f32 %v6486_v23, %v2714_v13  ;;  %v2718_v8 = vadd.f32 %v6005_v56, %v6491_v14  ;;  %v3469_v40 = vadd.f32 %v6083_v55, %v6045_v59 }
 0x21a   : > { %4029 = vst.msk [vmem:[%s6026_s8 + $0x90] sm:$0xff] %vm298_vm1, %v4027_v3  ;;  %v4019_v17 = vadd.f32 %v4017_v15, %v4015_v44  ;;  %3330 = vst.msk [vmem:[%s6026_s8 + $0xa0] sm:$0xff] %vm298_vm1, %v3298_v53  ;;  %v3301_v20 = vadd.f32 %v4900_v48, %v3007_v5  ;;  %v6255_v1 = vpop.f32.mrf.mxu1  ;;  %v6488_v32 = vld [vmem:[#allocation35_spill] sm:$0xff]  ;;  %v6490_v5 = vld [vmem:[#allocation37_spill] sm:$0xff] }
 0x21b   : > { %v4024_v51 = vld [vmem:[%s6026_s8 + $0x98] sm:$0xff]  ;;  %v3234_v9 = vpop.f32.mrf.mxu0  ;;  %v2715_v54 = vadd.f32 %v6488_v32, %v6487_v33  ;;  %v2720_v21 = vadd.f32 %v6490_v5, %v6489_v38  ;;  %v6492_v53 = vld [vmem:[#allocation34_spill] sm:$0xff]  ;;  %v4041_v56 = vld [vmem:[%s6055_s11 + $0xa0] sm:$0xff] }
 0x21c   : > { %4021 = vst.msk [vmem:[%s6026_s8 + $0x7e] sm:$0xff] %vm298_vm1, %v4019_v17  ;;  %v4028_v43 = vadd.f32 %v4026_v27, %v4024_v51  ;;  %3333 = vst.msk [vmem:[%s6026_s8 + $0xb8] sm:$0xff] %vm298_vm1, %v3301_v20  ;;  %v3299_v10 = vadd.f32 %v3234_v9, %v3005_v52  ;;  %v6266_v46 = vpop.f32.mrf.mxu1  ;;  %v3011_v44 = vadd.f32 %v6492_v53, %v2717_v30  ;;  %v6493_v13 = vld [vmem:[#allocation36_spill] sm:$0xff]  ;;  %v6494_v51 = vld [vmem:[#allocation38_spill] sm:$0xff] }
 0x21d   : > { %v4016_v31 = vld [vmem:[%s6026_s8 + $0x86] sm:$0xff]  ;;  %v4903_v11 = vpop.f32.mrf.mxu0  ;;  %v3466_v27 = vadd.f32 %v6066_v35, %v6031_v18  ;;  %v3458_v52 = vadd.f32 %v6074_v0, %v6038_v47  ;;  %v3009_v17 = vadd.f32 %v6493_v13, %v2715_v54  ;;  %v3012_v9 = vadd.f32 %v6008_v29, %v2718_v8  ;;  %v4034_v36 = vld [vmem:[%s6055_s11 + $0x98] sm:$0xff] }
 0x21e   : > { %4030 = vst.msk [vmem:[%s6026_s8 + $0x98] sm:$0xff] %vm298_vm1, %v4028_v43  ;;  %v4020_v34 = vadd.f32 %v4018_v25, %v4016_v31  ;;  %3331 = vst.msk [vmem:[%s6026_s8 + $0xa8] sm:$0xff] %vm298_vm1, %v3299_v10  ;;  %v3304_v15 = vadd.f32 %v4903_v11, %v3010_v28  ;;  %v6276_v24 = vpop.f32.mrf.mxu1  ;;  %v3014_v25 = vadd.f32 %v6494_v51, %v2720_v21  ;;  %v4033_v28 = vld [vmem:[%s6055_s11 + $0x90] sm:$0xff]  ;;  %v6495_v61 = vld [vmem:[#allocation15_spill] sm:$0xff] }
 0x21f   : > { %v3247_v3 = vpop.f32.mrf.mxu0  ;;  %v3539_v18 = vadd.f32 %v6104_v57, %v3466_v27  ;;  %v3537_v47 = vadd.f32 %v6114_v2, %v3458_v52  ;;  %v2721_v30 = vadd.f32 %v6011_v62, %v6495_v61  ;;  %v6496_v55 = vld [vmem:[#allocation16_spill] sm:$0xff]  ;;  %v3461_v31 = vadd.f32 %v6094_v19, %v6059_v45  ;;  %v4050_v13 = vld [vmem:[%s6055_s11 + $0xb8] sm:$0xff] }
 0x220   : > { %4022 = vst.msk [vmem:[%s6026_s8 + $0x86] sm:$0xff] %vm298_vm1, %v4020_v34  ;;  %3336 = vst.msk [vmem:[%s6026_s8 + $0xd0] sm:$0xff] %vm298_vm1, %v3304_v15  ;;  %v3302_v48 = vadd.f32 %v3247_v3, %v3008_v6  ;;  %v6289_v4 = vpop.f32.mrf.mxu1  ;;  %v2719_v2 = vadd.f32 %v6016_v22, %v6496_v55  ;;  %v3540_v11 = vadd.f32 %v6123_v60, %v3469_v40  ;;  %v6497_v15 = vld [vmem:[#allocation39_spill] sm:$0xff] }
 0x221   : > { %v4904_v26 = vpop.f32.mrf.mxu0  ;;  %v3608_v43 = vadd.f32 %v6147_v49, %v3539_v18  ;;  %v3606_v62 = vadd.f32 %v6160_v12, %v3537_v47  ;;  %v3538_v19 = vadd.f32 %v6135_v50, %v3461_v31  ;;  %v4042_v12 = vld [vmem:[%s6055_s11 + $0xa8] sm:$0xff]  ;;  %v3015_v38 = vadd.f32 %v6497_v15, %v2721_v30 }
 0x222   : > { %3334 = vst.msk [vmem:[%s6026_s8 + $0xc0] sm:$0xff] %vm298_vm1, %v3302_v48  ;;  %v3305_v35 = vadd.f32 %v4904_v26, %v3011_v44  ;;  %v6298_v20 = vpop.f32.mrf.mxu1  ;;  %v3609_v60 = vadd.f32 %v6170_v42, %v3540_v11  ;;  %v6498_v42 = vld [vmem:[#allocation40_spill] sm:$0xff]  ;;  %v4049_v26 = vld [vmem:[%s6055_s11 + $0xb0] sm:$0xff] }
 0x223   : > { %v4039_v0 = vld [vmem:[%s6026_s8 + $0xb4] sm:$0xff]  ;;  %v3250_v57 = vpop.f32.mrf.mxu0  ;;  %v3677_v33 = vadd.f32 %v6188_v37, %v3608_v43  ;;  %v3675_v37 = vadd.f32 %v6198_v58, %v3606_v62  ;;  %v3013_v14 = vadd.f32 %v6498_v42, %v2719_v2  ;;  %v3607_v8 = vadd.f32 %v6180_v16, %v3538_v19 }
 0x224   : > { %v4043_v10 = vadd.f32 %v4041_v56, %v4039_v0  ;;  %3337 = vst.msk [vmem:[%s6026_s8 + $0xd8] sm:$0xff] %vm298_vm1, %v3305_v35  ;;  %v3303_v29 = vadd.f32 %v3250_v57, %v3009_v17  ;;  %v6313_v59 = vpop.f32.mrf.mxu1  ;;  %v3678_v58 = vadd.f32 %v6207_v41, %v3609_v60  ;;  %v4065_v11 = vld [vmem:[%s6055_s11 + $0xd0] sm:$0xff]  ;;  %v4074_v60 = vld [vmem:[%s6055_s11 + $0xe8] sm:$0xff] }
 0x225   : > { %v4031_v23 = vld [vmem:[%s6026_s8 + $0xa2] sm:$0xff]  ;;  %v4032_v49 = vld [vmem:[%s6026_s8 + $0xaa] sm:$0xff]  ;;  %v4907_v6 = vpop.f32.mrf.mxu0  ;;  %v3746_v5 = vadd.f32 %v6231_v7, %v3677_v33  ;;  %v3744_v44 = vadd.f32 %v6244_v39, %v3675_v37  ;;  %v3676_v56 = vadd.f32 %v6219_v63, %v3607_v8 }
 0x226   : > { %4045 = vst.msk [vmem:[%s6026_s8 + $0xb4] sm:$0xff] %vm298_vm1, %v4043_v10  ;;  %v4035_v32 = vadd.f32 %v4033_v28, %v4031_v23  ;;  %v4036_v22 = vadd.f32 %v4034_v36, %v4032_v49  ;;  %3335 = vst.msk [vmem:[%s6026_s8 + $0xc8] sm:$0xff] %vm298_vm1, %v3303_v29  ;;  %v3308_v54 = vadd.f32 %v4907_v6, %v3014_v25  ;;  %v4955_v45 = vpop.f32.mrf.mxu1  ;;  %v4057_v7 = vld [vmem:[%s6055_s11 + $0xc0] sm:$0xff]  ;;  %v4058_v36 = vld [vmem:[%s6055_s11 + $0xc8] sm:$0xff] }
 0x227   : > { %v3263_v34 = vpop.f32.mrf.mxu0  ;;  %v3815_v27 = vadd.f32 %v6276_v24, %v3746_v5  ;;  %v3747_v16 = vadd.f32 %v6255_v1, %v3678_v58  ;;  %v3813_v39 = vadd.f32 %v6289_v4, %v3744_v44  ;;  %v3745_v1 = vadd.f32 %v6266_v46, %v3676_v56  ;;  %v4066_v10 = vld [vmem:[%s6055_s11 + $0xd8] sm:$0xff] }
 0x228   : > { %4037 = vst.msk [vmem:[%s6026_s8 + $0xa2] sm:$0xff] %vm298_vm1, %v4035_v32  ;;  %4038 = vst.msk [vmem:[%s6026_s8 + $0xaa] sm:$0xff] %vm298_vm1, %v4036_v22  ;;  %v3306_v50 = vadd.f32 %v3263_v34, %v3012_v9  ;;  %v3867_v21 = vpop.f32.mrf.mxu1  ;;  %v4073_v32 = vld [vmem:[%s6055_s11 + $0xe0] sm:$0xff] }
 0x229   : > { %3340 = vst.msk [vmem:[%s6026_s8 + $0xf0] sm:$0xff] %vm298_vm1, %v3308_v54  ;;  %v4040_v3 = vld [vmem:[%s6026_s8 + $0xbc] sm:$0xff]  ;;  %v4908_v53 = vpop.f32.mrf.mxu0  ;;  %v3884_v35 = vadd.f32 %v4955_v45, %v3815_v27  ;;  %v3816_v51 = vadd.f32 %v6298_v20, %v3747_v16  ;;  %v3882_v0 = vadd.f32 %v3867_v21, %v3813_v39  ;;  %v3814_v57 = vadd.f32 %v6313_v59, %v3745_v1 }
 0x22a   : > { %v4044_v48 = vadd.f32 %v4042_v12, %v4040_v3  ;;  %3338 = vst.msk [vmem:[%s6026_s8 + $0xe0] sm:$0xff] %vm298_vm1, %v3306_v50  ;;  %v3309_v52 = vadd.f32 %v4908_v53, %v3015_v38  ;;  %v4956_v17 = vpop.f32.mrf.mxu1  ;;  %v4082_v54 = vld [vmem:[%s6055_s11 + $0xf8] sm:$0xff]  ;;  %v4081_v12 = vld [vmem:[%s6055_s11 + $0xf0] sm:$0xff] }
 0x22b   : > { %v4055_v41 = vld [vmem:[%s6026_s8 + $0xd8] sm:$0xff]  ;;  %v3266_v18 = vpop.f32.mrf.mxu0  ;;  %v3885_v61 = vadd.f32 %v4956_v17, %v3816_v51 }
 0x22c   : > { %4046 = vst.msk [vmem:[%s6026_s8 + $0xbc] sm:$0xff] %vm298_vm1, %v4044_v48  ;;  %v4059_v24 = vadd.f32 %v4057_v7, %v4055_v41  ;;  %3341 = vst.msk [vmem:[%s6026_s8 + $0xf8] sm:$0xff] %vm298_vm1, %v3309_v52  ;;  %v3307_v63 = vadd.f32 %v3266_v18, %v3013_v14  ;;  %v3870_v46 = vpop.f32.mrf.mxu1 }
 0x22d   : > { %v4047_v25 = vld [vmem:[%s6026_s8 + $0xc6] sm:$0xff]  ;;  %v4048_v9 = vld [vmem:[%s6026_s8 + $0xce] sm:$0xff]  ;;  %v4961_v40 = vpop.f32.mrf.mxu0  ;;  %v3883_v2 = vadd.f32 %v3870_v46, %v3814_v57 }
 0x22e   : > { %4061 = vst.msk [vmem:[%s6026_s8 + $0xd8] sm:$0xff] %vm298_vm1, %v4059_v24  ;;  %v4051_v4 = vadd.f32 %v4049_v26, %v4047_v25  ;;  %v4052_v47 = vadd.f32 %v4050_v13, %v4048_v9  ;;  %3339 = vst.msk [vmem:[%s6026_s8 + $0xe8] sm:$0xff] %vm298_vm1, %v3307_v63  ;;  %v3953_v28 = vadd.f32 %v4961_v40, %v3884_v35 }
 0x22f   : > { %v3936_v20 = vpop.f32.mrf.mxu0 }
 0x230   : > { %4053 = vst.msk [vmem:[%s6026_s8 + $0xc6] sm:$0xff] %vm298_vm1, %v4051_v4  ;;  %4054 = vst.msk [vmem:[%s6026_s8 + $0xce] sm:$0xff] %vm298_vm1, %v4052_v47  ;;  %v3951_v30 = vadd.f32 %v3936_v20, %v3882_v0 }
 0x231   : > { %3957 = vst.msk [vmem:[%s6026_s8 + $0x110] sm:$0xff] %vm298_vm1, %v3953_v28  ;;  %v4056_v43 = vld [vmem:[%s6026_s8 + $0xe0] sm:$0xff]  ;;  %v4962_v29 = vpop.f32.mrf.mxu0 }
 0x232   : > { %v4060_v55 = vadd.f32 %v4058_v36, %v4056_v43  ;;  %3955 = vst.msk [vmem:[%s6026_s8 + $0x100] sm:$0xff] %vm298_vm1, %v3951_v30  ;;  %v3954_v59 = vadd.f32 %v4962_v29, %v3885_v61 }
 0x233   : > { %v4064_v31 = vld [vmem:[%s6026_s8 + $0xf2] sm:$0xff]  ;;  %v3939_v62 = vpop.f32.mrf.mxu0 }
 0x234   : > { %4062 = vst.msk [vmem:[%s6026_s8 + $0xe0] sm:$0xff] %vm298_vm1, %v4060_v55  ;;  %v4068_v23 = vadd.f32 %v4066_v10, %v4064_v31  ;;  %3958 = vst.msk [vmem:[%s6026_s8 + $0x118] sm:$0xff] %vm298_vm1, %v3954_v59  ;;  %v3952_v49 = vadd.f32 %v3939_v62, %v3883_v2 }
 0x235   : > { %v4063_v6 = vld [vmem:[%s6026_s8 + $0xea] sm:$0xff] }
 0x236   : > { %4070 = vst.msk [vmem:[%s6026_s8 + $0xf2] sm:$0xff] %vm298_vm1, %v4068_v23  ;;  %v4067_v33 = vadd.f32 %v4065_v11, %v4063_v6  ;;  %3956 = vst.msk [vmem:[%s6026_s8 + $0x108] sm:$0xff] %vm298_vm1, %v3952_v49 }
 0x238   : > { %4069 = vst.msk [vmem:[%s6026_s8 + $0xea] sm:$0xff] %vm298_vm1, %v4067_v33 }
 0x239   : > { %v4071_v22 = vld [vmem:[%s6026_s8 + $0xfc] sm:$0xff] }
 0x23a   : > { %v4075_v45 = vadd.f32 %v4073_v32, %v4071_v22 }
 0x23b   : > { %v4080_v19 = vld [vmem:[%s6026_s8 + $0x116] sm:$0xff] }
 0x23c   : > { %4077 = vst.msk [vmem:[%s6026_s8 + $0xfc] sm:$0xff] %vm298_vm1, %v4075_v45  ;;  %v4084_v34 = vadd.f32 %v4082_v54, %v4080_v19 }
 0x23d   : > { %v4072_v15 = vld [vmem:[%s6026_s8 + $0x104] sm:$0xff]  ;;  %v4079_v38 = vld [vmem:[%s6026_s8 + $0x10e] sm:$0xff] }
 0x23e   : > { %4086 = vst.msk [vmem:[%s6026_s8 + $0x116] sm:$0xff] %vm298_vm1, %v4084_v34  ;;  %v4076_v37 = vadd.f32 %v4074_v60, %v4072_v15  ;;  %v4083_v5 = vadd.f32 %v4081_v12, %v4079_v38 }
 0x240   : > { %4078 = vst.msk [vmem:[%s6026_s8 + $0x104] sm:$0xff] %vm298_vm1, %v4076_v37  ;;  %4085 = vst.msk [vmem:[%s6026_s8 + $0x10e] sm:$0xff] %vm298_vm1, %v4083_v5 }
 0x241 PF: > { %s15_s20 = sadd.s32 1, %s5029_s20   ;;  %s6499_s18 = smov %s5025_s19 }
 0x242   : > { %p12_p5 = scmp.ge.s32.totalorder %s15_s20, 4   ;;  %s6500_s19 = smov %s6502_s21 }
 0x244   :  { %14 = sbr.rel (!%p12_p5) target bundleno = 2 (0x2), region = 88 }

</bundles_post_ra>
